<compile_context>
chip_gen: v7x
topology: tpu7x:2x2x1
jax: 0.10.0
libtpu: 0.0.40
codegen_flags: <defaults>
</compile_context>

<pallas_src>
import jax
import jax.numpy as jnp
from jax.experimental import pallas as pl
from jax.experimental.pallas import tpu as pltpu


# ----------------------------- Pallas kernel -------------------------------

def _conv_block(act, pad_ref, col_ref, row_ref, pool_ref, w_ref, epi_ref):
    """maxpool2(bn(leaky_relu(conv3x3(act)))) for a tile of B images.

    act:      (B, H, W, Cin)       value (any float dtype)
    pad_ref:  (B, H+2, W+2, Cin)   bf16 VMEM scratch (zero-padded activation)
    col_ref:  (B*H*W, 9*Cin)       bf16 VMEM scratch (im2col, 2D / MXU-ready)
    row_ref:  (B*H*W, Cout)        f32  VMEM scratch (conv+epilogue rows, (b,h,w) order)
    pool_ref: (B*H, W//2, Cout)    f32  VMEM scratch (w-pooled rows, (b,h) order)
    w_ref:    (9*Cin, Cout)        bf16 conv weight, tap-major rows (HWIO flattened)
    epi_ref:  (3, Cout)            f32  [bias; folded-BN scale; folded-BN shift]
    returns   (B, H//2, W//2, Cout) f32 value
    """
    B, Hp, Wp, Cin = pad_ref.shape
    H, W = Hp - 2, Wp - 2
    Ho, Wo = H // 2, W // 2
    Cout = w_ref.shape[1]
    M = B * H * W

    # Zero only the 1-element border; the interior is fully overwritten below.
    zr = jnp.zeros((B, 1, Wp, Cin), pad_ref.dtype)
    zc = jnp.zeros((B, Hp, 1, Cin), pad_ref.dtype)
    pad_ref[:, 0:1, :, :] = zr
    pad_ref[:, H + 1:H + 2, :, :] = zr
    pad_ref[:, :, 0:1, :] = zc
    pad_ref[:, :, W + 1:W + 2, :] = zc
    pad_ref[:, 1:H + 1, 1:W + 1, :] = act.astype(pad_ref.dtype)

    # In-kernel im2col straight into the 2D (M, 9*Cin) bf16 matrix: 9 shifted taps
    # gathered with static contiguous slices (rows ordered (b, h, w)).
    for dy in range(3):
        for dx in range(3):
            t = dy * 3 + dx
            col_ref[:, t * Cin:(t + 1) * Cin] = (
                pad_ref[:, dy:dy + H, dx:dx + W, :].reshape(M, Cin))

    # One MXU matmul per block: bf16 x bf16 -> f32 accumulate.
    y = jnp.dot(col_ref[...], w_ref[...], preferred_element_type=jnp.float32)

    # Fused epilogue (f32): conv bias + leaky_relu(0.01) + eval-mode BatchNorm affine.
    epi = epi_ref[...]
    y = y + epi[0:1, :]
    y = jnp.where(y >= 0.0, y, 0.01 * y)
    y = y * epi[1:2, :] + epi[2:3, :]

    # 2x2 max-pool as two pairwise maxima over stride-2 ref loads (no relayout
    # reshapes of the (M, Cout) matmul result).
    row_ref[...] = y                                            # rows (b, h, w)
    yw = jnp.maximum(row_ref[pl.ds(0, M // 2, 2), :],
                     row_ref[pl.ds(1, M // 2, 2), :])           # pool along w
    pool_ref[...] = yw.reshape(B * H, Wo, Cout)                 # rows (b, h)
    yp = jnp.maximum(pool_ref[pl.ds(0, B * Ho, 2), :, :],
                     pool_ref[pl.ds(1, B * Ho, 2), :, :])       # pool along h
    return yp.reshape(B, Ho, Wo, Cout)


def _kcnn_kernel(x_ref,
                 w1, e1, w2, e2, w3, e3, w4, e4,
                 fcw_ref, fcb_ref,
                 o_ref,
                 pad1, col1, row1, pool1,
                 pad2, col2, row2, pool2,
                 pad3, col3, row3, pool3,
                 pad4, col4, row4, pool4):
    act = x_ref[...]                                            # (B, H, W, C0) bf16
    act = _conv_block(act, pad1, col1, row1, pool1, w1, e1)
    act = _conv_block(act, pad2, col2, row2, pool2, w2, e2)
    act = _conv_block(act, pad3, col3, row3, pool3, w3, e3)
    act = _conv_block(act, pad4, col4, row4, pool4, w4, e4)
    # After 4 pools at width=16 the spatial dims are 1x1, so the NHWC flatten matches
    # torch's NCHW flatten exactly.
    B = act.shape[0]
    feat = act.reshape(B, act.shape[-1]).astype(jnp.bfloat16)
    # TODO(synk): nn.Dropout(p=0.1) is stochastic in train mode; eval-mode identity here.
    out = jnp.dot(feat, fcw_ref[...], preferred_element_type=jnp.float32) + fcb_ref[...]
    o_ref[...] = out.reshape(1, B, out.shape[-1])


# ------------------------------ JAX wrapper ---------------------------------

def _pick_batch_tile(n, max_tile=16):
    """Largest divisor of n (<= max_tile) that still leaves >= 2 grid steps, so the
    "parallel" batch axis can shard across both TensorCores on v7x."""
    best = 1
    for t in range(1, min(n, max_tile) + 1):
        if n % t == 0 and (n // t >= 2 or n == t == 1):
            best = t
    return best


def kcnn_forward(x_nchw, conv_params, fc_params, noutput=2, batch_tile=None):
    # NCHW -> NHWC + bf16 once in the wrapper (negligible at these shapes).
    # TODO(synk): at serving batch sizes keep activations NHWC upstream (or index the
    # NCHW array inside the im2col) to avoid this extra HBM pass.
    x = jnp.transpose(x_nchw, (0, 2, 3, 1)).astype(jnp.bfloat16)     # (N, H, W, C0)
    n, h, w, c0 = x.shape
    bt = _pick_batch_tile(n) if batch_tile is None else batch_tile
    assert n % bt == 0

    args = [x]
    in_specs = [pl.BlockSpec((bt, h, w, c0), lambda i: (i, 0, 0, 0))]
    scratch = []
    hh, ww, cin = h, w, c0
    for p in conv_params:
        cout = p["w"].shape[3]
        wk = p["w"].reshape(9 * cin, cout).astype(jnp.bfloat16)      # HWIO tap-major rows
        epi = jnp.stack([p["b"], p["scale"], p["shift"]]).astype(jnp.float32)  # (3, Cout)
        args += [wk, epi]
        in_specs += [pl.BlockSpec(wk.shape, lambda i: (0, 0)),
                     pl.BlockSpec(epi.shape, lambda i: (0, 0))]
        scratch += [
            pltpu.VMEM((bt, hh + 2, ww + 2, cin), jnp.bfloat16),     # zero-padded act
            pltpu.VMEM((bt * hh * ww, 9 * cin), jnp.bfloat16),       # im2col (2D)
            pltpu.VMEM((bt * hh * ww, cout), jnp.float32),           # conv+epilogue rows
            pltpu.VMEM((bt * hh, ww // 2, cout), jnp.float32),       # w-pooled rows
        ]
        hh, ww, cin = hh // 2, ww // 2, cout
    assert hh == 1 and ww == 1, (
        "flatten order only matches torch's NCHW flatten when final spatial is 1x1")

    fcw, fcb = fc_params
    fcw_b = fcw.astype(jnp.bfloat16)
    fcb_b = fcb.reshape(1, noutput).astype(jnp.float32)
    args += [fcw_b, fcb_b]
    in_specs += [pl.BlockSpec(fcw_b.shape, lambda i: (0, 0)),
                 pl.BlockSpec((1, noutput), lambda i: (0, 0))]

    out = pl.pallas_call(
        _kcnn_kernel,
        out_shape=jax.ShapeDtypeStruct((n // bt, bt, noutput), jnp.float32),
        grid=(n // bt,),
        in_specs=in_specs,
        out_specs=pl.BlockSpec((1, bt, noutput), lambda i: (i, 0, 0)),
        scratch_shapes=scratch,
        compiler_params=pltpu.CompilerParams(dimension_semantics=("parallel",)),
    )(*args)

    out = out.reshape(n, noutput)
    if noutput == 1:
        out = jnp.squeeze(out)
    return out


# --------------------------- pure-JAX reference -----------------------------

def kcnn_reference(x_nchw, conv_params, fc_params, noutput=2):
    """f32 reference (eval-mode BN folded, no dropout)."""
    x = jnp.transpose(x_nchw, (0, 2, 3, 1)).astype(jnp.float32)
    for p in conv_params:
        y = jax.lax.conv_general_dilated(
            x, p["w"].astype(jnp.float32), (1, 1), "SAME",
            dimension_numbers=("NHWC", "HWIO", "NHWC"))
        y = y + p["b"]
        y = jnp.where(y >= 0.0, y, 0.01 * y)
        y = y * p["scale"] + p["shift"]
        x = jax.lax.reduce_window(y, -jnp.inf, jax.lax.max,
                                  (1, 2, 2, 1), (1, 2, 2, 1), "VALID")
    feat = x.reshape(x.shape[0], -1)
    fcw, fcb = fc_params
    out = feat @ fcw + fcb
    if noutput == 1:
        out = jnp.squeeze(out)
    return out


# --------------------------- parameter generation ---------------------------

def init_params(key, depth, expansion=2, kernel=3, noutput=2):
    """Deterministic synthetic parameters matching KCNN's shapes (conv weights in HWIO)."""
    chi = depth * expansion
    channels = [depth, chi, chi * 2, chi * 4, chi * 8]
    eps = 1e-5
    conv_params = []
    for i in range(4):
        cin, cout = channels[i], channels[i + 1]
        key, k1, k2, k3, k4, k5, k6 = jax.random.split(key, 7)
        w = jax.random.normal(k1, (kernel, kernel, cin, cout), jnp.float32)
        w = w / jnp.sqrt(float(cin * kernel * kernel))
        b = 0.1 * jax.random.normal(k2, (cout,), jnp.float32)
        gamma = 1.0 + 0.1 * jax.random.normal(k3, (cout,), jnp.float32)
        beta = 0.1 * jax.random.normal(k4, (cout,), jnp.float32)
        rmean = 0.1 * jax.random.normal(k5, (cout,), jnp.float32)
        rvar = jnp.abs(1.0 + 0.1 * jax.random.normal(k6, (cout,), jnp.float32))
        scale = gamma / jnp.sqrt(rvar + eps)
        shift = beta - rmean * scale
        conv_params.append(dict(w=w, b=b, scale=scale, shift=shift))
    key, kw, kb = jax.random.split(key, 3)
    fcw = jax.random.normal(kw, (chi * 8, noutput), jnp.float32) / jnp.sqrt(float(chi * 8))
    fcb = 0.1 * jax.random.normal(kb, (noutput,), jnp.float32)
    return conv_params, (fcw, fcb)


if __name__ == "__main__":
    key = jax.random.PRNGKey(0)
    depth, width, batch = 4, 16, 2            # KCNN(depth=4, width=16)
    kx, kp = jax.random.split(key)
    x = jax.random.normal(kx, (batch, depth, width, width), jnp.float32)
    conv_params, fc_params = init_params(kp, depth)

    fwd = jax.jit(lambda inp: kcnn_forward(inp, conv_params, fc_params))
    out = fwd(x)
    jax.block_until_ready(out)
    assert out.shape == (batch, 2), out.shape
    assert bool(jnp.all(jnp.isfinite(out)))

    ref = kcnn_reference(x, conv_params, fc_params)
    err = float(jnp.max(jnp.abs(out - ref)))
    assert err < 0.5, f"kernel/reference mismatch: max|diff|={err}"   # bf16 matmul path
    print("KERNEL_OK")
</pallas_src>

<mosaic_0001>
module attributes {stable_mosaic.version = 11 : i64} {
  func.func @_kcnn_kernel(%arg0: i32, %arg1: memref<1x16x16x4xbf16, #tpu.memory_space<vmem>>, %arg2: memref<36x8xbf16, #tpu.memory_space<vmem>>, %arg3: memref<3x8xf32, #tpu.memory_space<vmem>>, %arg4: memref<72x16xbf16, #tpu.memory_space<vmem>>, %arg5: memref<3x16xf32, #tpu.memory_space<vmem>>, %arg6: memref<144x32xbf16, #tpu.memory_space<vmem>>, %arg7: memref<3x32xf32, #tpu.memory_space<vmem>>, %arg8: memref<288x64xbf16, #tpu.memory_space<vmem>>, %arg9: memref<3x64xf32, #tpu.memory_space<vmem>>, %arg10: memref<64x2xbf16, #tpu.memory_space<vmem>>, %arg11: memref<1x2xf32, #tpu.memory_space<vmem>>, %arg12: memref<1x1x2xf32, #tpu.memory_space<vmem>>, %arg13: memref<1x18x18x4xbf16, #tpu.memory_space<vmem>>, %arg14: memref<256x36xbf16, #tpu.memory_space<vmem>>, %arg15: memref<256x8xf32, #tpu.memory_space<vmem>>, %arg16: memref<16x8x8xf32, #tpu.memory_space<vmem>>, %arg17: memref<1x10x10x8xbf16, #tpu.memory_space<vmem>>, %arg18: memref<64x72xbf16, #tpu.memory_space<vmem>>, %arg19: memref<64x16xf32, #tpu.memory_space<vmem>>, %arg20: memref<8x4x16xf32, #tpu.memory_space<vmem>>, %arg21: memref<1x6x6x16xbf16, #tpu.memory_space<vmem>>, %arg22: memref<16x144xbf16, #tpu.memory_space<vmem>>, %arg23: memref<16x32xf32, #tpu.memory_space<vmem>>, %arg24: memref<4x2x32xf32, #tpu.memory_space<vmem>>, %arg25: memref<1x4x4x32xbf16, #tpu.memory_space<vmem>>, %arg26: memref<4x288xbf16, #tpu.memory_space<vmem>>, %arg27: memref<4x64xf32, #tpu.memory_space<vmem>>, %arg28: memref<2x1x64xf32, #tpu.memory_space<vmem>>) attributes {dimension_semantics = [#tpu.dimension_semantics<parallel>], iteration_bounds = array<i64: 2>, scalar_prefetch = 0 : i64, scratch_operands = 16 : i64, tpu.core_type = #tpu.core_type<tc>, window_params = [{transform_indices = @transform_0, window_bounds = array<i64: 1, 16, 16, 4>}, {pipeline_mode = #tpu.pipeline_mode<synchronous>, transform_indices = @transform_1, window_bounds = array<i64: 36, 8>}, {pipeline_mode = #tpu.pipeline_mode<synchronous>, transform_indices = @transform_2, window_bounds = array<i64: 3, 8>}, {pipeline_mode = #tpu.pipeline_mode<synchronous>, transform_indices = @transform_3, window_bounds = array<i64: 72, 16>}, {pipeline_mode = #tpu.pipeline_mode<synchronous>, transform_indices = @transform_4, window_bounds = array<i64: 3, 16>}, {pipeline_mode = #tpu.pipeline_mode<synchronous>, transform_indices = @transform_5, window_bounds = array<i64: 144, 32>}, {pipeline_mode = #tpu.pipeline_mode<synchronous>, transform_indices = @transform_6, window_bounds = array<i64: 3, 32>}, {pipeline_mode = #tpu.pipeline_mode<synchronous>, transform_indices = @transform_7, window_bounds = array<i64: 288, 64>}, {pipeline_mode = #tpu.pipeline_mode<synchronous>, transform_indices = @transform_8, window_bounds = array<i64: 3, 64>}, {pipeline_mode = #tpu.pipeline_mode<synchronous>, transform_indices = @transform_9, window_bounds = array<i64: 64, 2>}, {pipeline_mode = #tpu.pipeline_mode<synchronous>, transform_indices = @transform_10, window_bounds = array<i64: 1, 2>}, {transform_indices = @transform_11, window_bounds = array<i64: 1, 1, 2>}]} {
    %c0 = arith.constant 0 : index
    %c0_0 = arith.constant 0 : index
    %c0_1 = arith.constant 0 : index
    %c0_2 = arith.constant 0 : index
    %0 = vector.load %arg1[%c0, %c0_0, %c0_1, %c0_2] : memref<1x16x16x4xbf16, #tpu.memory_space<vmem>>, vector<1x16x16x4xbf16>
    %cst = arith.constant 0.000000e+00 : bf16
    %1 = vector.broadcast %cst : bf16 to vector<1x1x18x4xbf16>
    %cst_3 = arith.constant 0.000000e+00 : bf16
    %2 = vector.broadcast %cst_3 : bf16 to vector<1x18x1x4xbf16>
    %c0_4 = arith.constant 0 : index
    %c0_5 = arith.constant 0 : index
    %c0_6 = arith.constant 0 : index
    %c0_7 = arith.constant 0 : index
    %3 = vector.load %arg13[%c0_4, %c0_5, %c0_6, %c0_7] : memref<1x18x18x4xbf16, #tpu.memory_space<vmem>>, vector<1x1x18x4xbf16>
    tpu.vector_store %arg13[%c0_4, %c0_5, %c0_6, %c0_7], %1 {strides = array<i32>} : memref<1x18x18x4xbf16, #tpu.memory_space<vmem>>, vector<1x1x18x4xbf16>,
    %c0_8 = arith.constant 0 : index
    %c17 = arith.constant 17 : index
    %c0_9 = arith.constant 0 : index
    %c0_10 = arith.constant 0 : index
    %4 = vector.load %arg13[%c0_8, %c17, %c0_9, %c0_10] : memref<1x18x18x4xbf16, #tpu.memory_space<vmem>>, vector<1x1x18x4xbf16>
    tpu.vector_store %arg13[%c0_8, %c17, %c0_9, %c0_10], %1 {strides = array<i32>} : memref<1x18x18x4xbf16, #tpu.memory_space<vmem>>, vector<1x1x18x4xbf16>,
    %c0_11 = arith.constant 0 : index
    %c0_12 = arith.constant 0 : index
    %c0_13 = arith.constant 0 : index
    %c0_14 = arith.constant 0 : index
    %5 = vector.load %arg13[%c0_11, %c0_12, %c0_13, %c0_14] : memref<1x18x18x4xbf16, #tpu.memory_space<vmem>>, vector<1x18x1x4xbf16>
    tpu.vector_store %arg13[%c0_11, %c0_12, %c0_13, %c0_14], %2 {strides = array<i32>} : memref<1x18x18x4xbf16, #tpu.memory_space<vmem>>, vector<1x18x1x4xbf16>,
    %c0_15 = arith.constant 0 : index
    %c0_16 = arith.constant 0 : index
    %c17_17 = arith.constant 17 : index
    %c0_18 = arith.constant 0 : index
    %6 = vector.load %arg13[%c0_15, %c0_16, %c17_17, %c0_18] : memref<1x18x18x4xbf16, #tpu.memory_space<vmem>>, vector<1x18x1x4xbf16>
    tpu.vector_store %arg13[%c0_15, %c0_16, %c17_17, %c0_18], %2 {strides = array<i32>} : memref<1x18x18x4xbf16, #tpu.memory_space<vmem>>, vector<1x18x1x4xbf16>,
    %c0_19 = arith.constant 0 : index
    %c1 = arith.constant 1 : index
    %c1_20 = arith.constant 1 : index
    %c0_21 = arith.constant 0 : index
    %7 = vector.load %arg13[%c0_19, %c1, %c1_20, %c0_21] : memref<1x18x18x4xbf16, #tpu.memory_space<vmem>>, vector<1x16x16x4xbf16>
    tpu.vector_store %arg13[%c0_19, %c1, %c1_20, %c0_21], %0 {strides = array<i32>} : memref<1x18x18x4xbf16, #tpu.memory_space<vmem>>, vector<1x16x16x4xbf16>,
    %c0_22 = arith.constant 0 : index
    %c0_23 = arith.constant 0 : index
    %c0_24 = arith.constant 0 : index
    %c0_25 = arith.constant 0 : index
    %8 = vector.load %arg13[%c0_22, %c0_23, %c0_24, %c0_25] : memref<1x18x18x4xbf16, #tpu.memory_space<vmem>>, vector<1x16x16x4xbf16>
    %9 = vector.shape_cast %8 : vector<1x16x16x4xbf16> to vector<256x4xbf16>
    %c0_26 = arith.constant 0 : index
    %c0_27 = arith.constant 0 : index
    %10 = vector.load %arg14[%c0_26, %c0_27] : memref<256x36xbf16, #tpu.memory_space<vmem>>, vector<256x4xbf16>
    tpu.vector_store %arg14[%c0_26, %c0_27], %9 {strides = array<i32>} : memref<256x36xbf16, #tpu.memory_space<vmem>>, vector<256x4xbf16>,
    %c0_28 = arith.constant 0 : index
    %c0_29 = arith.constant 0 : index
    %c1_30 = arith.constant 1 : index
    %c0_31 = arith.constant 0 : index
    %11 = vector.load %arg13[%c0_28, %c0_29, %c1_30, %c0_31] : memref<1x18x18x4xbf16, #tpu.memory_space<vmem>>, vector<1x16x16x4xbf16>
    %12 = vector.shape_cast %11 : vector<1x16x16x4xbf16> to vector<256x4xbf16>
    %c0_32 = arith.constant 0 : index
    %c4 = arith.constant 4 : index
    %13 = vector.load %arg14[%c0_32, %c4] : memref<256x36xbf16, #tpu.memory_space<vmem>>, vector<256x4xbf16>
    tpu.vector_store %arg14[%c0_32, %c4], %12 {strides = array<i32>} : memref<256x36xbf16, #tpu.memory_space<vmem>>, vector<256x4xbf16>,
    %c0_33 = arith.constant 0 : index
    %c0_34 = arith.constant 0 : index
    %c2 = arith.constant 2 : index
    %c0_35 = arith.constant 0 : index
    %14 = vector.load %arg13[%c0_33, %c0_34, %c2, %c0_35] : memref<1x18x18x4xbf16, #tpu.memory_space<vmem>>, vector<1x16x16x4xbf16>
    %15 = vector.shape_cast %14 : vector<1x16x16x4xbf16> to vector<256x4xbf16>
    %c0_36 = arith.constant 0 : index
    %c8 = arith.constant 8 : index
    %16 = vector.load %arg14[%c0_36, %c8] : memref<256x36xbf16, #tpu.memory_space<vmem>>, vector<256x4xbf16>
    tpu.vector_store %arg14[%c0_36, %c8], %15 {strides = array<i32>} : memref<256x36xbf16, #tpu.memory_space<vmem>>, vector<256x4xbf16>,
    %c0_37 = arith.constant 0 : index
    %c1_38 = arith.constant 1 : index
    %c0_39 = arith.constant 0 : index
    %c0_40 = arith.constant 0 : index
    %17 = vector.load %arg13[%c0_37, %c1_38, %c0_39, %c0_40] : memref<1x18x18x4xbf16, #tpu.memory_space<vmem>>, vector<1x16x16x4xbf16>
    %18 = vector.shape_cast %17 : vector<1x16x16x4xbf16> to vector<256x4xbf16>
    %c0_41 = arith.constant 0 : index
    %c12 = arith.constant 12 : index
    %19 = vector.load %arg14[%c0_41, %c12] : memref<256x36xbf16, #tpu.memory_space<vmem>>, vector<256x4xbf16>
    tpu.vector_store %arg14[%c0_41, %c12], %18 {strides = array<i32>} : memref<256x36xbf16, #tpu.memory_space<vmem>>, vector<256x4xbf16>,
    %c0_42 = arith.constant 0 : index
    %c1_43 = arith.constant 1 : index
    %c1_44 = arith.constant 1 : index
    %c0_45 = arith.constant 0 : index
    %20 = vector.load %arg13[%c0_42, %c1_43, %c1_44, %c0_45] : memref<1x18x18x4xbf16, #tpu.memory_space<vmem>>, vector<1x16x16x4xbf16>
    %21 = vector.shape_cast %20 : vector<1x16x16x4xbf16> to vector<256x4xbf16>
    %c0_46 = arith.constant 0 : index
    %c16 = arith.constant 16 : index
    %22 = vector.load %arg14[%c0_46, %c16] : memref<256x36xbf16, #tpu.memory_space<vmem>>, vector<256x4xbf16>
    tpu.vector_store %arg14[%c0_46, %c16], %21 {strides = array<i32>} : memref<256x36xbf16, #tpu.memory_space<vmem>>, vector<256x4xbf16>,
    %c0_47 = arith.constant 0 : index
    %c1_48 = arith.constant 1 : index
    %c2_49 = arith.constant 2 : index
    %c0_50 = arith.constant 0 : index
    %23 = vector.load %arg13[%c0_47, %c1_48, %c2_49, %c0_50] : memref<1x18x18x4xbf16, #tpu.memory_space<vmem>>, vector<1x16x16x4xbf16>
    %24 = vector.shape_cast %23 : vector<1x16x16x4xbf16> to vector<256x4xbf16>
    %c0_51 = arith.constant 0 : index
    %c20 = arith.constant 20 : index
    %25 = vector.load %arg14[%c0_51, %c20] : memref<256x36xbf16, #tpu.memory_space<vmem>>, vector<256x4xbf16>
    tpu.vector_store %arg14[%c0_51, %c20], %24 {strides = array<i32>} : memref<256x36xbf16, #tpu.memory_space<vmem>>, vector<256x4xbf16>,
    %c0_52 = arith.constant 0 : index
    %c2_53 = arith.constant 2 : index
    %c0_54 = arith.constant 0 : index
    %c0_55 = arith.constant 0 : index
    %26 = vector.load %arg13[%c0_52, %c2_53, %c0_54, %c0_55] : memref<1x18x18x4xbf16, #tpu.memory_space<vmem>>, vector<1x16x16x4xbf16>
    %27 = vector.shape_cast %26 : vector<1x16x16x4xbf16> to vector<256x4xbf16>
    %c0_56 = arith.constant 0 : index
    %c24 = arith.constant 24 : index
    %28 = vector.load %arg14[%c0_56, %c24] : memref<256x36xbf16, #tpu.memory_space<vmem>>, vector<256x4xbf16>
    tpu.vector_store %arg14[%c0_56, %c24], %27 {strides = array<i32>} : memref<256x36xbf16, #tpu.memory_space<vmem>>, vector<256x4xbf16>,
    %c0_57 = arith.constant 0 : index
    %c2_58 = arith.constant 2 : index
    %c1_59 = arith.constant 1 : index
    %c0_60 = arith.constant 0 : index
    %29 = vector.load %arg13[%c0_57, %c2_58, %c1_59, %c0_60] : memref<1x18x18x4xbf16, #tpu.memory_space<vmem>>, vector<1x16x16x4xbf16>
    %30 = vector.shape_cast %29 : vector<1x16x16x4xbf16> to vector<256x4xbf16>
    %c0_61 = arith.constant 0 : index
    %c28 = arith.constant 28 : index
    %31 = vector.load %arg14[%c0_61, %c28] : memref<256x36xbf16, #tpu.memory_space<vmem>>, vector<256x4xbf16>
    tpu.vector_store %arg14[%c0_61, %c28], %30 {strides = array<i32>} : memref<256x36xbf16, #tpu.memory_space<vmem>>, vector<256x4xbf16>,
    %c0_62 = arith.constant 0 : index
    %c2_63 = arith.constant 2 : index
    %c2_64 = arith.constant 2 : index
    %c0_65 = arith.constant 0 : index
    %32 = vector.load %arg13[%c0_62, %c2_63, %c2_64, %c0_65] : memref<1x18x18x4xbf16, #tpu.memory_space<vmem>>, vector<1x16x16x4xbf16>
    %33 = vector.shape_cast %32 : vector<1x16x16x4xbf16> to vector<256x4xbf16>
    %c0_66 = arith.constant 0 : index
    %c32 = arith.constant 32 : index
    %34 = vector.load %arg14[%c0_66, %c32] : memref<256x36xbf16, #tpu.memory_space<vmem>>, vector<256x4xbf16>
    tpu.vector_store %arg14[%c0_66, %c32], %33 {strides = array<i32>} : memref<256x36xbf16, #tpu.memory_space<vmem>>, vector<256x4xbf16>,
    %c0_67 = arith.constant 0 : index
    %c0_68 = arith.constant 0 : index
    %35 = vector.load %arg14[%c0_67, %c0_68] : memref<256x36xbf16, #tpu.memory_space<vmem>>, vector<256x36xbf16>
    %c0_69 = arith.constant 0 : index
    %c0_70 = arith.constant 0 : index
    %36 = vector.load %arg2[%c0_69, %c0_70] : memref<36x8xbf16, #tpu.memory_space<vmem>>, vector<36x8xbf16>
    %cst_71 = arith.constant dense<0.000000e+00> : vector<256x8xf32>
    %37 = tpu.matmul %35, %36, %cst_71 {dimension_numbers = #tpu.dot_dimension_numbers<[1], [0], [0], [1], [0, 0, 1, 1], [], []>} : vector<256x36xbf16>, vector<36x8xbf16>, vector<256x8xf32> -> vector<256x8xf32>
    %c0_72 = arith.constant 0 : index
    %c0_73 = arith.constant 0 : index
    %38 = vector.load %arg3[%c0_72, %c0_73] : memref<3x8xf32, #tpu.memory_space<vmem>>, vector<3x8xf32>
    %39 = vector.extract_strided_slice %38 {offsets = [0, 0], sizes = [1, 8], strides = [1, 1]} : vector<3x8xf32> to vector<1x8xf32>
    %40 = vector.broadcast %39 : vector<1x8xf32> to vector<256x8xf32>
    %41 = arith.addf %37, %40 : vector<256x8xf32>
    %cst_74 = arith.constant 0.000000e+00 : f32
    %42 = vector.broadcast %cst_74 : f32 to vector<256x8xf32>
    %43 = arith.cmpf oge, %41, %42 : vector<256x8xf32>
    %cst_75 = arith.constant 0.00999999977 : f32
    %44 = vector.broadcast %cst_75 : f32 to vector<256x8xf32>
    %45 = arith.mulf %44, %41 : vector<256x8xf32>
    %46 = arith.select %43, %41, %45 : vector<256x8xi1>, vector<256x8xf32>
    %47 = vector.extract_strided_slice %38 {offsets = [1, 0], sizes = [1, 8], strides = [1, 1]} : vector<3x8xf32> to vector<1x8xf32>
    %48 = vector.broadcast %47 : vector<1x8xf32> to vector<256x8xf32>
    %49 = arith.mulf %46, %48 : vector<256x8xf32>
    %50 = vector.extract_strided_slice %38 {offsets = [2, 0], sizes = [1, 8], strides = [1, 1]} : vector<3x8xf32> to vector<1x8xf32>
    %51 = vector.broadcast %50 : vector<1x8xf32> to vector<256x8xf32>
    %52 = arith.addf %49, %51 : vector<256x8xf32>
    %c0_76 = arith.constant 0 : index
    %c0_77 = arith.constant 0 : index
    %53 = vector.load %arg15[%c0_76, %c0_77] : memref<256x8xf32, #tpu.memory_space<vmem>>, vector<256x8xf32>
    tpu.vector_store %arg15[%c0_76, %c0_77], %52 {strides = array<i32>} : memref<256x8xf32, #tpu.memory_space<vmem>>, vector<256x8xf32>,
    %c0_78 = arith.constant 0 : index
    %c0_79 = arith.constant 0 : index
    %54 = tpu.strided_load %arg15[%c0_78, %c0_79] {strides = array<i32: 2, 1>} : memref<256x8xf32, #tpu.memory_space<vmem>>, vector<128x8xf32>
    %c1_80 = arith.constant 1 : index
    %c0_81 = arith.constant 0 : index
    %55 = tpu.strided_load %arg15[%c1_80, %c0_81] {strides = array<i32: 2, 1>} : memref<256x8xf32, #tpu.memory_space<vmem>>, vector<128x8xf32>
    %56 = arith.maximumf %54, %55 : vector<128x8xf32>
    %57 = vector.shape_cast %56 : vector<128x8xf32> to vector<16x8x8xf32>
    %c0_82 = arith.constant 0 : index
    %c0_83 = arith.constant 0 : index
    %c0_84 = arith.constant 0 : index
    %58 = vector.load %arg16[%c0_82, %c0_83, %c0_84] : memref<16x8x8xf32, #tpu.memory_space<vmem>>, vector<16x8x8xf32>
    tpu.vector_store %arg16[%c0_82, %c0_83, %c0_84], %57 {strides = array<i32>} : memref<16x8x8xf32, #tpu.memory_space<vmem>>, vector<16x8x8xf32>,
    %c0_85 = arith.constant 0 : index
    %c0_86 = arith.constant 0 : index
    %c0_87 = arith.constant 0 : index
    %59 = tpu.strided_load %arg16[%c0_85, %c0_86, %c0_87] {strides = array<i32: 2, 1, 1>} : memref<16x8x8xf32, #tpu.memory_space<vmem>>, vector<8x8x8xf32>
    %c1_88 = arith.constant 1 : index
    %c0_89 = arith.constant 0 : index
    %c0_90 = arith.constant 0 : index
    %60 = tpu.strided_load %arg16[%c1_88, %c0_89, %c0_90] {strides = array<i32: 2, 1, 1>} : memref<16x8x8xf32, #tpu.memory_space<vmem>>, vector<8x8x8xf32>
    %61 = arith.maximumf %59, %60 : vector<8x8x8xf32>
    %62 = vector.shape_cast %61 : vector<8x8x8xf32> to vector<1x8x8x8xf32>
    %cst_91 = arith.constant 0.000000e+00 : bf16
    %63 = vector.broadcast %cst_91 : bf16 to vector<1x1x10x8xbf16>
    %cst_92 = arith.constant 0.000000e+00 : bf16
    %64 = vector.broadcast %cst_92 : bf16 to vector<1x10x1x8xbf16>
    %c0_93 = arith.constant 0 : index
    %c0_94 = arith.constant 0 : index
    %c0_95 = arith.constant 0 : index
    %c0_96 = arith.constant 0 : index
    %65 = vector.load %arg17[%c0_93, %c0_94, %c0_95, %c0_96] : memref<1x10x10x8xbf16, #tpu.memory_space<vmem>>, vector<1x1x10x8xbf16>
    tpu.vector_store %arg17[%c0_93, %c0_94, %c0_95, %c0_96], %63 {strides = array<i32>} : memref<1x10x10x8xbf16, #tpu.memory_space<vmem>>, vector<1x1x10x8xbf16>,
    %c0_97 = arith.constant 0 : index
    %c9 = arith.constant 9 : index
    %c0_98 = arith.constant 0 : index
    %c0_99 = arith.constant 0 : index
    %66 = vector.load %arg17[%c0_97, %c9, %c0_98, %c0_99] : memref<1x10x10x8xbf16, #tpu.memory_space<vmem>>, vector<1x1x10x8xbf16>
    tpu.vector_store %arg17[%c0_97, %c9, %c0_98, %c0_99], %63 {strides = array<i32>} : memref<1x10x10x8xbf16, #tpu.memory_space<vmem>>, vector<1x1x10x8xbf16>,
    %c0_100 = arith.constant 0 : index
    %c0_101 = arith.constant 0 : index
    %c0_102 = arith.constant 0 : index
    %c0_103 = arith.constant 0 : index
    %67 = vector.load %arg17[%c0_100, %c0_101, %c0_102, %c0_103] : memref<1x10x10x8xbf16, #tpu.memory_space<vmem>>, vector<1x10x1x8xbf16>
    tpu.vector_store %arg17[%c0_100, %c0_101, %c0_102, %c0_103], %64 {strides = array<i32>} : memref<1x10x10x8xbf16, #tpu.memory_space<vmem>>, vector<1x10x1x8xbf16>,
    %c0_104 = arith.constant 0 : index
    %c0_105 = arith.constant 0 : index
    %c9_106 = arith.constant 9 : index
    %c0_107 = arith.constant 0 : index
    %68 = vector.load %arg17[%c0_104, %c0_105, %c9_106, %c0_107] : memref<1x10x10x8xbf16, #tpu.memory_space<vmem>>, vector<1x10x1x8xbf16>
    tpu.vector_store %arg17[%c0_104, %c0_105, %c9_106, %c0_107], %64 {strides = array<i32>} : memref<1x10x10x8xbf16, #tpu.memory_space<vmem>>, vector<1x10x1x8xbf16>,
    %69 = arith.truncf %62 : vector<1x8x8x8xf32> to vector<1x8x8x8xbf16>
    %c0_108 = arith.constant 0 : index
    %c1_109 = arith.constant 1 : index
    %c1_110 = arith.constant 1 : index
    %c0_111 = arith.constant 0 : index
    %70 = vector.load %arg17[%c0_108, %c1_109, %c1_110, %c0_111] : memref<1x10x10x8xbf16, #tpu.memory_space<vmem>>, vector<1x8x8x8xbf16>
    tpu.vector_store %arg17[%c0_108, %c1_109, %c1_110, %c0_111], %69 {strides = array<i32>} : memref<1x10x10x8xbf16, #tpu.memory_space<vmem>>, vector<1x8x8x8xbf16>,
    %c0_112 = arith.constant 0 : index
    %c0_113 = arith.constant 0 : index
    %c0_114 = arith.constant 0 : index
    %c0_115 = arith.constant 0 : index
    %71 = vector.load %arg17[%c0_112, %c0_113, %c0_114, %c0_115] : memref<1x10x10x8xbf16, #tpu.memory_space<vmem>>, vector<1x8x8x8xbf16>
    %72 = vector.shape_cast %71 : vector<1x8x8x8xbf16> to vector<64x8xbf16>
    %c0_116 = arith.constant 0 : index
    %c0_117 = arith.constant 0 : index
    %73 = vector.load %arg18[%c0_116, %c0_117] : memref<64x72xbf16, #tpu.memory_space<vmem>>, vector<64x8xbf16>
    tpu.vector_store %arg18[%c0_116, %c0_117], %72 {strides = array<i32>} : memref<64x72xbf16, #tpu.memory_space<vmem>>, vector<64x8xbf16>,
    %c0_118 = arith.constant 0 : index
    %c0_119 = arith.constant 0 : index
    %c1_120 = arith.constant 1 : index
    %c0_121 = arith.constant 0 : index
    %74 = vector.load %arg17[%c0_118, %c0_119, %c1_120, %c0_121] : memref<1x10x10x8xbf16, #tpu.memory_space<vmem>>, vector<1x8x8x8xbf16>
    %75 = vector.shape_cast %74 : vector<1x8x8x8xbf16> to vector<64x8xbf16>
    %c0_122 = arith.constant 0 : index
    %c8_123 = arith.constant 8 : index
    %76 = vector.load %arg18[%c0_122, %c8_123] : memref<64x72xbf16, #tpu.memory_space<vmem>>, vector<64x8xbf16>
    tpu.vector_store %arg18[%c0_122, %c8_123], %75 {strides = array<i32>} : memref<64x72xbf16, #tpu.memory_space<vmem>>, vector<64x8xbf16>,
    %c0_124 = arith.constant 0 : index
    %c0_125 = arith.constant 0 : index
    %c2_126 = arith.constant 2 : index
    %c0_127 = arith.constant 0 : index
    %77 = vector.load %arg17[%c0_124, %c0_125, %c2_126, %c0_127] : memref<1x10x10x8xbf16, #tpu.memory_space<vmem>>, vector<1x8x8x8xbf16>
    %78 = vector.shape_cast %77 : vector<1x8x8x8xbf16> to vector<64x8xbf16>
    %c0_128 = arith.constant 0 : index
    %c16_129 = arith.constant 16 : index
    %79 = vector.load %arg18[%c0_128, %c16_129] : memref<64x72xbf16, #tpu.memory_space<vmem>>, vector<64x8xbf16>
    tpu.vector_store %arg18[%c0_128, %c16_129], %78 {strides = array<i32>} : memref<64x72xbf16, #tpu.memory_space<vmem>>, vector<64x8xbf16>,
    %c0_130 = arith.constant 0 : index
    %c1_131 = arith.constant 1 : index
    %c0_132 = arith.constant 0 : index
    %c0_133 = arith.constant 0 : index
    %80 = vector.load %arg17[%c0_130, %c1_131, %c0_132, %c0_133] : memref<1x10x10x8xbf16, #tpu.memory_space<vmem>>, vector<1x8x8x8xbf16>
    %81 = vector.shape_cast %80 : vector<1x8x8x8xbf16> to vector<64x8xbf16>
    %c0_134 = arith.constant 0 : index
    %c24_135 = arith.constant 24 : index
    %82 = vector.load %arg18[%c0_134, %c24_135] : memref<64x72xbf16, #tpu.memory_space<vmem>>, vector<64x8xbf16>
    tpu.vector_store %arg18[%c0_134, %c24_135], %81 {strides = array<i32>} : memref<64x72xbf16, #tpu.memory_space<vmem>>, vector<64x8xbf16>,
    %c0_136 = arith.constant 0 : index
    %c1_137 = arith.constant 1 : index
    %c1_138 = arith.constant 1 : index
    %c0_139 = arith.constant 0 : index
    %83 = vector.load %arg17[%c0_136, %c1_137, %c1_138, %c0_139] : memref<1x10x10x8xbf16, #tpu.memory_space<vmem>>, vector<1x8x8x8xbf16>
    %84 = vector.shape_cast %83 : vector<1x8x8x8xbf16> to vector<64x8xbf16>
    %c0_140 = arith.constant 0 : index
    %c32_141 = arith.constant 32 : index
    %85 = vector.load %arg18[%c0_140, %c32_141] : memref<64x72xbf16, #tpu.memory_space<vmem>>, vector<64x8xbf16>
    tpu.vector_store %arg18[%c0_140, %c32_141], %84 {strides = array<i32>} : memref<64x72xbf16, #tpu.memory_space<vmem>>, vector<64x8xbf16>,
    %c0_142 = arith.constant 0 : index
    %c1_143 = arith.constant 1 : index
    %c2_144 = arith.constant 2 : index
    %c0_145 = arith.constant 0 : index
    %86 = vector.load %arg17[%c0_142, %c1_143, %c2_144, %c0_145] : memref<1x10x10x8xbf16, #tpu.memory_space<vmem>>, vector<1x8x8x8xbf16>
    %87 = vector.shape_cast %86 : vector<1x8x8x8xbf16> to vector<64x8xbf16>
    %c0_146 = arith.constant 0 : index
    %c40 = arith.constant 40 : index
    %88 = vector.load %arg18[%c0_146, %c40] : memref<64x72xbf16, #tpu.memory_space<vmem>>, vector<64x8xbf16>
    tpu.vector_store %arg18[%c0_146, %c40], %87 {strides = array<i32>} : memref<64x72xbf16, #tpu.memory_space<vmem>>, vector<64x8xbf16>,
    %c0_147 = arith.constant 0 : index
    %c2_148 = arith.constant 2 : index
    %c0_149 = arith.constant 0 : index
    %c0_150 = arith.constant 0 : index
    %89 = vector.load %arg17[%c0_147, %c2_148, %c0_149, %c0_150] : memref<1x10x10x8xbf16, #tpu.memory_space<vmem>>, vector<1x8x8x8xbf16>
    %90 = vector.shape_cast %89 : vector<1x8x8x8xbf16> to vector<64x8xbf16>
    %c0_151 = arith.constant 0 : index
    %c48 = arith.constant 48 : index
    %91 = vector.load %arg18[%c0_151, %c48] : memref<64x72xbf16, #tpu.memory_space<vmem>>, vector<64x8xbf16>
    tpu.vector_store %arg18[%c0_151, %c48], %90 {strides = array<i32>} : memref<64x72xbf16, #tpu.memory_space<vmem>>, vector<64x8xbf16>,
    %c0_152 = arith.constant 0 : index
    %c2_153 = arith.constant 2 : index
    %c1_154 = arith.constant 1 : index
    %c0_155 = arith.constant 0 : index
    %92 = vector.load %arg17[%c0_152, %c2_153, %c1_154, %c0_155] : memref<1x10x10x8xbf16, #tpu.memory_space<vmem>>, vector<1x8x8x8xbf16>
    %93 = vector.shape_cast %92 : vector<1x8x8x8xbf16> to vector<64x8xbf16>
    %c0_156 = arith.constant 0 : index
    %c56 = arith.constant 56 : index
    %94 = vector.load %arg18[%c0_156, %c56] : memref<64x72xbf16, #tpu.memory_space<vmem>>, vector<64x8xbf16>
    tpu.vector_store %arg18[%c0_156, %c56], %93 {strides = array<i32>} : memref<64x72xbf16, #tpu.memory_space<vmem>>, vector<64x8xbf16>,
    %c0_157 = arith.constant 0 : index
    %c2_158 = arith.constant 2 : index
    %c2_159 = arith.constant 2 : index
    %c0_160 = arith.constant 0 : index
    %95 = vector.load %arg17[%c0_157, %c2_158, %c2_159, %c0_160] : memref<1x10x10x8xbf16, #tpu.memory_space<vmem>>, vector<1x8x8x8xbf16>
    %96 = vector.shape_cast %95 : vector<1x8x8x8xbf16> to vector<64x8xbf16>
    %c0_161 = arith.constant 0 : index
    %c64 = arith.constant 64 : index
    %97 = vector.load %arg18[%c0_161, %c64] : memref<64x72xbf16, #tpu.memory_space<vmem>>, vector<64x8xbf16>
    tpu.vector_store %arg18[%c0_161, %c64], %96 {strides = array<i32>} : memref<64x72xbf16, #tpu.memory_space<vmem>>, vector<64x8xbf16>,
    %c0_162 = arith.constant 0 : index
    %c0_163 = arith.constant 0 : index
    %98 = vector.load %arg18[%c0_162, %c0_163] : memref<64x72xbf16, #tpu.memory_space<vmem>>, vector<64x72xbf16>
    %c0_164 = arith.constant 0 : index
    %c0_165 = arith.constant 0 : index
    %99 = vector.load %arg4[%c0_164, %c0_165] : memref<72x16xbf16, #tpu.memory_space<vmem>>, vector<72x16xbf16>
    %cst_166 = arith.constant dense<0.000000e+00> : vector<64x16xf32>
    %100 = tpu.matmul %98, %99, %cst_166 {dimension_numbers = #tpu.dot_dimension_numbers<[1], [0], [0], [1], [0, 0, 1, 1], [], []>} : vector<64x72xbf16>, vector<72x16xbf16>, vector<64x16xf32> -> vector<64x16xf32>
    %c0_167 = arith.constant 0 : index
    %c0_168 = arith.constant 0 : index
    %101 = vector.load %arg5[%c0_167, %c0_168] : memref<3x16xf32, #tpu.memory_space<vmem>>, vector<3x16xf32>
    %102 = vector.extract_strided_slice %101 {offsets = [0, 0], sizes = [1, 16], strides = [1, 1]} : vector<3x16xf32> to vector<1x16xf32>
    %103 = vector.broadcast %102 : vector<1x16xf32> to vector<64x16xf32>
    %104 = arith.addf %100, %103 : vector<64x16xf32>
    %cst_169 = arith.constant 0.000000e+00 : f32
    %105 = vector.broadcast %cst_169 : f32 to vector<64x16xf32>
    %106 = arith.cmpf oge, %104, %105 : vector<64x16xf32>
    %cst_170 = arith.constant 0.00999999977 : f32
    %107 = vector.broadcast %cst_170 : f32 to vector<64x16xf32>
    %108 = arith.mulf %107, %104 : vector<64x16xf32>
    %109 = arith.select %106, %104, %108 : vector<64x16xi1>, vector<64x16xf32>
    %110 = vector.extract_strided_slice %101 {offsets = [1, 0], sizes = [1, 16], strides = [1, 1]} : vector<3x16xf32> to vector<1x16xf32>
    %111 = vector.broadcast %110 : vector<1x16xf32> to vector<64x16xf32>
    %112 = arith.mulf %109, %111 : vector<64x16xf32>
    %113 = vector.extract_strided_slice %101 {offsets = [2, 0], sizes = [1, 16], strides = [1, 1]} : vector<3x16xf32> to vector<1x16xf32>
    %114 = vector.broadcast %113 : vector<1x16xf32> to vector<64x16xf32>
    %115 = arith.addf %112, %114 : vector<64x16xf32>
    %c0_171 = arith.constant 0 : index
    %c0_172 = arith.constant 0 : index
    %116 = vector.load %arg19[%c0_171, %c0_172] : memref<64x16xf32, #tpu.memory_space<vmem>>, vector<64x16xf32>
    tpu.vector_store %arg19[%c0_171, %c0_172], %115 {strides = array<i32>} : memref<64x16xf32, #tpu.memory_space<vmem>>, vector<64x16xf32>,
    %c0_173 = arith.constant 0 : index
    %c0_174 = arith.constant 0 : index
    %117 = tpu.strided_load %arg19[%c0_173, %c0_174] {strides = array<i32: 2, 1>} : memref<64x16xf32, #tpu.memory_space<vmem>>, vector<32x16xf32>
    %c1_175 = arith.constant 1 : index
    %c0_176 = arith.constant 0 : index
    %118 = tpu.strided_load %arg19[%c1_175, %c0_176] {strides = array<i32: 2, 1>} : memref<64x16xf32, #tpu.memory_space<vmem>>, vector<32x16xf32>
    %119 = arith.maximumf %117, %118 : vector<32x16xf32>
    %120 = vector.shape_cast %119 : vector<32x16xf32> to vector<8x4x16xf32>
    %c0_177 = arith.constant 0 : index
    %c0_178 = arith.constant 0 : index
    %c0_179 = arith.constant 0 : index
    %121 = vector.load %arg20[%c0_177, %c0_178, %c0_179] : memref<8x4x16xf32, #tpu.memory_space<vmem>>, vector<8x4x16xf32>
    tpu.vector_store %arg20[%c0_177, %c0_178, %c0_179], %120 {strides = array<i32>} : memref<8x4x16xf32, #tpu.memory_space<vmem>>, vector<8x4x16xf32>,
    %c0_180 = arith.constant 0 : index
    %c0_181 = arith.constant 0 : index
    %c0_182 = arith.constant 0 : index
    %122 = tpu.strided_load %arg20[%c0_180, %c0_181, %c0_182] {strides = array<i32: 2, 1, 1>} : memref<8x4x16xf32, #tpu.memory_space<vmem>>, vector<4x4x16xf32>
    %c1_183 = arith.constant 1 : index
    %c0_184 = arith.constant 0 : index
    %c0_185 = arith.constant 0 : index
    %123 = tpu.strided_load %arg20[%c1_183, %c0_184, %c0_185] {strides = array<i32: 2, 1, 1>} : memref<8x4x16xf32, #tpu.memory_space<vmem>>, vector<4x4x16xf32>
    %124 = arith.maximumf %122, %123 : vector<4x4x16xf32>
    %125 = vector.shape_cast %124 : vector<4x4x16xf32> to vector<1x4x4x16xf32>
    %cst_186 = arith.constant 0.000000e+00 : bf16
    %126 = vector.broadcast %cst_186 : bf16 to vector<1x1x6x16xbf16>
    %cst_187 = arith.constant 0.000000e+00 : bf16
    %127 = vector.broadcast %cst_187 : bf16 to vector<1x6x1x16xbf16>
    %c0_188 = arith.constant 0 : index
    %c0_189 = arith.constant 0 : index
    %c0_190 = arith.constant 0 : index
    %c0_191 = arith.constant 0 : index
    %128 = vector.load %arg21[%c0_188, %c0_189, %c0_190, %c0_191] : memref<1x6x6x16xbf16, #tpu.memory_space<vmem>>, vector<1x1x6x16xbf16>
    tpu.vector_store %arg21[%c0_188, %c0_189, %c0_190, %c0_191], %126 {strides = array<i32>} : memref<1x6x6x16xbf16, #tpu.memory_space<vmem>>, vector<1x1x6x16xbf16>,
    %c0_192 = arith.constant 0 : index
    %c5 = arith.constant 5 : index
    %c0_193 = arith.constant 0 : index
    %c0_194 = arith.constant 0 : index
    %129 = vector.load %arg21[%c0_192, %c5, %c0_193, %c0_194] : memref<1x6x6x16xbf16, #tpu.memory_space<vmem>>, vector<1x1x6x16xbf16>
    tpu.vector_store %arg21[%c0_192, %c5, %c0_193, %c0_194], %126 {strides = array<i32>} : memref<1x6x6x16xbf16, #tpu.memory_space<vmem>>, vector<1x1x6x16xbf16>,
    %c0_195 = arith.constant 0 : index
    %c0_196 = arith.constant 0 : index
    %c0_197 = arith.constant 0 : index
    %c0_198 = arith.constant 0 : index
    %130 = vector.load %arg21[%c0_195, %c0_196, %c0_197, %c0_198] : memref<1x6x6x16xbf16, #tpu.memory_space<vmem>>, vector<1x6x1x16xbf16>
    tpu.vector_store %arg21[%c0_195, %c0_196, %c0_197, %c0_198], %127 {strides = array<i32>} : memref<1x6x6x16xbf16, #tpu.memory_space<vmem>>, vector<1x6x1x16xbf16>,
    %c0_199 = arith.constant 0 : index
    %c0_200 = arith.constant 0 : index
    %c5_201 = arith.constant 5 : index
    %c0_202 = arith.constant 0 : index
    %131 = vector.load %arg21[%c0_199, %c0_200, %c5_201, %c0_202] : memref<1x6x6x16xbf16, #tpu.memory_space<vmem>>, vector<1x6x1x16xbf16>
    tpu.vector_store %arg21[%c0_199, %c0_200, %c5_201, %c0_202], %127 {strides = array<i32>} : memref<1x6x6x16xbf16, #tpu.memory_space<vmem>>, vector<1x6x1x16xbf16>,
    %132 = arith.truncf %125 : vector<1x4x4x16xf32> to vector<1x4x4x16xbf16>
    %c0_203 = arith.constant 0 : index
    %c1_204 = arith.constant 1 : index
    %c1_205 = arith.constant 1 : index
    %c0_206 = arith.constant 0 : index
    %133 = vector.load %arg21[%c0_203, %c1_204, %c1_205, %c0_206] : memref<1x6x6x16xbf16, #tpu.memory_space<vmem>>, vector<1x4x4x16xbf16>
    tpu.vector_store %arg21[%c0_203, %c1_204, %c1_205, %c0_206], %132 {strides = array<i32>} : memref<1x6x6x16xbf16, #tpu.memory_space<vmem>>, vector<1x4x4x16xbf16>,
    %c0_207 = arith.constant 0 : index
    %c0_208 = arith.constant 0 : index
    %c0_209 = arith.constant 0 : index
    %c0_210 = arith.constant 0 : index
    %134 = vector.load %arg21[%c0_207, %c0_208, %c0_209, %c0_210] : memref<1x6x6x16xbf16, #tpu.memory_space<vmem>>, vector<1x4x4x16xbf16>
    %135 = vector.shape_cast %134 : vector<1x4x4x16xbf16> to vector<16x16xbf16>
    %c0_211 = arith.constant 0 : index
    %c0_212 = arith.constant 0 : index
    %136 = vector.load %arg22[%c0_211, %c0_212] : memref<16x144xbf16, #tpu.memory_space<vmem>>, vector<16x16xbf16>
    tpu.vector_store %arg22[%c0_211, %c0_212], %135 {strides = array<i32>} : memref<16x144xbf16, #tpu.memory_space<vmem>>, vector<16x16xbf16>,
    %c0_213 = arith.constant 0 : index
    %c0_214 = arith.constant 0 : index
    %c1_215 = arith.constant 1 : index
    %c0_216 = arith.constant 0 : index
    %137 = vector.load %arg21[%c0_213, %c0_214, %c1_215, %c0_216] : memref<1x6x6x16xbf16, #tpu.memory_space<vmem>>, vector<1x4x4x16xbf16>
    %138 = vector.shape_cast %137 : vector<1x4x4x16xbf16> to vector<16x16xbf16>
    %c0_217 = arith.constant 0 : index
    %c16_218 = arith.constant 16 : index
    %139 = vector.load %arg22[%c0_217, %c16_218] : memref<16x144xbf16, #tpu.memory_space<vmem>>, vector<16x16xbf16>
    tpu.vector_store %arg22[%c0_217, %c16_218], %138 {strides = array<i32>} : memref<16x144xbf16, #tpu.memory_space<vmem>>, vector<16x16xbf16>,
    %c0_219 = arith.constant 0 : index
    %c0_220 = arith.constant 0 : index
    %c2_221 = arith.constant 2 : index
    %c0_222 = arith.constant 0 : index
    %140 = vector.load %arg21[%c0_219, %c0_220, %c2_221, %c0_222] : memref<1x6x6x16xbf16, #tpu.memory_space<vmem>>, vector<1x4x4x16xbf16>
    %141 = vector.shape_cast %140 : vector<1x4x4x16xbf16> to vector<16x16xbf16>
    %c0_223 = arith.constant 0 : index
    %c32_224 = arith.constant 32 : index
    %142 = vector.load %arg22[%c0_223, %c32_224] : memref<16x144xbf16, #tpu.memory_space<vmem>>, vector<16x16xbf16>
    tpu.vector_store %arg22[%c0_223, %c32_224], %141 {strides = array<i32>} : memref<16x144xbf16, #tpu.memory_space<vmem>>, vector<16x16xbf16>,
    %c0_225 = arith.constant 0 : index
    %c1_226 = arith.constant 1 : index
    %c0_227 = arith.constant 0 : index
    %c0_228 = arith.constant 0 : index
    %143 = vector.load %arg21[%c0_225, %c1_226, %c0_227, %c0_228] : memref<1x6x6x16xbf16, #tpu.memory_space<vmem>>, vector<1x4x4x16xbf16>
    %144 = vector.shape_cast %143 : vector<1x4x4x16xbf16> to vector<16x16xbf16>
    %c0_229 = arith.constant 0 : index
    %c48_230 = arith.constant 48 : index
    %145 = vector.load %arg22[%c0_229, %c48_230] : memref<16x144xbf16, #tpu.memory_space<vmem>>, vector<16x16xbf16>
    tpu.vector_store %arg22[%c0_229, %c48_230], %144 {strides = array<i32>} : memref<16x144xbf16, #tpu.memory_space<vmem>>, vector<16x16xbf16>,
    %c0_231 = arith.constant 0 : index
    %c1_232 = arith.constant 1 : index
    %c1_233 = arith.constant 1 : index
    %c0_234 = arith.constant 0 : index
    %146 = vector.load %arg21[%c0_231, %c1_232, %c1_233, %c0_234] : memref<1x6x6x16xbf16, #tpu.memory_space<vmem>>, vector<1x4x4x16xbf16>
    %147 = vector.shape_cast %146 : vector<1x4x4x16xbf16> to vector<16x16xbf16>
    %c0_235 = arith.constant 0 : index
    %c64_236 = arith.constant 64 : index
    %148 = vector.load %arg22[%c0_235, %c64_236] : memref<16x144xbf16, #tpu.memory_space<vmem>>, vector<16x16xbf16>
    tpu.vector_store %arg22[%c0_235, %c64_236], %147 {strides = array<i32>} : memref<16x144xbf16, #tpu.memory_space<vmem>>, vector<16x16xbf16>,
    %c0_237 = arith.constant 0 : index
    %c1_238 = arith.constant 1 : index
    %c2_239 = arith.constant 2 : index
    %c0_240 = arith.constant 0 : index
    %149 = vector.load %arg21[%c0_237, %c1_238, %c2_239, %c0_240] : memref<1x6x6x16xbf16, #tpu.memory_space<vmem>>, vector<1x4x4x16xbf16>
    %150 = vector.shape_cast %149 : vector<1x4x4x16xbf16> to vector<16x16xbf16>
    %c0_241 = arith.constant 0 : index
    %c80 = arith.constant 80 : index
    %151 = vector.load %arg22[%c0_241, %c80] : memref<16x144xbf16, #tpu.memory_space<vmem>>, vector<16x16xbf16>
    tpu.vector_store %arg22[%c0_241, %c80], %150 {strides = array<i32>} : memref<16x144xbf16, #tpu.memory_space<vmem>>, vector<16x16xbf16>,
    %c0_242 = arith.constant 0 : index
    %c2_243 = arith.constant 2 : index
    %c0_244 = arith.constant 0 : index
    %c0_245 = arith.constant 0 : index
    %152 = vector.load %arg21[%c0_242, %c2_243, %c0_244, %c0_245] : memref<1x6x6x16xbf16, #tpu.memory_space<vmem>>, vector<1x4x4x16xbf16>
    %153 = vector.shape_cast %152 : vector<1x4x4x16xbf16> to vector<16x16xbf16>
    %c0_246 = arith.constant 0 : index
    %c96 = arith.constant 96 : index
    %154 = vector.load %arg22[%c0_246, %c96] : memref<16x144xbf16, #tpu.memory_space<vmem>>, vector<16x16xbf16>
    tpu.vector_store %arg22[%c0_246, %c96], %153 {strides = array<i32>} : memref<16x144xbf16, #tpu.memory_space<vmem>>, vector<16x16xbf16>,
    %c0_247 = arith.constant 0 : index
    %c2_248 = arith.constant 2 : index
    %c1_249 = arith.constant 1 : index
    %c0_250 = arith.constant 0 : index
    %155 = vector.load %arg21[%c0_247, %c2_248, %c1_249, %c0_250] : memref<1x6x6x16xbf16, #tpu.memory_space<vmem>>, vector<1x4x4x16xbf16>
    %156 = vector.shape_cast %155 : vector<1x4x4x16xbf16> to vector<16x16xbf16>
    %c0_251 = arith.constant 0 : index
    %c112 = arith.constant 112 : index
    %157 = vector.load %arg22[%c0_251, %c112] : memref<16x144xbf16, #tpu.memory_space<vmem>>, vector<16x16xbf16>
    tpu.vector_store %arg22[%c0_251, %c112], %156 {strides = array<i32>} : memref<16x144xbf16, #tpu.memory_space<vmem>>, vector<16x16xbf16>,
    %c0_252 = arith.constant 0 : index
    %c2_253 = arith.constant 2 : index
    %c2_254 = arith.constant 2 : index
    %c0_255 = arith.constant 0 : index
    %158 = vector.load %arg21[%c0_252, %c2_253, %c2_254, %c0_255] : memref<1x6x6x16xbf16, #tpu.memory_space<vmem>>, vector<1x4x4x16xbf16>
    %159 = vector.shape_cast %158 : vector<1x4x4x16xbf16> to vector<16x16xbf16>
    %c0_256 = arith.constant 0 : index
    %c128 = arith.constant 128 : index
    %160 = vector.load %arg22[%c0_256, %c128] : memref<16x144xbf16, #tpu.memory_space<vmem>>, vector<16x16xbf16>
    tpu.vector_store %arg22[%c0_256, %c128], %159 {strides = array<i32>} : memref<16x144xbf16, #tpu.memory_space<vmem>>, vector<16x16xbf16>,
    %c0_257 = arith.constant 0 : index
    %c0_258 = arith.constant 0 : index
    %161 = vector.load %arg22[%c0_257, %c0_258] : memref<16x144xbf16, #tpu.memory_space<vmem>>, vector<16x144xbf16>
    %c0_259 = arith.constant 0 : index
    %c0_260 = arith.constant 0 : index
    %162 = vector.load %arg6[%c0_259, %c0_260] : memref<144x32xbf16, #tpu.memory_space<vmem>>, vector<144x32xbf16>
    %cst_261 = arith.constant dense<0.000000e+00> : vector<16x32xf32>
    %163 = tpu.matmul %161, %162, %cst_261 {dimension_numbers = #tpu.dot_dimension_numbers<[1], [0], [0], [1], [0, 0, 1, 1], [], []>} : vector<16x144xbf16>, vector<144x32xbf16>, vector<16x32xf32> -> vector<16x32xf32>
    %c0_262 = arith.constant 0 : index
    %c0_263 = arith.constant 0 : index
    %164 = vector.load %arg7[%c0_262, %c0_263] : memref<3x32xf32, #tpu.memory_space<vmem>>, vector<3x32xf32>
    %165 = vector.extract_strided_slice %164 {offsets = [0, 0], sizes = [1, 32], strides = [1, 1]} : vector<3x32xf32> to vector<1x32xf32>
    %166 = vector.broadcast %165 : vector<1x32xf32> to vector<16x32xf32>
    %167 = arith.addf %163, %166 : vector<16x32xf32>
    %cst_264 = arith.constant 0.000000e+00 : f32
    %168 = vector.broadcast %cst_264 : f32 to vector<16x32xf32>
    %169 = arith.cmpf oge, %167, %168 : vector<16x32xf32>
    %cst_265 = arith.constant 0.00999999977 : f32
    %170 = vector.broadcast %cst_265 : f32 to vector<16x32xf32>
    %171 = arith.mulf %170, %167 : vector<16x32xf32>
    %172 = arith.select %169, %167, %171 : vector<16x32xi1>, vector<16x32xf32>
    %173 = vector.extract_strided_slice %164 {offsets = [1, 0], sizes = [1, 32], strides = [1, 1]} : vector<3x32xf32> to vector<1x32xf32>
    %174 = vector.broadcast %173 : vector<1x32xf32> to vector<16x32xf32>
    %175 = arith.mulf %172, %174 : vector<16x32xf32>
    %176 = vector.extract_strided_slice %164 {offsets = [2, 0], sizes = [1, 32], strides = [1, 1]} : vector<3x32xf32> to vector<1x32xf32>
    %177 = vector.broadcast %176 : vector<1x32xf32> to vector<16x32xf32>
    %178 = arith.addf %175, %177 : vector<16x32xf32>
    %c0_266 = arith.constant 0 : index
    %c0_267 = arith.constant 0 : index
    %179 = vector.load %arg23[%c0_266, %c0_267] : memref<16x32xf32, #tpu.memory_space<vmem>>, vector<16x32xf32>
    tpu.vector_store %arg23[%c0_266, %c0_267], %178 {strides = array<i32>} : memref<16x32xf32, #tpu.memory_space<vmem>>, vector<16x32xf32>,
    %c0_268 = arith.constant 0 : index
    %c0_269 = arith.constant 0 : index
    %180 = tpu.strided_load %arg23[%c0_268, %c0_269] {strides = array<i32: 2, 1>} : memref<16x32xf32, #tpu.memory_space<vmem>>, vector<8x32xf32>
    %c1_270 = arith.constant 1 : index
    %c0_271 = arith.constant 0 : index
    %181 = tpu.strided_load %arg23[%c1_270, %c0_271] {strides = array<i32: 2, 1>} : memref<16x32xf32, #tpu.memory_space<vmem>>, vector<8x32xf32>
    %182 = arith.maximumf %180, %181 : vector<8x32xf32>
    %183 = vector.shape_cast %182 : vector<8x32xf32> to vector<4x2x32xf32>
    %c0_272 = arith.constant 0 : index
    %c0_273 = arith.constant 0 : index
    %c0_274 = arith.constant 0 : index
    %184 = vector.load %arg24[%c0_272, %c0_273, %c0_274] : memref<4x2x32xf32, #tpu.memory_space<vmem>>, vector<4x2x32xf32>
    tpu.vector_store %arg24[%c0_272, %c0_273, %c0_274], %183 {strides = array<i32>} : memref<4x2x32xf32, #tpu.memory_space<vmem>>, vector<4x2x32xf32>,
    %c0_275 = arith.constant 0 : index
    %c0_276 = arith.constant 0 : index
    %c0_277 = arith.constant 0 : index
    %185 = tpu.strided_load %arg24[%c0_275, %c0_276, %c0_277] {strides = array<i32: 2, 1, 1>} : memref<4x2x32xf32, #tpu.memory_space<vmem>>, vector<2x2x32xf32>
    %c1_278 = arith.constant 1 : index
    %c0_279 = arith.constant 0 : index
    %c0_280 = arith.constant 0 : index
    %186 = tpu.strided_load %arg24[%c1_278, %c0_279, %c0_280] {strides = array<i32: 2, 1, 1>} : memref<4x2x32xf32, #tpu.memory_space<vmem>>, vector<2x2x32xf32>
    %187 = arith.maximumf %185, %186 : vector<2x2x32xf32>
    %188 = vector.shape_cast %187 : vector<2x2x32xf32> to vector<1x2x2x32xf32>
    %cst_281 = arith.constant 0.000000e+00 : bf16
    %189 = vector.broadcast %cst_281 : bf16 to vector<1x1x4x32xbf16>
    %cst_282 = arith.constant 0.000000e+00 : bf16
    %190 = vector.broadcast %cst_282 : bf16 to vector<1x4x1x32xbf16>
    %c0_283 = arith.constant 0 : index
    %c0_284 = arith.constant 0 : index
    %c0_285 = arith.constant 0 : index
    %c0_286 = arith.constant 0 : index
    %191 = vector.load %arg25[%c0_283, %c0_284, %c0_285, %c0_286] : memref<1x4x4x32xbf16, #tpu.memory_space<vmem>>, vector<1x1x4x32xbf16>
    tpu.vector_store %arg25[%c0_283, %c0_284, %c0_285, %c0_286], %189 {strides = array<i32>} : memref<1x4x4x32xbf16, #tpu.memory_space<vmem>>, vector<1x1x4x32xbf16>,
    %c0_287 = arith.constant 0 : index
    %c3 = arith.constant 3 : index
    %c0_288 = arith.constant 0 : index
    %c0_289 = arith.constant 0 : index
    %192 = vector.load %arg25[%c0_287, %c3, %c0_288, %c0_289] : memref<1x4x4x32xbf16, #tpu.memory_space<vmem>>, vector<1x1x4x32xbf16>
    tpu.vector_store %arg25[%c0_287, %c3, %c0_288, %c0_289], %189 {strides = array<i32>} : memref<1x4x4x32xbf16, #tpu.memory_space<vmem>>, vector<1x1x4x32xbf16>,
    %c0_290 = arith.constant 0 : index
    %c0_291 = arith.constant 0 : index
    %c0_292 = arith.constant 0 : index
    %c0_293 = arith.constant 0 : index
    %193 = vector.load %arg25[%c0_290, %c0_291, %c0_292, %c0_293] : memref<1x4x4x32xbf16, #tpu.memory_space<vmem>>, vector<1x4x1x32xbf16>
    tpu.vector_store %arg25[%c0_290, %c0_291, %c0_292, %c0_293], %190 {strides = array<i32>} : memref<1x4x4x32xbf16, #tpu.memory_space<vmem>>, vector<1x4x1x32xbf16>,
    %c0_294 = arith.constant 0 : index
    %c0_295 = arith.constant 0 : index
    %c3_296 = arith.constant 3 : index
    %c0_297 = arith.constant 0 : index
    %194 = vector.load %arg25[%c0_294, %c0_295, %c3_296, %c0_297] : memref<1x4x4x32xbf16, #tpu.memory_space<vmem>>, vector<1x4x1x32xbf16>
    tpu.vector_store %arg25[%c0_294, %c0_295, %c3_296, %c0_297], %190 {strides = array<i32>} : memref<1x4x4x32xbf16, #tpu.memory_space<vmem>>, vector<1x4x1x32xbf16>,
    %195 = arith.truncf %188 : vector<1x2x2x32xf32> to vector<1x2x2x32xbf16>
    %c0_298 = arith.constant 0 : index
    %c1_299 = arith.constant 1 : index
    %c1_300 = arith.constant 1 : index
    %c0_301 = arith.constant 0 : index
    %196 = vector.load %arg25[%c0_298, %c1_299, %c1_300, %c0_301] : memref<1x4x4x32xbf16, #tpu.memory_space<vmem>>, vector<1x2x2x32xbf16>
    tpu.vector_store %arg25[%c0_298, %c1_299, %c1_300, %c0_301], %195 {strides = array<i32>} : memref<1x4x4x32xbf16, #tpu.memory_space<vmem>>, vector<1x2x2x32xbf16>,
    %c0_302 = arith.constant 0 : index
    %c0_303 = arith.constant 0 : index
    %c0_304 = arith.constant 0 : index
    %c0_305 = arith.constant 0 : index
    %197 = vector.load %arg25[%c0_302, %c0_303, %c0_304, %c0_305] : memref<1x4x4x32xbf16, #tpu.memory_space<vmem>>, vector<1x2x2x32xbf16>
    %198 = vector.shape_cast %197 : vector<1x2x2x32xbf16> to vector<4x32xbf16>
    %c0_306 = arith.constant 0 : index
    %c0_307 = arith.constant 0 : index
    %199 = vector.load %arg26[%c0_306, %c0_307] : memref<4x288xbf16, #tpu.memory_space<vmem>>, vector<4x32xbf16>
    tpu.vector_store %arg26[%c0_306, %c0_307], %198 {strides = array<i32>} : memref<4x288xbf16, #tpu.memory_space<vmem>>, vector<4x32xbf16>,
    %c0_308 = arith.constant 0 : index
    %c0_309 = arith.constant 0 : index
    %c1_310 = arith.constant 1 : index
    %c0_311 = arith.constant 0 : index
    %200 = vector.load %arg25[%c0_308, %c0_309, %c1_310, %c0_311] : memref<1x4x4x32xbf16, #tpu.memory_space<vmem>>, vector<1x2x2x32xbf16>
    %201 = vector.shape_cast %200 : vector<1x2x2x32xbf16> to vector<4x32xbf16>
    %c0_312 = arith.constant 0 : index
    %c32_313 = arith.constant 32 : index
    %202 = vector.load %arg26[%c0_312, %c32_313] : memref<4x288xbf16, #tpu.memory_space<vmem>>, vector<4x32xbf16>
    tpu.vector_store %arg26[%c0_312, %c32_313], %201 {strides = array<i32>} : memref<4x288xbf16, #tpu.memory_space<vmem>>, vector<4x32xbf16>,
    %c0_314 = arith.constant 0 : index
    %c0_315 = arith.constant 0 : index
    %c2_316 = arith.constant 2 : index
    %c0_317 = arith.constant 0 : index
    %203 = vector.load %arg25[%c0_314, %c0_315, %c2_316, %c0_317] : memref<1x4x4x32xbf16, #tpu.memory_space<vmem>>, vector<1x2x2x32xbf16>
    %204 = vector.shape_cast %203 : vector<1x2x2x32xbf16> to vector<4x32xbf16>
    %c0_318 = arith.constant 0 : index
    %c64_319 = arith.constant 64 : index
    %205 = vector.load %arg26[%c0_318, %c64_319] : memref<4x288xbf16, #tpu.memory_space<vmem>>, vector<4x32xbf16>
    tpu.vector_store %arg26[%c0_318, %c64_319], %204 {strides = array<i32>} : memref<4x288xbf16, #tpu.memory_space<vmem>>, vector<4x32xbf16>,
    %c0_320 = arith.constant 0 : index
    %c1_321 = arith.constant 1 : index
    %c0_322 = arith.constant 0 : index
    %c0_323 = arith.constant 0 : index
    %206 = vector.load %arg25[%c0_320, %c1_321, %c0_322, %c0_323] : memref<1x4x4x32xbf16, #tpu.memory_space<vmem>>, vector<1x2x2x32xbf16>
    %207 = vector.shape_cast %206 : vector<1x2x2x32xbf16> to vector<4x32xbf16>
    %c0_324 = arith.constant 0 : index
    %c96_325 = arith.constant 96 : index
    %208 = vector.load %arg26[%c0_324, %c96_325] : memref<4x288xbf16, #tpu.memory_space<vmem>>, vector<4x32xbf16>
    tpu.vector_store %arg26[%c0_324, %c96_325], %207 {strides = array<i32>} : memref<4x288xbf16, #tpu.memory_space<vmem>>, vector<4x32xbf16>,
    %c0_326 = arith.constant 0 : index
    %c1_327 = arith.constant 1 : index
    %c1_328 = arith.constant 1 : index
    %c0_329 = arith.constant 0 : index
    %209 = vector.load %arg25[%c0_326, %c1_327, %c1_328, %c0_329] : memref<1x4x4x32xbf16, #tpu.memory_space<vmem>>, vector<1x2x2x32xbf16>
    %210 = vector.shape_cast %209 : vector<1x2x2x32xbf16> to vector<4x32xbf16>
    %c0_330 = arith.constant 0 : index
    %c128_331 = arith.constant 128 : index
    %211 = vector.load %arg26[%c0_330, %c128_331] : memref<4x288xbf16, #tpu.memory_space<vmem>>, vector<4x32xbf16>
    tpu.vector_store %arg26[%c0_330, %c128_331], %210 {strides = array<i32>} : memref<4x288xbf16, #tpu.memory_space<vmem>>, vector<4x32xbf16>,
    %c0_332 = arith.constant 0 : index
    %c1_333 = arith.constant 1 : index
    %c2_334 = arith.constant 2 : index
    %c0_335 = arith.constant 0 : index
    %212 = vector.load %arg25[%c0_332, %c1_333, %c2_334, %c0_335] : memref<1x4x4x32xbf16, #tpu.memory_space<vmem>>, vector<1x2x2x32xbf16>
    %213 = vector.shape_cast %212 : vector<1x2x2x32xbf16> to vector<4x32xbf16>
    %c0_336 = arith.constant 0 : index
    %c160 = arith.constant 160 : index
    %214 = vector.load %arg26[%c0_336, %c160] : memref<4x288xbf16, #tpu.memory_space<vmem>>, vector<4x32xbf16>
    tpu.vector_store %arg26[%c0_336, %c160], %213 {strides = array<i32>} : memref<4x288xbf16, #tpu.memory_space<vmem>>, vector<4x32xbf16>,
    %c0_337 = arith.constant 0 : index
    %c2_338 = arith.constant 2 : index
    %c0_339 = arith.constant 0 : index
    %c0_340 = arith.constant 0 : index
    %215 = vector.load %arg25[%c0_337, %c2_338, %c0_339, %c0_340] : memref<1x4x4x32xbf16, #tpu.memory_space<vmem>>, vector<1x2x2x32xbf16>
    %216 = vector.shape_cast %215 : vector<1x2x2x32xbf16> to vector<4x32xbf16>
    %c0_341 = arith.constant 0 : index
    %c192 = arith.constant 192 : index
    %217 = vector.load %arg26[%c0_341, %c192] : memref<4x288xbf16, #tpu.memory_space<vmem>>, vector<4x32xbf16>
    tpu.vector_store %arg26[%c0_341, %c192], %216 {strides = array<i32>} : memref<4x288xbf16, #tpu.memory_space<vmem>>, vector<4x32xbf16>,
    %c0_342 = arith.constant 0 : index
    %c2_343 = arith.constant 2 : index
    %c1_344 = arith.constant 1 : index
    %c0_345 = arith.constant 0 : index
    %218 = vector.load %arg25[%c0_342, %c2_343, %c1_344, %c0_345] : memref<1x4x4x32xbf16, #tpu.memory_space<vmem>>, vector<1x2x2x32xbf16>
    %219 = vector.shape_cast %218 : vector<1x2x2x32xbf16> to vector<4x32xbf16>
    %c0_346 = arith.constant 0 : index
    %c224 = arith.constant 224 : index
    %220 = vector.load %arg26[%c0_346, %c224] : memref<4x288xbf16, #tpu.memory_space<vmem>>, vector<4x32xbf16>
    tpu.vector_store %arg26[%c0_346, %c224], %219 {strides = array<i32>} : memref<4x288xbf16, #tpu.memory_space<vmem>>, vector<4x32xbf16>,
    %c0_347 = arith.constant 0 : index
    %c2_348 = arith.constant 2 : index
    %c2_349 = arith.constant 2 : index
    %c0_350 = arith.constant 0 : index
    %221 = vector.load %arg25[%c0_347, %c2_348, %c2_349, %c0_350] : memref<1x4x4x32xbf16, #tpu.memory_space<vmem>>, vector<1x2x2x32xbf16>
    %222 = vector.shape_cast %221 : vector<1x2x2x32xbf16> to vector<4x32xbf16>
    %c0_351 = arith.constant 0 : index
    %c256 = arith.constant 256 : index
    %223 = vector.load %arg26[%c0_351, %c256] : memref<4x288xbf16, #tpu.memory_space<vmem>>, vector<4x32xbf16>
    tpu.vector_store %arg26[%c0_351, %c256], %222 {strides = array<i32>} : memref<4x288xbf16, #tpu.memory_space<vmem>>, vector<4x32xbf16>,
    %c0_352 = arith.constant 0 : index
    %c0_353 = arith.constant 0 : index
    %224 = vector.load %arg26[%c0_352, %c0_353] : memref<4x288xbf16, #tpu.memory_space<vmem>>, vector<4x288xbf16>
    %c0_354 = arith.constant 0 : index
    %c0_355 = arith.constant 0 : index
    %225 = vector.load %arg8[%c0_354, %c0_355] : memref<288x64xbf16, #tpu.memory_space<vmem>>, vector<288x64xbf16>
    %cst_356 = arith.constant dense<0.000000e+00> : vector<4x64xf32>
    %226 = tpu.matmul %224, %225, %cst_356 {dimension_numbers = #tpu.dot_dimension_numbers<[1], [0], [0], [1], [0, 0, 1, 1], [], []>} : vector<4x288xbf16>, vector<288x64xbf16>, vector<4x64xf32> -> vector<4x64xf32>
    %c0_357 = arith.constant 0 : index
    %c0_358 = arith.constant 0 : index
    %227 = vector.load %arg9[%c0_357, %c0_358] : memref<3x64xf32, #tpu.memory_space<vmem>>, vector<3x64xf32>
    %228 = vector.extract_strided_slice %227 {offsets = [0, 0], sizes = [1, 64], strides = [1, 1]} : vector<3x64xf32> to vector<1x64xf32>
    %229 = vector.broadcast %228 : vector<1x64xf32> to vector<4x64xf32>
    %230 = arith.addf %226, %229 : vector<4x64xf32>
    %cst_359 = arith.constant 0.000000e+00 : f32
    %231 = vector.broadcast %cst_359 : f32 to vector<4x64xf32>
    %232 = arith.cmpf oge, %230, %231 : vector<4x64xf32>
    %cst_360 = arith.constant 0.00999999977 : f32
    %233 = vector.broadcast %cst_360 : f32 to vector<4x64xf32>
    %234 = arith.mulf %233, %230 : vector<4x64xf32>
    %235 = arith.select %232, %230, %234 : vector<4x64xi1>, vector<4x64xf32>
    %236 = vector.extract_strided_slice %227 {offsets = [1, 0], sizes = [1, 64], strides = [1, 1]} : vector<3x64xf32> to vector<1x64xf32>
    %237 = vector.broadcast %236 : vector<1x64xf32> to vector<4x64xf32>
    %238 = arith.mulf %235, %237 : vector<4x64xf32>
    %239 = vector.extract_strided_slice %227 {offsets = [2, 0], sizes = [1, 64], strides = [1, 1]} : vector<3x64xf32> to vector<1x64xf32>
    %240 = vector.broadcast %239 : vector<1x64xf32> to vector<4x64xf32>
    %241 = arith.addf %238, %240 : vector<4x64xf32>
    %c0_361 = arith.constant 0 : index
    %c0_362 = arith.constant 0 : index
    %242 = vector.load %arg27[%c0_361, %c0_362] : memref<4x64xf32, #tpu.memory_space<vmem>>, vector<4x64xf32>
    tpu.vector_store %arg27[%c0_361, %c0_362], %241 {strides = array<i32>} : memref<4x64xf32, #tpu.memory_space<vmem>>, vector<4x64xf32>,
    %c0_363 = arith.constant 0 : index
    %c0_364 = arith.constant 0 : index
    %243 = tpu.strided_load %arg27[%c0_363, %c0_364] {strides = array<i32: 2, 1>} : memref<4x64xf32, #tpu.memory_space<vmem>>, vector<2x64xf32>
    %c1_365 = arith.constant 1 : index
    %c0_366 = arith.constant 0 : index
    %244 = tpu.strided_load %arg27[%c1_365, %c0_366] {strides = array<i32: 2, 1>} : memref<4x64xf32, #tpu.memory_space<vmem>>, vector<2x64xf32>
    %245 = arith.maximumf %243, %244 : vector<2x64xf32>
    %246 = vector.shape_cast %245 : vector<2x64xf32> to vector<2x1x64xf32>
    %c0_367 = arith.constant 0 : index
    %c0_368 = arith.constant 0 : index
    %c0_369 = arith.constant 0 : index
    %247 = vector.load %arg28[%c0_367, %c0_368, %c0_369] : memref<2x1x64xf32, #tpu.memory_space<vmem>>, vector<2x1x64xf32>
    tpu.vector_store %arg28[%c0_367, %c0_368, %c0_369], %246 {strides = array<i32>} : memref<2x1x64xf32, #tpu.memory_space<vmem>>, vector<2x1x64xf32>,
    %c0_370 = arith.constant 0 : index
    %c0_371 = arith.constant 0 : index
    %c0_372 = arith.constant 0 : index
    %248 = tpu.strided_load %arg28[%c0_370, %c0_371, %c0_372] {strides = array<i32: 2, 1, 1>} : memref<2x1x64xf32, #tpu.memory_space<vmem>>, vector<1x1x64xf32>
    %c1_373 = arith.constant 1 : index
    %c0_374 = arith.constant 0 : index
    %c0_375 = arith.constant 0 : index
    %249 = tpu.strided_load %arg28[%c1_373, %c0_374, %c0_375] {strides = array<i32: 2, 1, 1>} : memref<2x1x64xf32, #tpu.memory_space<vmem>>, vector<1x1x64xf32>
    %250 = arith.maximumf %248, %249 : vector<1x1x64xf32>
    %251 = vector.shape_cast %250 : vector<1x1x64xf32> to vector<1x1x1x64xf32>
    %252 = vector.shape_cast %251 : vector<1x1x1x64xf32> to vector<1x64xf32>
    %253 = arith.truncf %252 : vector<1x64xf32> to vector<1x64xbf16>
    %c0_376 = arith.constant 0 : index
    %c0_377 = arith.constant 0 : index
    %254 = vector.load %arg10[%c0_376, %c0_377] : memref<64x2xbf16, #tpu.memory_space<vmem>>, vector<64x2xbf16>
    %cst_378 = arith.constant dense<0.000000e+00> : vector<1x2xf32>
    %255 = tpu.matmul %253, %254, %cst_378 {dimension_numbers = #tpu.dot_dimension_numbers<[1], [0], [0], [1], [0, 0, 1, 1], [], []>} : vector<1x64xbf16>, vector<64x2xbf16>, vector<1x2xf32> -> vector<1x2xf32>
    %c0_379 = arith.constant 0 : index
    %c0_380 = arith.constant 0 : index
    %256 = vector.load %arg11[%c0_379, %c0_380] : memref<1x2xf32, #tpu.memory_space<vmem>>, vector<1x2xf32>
    %257 = arith.addf %255, %256 : vector<1x2xf32>
    %258 = vector.shape_cast %257 : vector<1x2xf32> to vector<1x1x2xf32>
    %c0_381 = arith.constant 0 : index
    %c0_382 = arith.constant 0 : index
    %c0_383 = arith.constant 0 : index
    %259 = vector.load %arg12[%c0_381, %c0_382, %c0_383] : memref<1x1x2xf32, #tpu.memory_space<vmem>>, vector<1x1x2xf32>
    tpu.vector_store %arg12[%c0_381, %c0_382, %c0_383], %258 {strides = array<i32>} : memref<1x1x2xf32, #tpu.memory_space<vmem>>, vector<1x1x2xf32>,
    return
  }
  func.func @transform_0(%arg0: i32) -> (i32, i32, i32, i32) {
    %c0_i32 = arith.constant 0 : i32
    %c0_i32_0 = arith.constant 0 : i32
    %c0_i32_1 = arith.constant 0 : i32
    %c0_i32_2 = arith.constant 0 : i32
    return %arg0, %c0_i32, %c0_i32_0, %c0_i32_1 : i32, i32, i32, i32
  }
  func.func @transform_1(%arg0: i32) -> (i32, i32) {
    %c0_i32 = arith.constant 0 : i32
    %c0_i32_0 = arith.constant 0 : i32
    %c0_i32_1 = arith.constant 0 : i32
    return %c0_i32, %c0_i32_0 : i32, i32
  }
  func.func @transform_2(%arg0: i32) -> (i32, i32) {
    %c0_i32 = arith.constant 0 : i32
    %c0_i32_0 = arith.constant 0 : i32
    %c0_i32_1 = arith.constant 0 : i32
    return %c0_i32, %c0_i32_0 : i32, i32
  }
  func.func @transform_3(%arg0: i32) -> (i32, i32) {
    %c0_i32 = arith.constant 0 : i32
    %c0_i32_0 = arith.constant 0 : i32
    %c0_i32_1 = arith.constant 0 : i32
    return %c0_i32, %c0_i32_0 : i32, i32
  }
  func.func @transform_4(%arg0: i32) -> (i32, i32) {
    %c0_i32 = arith.constant 0 : i32
    %c0_i32_0 = arith.constant 0 : i32
    %c0_i32_1 = arith.constant 0 : i32
    return %c0_i32, %c0_i32_0 : i32, i32
  }
  func.func @transform_5(%arg0: i32) -> (i32, i32) {
    %c0_i32 = arith.constant 0 : i32
    %c0_i32_0 = arith.constant 0 : i32
    %c0_i32_1 = arith.constant 0 : i32
    return %c0_i32, %c0_i32_0 : i32, i32
  }
  func.func @transform_6(%arg0: i32) -> (i32, i32) {
    %c0_i32 = arith.constant 0 : i32
    %c0_i32_0 = arith.constant 0 : i32
    %c0_i32_1 = arith.constant 0 : i32
    return %c0_i32, %c0_i32_0 : i32, i32
  }
  func.func @transform_7(%arg0: i32) -> (i32, i32) {
    %c0_i32 = arith.constant 0 : i32
    %c0_i32_0 = arith.constant 0 : i32
    %c0_i32_1 = arith.constant 0 : i32
    return %c0_i32, %c0_i32_0 : i32, i32
  }
  func.func @transform_8(%arg0: i32) -> (i32, i32) {
    %c0_i32 = arith.constant 0 : i32
    %c0_i32_0 = arith.constant 0 : i32
    %c0_i32_1 = arith.constant 0 : i32
    return %c0_i32, %c0_i32_0 : i32, i32
  }
  func.func @transform_9(%arg0: i32) -> (i32, i32) {
    %c0_i32 = arith.constant 0 : i32
    %c0_i32_0 = arith.constant 0 : i32
    %c0_i32_1 = arith.constant 0 : i32
    return %c0_i32, %c0_i32_0 : i32, i32
  }
  func.func @transform_10(%arg0: i32) -> (i32, i32) {
    %c0_i32 = arith.constant 0 : i32
    %c0_i32_0 = arith.constant 0 : i32
    %c0_i32_1 = arith.constant 0 : i32
    return %c0_i32, %c0_i32_0 : i32, i32
  }
  func.func @transform_11(%arg0: i32) -> (i32, i32, i32) {
    %c0_i32 = arith.constant 0 : i32
    %c0_i32_0 = arith.constant 0 : i32
    %c0_i32_1 = arith.constant 0 : i32
    return %arg0, %c0_i32, %c0_i32_0 : i32, i32, i32
  }
}

</mosaic_0001>

<bundles_post_ra>
// kernel: _lambda_.1
= control target key start
LH: loop header
LB: loop body
LE: loop exit
PB: predicated region body
PF: predicated region fallthrough
CT: control target
= control target key end

     0   :  { %s10926_s0 = inlined_call_operand.vmem [shape: bf16[2,16,16,4], index: 0, kind: input, shape index: {}]   ;;  %s10927_s1 = inlined_call_operand.vmem [shape: bf16[36,8], index: 1, kind: input, shape index: {}]   ;;  %s10928_s2 = inlined_call_operand.vmem [shape: f32[3,8], index: 2, kind: input, shape index: {}]   ;;  %s10929_s3 = inlined_call_operand.vmem [shape: bf16[72,16], index: 3, kind: input, shape index: {}]   ;;  %s10930_s4 = inlined_call_operand.vmem [shape: f32[3,16], index: 4, kind: input, shape index: {}]   ;;  %s10931_s5 = inlined_call_operand.vmem [shape: bf16[144,32], index: 5, kind: input, shape index: {}]   ;;  %s10932_s6 = inlined_call_operand.vmem [shape: f32[3,32], index: 6, kind: input, shape index: {}]   ;;  %s10933_s7 = inlined_call_operand.vmem [shape: bf16[288,64], index: 7, kind: input, shape index: {}]   ;;  %s10934_s8 = inlined_call_operand.vmem [shape: f32[3,64], index: 8, kind: input, shape index: {}]   ;;  %s10935_s9 = inlined_call_operand.vmem [shape: bf16[64,2], index: 9, kind: input, shape index: {}]   ;;  %s10936_s10 = inlined_call_operand.vmem [shape: f32[1,2], index: 10, kind: input, shape index: {}]   ;;  %s10937_s11 = inlined_call_operand.hbm [shape: f32[2,1,2], index: 11, kind: output, shape index: {}]  }
   0x1   :  { %10961 = sst [smem:[#allocation21_spill]] %s10926_s0 }
   0x2   :  { %10962 = sst [smem:[#allocation22_spill]] %s10927_s1 }
   0x3   :  { %16 = vsyncpa [#allocation19], 0 }
   0x4   :  { %18 = vsyncpa [#allocation19 + $0x1], 0  ;;  %s8672_s17 = smov 0   ;;  %s8674_s18 = smov 0  }
   0x5   :  { %s8676_s19 = smov 0   ;;  %s8678_s20 = smov 0  }
   0x6 LB: > { %s8693_s21 = sadd.s32 4294967295, %s8588_s20   ;;  %s7813_s22 = sadd.s32 4294967294, %s8588_s20   ;;  %s8588_s20 = sphi %s8678_s20, %s11061_s20   ;;  %s8584_s19 = sphi %s8676_s19, %s11060_s19   ;;  %s8580_s18 = sphi %s8674_s18, %s11059_s18   ;;  %s8576_s17 = sphi %s8672_s17, %s11058_s17  }
   0x7   : > { %s8697_s23 = sadd.s32 1, %s8588_s20   ;;  %s267_s24 = sadd.s32 1, %s8584_s19 }
   0x8   : > { %s264_s25 = ssub.s32 %s8588_s20, %s8697_s23  ;;  %p277_p0 = scmp.ne.s32.totalorder %s8584_s19, %s8580_s18 }
   0x9   : > { %p265_p1 = scmp.eq.s32.totalorder %s264_s25, 0  ;;  %p278_p2 = scmp.eq.s32.totalorder %s8693_s21, 1 }
   0xa   : > { %p283_p3 = scmp.ne.s32.totalorder %s8580_s18, %s8576_s17  ;;  %p284_p4 = scmp.eq.s32.totalorder %s7813_s22, 1 }
   0xb   : > { %s8708_s26 = scalar_select %p265_p1, %s8584_s19, %s267_s24  }
   0xc   : > { %p8710_p5 = por %p278_p2, %p277_p0  ;;  %p8714_p6 = por %p284_p4, %p283_p3 }
   0xd   : > { %p7816_p7 = scmp.ge.s32.totalorder %s8588_s20, 1  ;;  %p340_p8 = scmp.lt.s32.totalorder %s8588_s20, 3 }
   0xf   : > { %p341_p9 = pnand %p7816_p7, %p340_p8 }
  0x10   : > { %p379_p10 = scmp.lt.s32.totalorder (!%p341_p9), %s8693_s21, 1  ;;  %vm417_vm0 = vcmask (!%p341_p9), 27648   ;;  %vm420_vm1 = vcmask (!%p341_p9), 24576   ;;  %vm10942_vm2 = vsmask.f32 (!%p341_p9), 256  ;;  %v8590_v3 = vmov (!%p341_p9), 0  }
  0x11   : > { %344 = sbr.rel (%p341_p9) target bundleno = 2251 (0x8cb), region = 64  ;;  %vm8723_vm3 = vmand (!%p341_p9), %vm420_vm1, %vm10942_vm2  ;;  %v432_v1 = vld [vmem:[#allocation2 + $0xc] sm:$0x1] (!%p341_p9)  ;;  %418 = vst.msk [vmem:[#allocation2] sm:$0xf] (!%p341_p9), %vm417_vm0, %v8590_v3  ;;  %s10967_s0 = sld [smem:[#allocation21_spill]] (!%p341_p9) }
  0x12   : > { %v433_v2 = vsel (!%p341_p9), %vm8723_vm3, 0, %v432_v1  ;;  %419 = vst.msk [vmem:[#allocation2 + $0x4] sm:$0xf] (!%p341_p9), %vm417_vm0, %v8590_v3  ;;  %423 = vst.msk [vmem:[#allocation2 + $0xcc] sm:$0xf] (!%p341_p9), %vm417_vm0, %v8590_v3  ;;  %vm1765_vm8 = vcmask (!%p341_p9), 1042432  }
  0x13   : > { %434 = vst [vmem:[#allocation2 + $0xc] sm:$0x1] (!%p341_p9), %v433_v2  ;;  %421 = vst.msk [vmem:[#allocation2 + $0x8] sm:$0x1] (!%p341_p9), %vm420_vm1, %v8590_v3  ;;  %v435_v4 = vld [vmem:[#allocation2 + $0x18] sm:$0x1] (!%p341_p9) }
  0x14   : > { %424 = vst.msk [vmem:[#allocation2 + $0xd0] sm:$0xf] (!%p341_p9), %vm417_vm0, %v8590_v3  ;;  %vm10941_vm4 = vsmask.f32 (!%p341_p9), 7938  ;;  %v436_v5 = vsel (!%p341_p9), %vm8723_vm3, 0, %v435_v4  ;;  %vm1766_vm9 = vcmask (!%p341_p9), 1046532  }
  0x15   : > { %425 = vst.msk [vmem:[#allocation2 + $0xd4] sm:$0x1] (!%p341_p9), %vm420_vm1, %v8590_v3  ;;  %vm10940_vm5 = vsmask.f32 (!%p341_p9), 4368  ;;  %437 = vst [vmem:[#allocation2 + $0x18] sm:$0x1] (!%p341_p9), %v436_v5 }
  0x16   : > { %v438_v6 = vld [vmem:[#allocation2 + $0x24] sm:$0x1] (!%p341_p9)  ;;  %vm8754_vm6 = vmand (!%p341_p9), %vm420_vm1, %vm10941_vm4  ;;  %v488_v49 = vld [vmem:[#allocation2 + $0x14] sm:$0x1] (!%p341_p9)  ;;  %vm1169_vm11 = vsmask.f32 (!%p341_p9), 3328 }
  0x17   : > { %vm8761_vm7 = vmor (!%p341_p9), %vm10942_vm2, %vm10940_vm5  ;;  %v439_v24 = vsel (!%p341_p9), %vm8723_vm3, 0, %v438_v6  ;;  %vm1170_vm12 = vsmask.f32 (!%p341_p9), 7440  ;;  %v491_v54 = vld [vmem:[#allocation2 + $0x20] sm:$0x1] (!%p341_p9)  ;;  %s8591_s15 = smov (!%p341_p9), 12  }
  0x18   : > { %s380_s29 = scalar_select %p379_p10, %s8693_s21, 1  ;;  %vm8769_vm10 = vmand %vm417_vm0, %vm10941_vm4  ;;  %v8776_v27 = vld [vmem:[#allocation2] sm:$0xe]  ;;  %440 = vst [vmem:[#allocation2 + $0x24] sm:$0x1] %v439_v24  ;;  %vm10945_vm15 = vcmask 31744  }
  0x19   : > { %v8779_v31 = vld [vmem:[#allocation2 + $0x4] sm:$0xf]  ;;  %v429_v33 = vld [vmem:[#allocation2] sm:$0x1]  ;;  %v7851_v46 = vrot.slane %v8776_v27, 9  ;;  %vm8805_vm13 = vmor %vm1765_vm8, %vm1766_vm9  ;;  %s10950_s16 = smov 8  }
  0x1a   : > { %s8205_s30 = sshll.u32 %s380_s29, 7  ;;  %v864_v25 = vld [vmem:[#allocation2 + $0xc] sm:$0xf]  ;;  %v485_v26 = vld [vmem:[#allocation2 + $0x8] sm:$0x1]  ;;  %v1770_v35 = vrot.slane %v8779_v31, 5  ;;  %vm8841_vm14 = vmor %vm1169_vm11, %vm1170_vm12 }
  0x1b   : > { %s8747_s14 = scalar_lea.vmem %s10967_s0, %s8205_s30  ;;  %v486_v34 = vsel %vm8754_vm6, 0, %v485_v26  ;;  %v430_v43 = vsel %vm8723_vm3, 0, %v429_v33  ;;  %v1122_v44 = vld [vmem:[#allocation2 + $0x4] sm:$0xf]  ;;  %v494_v59 = vld [vmem:[#allocation2 + $0x2c] sm:$0x1] }
  0x1c   : > { %v385_v7 = vld [vmem:[%s8747_s14] sm:$0xf]  ;;  %v386_v8 = vld [vmem:[%s8747_s14 + $0x4] sm:$0xf]  ;;  %v387_v9 = vld [vmem:[%s8747_s14 + $0x8] sm:$0xf] }
  0x1d   : > { %v542_v11 = vshrl.u32 %v385_v7, 16  ;;  %v545_v12 = vshll.u32 %v385_v7, 16  ;;  %v550_v13 = vshrl.u32 %v386_v8, 16  ;;  %v553_v14 = vshll.u32 %v386_v8, 16  ;;  %v388_v15 = vld [vmem:[%s8747_s14 + $0xc] sm:$0xf] }
  0x1e   : > { %v559_v17 = vshrl.u32 %v387_v9, 16  ;;  %v562_v18 = vshll.u32 %v387_v9, 16  ;;  %v567_v22 = vshrl.u32 %v388_v15, 16  ;;  %v389_v23 = vld [vmem:[%s8747_s14 + $0x10] sm:$0xf]  ;;  %v570_v32 = vshll.u32 %v388_v15, 16 }
  0x1f   : > { %v544_v19 = vrot.slane %v542_v11, 7  ;;  %v8765_v20 = vrot.slane %v550_v13, 7  ;;  %v390_v37 = vld [vmem:[%s8747_s14 + $0x14] sm:$0xf]  ;;  %v576_v38 = vshrl.u32 %v389_v23, 16  ;;  %v1772_v50 = vrot.slane %v1770_v35, 4 }
  0x20   : > { %v561_v36 = vrot.slane %v559_v17, 7  ;;  %487 = vst [vmem:[#allocation2 + $0x8] sm:$0x1] %v486_v34  ;;  %v8789_v41 = vrot.slane %v567_v22, 7  ;;  %v871_v42 = vld [vmem:[#allocation2 + $0x18] sm:$0xf] }
  0x21   : > { %v547_v28 = vor.u32 %v545_v12, %v544_v19  ;;  %v548_v29 = vrot.slane %v544_v19, 4  ;;  %v555_v30 = vor.u32 %v553_v14, %v8765_v20  ;;  %v557_v45 = vrot.slane %v8765_v20, 4  ;;  %431 = vst [vmem:[#allocation2] sm:$0x1] %v430_v43  ;;  %v878_v1 = vld [vmem:[#allocation2 + $0x24] sm:$0xf] }
  0x22   : > { %v564_v47 = vor.u32 %v562_v18, %v561_v36  ;;  %v565_v48 = vrot.slane %v561_v36, 4  ;;  %v572_v51 = vor.u32 %v570_v32, %v8789_v41  ;;  %v1182_v52 = vshll.u32 %v1122_v44, 16  ;;  %v441_v8 = vld [vmem:[#allocation2 + $0x30] sm:$0x1]  ;;  %v8825_v19 = vld [vmem:[%s8747_s14 + $0x18] sm:$0xf] }
  0x23   : > { %v556_v39 = vsel %vm8761_vm7, %v548_v29, %v555_v30  ;;  %v865_v40 = vsel %vm8769_vm10, %v547_v28, %v864_v25  ;;  %v1186_v53 = vshrl.u32 %v1122_v44, 16  ;;  %v578_v56 = vrot.slane %v576_v38, 7  ;;  %s8593_s22 = smov 24   ;;  %s10943_s24 = smov 4   ;;  %v9862_v10 = vld [vmem:[#allocation2 + $0xd0] sm:$0xf] }
  0x24   : > { %866 = vst [vmem:[#allocation2 + $0xc] sm:$0xf] %v865_v40  ;;  %867 = vst.msk [vmem:[#allocation2 + $0x10] sm:$0xf] %vm417_vm0, %v556_v39  ;;  %v872_v55 = vsel %vm8769_vm10, %v564_v47, %v871_v42  ;;  %v579_v57 = vshll.u32 %v389_v23, 16  ;;  %v584_v58 = vshrl.u32 %v390_v37, 16  ;;  %v573_v60 = vsel %vm8761_vm7, %v565_v48, %v572_v51 }
  0x25   : > { %873 = vst [vmem:[#allocation2 + $0x18] sm:$0xf] %v872_v55  ;;  %v8801_v61 = vrot.slane %v1182_v52, 5  ;;  %v1188_v62 = vrot.slane %v1186_v53, 4  ;;  %v587_v63 = vshll.u32 %v390_v37, 16  ;;  %v582_v5 = vrot.slane %v578_v56, 4 }
  0x26   : > { %874 = vst.msk [vmem:[#allocation2 + $0x1c] sm:$0xf] %vm417_vm0, %v573_v60  ;;  %v581_v4 = vor.u32 %v579_v57, %v578_v56  ;;  %v8810_v6 = vrot.slane %v584_v58, 7  ;;  %v489_v7 = vsel %vm8754_vm6, 0, %v488_v49  ;;  %v574_v9 = vrot.slane %v8789_v41, 4  ;;  %s8595_s25 = smov 20  }
  0x27   : > { %490 = vst [vmem:[#allocation2 + $0x14] sm:$0x1] %v489_v7  ;;  %v492_v11 = vsel %vm8754_vm6, 0, %v491_v54  ;;  %v495_v12 = vsel %vm8754_vm6, 0, %v494_v59  ;;  %v442_v13 = vsel %vm8723_vm3, 0, %v441_v8  ;;  %v1771_v23 = vsel %vm8805_vm13, %v7851_v46, %v1770_v35  ;;  %s10938_s29 = smov 32  }
  0x28   : > { %v1671_v14 = vld [vmem:[#allocation2 + $0x8] sm:$0x1]  ;;  %v589_v17 = vor.u32 %v587_v63, %v8810_v6  ;;  %v879_v18 = vsel %vm8769_vm10, %v581_v4, %v878_v1  ;;  %493 = vst [vmem:[#allocation2 + $0x20] sm:$0x1] %v492_v11  ;;  %496 = vst [vmem:[#allocation2 + $0x2c] sm:$0x1] %v495_v12  ;;  %v1189_v26 = vor.u32 %v1188_v62, %v8801_v61 }
  0x29   : > { %v1123_v15 = vld [vmem:[#allocation2 + $0x8] sm:$0x1]  ;;  %443 = vst [vmem:[#allocation2 + $0x30] sm:$0x1] %v442_v13  ;;  %v1773_v24 = vrot.slane %v1671_v14, 5  ;;  %v591_v29 = vrot.slane %v8810_v6, 4 }
  0x2a   : > { %880 = vst [vmem:[#allocation2 + $0x24] sm:$0xf] %v879_v18  ;;  %v1121_v25 = vld [vmem:[#allocation2] sm:$0xf]  ;;  %v1192_v27 = vshll.u32 %v1123_v15, 16  ;;  %v590_v28 = vsel %vm8761_vm7, %v582_v5, %v589_v17  ;;  %v593_v37 = vshrl.u32 %v8825_v19, 16 }
  0x2b   : > { %v8414_v22 = vld [vmem:[#allocation2 + $0xc] sm:$0xff]   ;;  %v1774_v30 = vsel %vm8805_vm13, %v1772_v50, %v1773_v24  ;;  %v1173_v31 = vshrl.u32 %v1121_v25, 16  ;;  %v1176_v32 = vshll.u32 %v1121_v25, 16  ;;  %881 = vst.msk [vmem:[#allocation2 + $0x28] sm:$0xf] %vm417_vm0, %v590_v28  ;;  %v1190_v43 = vrot.slane %v1189_v26, 4 }
  0x2c   : > { %2105 = vrot.lane.b32.xlu0 %v8414_v22, %s8591_s15  ;;  %v2715_v33 = vld [vmem:[#allocation2 + $0xc] sm:$0xe]  ;;  %v2716_v34 = vld [vmem:[#allocation2 + $0x10] sm:$0xf]  ;;  %v7867_v35 = vcombine.low %v1771_v23, %v1774_v30  ;;  %v1194_v44 = vrot.slane %v1192_v27, 5  ;;  %v8855_v6 = vrot.slane %v593_v37, 7 }
  0x2d   : > { %v2813_v36 = vrot.slane %v2716_v34, 5  ;;  %v8415_v38 = vld [vmem:[#allocation2 + $0x18] sm:$0xff]   ;;  %v1175_v39 = vrot.slane %v1173_v31, 4  ;;  %v1178_v42 = vrot.slane %v1176_v32, 5  ;;  %v1672_v48 = vld [vmem:[#allocation2 + $0xc] sm:$0xe] }
  0x2e   : > { %1928 = vrot.lane.b32.xlu1 %v7867_v35, %s10950_s16  ;;  %v8416_v40 = vld [vmem:[#allocation2 + $0x18] sm:$0xff]   ;;  %v868_v46 = vld [vmem:[#allocation2 + $0x14] sm:$0x1]  ;;  %v1673_v49 = vld [vmem:[#allocation2 + $0x10] sm:$0xf]  ;;  %v7915_v52 = vrot.slane %v2715_v33, 9 }
  0x2f   : > { %v869_v47 = vsel %vm8723_vm3, %v557_v45, %v868_v46  ;;  %v875_v50 = vld [vmem:[#allocation2 + $0x20] sm:$0x1]  ;;  %v1179_v51 = vor.u32 %v1178_v42, %v1175_v39  ;;  %v1777_v53 = vrot.slane %v1673_v49, 5  ;;  %v3759_v55 = vld [vmem:[#allocation2 + $0x18] sm:$0xe]  ;;  %v2815_v56 = vrot.slane %v2813_v36, 4 }
  0x30   : > { %3149 = vrot.lane.b32.xlu0 %v8415_v38, %s8593_s22  ;;  %870 = vst [vmem:[#allocation2 + $0x14] sm:$0x1] %v869_v47  ;;  %v876_v54 = vsel %vm8723_vm3, %v574_v9, %v875_v50  ;;  %v7852_v57 = vrot.slane %v1672_v48, 9  ;;  %v3760_v58 = vld [vmem:[#allocation2 + $0x1c] sm:$0xf]  ;;  %v1195_v45 = vsel %vm8841_vm14, %v1190_v43, %v1194_v44  ;;  %v7979_v62 = vrot.slane %v3759_v55, 9 }
  0x31   : > { %877 = vst [vmem:[#allocation2 + $0x20] sm:$0x1] %v876_v54  ;;  %v2718_v59 = vld [vmem:[#allocation2 + $0x18] sm:$0xe]  ;;  %v1180_v20 = vrot.slane %v1179_v51, 4  ;;  %v3857_v63 = vrot.slane %v3760_v58, 5  ;;  %v2814_v8 = vsel %vm8805_vm13, %v7915_v52, %v2813_v36 }
  0x32   : > { %2107 = vrot.lane.b32.xlu1 %v8416_v40, %s8591_s15  ;;  %v8417_v60 = vld [vmem:[#allocation2 + $0x24] sm:$0xff]   ;;  %v1779_v1 = vrot.slane %v1777_v53, 4  ;;  %v2719_v4 = vld [vmem:[#allocation2 + $0x1c] sm:$0xf]  ;;  %v882_v5 = vld [vmem:[#allocation2 + $0x2c] sm:$0x1]  ;;  %v1778_v30 = vsel %vm8805_vm13, %v7852_v57, %v1777_v53 }
  0x33   : > { %v1185_v7 = vsel %vm8841_vm14, %v1180_v20, %v8801_v61  ;;  %v7916_v9 = vrot.slane %v2718_v59, 9  ;;  %v2820_v11 = vrot.slane %v2719_v4, 5  ;;  %v3762_v12 = vld [vmem:[#allocation2 + $0x24] sm:$0xe]  ;;  %v3763_v13 = vld [vmem:[#allocation2 + $0x28] sm:$0xf]  ;;  %v883_v15 = vsel %vm8723_vm3, %v591_v29, %v882_v5 }
  0x34   : > { %v7835_v14 = vcombine.low %v1185_v7, %v1195_v45  ;;  %v7980_v17 = vrot.slane %v3762_v12, 9  ;;  %v3864_v18 = vrot.slane %v3763_v13, 5  ;;  %v2173_v22 = vld [vmem:[#allocation2 + $0x18] sm:$0xf]  ;;  %v2174_v23 = vld [vmem:[#allocation2 + $0x1c] sm:$0xf]  ;;  %v3858_v29 = vsel %vm8805_vm13, %v7979_v62, %v3857_v63 }
  0x35   : > { %v3859_v24 = vrot.slane %v3857_v63, 4  ;;  %v2822_v25 = vrot.slane %v2820_v11, 4  ;;  %884 = vst [vmem:[#allocation2 + $0x2c] sm:$0x1] %v883_v15  ;;  %v2243_v61 = vshrl.u32 %v2173_v22, 16  ;;  %v2246_v26 = vshll.u32 %v2173_v22, 16 }
  0x36   : > { %3151 = vrot.lane.b32.xlu1 %v8417_v60, %s8593_s22  ;;  %1604 = vrot.lane.b32.xlu0 %v7835_v14, %s10943_s24  ;;  %v3866_v31 = vrot.slane %v3864_v18, 4  ;;  %v2252_v32 = vshll.u32 %v2174_v23, 16  ;;  %v2821_v37 = vsel %vm8805_vm13, %v7916_v9, %v2820_v11  ;;  %v8874_v38 = vsel %vm8805_vm13, %v7980_v17, %v3864_v18  ;;  %v1124_v44 = vld [vmem:[#allocation2 + $0xc] sm:$0xf]  ;;  %v1125_v51 = vld [vmem:[#allocation2 + $0x10] sm:$0xf] }
  0x37   : > { %v2717_v27 = vld [vmem:[#allocation2 + $0x14] sm:$0x1]  ;;  %v2245_v42 = vrot.slane %v2243_v61, 4  ;;  %v2248_v43 = vrot.slane %v2246_v26, 5  ;;  %v2256_v50 = vshrl.u32 %v2174_v23, 16  ;;  %v1197_v62 = vshrl.u32 %v1124_v44, 16 }
  0x38   : > { %v1674_v28 = vld [vmem:[#allocation2 + $0x14] sm:$0x1]  ;;  %v2816_v33 = vrot.slane %v2717_v27, 5  ;;  %v3761_v35 = vld [vmem:[#allocation2 + $0x20] sm:$0x1]  ;;  %v2254_v49 = vrot.slane %v2252_v32, 5 }
  0x39   : > { %v1780_v34 = vrot.slane %v1674_v28, 5  ;;  %v2720_v36 = vld [vmem:[#allocation2 + $0x20] sm:$0x1]  ;;  %v3860_v39 = vrot.slane %v3761_v35, 5  ;;  %v2249_v59 = vor.u32 %v2248_v43, %v2245_v42  ;;  %v2258_v20 = vrot.slane %v2256_v50, 4  ;;  %s10955_s30 = smov 16  }
  0x3a   : > { %v2823_v40 = vrot.slane %v2720_v36, 5  ;;  %v2817_v46 = vsel %vm8805_vm13, %v2815_v56, %v2816_v33  ;;  %v2175_v48 = vld [vmem:[#allocation2 + $0x20] sm:$0x1]  ;;  %v1126_v56 = vld [vmem:[#allocation2 + $0x14] sm:$0x1]  ;;  %v1200_v63 = vshll.u32 %v1124_v44, 16 }
  0x3b   : > { %v1781_v47 = vsel %vm8805_vm13, %v1779_v1, %v1780_v34  ;;  %v7931_v52 = vcombine.low %v2814_v8, %v2817_v46  ;;  %v3861_v54 = vsel %vm8805_vm13, %v3859_v24, %v3860_v39  ;;  %v2262_v60 = vshll.u32 %v2175_v48, 16  ;;  %v3217_v9 = vld [vmem:[#allocation2 + $0x24] sm:$0xf]  ;;  %v3218_v15 = vld [vmem:[#allocation2 + $0x28] sm:$0xf]  ;;  %s8598_s12 = smov 28  }
  0x3c   : > { %v7868_v53 = vcombine.low %v1778_v30, %v1781_v47  ;;  %v2824_v55 = vsel %vm8805_vm13, %v2822_v25, %v2823_v40  ;;  %v7995_v57 = vcombine.low %v3858_v29, %v3861_v54  ;;  %v3764_v45 = vld [vmem:[#allocation2 + $0x2c] sm:$0x1]  ;;  %v1206_v1 = vshll.u32 %v1125_v51, 16  ;;  %s10978_s1 = sld [smem:[#allocation22_spill]]  ;;  %s10951_s13 = smov 64  }
  0x3d   : > { %v7932_v58 = vcombine.low %v2821_v37, %v2824_v55  ;;  %2971 = vrot.lane.b32.xlu0 %v7931_v52, %s8595_s25  ;;  %v3867_v4 = vrot.slane %v3764_v45, 5  ;;  %v2250_v5 = vrot.slane %v2249_v59, 4  ;;  %v2259_v7 = vor.u32 %v2258_v20, %v2254_v49  ;;  %v3219_v30 = vld [vmem:[#allocation2 + $0x2c] sm:$0x1]  ;;  %v2171_v37 = vld [vmem:[#allocation2 + $0x10] sm:$0xf] }
  0x3e   : > { %1930 = vrot.lane.b32.xlu1 %v7868_v53, %s10950_s16  ;;  %v1210_v8 = vshrl.u32 %v1125_v51, 16  ;;  %v2264_v11 = vrot.slane %v2262_v60, 5  ;;  %v1199_v12 = vrot.slane %v1197_v62, 4  ;;  %v1202_v13 = vrot.slane %v1200_v63, 5  ;;  %v2170_v32 = vld [vmem:[#allocation2 + $0xc] sm:$0xf] }
  0x3f   : > { %v1208_v14 = vrot.slane %v1206_v1, 5  ;;  %v3868_v17 = vsel %vm8805_vm13, %v3866_v31, %v3867_v4  ;;  %v2255_v18 = vsel %vm8841_vm14, %v2250_v5, %v2254_v49  ;;  %v2260_v22 = vrot.slane %v2259_v7, 4  ;;  %v2172_v51 = vld [vmem:[#allocation2 + $0x14] sm:$0x1]  ;;  %v1127_v53 = vld [vmem:[#allocation2 + $0x18] sm:$0xf] }
  0x40   : > { %v1212_v23 = vrot.slane %v1210_v8, 4  ;;  %v7996_v24 = vcombine.low %v8874_v38, %v3868_v17  ;;  %v1203_v25 = vor.u32 %v1202_v13, %v1199_v12  ;;  %v1216_v61 = vshll.u32 %v1126_v56, 16  ;;  %v1128_v59 = vld [vmem:[#allocation2 + $0x1c] sm:$0xf]  ;;  %v1129_v62 = vld [vmem:[#allocation2 + $0x20] sm:$0x1] }
  0x41   : > { %4015 = vrot.lane.b32.xlu0 %v7995_v57, %s10938_s29  ;;  %v3287_v26 = vshrl.u32 %v3217_v9, 16  ;;  %v2265_v27 = vsel %vm8841_vm14, %v2260_v22, %v2264_v11  ;;  %v3290_v29 = vshll.u32 %v3217_v9, 16  ;;  %v3296_v31 = vshll.u32 %v3218_v15, 16  ;;  %v3214_v7 = vld [vmem:[#allocation2 + $0x18] sm:$0xf]  ;;  %s11057_s0 = smov 96  }
  0x42   : > { %2973 = vrot.lane.b32.xlu1 %v7932_v58, %s8595_s25  ;;  %v1213_v28 = vor.u32 %v1212_v23, %v1208_v14  ;;  %v7900_v33 = vcombine.low %v2255_v18, %v2265_v27  ;;  %v1204_v34 = vrot.slane %v1203_v25, 4  ;;  %v1218_v35 = vrot.slane %v1216_v61, 5  ;;  %v3215_v25 = vld [vmem:[#allocation2 + $0x1c] sm:$0xf] }
  0x43   : > { %v3289_v36 = vrot.slane %v3287_v26, 4  ;;  %v3292_v40 = vrot.slane %v3290_v29, 5  ;;  %v3298_v42 = vrot.slane %v3296_v31, 5  ;;  %v3300_v38 = vshrl.u32 %v3218_v15, 16  ;;  %v3216_v31 = vld [vmem:[#allocation2 + $0x20] sm:$0x1] }
  0x44   : > { %v1214_v39 = vrot.slane %v1213_v28, 4  ;;  %v1209_v43 = vsel %vm8841_vm14, %v1204_v34, %v1208_v14  ;;  %v3306_v44 = vshll.u32 %v3219_v30, 16  ;;  %v2219_v46 = vshrl.u32 %v2170_v32, 16 }
  0x45   : > { %4017 = vrot.lane.b32.xlu0 %v7996_v24, %s10938_s29  ;;  %v2222_v47 = vshll.u32 %v2170_v32, 16  ;;  %v3293_v49 = vor.u32 %v3292_v40, %v3289_v36  ;;  %v3302_v50 = vrot.slane %v3300_v38, 4  ;;  %v2228_v52 = vshll.u32 %v2171_v37, 16 }
  0x46   : > { %2652 = vrot.lane.b32.xlu1 %v7900_v33, %s10955_s30  ;;  %v1219_v48 = vsel %vm8841_vm14, %v1214_v39, %v1218_v35  ;;  %v3308_v55 = vrot.slane %v3306_v44, 5  ;;  %v2221_v57 = vrot.slane %v2219_v46, 4  ;;  %v2232_v60 = vshrl.u32 %v2171_v37, 16  ;;  %v1130_v39 = vld [vmem:[#allocation2 + $0x24] sm:$0xf] }
  0x47   : > { %v7836_v54 = vcombine.low %v1209_v43, %v1219_v48  ;;  %v2224_v58 = vrot.slane %v2222_v47, 5  ;;  %v3294_v20 = vrot.slane %v3293_v49, 4  ;;  %v3303_v56 = vor.u32 %v3302_v50, %v3298_v42  ;;  %v1131_v44 = vld [vmem:[#allocation2 + $0x28] sm:$0xf]  ;;  %v1132_v50 = vld [vmem:[#allocation2 + $0x2c] sm:$0x1] }
  0x48   : > { %v2230_v45 = vrot.slane %v2228_v52, 5  ;;  %v2238_v1 = vshll.u32 %v2172_v51, 16  ;;  %v1221_v4 = vshrl.u32 %v1127_v53, 16  ;;  %v1224_v5 = vshll.u32 %v1127_v53, 16 }
  0x49   : > { %1606 = vrot.lane.b32.xlu0 %v7836_v54, %s10943_s24  ;;  %v2225_v63 = vor.u32 %v2224_v58, %v2221_v57  ;;  %v3299_v8 = vsel %vm8841_vm14, %v3294_v20, %v3298_v42  ;;  %v3304_v9 = vrot.slane %v3303_v56, 4  ;;  %v2234_v11 = vrot.slane %v2232_v60, 4  ;;  %v1676_v56 = vld [vmem:[#allocation2 + $0x1c] sm:$0xf] }
  0x4a   : > { %v1230_v12 = vshll.u32 %v1128_v59, 16  ;;  %v2240_v14 = vrot.slane %v2238_v1, 5  ;;  %v1223_v15 = vrot.slane %v1221_v4, 4  ;;  %v1226_v17 = vrot.slane %v1224_v5, 5  ;;  %v1677_v1 = vld [vmem:[#allocation2 + $0x20] sm:$0x1] }
  0x4b   : > { %v2226_v13 = vrot.slane %v2225_v63, 4  ;;  %v3309_v18 = vsel %vm8841_vm14, %v3304_v9, %v3308_v55  ;;  %v2235_v22 = vor.u32 %v2234_v11, %v2230_v45  ;;  %v1234_v24 = vshrl.u32 %v1128_v59, 16  ;;  %v1675_v55 = vld [vmem:[#allocation2 + $0x18] sm:$0xe]  ;;  %v1678_v9 = vld [vmem:[#allocation2 + $0x24] sm:$0xe] }
  0x4c   : > { %v1232_v23 = vrot.slane %v1230_v12, 5  ;;  %v7964_v61 = vcombine.low %v3299_v8, %v3309_v18  ;;  %v1227_v27 = vor.u32 %v1226_v17, %v1223_v15  ;;  %v1240_v28 = vshll.u32 %v1129_v62, 16  ;;  %v1679_v15 = vld [vmem:[#allocation2 + $0x28] sm:$0xf] }
  0x4d   : > { %v2231_v26 = vsel %vm8841_vm14, %v2226_v13, %v2230_v45  ;;  %v2236_v30 = vrot.slane %v2235_v22, 4  ;;  %v1236_v29 = vrot.slane %v1234_v24, 4  ;;  %v3263_v32 = vshrl.u32 %v3214_v7, 16  ;;  %v1680_v24 = vld [vmem:[#allocation2 + $0x2c] sm:$0x1] }
  0x4e   : > { %v3266_v33 = vshll.u32 %v3214_v7, 16  ;;  %3696 = vrot.lane.b32.xlu1 %v7964_v61, %s8598_s12  ;;  %v1228_v34 = vrot.slane %v1227_v27, 4  ;;  %v1242_v35 = vrot.slane %v1240_v28, 5  ;;  %v3272_v36 = vshll.u32 %v3215_v25, 16 }
  0x4f   : > { %v3276_v37 = vshrl.u32 %v3215_v25, 16  ;;  %v2241_v40 = vsel %vm8841_vm14, %v2236_v30, %v2240_v14  ;;  %v1237_v42 = vor.u32 %v1236_v29, %v1232_v23  ;;  %v3265_v38 = vrot.slane %v3263_v32, 4  ;;  %v392_v32 = vld [vmem:[%s8747_s14 + $0x1c] sm:$0xf] }
  0x50   : > { %v3268_v43 = vrot.slane %v3266_v33, 5  ;;  %v7899_v46 = vcombine.low %v2231_v26, %v2241_v40  ;;  %v1233_v47 = vsel %vm8841_vm14, %v1228_v34, %v1232_v23  ;;  %v3274_v48 = vrot.slane %v3272_v36, 5 }
  0x51   : > { %v3278_v49 = vrot.slane %v3276_v37, 4  ;;  %v1238_v51 = vrot.slane %v1237_v42, 4  ;;  %v3282_v53 = vshll.u32 %v3216_v31, 16  ;;  %v1245_v54 = vshrl.u32 %v1130_v39, 16  ;;  %v2176_v37 = vld [vmem:[#allocation2 + $0x24] sm:$0xf] }
  0x52   : > { %v3269_v52 = vor.u32 %v3268_v43, %v3265_v38  ;;  %2650 = vrot.lane.b32.xlu0 %v7899_v46, %s10955_s30  ;;  %v1248_v58 = vshll.u32 %v1130_v39, 16  ;;  %v1254_v59 = vshll.u32 %v1131_v44, 16  ;;  %v1258_v20 = vshrl.u32 %v1131_v44, 16  ;;  %v885_v43 = vld [vmem:[#allocation2 + $0x30] sm:$0xf] }
  0x53   : > { %v3279_v57 = vor.u32 %v3278_v49, %v3274_v48  ;;  %v1243_v45 = vsel %vm8841_vm14, %v1238_v51, %v1242_v35  ;;  %v3284_v62 = vrot.slane %v3282_v53, 5  ;;  %v1247_v63 = vrot.slane %v1245_v54, 4  ;;  %v497_v44 = vld [vmem:[#allocation2 + $0x38] sm:$0x1]  ;;  %v2178_v51 = vld [vmem:[#allocation2 + $0x2c] sm:$0x1] }
  0x54   : > { %v3270_v60 = vrot.slane %v3269_v52, 4  ;;  %v7837_v4 = vcombine.low %v1233_v47, %v1243_v45  ;;  %v1250_v7 = vrot.slane %v1248_v58, 5  ;;  %v1256_v8 = vrot.slane %v1254_v59, 5  ;;  %v2722_v58 = vld [vmem:[#allocation2 + $0x28] sm:$0xf] }
  0x55   : > { %v3280_v5 = vrot.slane %v3279_v57, 4  ;;  %v1260_v12 = vrot.slane %v1258_v20, 4  ;;  %v1264_v13 = vshll.u32 %v1132_v50, 16  ;;  %v7853_v14 = vrot.slane %v1675_v55, 9  ;;  %v2177_v50 = vld [vmem:[#allocation2 + $0x28] sm:$0xf] }
  0x56   : > { %v3275_v11 = vsel %vm8841_vm14, %v3270_v60, %v3274_v48  ;;  %1608 = vrot.lane.b32.xlu1 %v7837_v4, %s10943_s24  ;;  %v1251_v18 = vor.u32 %v1250_v7, %v1247_v63  ;;  %v1784_v22 = vrot.slane %v1676_v56, 5  ;;  %v1787_v23 = vrot.slane %v1677_v1, 5  ;;  %v2721_v57 = vld [vmem:[#allocation2 + $0x24] sm:$0xe]  ;;  %v2723_v45 = vld [vmem:[#allocation2 + $0x2c] sm:$0x1] }
  0x57   : > { %v3285_v17 = vsel %vm8841_vm14, %v3280_v5, %v3284_v62  ;;  %v1261_v61 = vor.u32 %v1260_v12, %v1256_v8  ;;  %v1266_v26 = vrot.slane %v1264_v13, 5  ;;  %v7854_v27 = vrot.slane %v1678_v9, 9  ;;  %v393_v4 = vld [vmem:[%s8747_s14 + $0x20] sm:$0xf]  ;;  %v394_v9 = vld [vmem:[%s8747_s14 + $0x24] sm:$0xf] }
  0x58   : > { %v7963_v25 = vcombine.low %v3275_v11, %v3285_v17  ;;  %v1252_v28 = vrot.slane %v1251_v18, 4  ;;  %v1785_v30 = vsel %vm8805_vm13, %v7853_v14, %v1784_v22  ;;  %v1786_v29 = vrot.slane %v1784_v22, 4  ;;  %v444_v11 = vld [vmem:[#allocation2 + $0x3c] sm:$0x1]  ;;  %v500_v17 = vld [vmem:[#allocation2 + $0x44] sm:$0x1] }
  0x59   : > { %v1791_v31 = vrot.slane %v1679_v15, 5  ;;  %v1262_v33 = vrot.slane %v1261_v61, 4  ;;  %v1794_v34 = vrot.slane %v1680_v24, 5  ;;  %v596_v35 = vshll.u32 %v8825_v19, 16  ;;  %v8418_v19 = vld [vmem:[#allocation2 + $0x24] sm:$0xff]  }
  0x5a   : > { %3694 = vrot.lane.b32.xlu0 %v7963_v25, %s8598_s12  ;;  %v599_v36 = vrot.slane %v8855_v6, 4  ;;  %v1257_v39 = vsel %vm8841_vm14, %v1252_v28, %v1256_v8  ;;  %v1788_v40 = vsel %vm8805_vm13, %v1786_v29, %v1787_v23  ;;  %v601_v49 = vshrl.u32 %v392_v32, 16 }
  0x5b   : > { %v1792_v42 = vsel %vm8805_vm13, %v7854_v27, %v1791_v31  ;;  %v1793_v38 = vrot.slane %v1791_v31, 4  ;;  %v1267_v46 = vsel %vm8841_vm14, %v1262_v33, %v1266_v26  ;;  %v7869_v47 = vcombine.low %v1785_v30, %v1788_v40 }
  0x5c   : > { %v598_v48 = vor.u32 %v596_v35, %v8855_v6  ;;  %v7838_v52 = vcombine.low %v1257_v39, %v1267_v46  ;;  %v604_v54 = vshll.u32 %v392_v32, 16  ;;  %v2267_v55 = vshrl.u32 %v2176_v37, 16 }
  0x5d   : > { %v1795_v53 = vsel %vm8805_vm13, %v1793_v38, %v1794_v34  ;;  %v603_v20 = vrot.slane %v601_v49, 7  ;;  %v2270_v56 = vshll.u32 %v2176_v37, 16  ;;  %v2276_v62 = vshll.u32 %v2177_v50, 16 }
  0x5e   : > { %1932 = vrot.lane.b32.xlu0 %v7869_v47, %s10950_s16  ;;  %v7870_v59 = vcombine.low %v1792_v42, %v1795_v53  ;;  %v886_v6 = vsel %vm8769_vm10, %v598_v48, %v885_v43  ;;  %1610 = vrot.lane.b32.xlu1 %v7838_v52, %s10943_s24  ;;  %v2269_v60 = vrot.slane %v2267_v55, 4  ;;  %v2280_v63 = vshrl.u32 %v2177_v50, 16 }
  0x5f   : > { %887 = vst [vmem:[#allocation2 + $0x30] sm:$0xf] %v886_v6  ;;  %v2286_v1 = vshll.u32 %v2178_v51, 16  ;;  %v606_v5 = vor.u32 %v604_v54, %v603_v20  ;;  %v2272_v7 = vrot.slane %v2270_v56, 5  ;;  %v498_v8 = vsel %vm8754_vm6, 0, %v497_v44 }
  0x60   : > { %v608_v12 = vrot.slane %v603_v20, 4  ;;  %v2278_v13 = vrot.slane %v2276_v62, 5  ;;  %v2282_v14 = vrot.slane %v2280_v63, 4  ;;  %499 = vst [vmem:[#allocation2 + $0x38] sm:$0x1] %v498_v8  ;;  %v7917_v23 = vrot.slane %v2721_v57, 9 }
  0x61   : > { %v2288_v15 = vrot.slane %v2286_v1, 5  ;;  %v607_v18 = vsel %vm8761_vm7, %v599_v36, %v606_v5  ;;  %v2273_v22 = vor.u32 %v2272_v7, %v2269_v60  ;;  %v2827_v24 = vrot.slane %v2722_v58, 5 }
  0x62   : > { %2109 = vrot.lane.b32.xlu0 %v8418_v19, %s8591_s15  ;;  %1934 = vrot.lane.b32.xlu1 %v7870_v59, %s10950_s16  ;;  %888 = vst.msk [vmem:[#allocation2 + $0x34] sm:$0xf] %vm417_vm0, %v607_v18  ;;  %v2283_v25 = vor.u32 %v2282_v14, %v2278_v13  ;;  %v2830_v61 = vrot.slane %v2723_v45, 5  ;;  %v445_v26 = vsel %vm8723_vm3, 0, %v444_v11  ;;  %v610_v27 = vshrl.u32 %v393_v4, 16 }
  0x63   : > { %v2274_v28 = vrot.slane %v2273_v22, 4  ;;  %v2829_v30 = vrot.slane %v2827_v24, 4  ;;  %446 = vst [vmem:[#allocation2 + $0x3c] sm:$0x1] %v445_v26  ;;  %v613_v29 = vshll.u32 %v393_v4, 16  ;;  %v618_v31 = vshrl.u32 %v394_v9, 16 }
  0x64   : > { %v2284_v32 = vrot.slane %v2283_v25, 4  ;;  %v612_v33 = vrot.slane %v610_v27, 7  ;;  %v621_v34 = vshll.u32 %v394_v9, 16  ;;  %v501_v35 = vsel %vm8754_vm6, 0, %v500_v17 }
  0x65   : > { %v2279_v36 = vsel %vm8841_vm14, %v2274_v28, %v2278_v13  ;;  %v2828_v39 = vsel %vm8805_vm13, %v7917_v23, %v2827_v24  ;;  %502 = vst [vmem:[#allocation2 + $0x44] sm:$0x1] %v501_v35  ;;  %v2831_v44 = vsel %vm8805_vm13, %v2829_v30, %v2830_v61  ;;  %v620_v53 = vrot.slane %v618_v31, 7 }
  0x66   : > { %v2179_v37 = vld [vmem:[#allocation2 + $0x30] sm:$0xf]  ;;  %v2289_v42 = vsel %vm8841_vm14, %v2284_v32, %v2288_v15  ;;  %v616_v49 = vrot.slane %v612_v33, 4  ;;  %v7933_v57 = vcombine.low %v2828_v39, %v2831_v44  ;;  %v615_v58 = vor.u32 %v613_v29, %v612_v33 }
  0x67   : > { %v8959_v40 = vld [vmem:[#allocation2 + $0x30] sm:$0xe]  ;;  %v2291_v38 = vshrl.u32 %v2179_v37, 16  ;;  %v2294_v43 = vshll.u32 %v2179_v37, 16  ;;  %v7901_v47 = vcombine.low %v2279_v36, %v2289_v42  ;;  %v889_v19 = vld [vmem:[#allocation2 + $0x38] sm:$0x1]  ;;  %v623_v60 = vor.u32 %v621_v34, %v620_v53 }
  0x68   : > { %v3220_v46 = vld [vmem:[#allocation2 + $0x30] sm:$0xf]  ;;  %v7918_v48 = vrot.slane %v8959_v40, 9  ;;  %v890_v50 = vsel %vm8723_vm3, %v608_v12, %v889_v19  ;;  %v625_v63 = vrot.slane %v620_v53, 4  ;;  %vm1652_vm1 = vcmask 64544  }
  0x69   : > { %v2293_v51 = vrot.slane %v2291_v38, 4  ;;  %v2296_v52 = vrot.slane %v2294_v43, 5  ;;  %v8419_v54 = vld [vmem:[#allocation2 + $0x30] sm:$0xff]   ;;  %2654 = vrot.lane.b32.xlu0 %v7901_v47, %s10955_s30  ;;  %891 = vst [vmem:[#allocation2 + $0x38] sm:$0x1] %v890_v50  ;;  %v3311_v59 = vshrl.u32 %v3220_v46, 16  ;;  %v624_v9 = vsel %vm8761_vm7, %v616_v49, %v623_v60 }
  0x6a   : > { %v2180_v55 = vld [vmem:[#allocation2 + $0x34] sm:$0xf]  ;;  %2111 = vrot.lane.b32.xlu1 %v8419_v54, %s8591_s15  ;;  %v892_v1 = vld [vmem:[#allocation2 + $0x3c] sm:$0xf]  ;;  %v3765_v4 = vld [vmem:[#allocation2 + $0x30] sm:$0xe] }
  0x6b   : > { %v2297_v20 = vor.u32 %v2296_v52, %v2293_v51  ;;  %v2300_v6 = vshll.u32 %v2180_v55, 16  ;;  %v2304_v56 = vshrl.u32 %v2180_v55, 16  ;;  %v2725_v45 = vld [vmem:[#allocation2 + $0x34] sm:$0xf]  ;;  %v3313_v12 = vrot.slane %v3311_v59, 4 }
  0x6c   : > { %v2834_v62 = vrot.slane %v2725_v45, 5  ;;  %v8420_v8 = vld [vmem:[#allocation2 + $0x30] sm:$0xff]   ;;  %v893_v14 = vsel %vm8769_vm10, %v615_v58, %v892_v1  ;;  %895 = vst.msk [vmem:[#allocation2 + $0x40] sm:$0xf] %vm417_vm0, %v624_v9  ;;  %v3314_v15 = vshll.u32 %v3220_v46, 16  ;;  %v7981_v27 = vrot.slane %v3765_v4, 9 }
  0x6d   : > { %v2302_v5 = vrot.slane %v2300_v6, 5  ;;  %v2306_v7 = vrot.slane %v2304_v56, 4  ;;  %v3221_v11 = vld [vmem:[#allocation2 + $0x34] sm:$0xf]  ;;  %v2298_v13 = vrot.slane %v2297_v20, 4  ;;  %2975 = vrot.lane.b32.xlu0 %v7933_v57, %s8595_s25  ;;  %vm1976_vm8 = vcmask 97344  }
  0x6e   : > { %v896_v17 = vld [vmem:[#allocation2 + $0x44] sm:$0x1]  ;;  %v3766_v18 = vld [vmem:[#allocation2 + $0x34] sm:$0xf]  ;;  %v2836_v23 = vrot.slane %v2834_v62, 4  ;;  %v3320_v24 = vshll.u32 %v3221_v11, 16  ;;  %v2835_v40 = vsel %vm8805_vm13, %v7918_v48, %v2834_v62 }
  0x6f   : > { %v2307_v22 = vor.u32 %v2306_v7, %v2302_v5  ;;  %894 = vst [vmem:[#allocation2 + $0x3c] sm:$0xf] %v893_v14  ;;  %v3324_v25 = vshrl.u32 %v3221_v11, 16  ;;  %v3316_v61 = vrot.slane %v3314_v15, 5  ;;  %v897_v26 = vsel %vm8723_vm3, %v625_v63, %v896_v17  ;;  %v1133_v49 = vld [vmem:[#allocation2 + $0x30] sm:$0xf] }
  0x70   : > { %v3871_v28 = vrot.slane %v3766_v18, 5  ;;  %v2181_v30 = vld [vmem:[#allocation2 + $0x38] sm:$0x1]  ;;  %v3322_v32 = vrot.slane %v3320_v24, 5  ;;  %898 = vst [vmem:[#allocation2 + $0x44] sm:$0x1] %v897_v26  ;;  %v2303_v39 = vsel %vm8841_vm14, %v2298_v13, %v2302_v5 }
  0x71   : > { %v2308_v29 = vrot.slane %v2307_v22, 4  ;;  %v2726_v31 = vld [vmem:[#allocation2 + $0x38] sm:$0x1]  ;;  %v2310_v33 = vshll.u32 %v2181_v30, 16  ;;  %3153 = vrot.lane.b32.xlu0 %v8420_v8, %s8593_s22  ;;  %v3317_v36 = vor.u32 %v3316_v61, %v3313_v12  ;;  %v3326_v37 = vrot.slane %v3324_v25, 4 }
  0x72   : > { %v2837_v34 = vrot.slane %v2726_v31, 5  ;;  %v3222_v35 = vld [vmem:[#allocation2 + $0x38] sm:$0x1]  ;;  %v3873_v43 = vrot.slane %v3871_v28, 4  ;;  %v3872_v52 = vsel %vm8805_vm13, %v7981_v27, %v3871_v28  ;;  %v1134_v45 = vld [vmem:[#allocation2 + $0x34] sm:$0xf] }
  0x73   : > { %v3330_v42 = vshll.u32 %v3222_v35, 16  ;;  %v3767_v38 = vld [vmem:[#allocation2 + $0x38] sm:$0x1]  ;;  %v2312_v44 = vrot.slane %v2310_v33, 5  ;;  %v3318_v47 = vrot.slane %v3317_v36, 4  ;;  %v3327_v19 = vor.u32 %v3326_v37, %v3322_v32 }
  0x74   : > { %v2838_v46 = vsel %vm8805_vm13, %v2836_v23, %v2837_v34  ;;  %v3224_v51 = vld [vmem:[#allocation2 + $0x40] sm:$0xf]  ;;  %v3874_v53 = vrot.slane %v3767_v38, 5  ;;  %v1135_v4 = vld [vmem:[#allocation2 + $0x38] sm:$0x1]  ;;  %v1269_v5 = vshrl.u32 %v1133_v49, 16 }
  0x75   : > { %v3332_v50 = vrot.slane %v3330_v42, 5  ;;  %v2313_v54 = vsel %vm8841_vm14, %v2308_v29, %v2312_v44  ;;  %v7934_v48 = vcombine.low %v2835_v40, %v2838_v46  ;;  %v3323_v55 = vsel %vm8841_vm14, %v3318_v47, %v3322_v32  ;;  %v3769_v18 = vld [vmem:[#allocation2 + $0x40] sm:$0xf] }
  0x76   : > { %v3328_v57 = vrot.slane %v3327_v19, 4  ;;  %v3223_v58 = vld [vmem:[#allocation2 + $0x3c] sm:$0xf]  ;;  %v7902_v59 = vcombine.low %v2303_v39, %v2313_v54  ;;  %v3344_v56 = vshll.u32 %v3224_v51, 16  ;;  %v3348_v63 = vshrl.u32 %v3224_v51, 16 }
  0x77   : > { %v3335_v20 = vshrl.u32 %v3223_v58, 16  ;;  %v3338_v6 = vshll.u32 %v3223_v58, 16  ;;  %v3225_v62 = vld [vmem:[#allocation2 + $0x44] sm:$0x1]  ;;  %v3875_v1 = vsel %vm8805_vm13, %v3873_v43, %v3874_v53  ;;  %v3768_v12 = vld [vmem:[#allocation2 + $0x3c] sm:$0xe] }
  0x78   : > { %v3333_v60 = vsel %vm8841_vm14, %v3328_v57, %v3332_v50  ;;  %2656 = vrot.lane.b32.xlu1 %v7902_v59, %s10955_s30  ;;  %v3346_v11 = vrot.slane %v3344_v56, 5  ;;  %v3350_v13 = vrot.slane %v3348_v63, 4  ;;  %v3354_v14 = vshll.u32 %v3225_v62, 16  ;;  %v3770_v61 = vld [vmem:[#allocation2 + $0x44] sm:$0x1]  ;;  %v8421_v31 = vld [vmem:[#allocation2 + $0x3c] sm:$0xff]  }
  0x79   : > { %v7965_v7 = vcombine.low %v3323_v55, %v3333_v60  ;;  %v3337_v8 = vrot.slane %v3335_v20, 4  ;;  %v3340_v9 = vrot.slane %v3338_v6, 5  ;;  %v7997_v15 = vcombine.low %v3872_v52, %v3875_v1  ;;  %v1136_v29 = vld [vmem:[#allocation2 + $0x3c] sm:$0xf]  ;;  %v1137_v44 = vld [vmem:[#allocation2 + $0x40] sm:$0xf] }
  0x7a   : > { %v1271_v17 = vrot.slane %v1269_v5, 4  ;;  %v1272_v23 = vshll.u32 %v1133_v49, 16  ;;  %v1278_v24 = vshll.u32 %v1134_v45, 16  ;;  %v1282_v25 = vshrl.u32 %v1134_v45, 16  ;;  %v1138_v50 = vld [vmem:[#allocation2 + $0x44] sm:$0x1] }
  0x7b   : > { %3698 = vrot.lane.b32.xlu0 %v7965_v7, %s8598_s12  ;;  %v3341_v22 = vor.u32 %v3340_v9, %v3337_v8  ;;  %v3351_v26 = vor.u32 %v3350_v13, %v3346_v11  ;;  %v3356_v27 = vrot.slane %v3354_v14, 5  ;;  %v1288_v28 = vshll.u32 %v1135_v4, 16  ;;  %v1681_v52 = vld [vmem:[#allocation2 + $0x30] sm:$0xe]  ;;  %v1682_v57 = vld [vmem:[#allocation2 + $0x34] sm:$0xf] }
  0x7c   : > { %v7982_v30 = vrot.slane %v3768_v12, 9  ;;  %2977 = vrot.lane.b32.xlu1 %v7934_v48, %s8595_s25  ;;  %v1274_v33 = vrot.slane %v1272_v23, 5  ;;  %v1280_v34 = vrot.slane %v1278_v24, 5  ;;  %v1284_v35 = vrot.slane %v1282_v25, 4  ;;  %v1683_v56 = vld [vmem:[#allocation2 + $0x38] sm:$0x1] }
  0x7d   : > { %v3342_v32 = vrot.slane %v3341_v22, 4  ;;  %v3352_v36 = vrot.slane %v3351_v26, 4  ;;  %v1290_v37 = vrot.slane %v1288_v28, 5  ;;  %v3878_v39 = vrot.slane %v3769_v18, 5  ;;  %v447_v45 = vld [vmem:[#allocation2 + $0x48] sm:$0x1] }
  0x7e   : > { %v3881_v40 = vrot.slane %v3770_v61, 5  ;;  %v1275_v38 = vor.u32 %v1274_v33, %v1271_v17  ;;  %v1285_v43 = vor.u32 %v1284_v35, %v1280_v34  ;;  %v1293_v46 = vshrl.u32 %v1136_v29, 16  ;;  %v1684_v4 = vld [vmem:[#allocation2 + $0x3c] sm:$0xe]  ;;  %v1685_v5 = vld [vmem:[#allocation2 + $0x40] sm:$0xf] }
  0x7f   : > { %v3347_v42 = vsel %vm8841_vm14, %v3342_v32, %v3346_v11  ;;  %4019 = vrot.lane.b32.xlu0 %v7997_v15, %s10938_s29  ;;  %v3357_v47 = vsel %vm8841_vm14, %v3352_v36, %v3356_v27  ;;  %v3879_v19 = vsel %vm8805_vm13, %v7982_v30, %v3878_v39  ;;  %v3880_v49 = vrot.slane %v3878_v39, 4  ;;  %v1686_v12 = vld [vmem:[#allocation2 + $0x44] sm:$0x1]  ;;  %v395_v13 = vld [vmem:[%s8747_s14 + $0x28] sm:$0xf] }
  0x80   : > { %v1296_v51 = vshll.u32 %v1136_v29, 16  ;;  %3155 = vrot.lane.b32.xlu1 %v8421_v31, %s8593_s22  ;;  %v7966_v53 = vcombine.low %v3347_v42, %v3357_v47  ;;  %v1276_v54 = vrot.slane %v1275_v38, 4  ;;  %v1286_v48 = vrot.slane %v1285_v43, 4  ;;  %v396_v14 = vld [vmem:[%s8747_s14 + $0x2c] sm:$0xf]  ;;  %v8435_v36 = vld [vmem:[%s10978_s1] sm:$0xff]  }
  0x81   : > { %v1295_v55 = vrot.slane %v1293_v46, 4  ;;  %v3882_v58 = vsel %vm8805_vm13, %v3880_v49, %v3881_v40  ;;  %v1302_v20 = vshll.u32 %v1137_v44, 16  ;;  %v1306_v6 = vshrl.u32 %v1137_v44, 16  ;;  %v2182_v29 = vld [vmem:[#allocation2 + $0x3c] sm:$0xf]  ;;  %8276 = vmatprep.subr.bf16.mxu0 %v8435_v36 }
  0x82   : > { %v1298_v59 = vrot.slane %v1296_v51, 5  ;;  %v1281_v60 = vsel %vm8841_vm14, %v1276_v54, %v1280_v34  ;;  %v1291_v62 = vsel %vm8841_vm14, %v1286_v48, %v1290_v37  ;;  %v7998_v63 = vcombine.low %v3879_v19, %v3882_v58  ;;  %v2183_v31 = vld [vmem:[#allocation2 + $0x40] sm:$0xf]  ;;  %v2184_v47 = vld [vmem:[#allocation2 + $0x44] sm:$0x1]  ;;  %8277 = vmatpush3.bf16.msra.mxu0 %v8435_v36 }
  0x83   : > { %v1312_v1 = vshll.u32 %v1138_v50, 16  ;;  %v7839_v7 = vcombine.low %v1281_v60, %v1291_v62  ;;  %v1304_v9 = vrot.slane %v1302_v20, 5  ;;  %v1308_v11 = vrot.slane %v1306_v6, 4  ;;  %v503_v19 = vld [vmem:[#allocation2 + $0x50] sm:$0x1]  ;;  %v8438_v20 = vld [vmem:[%s10978_s1 + $0x8] sm:$0xff]  }
  0x84   : > { %v1299_v8 = vor.u32 %v1298_v59, %v1295_v55  ;;  %3700 = vrot.lane.b32.xlu1 %v7966_v53, %s8598_s12  ;;  %4021 = vrot.lane.b32.xlu0 %v7998_v63, %s10938_s29  ;;  %v7855_v17 = vrot.slane %v1681_v52, 9  ;;  %v1798_v18 = vrot.slane %v1682_v57, 5  ;;  %v1801_v22 = vrot.slane %v1683_v56, 5  ;;  %v2727_v52 = vld [vmem:[#allocation2 + $0x3c] sm:$0xe]  ;;  %s10979_s29 = smov 32  }
  0x85   : > { %v1314_v15 = vrot.slane %v1312_v1, 5  ;;  %v1309_v24 = vor.u32 %v1308_v11, %v1304_v9  ;;  %v7856_v25 = vrot.slane %v1684_v4, 9  ;;  %v1805_v61 = vrot.slane %v1685_v5, 5  ;;  %v8422_v53 = vld [vmem:[#allocation2 + $0x3c] sm:$0xff]   ;;  %v9038_v58 = vld [vmem:[%s8747_s14 + $0x30] sm:$0xf]  ;;  %8278 = vmatprep.subr.bf16.mxu0 %v8438_v20 }
  0x86   : > { %v1300_v23 = vrot.slane %v1299_v8, 4  ;;  %v1799_v26 = vsel %vm8805_vm13, %v7855_v17, %v1798_v18  ;;  %v1800_v27 = vrot.slane %v1798_v18, 4  ;;  %v1808_v28 = vrot.slane %v1686_v12, 5  ;;  %v450_v59 = vld [vmem:[#allocation2 + $0x54] sm:$0x1]  ;;  %8279 = vmatpush3.bf16.msra.mxu0 %v8438_v20 }
  0x87   : > { %v448_v30 = vsel %vm8723_vm3, 0, %v447_v45  ;;  %v1310_v33 = vrot.slane %v1309_v24, 4  ;;  %v1806_v34 = vsel %vm8805_vm13, %v7856_v25, %v1805_v61  ;;  %v1807_v35 = vrot.slane %v1805_v61, 4  ;;  %v2728_v62 = vld [vmem:[#allocation2 + $0x40] sm:$0xf] }
  0x88   : > { %v1305_v32 = vsel %vm8841_vm14, %v1300_v23, %v1304_v9  ;;  %449 = vst [vmem:[#allocation2 + $0x48] sm:$0x1] %v448_v30  ;;  %1612 = vrot.lane.b32.xlu1 %v7839_v7, %s10943_s24  ;;  %v1802_v37 = vsel %vm8805_vm13, %v1800_v27, %v1801_v22  ;;  %v627_v39 = vshrl.u32 %v395_v13, 16  ;;  %v630_v40 = vshll.u32 %v395_v13, 16  ;;  %v2729_v63 = vld [vmem:[#allocation2 + $0x44] sm:$0x1] }
  0x89   : > { %v635_v42 = vshrl.u32 %v396_v14, 16  ;;  %v1315_v38 = vsel %vm8841_vm14, %v1310_v33, %v1314_v15  ;;  %v7871_v43 = vcombine.low %v1799_v26, %v1802_v37  ;;  %v1809_v44 = vsel %vm8805_vm13, %v1807_v35, %v1808_v28  ;;  %v398_v22 = vld [vmem:[%s8747_s14 + $0x34] sm:$0xf]  ;;  %v506_v23 = vld [vmem:[#allocation2 + $0x5c] sm:$0x1] }
  0x8a   : > { %v638_v46 = vshll.u32 %v396_v14, 16  ;;  %v7840_v49 = vcombine.low %v1305_v32, %v1315_v38  ;;  %v629_v50 = vrot.slane %v627_v39, 7  ;;  %v2315_v54 = vshrl.u32 %v2182_v29, 16  ;;  %v9059_v27 = vld [vmem:[%s8747_s14 + $0x38] sm:$0xf] }
  0x8b   : > { %v9034_v51 = vrot.slane %v635_v42, 7  ;;  %1936 = vrot.lane.b32.xlu0 %v7871_v43, %s10950_s16  ;;  %v2318_v48 = vshll.u32 %v2182_v29, 16  ;;  %v2324_v55 = vshll.u32 %v2183_v31, 16  ;;  %v2328_v57 = vshrl.u32 %v2183_v31, 16  ;;  %v453_v28 = vld [vmem:[#allocation2 + $0x60] sm:$0x1] }
  0x8c   : > { %1614 = vrot.lane.b32.xlu1 %v7840_v49, %s10943_s24  ;;  %v7872_v6 = vcombine.low %v1806_v34, %v1809_v44  ;;  %v632_v56 = vor.u32 %v630_v40, %v629_v50  ;;  %v633_v45 = vrot.slane %v629_v50, 4  ;;  %v2317_v1 = vrot.slane %v2315_v54, 4 }
  0x8d   : > { %v640_v60 = vor.u32 %v638_v46, %v9034_v51  ;;  %v2320_v4 = vrot.slane %v2318_v48, 5  ;;  %v2326_v5 = vrot.slane %v2324_v55, 5  ;;  %v2330_v7 = vrot.slane %v2328_v57, 4 }
  0x8e   : > { %v2334_v11 = vshll.u32 %v2184_v47, 16  ;;  %v504_v12 = vsel %vm8754_vm6, 0, %v503_v19  ;;  %v7919_v13 = vrot.slane %v2727_v52, 9  ;;  %v2841_v18 = vrot.slane %v2728_v62, 5 }
  0x8f   : > { %v641_v8 = vsel %vm8761_vm7, %v633_v45, %v640_v60  ;;  %v899_v9 = vld [vmem:[#allocation2 + $0x48] sm:$0xf]  ;;  %2113 = vrot.lane.b32.xlu0 %v8422_v53, %s8591_s15  ;;  %v2321_v15 = vor.u32 %v2320_v4, %v2317_v1  ;;  %v2331_v17 = vor.u32 %v2330_v7, %v2326_v5  ;;  %505 = vst [vmem:[#allocation2 + $0x50] sm:$0x1] %v504_v12  ;;  %v2844_v25 = vrot.slane %v2729_v63, 5 }
  0x90   : > { %v900_v14 = vsel %vm8769_vm10, %v632_v56, %v899_v9  ;;  %902 = vst.msk [vmem:[#allocation2 + $0x4c] sm:$0xf] %vm417_vm0, %v641_v8  ;;  %1938 = vrot.lane.b32.xlu1 %v7872_v6, %s10950_s16  ;;  %v2336_v24 = vrot.slane %v2334_v11, 5  ;;  %v451_v61 = vsel %vm8723_vm3, 0, %v450_v59  ;;  %v644_v26 = vshrl.u32 %v9038_v58, 16 }
  0x91   : > { %901 = vst [vmem:[#allocation2 + $0x48] sm:$0xf] %v900_v14  ;;  %v642_v30 = vrot.slane %v9034_v51, 4  ;;  %v2322_v29 = vrot.slane %v2321_v15, 4  ;;  %v2332_v31 = vrot.slane %v2331_v17, 4  ;;  %v2843_v32 = vrot.slane %v2841_v18, 4 }
  0x92   : > { %452 = vst [vmem:[#allocation2 + $0x54] sm:$0x1] %v451_v61  ;;  %v2842_v33 = vsel %vm8805_vm13, %v7919_v13, %v2841_v18  ;;  %v646_v34 = vrot.slane %v644_v26, 7  ;;  %v652_v35 = vshrl.u32 %v398_v22, 16  ;;  %v655_v36 = vshll.u32 %v398_v22, 16 }
  0x93   : > { %v2327_v37 = vsel %vm8841_vm14, %v2322_v29, %v2326_v5  ;;  %v2337_v39 = vsel %vm8841_vm14, %v2332_v31, %v2336_v24  ;;  %v2845_v40 = vsel %vm8805_vm13, %v2843_v32, %v2844_v25  ;;  %v507_v42 = vsel %vm8754_vm6, 0, %v506_v23 }
  0x94   : > { %v7903_v38 = vcombine.low %v2327_v37, %v2337_v39  ;;  %v647_v43 = vshll.u32 %v9038_v58, 16  ;;  %508 = vst [vmem:[#allocation2 + $0x5c] sm:$0x1] %v507_v42  ;;  %v650_v44 = vrot.slane %v646_v34, 4  ;;  %v654_v46 = vrot.slane %v652_v35, 7 }
  0x95   : > { %v454_v47 = vsel %vm8723_vm3, 0, %v453_v28  ;;  %v661_v19 = vshrl.u32 %v9059_v27, 16  ;;  %v7935_v51 = vcombine.low %v2842_v33, %v2845_v40  ;;  %v664_v6 = vshll.u32 %v9059_v27, 16 }
  0x96   : > { %2658 = vrot.lane.b32.xlu0 %v7903_v38, %s10955_s30  ;;  %v903_v49 = vld [vmem:[#allocation2 + $0x50] sm:$0x1]  ;;  %455 = vst [vmem:[#allocation2 + $0x60] sm:$0x1] %v454_v47  ;;  %v657_v55 = vor.u32 %v655_v36, %v654_v46  ;;  %v649_v62 = vor.u32 %v647_v43, %v646_v34  ;;  %v659_v9 = vrot.slane %v654_v46, 4  ;;  %vm10946_vm9 = vcmask 130144  }
  0x97   : > { %v2186_v50 = vld [vmem:[#allocation2 + $0x4c] sm:$0xf]  ;;  %v904_v53 = vsel %vm8723_vm3, %v642_v30, %v903_v49  ;;  %v9088_v22 = vrot.slane %v661_v19, 7  ;;  %vm2698_vm11 = vcmask 162944   ;;  %vm10949_vm12 = vcmask 195744  }
  0x98   : > { %v8423_v52 = vld [vmem:[#allocation2 + $0x48] sm:$0xff]   ;;  %v2348_v48 = vshll.u32 %v2186_v50, 16  ;;  %905 = vst [vmem:[#allocation2 + $0x50] sm:$0x1] %v904_v53  ;;  %v2352_v59 = vshrl.u32 %v2186_v50, 16  ;;  %v658_v63 = vsel %vm8761_vm7, %v650_v44, %v657_v55  ;;  %vm10947_vm5 = vcmask 228544  }
  0x99   : > { %v2185_v54 = vld [vmem:[#allocation2 + $0x48] sm:$0xf]  ;;  %2115 = vrot.lane.b32.xlu1 %v8423_v52, %s8591_s15  ;;  %v2731_v45 = vld [vmem:[#allocation2 + $0x4c] sm:$0xf]  ;;  %909 = vst.msk [vmem:[#allocation2 + $0x58] sm:$0xf] %vm417_vm0, %v658_v63 }
  0x9a   : > { %v2339_v57 = vshrl.u32 %v2185_v54, 16  ;;  %v2342_v58 = vshll.u32 %v2185_v54, 16  ;;  %v2730_v20 = vld [vmem:[#allocation2 + $0x48] sm:$0xe]  ;;  %v9081_v56 = vrot.slane %v2348_v48, 5  ;;  %v2354_v5 = vrot.slane %v2352_v59, 4  ;;  %2979 = vrot.lane.b32.xlu0 %v7935_v51, %s8595_s25 }
  0x9b   : > { %v8424_v60 = vld [vmem:[#allocation2 + $0x48] sm:$0xff]   ;;  %v2848_v7 = vrot.slane %v2731_v45, 5  ;;  %v7920_v8 = vrot.slane %v2730_v20, 9  ;;  %v906_v11 = vld [vmem:[#allocation2 + $0x54] sm:$0xf]  ;;  %vm3742_vm4 = vcmask 261344  }
  0x9c   : > { %v2341_v1 = vrot.slane %v2339_v57, 4  ;;  %v2344_v4 = vrot.slane %v2342_v58, 5  ;;  %v3226_v12 = vld [vmem:[#allocation2 + $0x48] sm:$0xf]  ;;  %v2355_v14 = vor.u32 %v2354_v5, %v9081_v56  ;;  %v3227_v17 = vld [vmem:[#allocation2 + $0x4c] sm:$0xf]  ;;  %v907_v24 = vsel %vm8769_vm10, %v649_v62, %v906_v11 }
  0x9d   : > { %v2850_v15 = vrot.slane %v2848_v7, 4  ;;  %v910_v18 = vld [vmem:[#allocation2 + $0x5c] sm:$0x1]  ;;  %v3359_v25 = vshrl.u32 %v3226_v12, 16  ;;  %v3362_v61 = vshll.u32 %v3226_v12, 16  ;;  %v3368_v26 = vshll.u32 %v3227_v17, 16 }
  0x9e   : > { %v2345_v13 = vor.u32 %v2344_v4, %v2341_v1  ;;  %v9090_v23 = vpop.permute.xlu0 %2105  ;;  %3157 = vrot.lane.b32.xlu0 %v8424_v60, %s8593_s22  ;;  %908 = vst [vmem:[#allocation2 + $0x54] sm:$0xf] %v907_v24  ;;  %v3372_v30 = vshrl.u32 %v3227_v17, 16  ;;  %v911_v29 = vsel %vm8723_vm3, %v659_v9, %v910_v18  ;;  %v3771_v31 = vld [vmem:[#allocation2 + $0x48] sm:$0xe]  ;;  %v9099_v35 = vsel %vm8805_vm13, %v7920_v8, %v2848_v7 }
  0x9f   : > { %v3772_v32 = vld [vmem:[#allocation2 + $0x4c] sm:$0xf]  ;;  %v2187_v33 = vld [vmem:[#allocation2 + $0x50] sm:$0x1]  ;;  %912 = vst [vmem:[#allocation2 + $0x5c] sm:$0x1] %v911_v29 }
  0xa0   : > { %v2346_v28 = vrot.slane %v2345_v13, 4  ;;  %v2732_v34 = vld [vmem:[#allocation2 + $0x50] sm:$0x1]  ;;  %v2356_v37 = vrot.slane %v2355_v14, 4  ;;  %v2358_v39 = vshll.u32 %v2187_v33, 16  ;;  %v3361_v42 = vrot.slane %v3359_v25, 4  ;;  %v9101_v38 = vpop.permute.xlu1 %1928 }
  0xa1   : > { %v3228_v36 = vld [vmem:[#allocation2 + $0x50] sm:$0x1]  ;;  %v2851_v40 = vrot.slane %v2732_v34, 5  ;;  %v3364_v43 = vrot.slane %v3362_v61, 5  ;;  %v3370_v44 = vrot.slane %v3368_v26, 5  ;;  %v3374_v46 = vrot.slane %v3372_v30, 4 }
  0xa2   : > { %v3378_v47 = vshll.u32 %v3228_v36, 16  ;;  %v2351_v19 = vsel %vm8841_vm14, %v2346_v28, %v9081_v56  ;;  %v2360_v49 = vrot.slane %v2358_v39, 5  ;;  %v3230_v50 = vld [vmem:[#allocation2 + $0x58] sm:$0xf]  ;;  %v7983_v51 = vrot.slane %v3771_v31, 9  ;;  %v9106_v53 = vpop.permute.xlu0 %3149 }
  0xa3   : > { %v3885_v52 = vrot.slane %v3772_v32, 5  ;;  %v2852_v54 = vsel %vm8805_vm13, %v2850_v15, %v2851_v40  ;;  %v3365_v48 = vor.u32 %v3364_v43, %v3361_v42  ;;  %v3375_v55 = vor.u32 %v3374_v46, %v3370_v44  ;;  %v3773_v45 = vld [vmem:[#allocation2 + $0x50] sm:$0x1]  ;;  %v1139_v60 = vld [vmem:[#allocation2 + $0x48] sm:$0xf] }
  0xa4   : > { %v3380_v57 = vrot.slane %v3378_v47, 5  ;;  %v2361_v58 = vsel %vm8841_vm14, %v2356_v37, %v2360_v49  ;;  %v3392_v59 = vshll.u32 %v3230_v50, 16  ;;  %v3396_v20 = vshrl.u32 %v3230_v50, 16  ;;  %v9120_v13 = vpop.permute.xlu1 %2107  ;;  %v1140_v17 = vld [vmem:[#allocation2 + $0x4c] sm:$0xf] }
  0xa5   : > { %v9115_v56 = vor.u32 %v664_v6, %v9088_v22  ;;  %v7904_v62 = vcombine.low %v2351_v19, %v2361_v58  ;;  %v3366_v63 = vrot.slane %v3365_v48, 4  ;;  %v3376_v1 = vrot.slane %v3375_v55, 4  ;;  %v3229_v7 = vld [vmem:[#allocation2 + $0x54] sm:$0xf]  ;;  %v1141_v26 = vld [vmem:[#allocation2 + $0x50] sm:$0x1] }
  0xa6   : > { %v3887_v4 = vrot.slane %v3885_v52, 4  ;;  %v7936_v5 = vcombine.low %v9099_v35, %v2852_v54  ;;  %v3231_v8 = vld [vmem:[#allocation2 + $0x5c] sm:$0x1]  ;;  %v3394_v9 = vrot.slane %v3392_v59, 5  ;;  %v3398_v11 = vrot.slane %v3396_v20, 4  ;;  %v8425_v34 = vld [vmem:[#allocation2 + $0x54] sm:$0xff]  }
  0xa7   : > { %v3886_v12 = vsel %vm8805_vm13, %v7983_v51, %v3885_v52  ;;  %2660 = vrot.lane.b32.xlu1 %v7904_v62, %s10955_s30  ;;  %v3371_v27 = vsel %vm8841_vm14, %v3366_v63, %v3370_v44  ;;  %v3381_v6 = vsel %vm8841_vm14, %v3376_v1, %v3380_v57  ;;  %v3383_v14 = vshrl.u32 %v3229_v7, 16  ;;  %v3775_v33 = vld [vmem:[#allocation2 + $0x58] sm:$0xf]  ;;  %v3774_v40 = vld [vmem:[#allocation2 + $0x54] sm:$0xe] }
  0xa8   : > { %v3386_v15 = vshll.u32 %v3229_v7, 16  ;;  %v7967_v18 = vcombine.low %v3371_v27, %v3381_v6  ;;  %v3399_v24 = vor.u32 %v3398_v11, %v3394_v9  ;;  %v3402_v25 = vshll.u32 %v3231_v8, 16  ;;  %v9127_v28 = vpop.permute.xlu0 %1604  ;;  %v3776_v47 = vld [vmem:[#allocation2 + $0x5c] sm:$0x1]  ;;  %v1142_v19 = vld [vmem:[#allocation2 + $0x54] sm:$0xf]  ;;  %v9135_v54 = vpop.permute.xlu1 %3151 }
  0xa9   : > { %v3888_v61 = vrot.slane %v3773_v45, 5  ;;  %v3385_v30 = vrot.slane %v3383_v14, 4  ;;  %v1317_v31 = vshrl.u32 %v1139_v60, 16  ;;  %v1320_v32 = vshll.u32 %v1139_v60, 16  ;;  %v1143_v59 = vld [vmem:[#allocation2 + $0x58] sm:$0xf] }
  0xaa   : > { %v3388_v29 = vrot.slane %v3386_v15, 5  ;;  %3702 = vrot.lane.b32.xlu0 %v7967_v18, %s8598_s12  ;;  %v3400_v35 = vrot.slane %v3399_v24, 4  ;;  %v3404_v36 = vrot.slane %v3402_v25, 5  ;;  %v1326_v39 = vshll.u32 %v1140_v17, 16  ;;  %v1144_v62 = vld [vmem:[#allocation2 + $0x5c] sm:$0x1] }
  0xab   : > { %v3889_v37 = vsel %vm8805_vm13, %v3887_v4, %v3888_v61  ;;  %2981 = vrot.lane.b32.xlu1 %v7936_v5, %s8595_s25  ;;  %v1319_v44 = vrot.slane %v1317_v31, 4  ;;  %v1322_v46 = vrot.slane %v1320_v32, 5  ;;  %v1330_v51 = vshrl.u32 %v1140_v17, 16  ;;  %v1687_v14 = vld [vmem:[#allocation2 + $0x48] sm:$0xe] }
  0xac   : > { %v3389_v42 = vor.u32 %v3388_v29, %v3385_v30  ;;  %v7999_v43 = vcombine.low %v3886_v12, %v3889_v37  ;;  %v3405_v49 = vsel %vm8841_vm14, %v3400_v35, %v3404_v36  ;;  %v1328_v50 = vrot.slane %v1326_v39, 5  ;;  %v1688_v15 = vld [vmem:[#allocation2 + $0x4c] sm:$0xf]  ;;  %v1690_v61 = vld [vmem:[#allocation2 + $0x54] sm:$0xe] }
  0xad   : > { %v1336_v52 = vshll.u32 %v1141_v26, 16  ;;  %v1323_v55 = vor.u32 %v1322_v46, %v1319_v44  ;;  %v7984_v57 = vrot.slane %v3774_v40, 9  ;;  %v3892_v58 = vrot.slane %v3775_v33, 5  ;;  %v1691_v32 = vld [vmem:[#allocation2 + $0x58] sm:$0xf] }
  0xae   : > { %v3390_v48 = vrot.slane %v3389_v42, 4  ;;  %4023 = vrot.lane.b32.xlu0 %v7999_v43, %s10979_s29  ;;  %v1332_v20 = vrot.slane %v1330_v51, 4  ;;  %v3895_v60 = vrot.slane %v3776_v47, 5  ;;  %v1341_v63 = vshrl.u32 %v1142_v19, 16  ;;  %v1692_v39 = vld [vmem:[#allocation2 + $0x5c] sm:$0x1] }
  0xaf   : > { %v1338_v45 = vrot.slane %v1336_v52, 5  ;;  %v9138_v1 = vpop.permute.xlu0 %2971  ;;  %3159 = vrot.lane.b32.xlu1 %v8425_v34, %s8593_s22  ;;  %v1324_v5 = vrot.slane %v1323_v55, 4  ;;  %v3893_v7 = vsel %vm8805_vm13, %v7984_v57, %v3892_v58  ;;  %v3894_v8 = vrot.slane %v3892_v58, 4  ;;  %v400_v47 = vld [vmem:[%s8747_s14 + $0x3c] sm:$0xf] }
  0xb0   : > { %v3395_v4 = vsel %vm8841_vm14, %v3390_v48, %v3394_v9  ;;  %v1333_v12 = vor.u32 %v1332_v20, %v1328_v50  ;;  %v1343_v27 = vrot.slane %v1341_v63, 4  ;;  %v1344_v6 = vshll.u32 %v1142_v19, 16  ;;  %v1689_v9 = vld [vmem:[#allocation2 + $0x50] sm:$0x1]  ;;  %v9149_v33 = vpop.permute.xlu1 %1930  ;;  %v913_v52 = vld [vmem:[#allocation2 + $0x60] sm:$0xf] }
  0xb1   : > { %v7968_v11 = vcombine.low %v3395_v4, %v3405_v49  ;;  %v1329_v17 = vsel %vm8841_vm14, %v1324_v5, %v1328_v50  ;;  %v3896_v18 = vsel %vm8805_vm13, %v3894_v8, %v3895_v60  ;;  %v1350_v24 = vshll.u32 %v1143_v59, 16  ;;  %v2188_v48 = vld [vmem:[#allocation2 + $0x54] sm:$0xf]  ;;  %v2189_v20 = vld [vmem:[#allocation2 + $0x58] sm:$0xf] }
  0xb2   : > { %v1354_v25 = vshrl.u32 %v1143_v59, 16  ;;  %v1334_v26 = vrot.slane %v1333_v12, 4  ;;  %v8000_v30 = vcombine.low %v3893_v7, %v3896_v18  ;;  %v1346_v29 = vrot.slane %v1344_v6, 5  ;;  %v2190_v4 = vld [vmem:[#allocation2 + $0x5c] sm:$0x1]  ;;  %v8426_v12 = vld [vmem:[#allocation2 + $0x54] sm:$0xff]  }
  0xb3   : > { %v1360_v31 = vshll.u32 %v1144_v62, 16  ;;  %3704 = vrot.lane.b32.xlu1 %v7968_v11, %s8598_s12  ;;  %v1352_v34 = vrot.slane %v1350_v24, 5  ;;  %v7857_v36 = vrot.slane %v1687_v14, 9  ;;  %v1812_v37 = vrot.slane %v1688_v15, 5  ;;  %v9152_v40 = vpop.permute.xlu0 %4015  ;;  %v2733_v18 = vld [vmem:[#allocation2 + $0x54] sm:$0xe] }
  0xb4   : > { %v1356_v35 = vrot.slane %v1354_v25, 4  ;;  %v1339_v42 = vsel %vm8841_vm14, %v1334_v26, %v1338_v45  ;;  %4025 = vrot.lane.b32.xlu0 %v8000_v30, %s10979_s29  ;;  %v1347_v43 = vor.u32 %v1346_v29, %v1343_v27  ;;  %v1815_v46 = vrot.slane %v1689_v9, 5  ;;  %v509_v27 = vld [vmem:[#allocation2 + $0x68] sm:$0x1]  ;;  %v9168_v6 = vpop.permute.xlu1 %2973  ;;  %v2734_v30 = vld [vmem:[#allocation2 + $0x58] sm:$0xf] }
  0xb5   : > { %v1362_v44 = vrot.slane %v1360_v31, 5  ;;  %v7841_v19 = vcombine.low %v1329_v17, %v1339_v42  ;;  %v1813_v50 = vsel %vm8805_vm13, %v7857_v36, %v1812_v37  ;;  %v1814_v51 = vrot.slane %v1812_v37, 4  ;;  %v401_v29 = vld [vmem:[%s8747_s14 + $0x40] sm:$0xf]  ;;  %v456_v31 = vld [vmem:[#allocation2 + $0x6c] sm:$0x1] }
  0xb6   : > { %v1357_v49 = vor.u32 %v1356_v35, %v1352_v34  ;;  %v1348_v55 = vrot.slane %v1347_v43, 4  ;;  %v7858_v57 = vrot.slane %v1690_v61, 9  ;;  %v1819_v58 = vrot.slane %v1691_v32, 5 }
  0xb7   : > { %v1822_v59 = vrot.slane %v1692_v39, 5  ;;  %1616 = vrot.lane.b32.xlu1 %v7841_v19, %s10943_s24  ;;  %v1816_v60 = vsel %vm8805_vm13, %v1814_v51, %v1815_v46  ;;  %v667_v62 = vrot.slane %v9088_v22, 4  ;;  %v669_v63 = vshrl.u32 %v400_v47, 16  ;;  %v9177_v24 = vpop.permute.xlu0 %4017  ;;  %v402_v51 = vld [vmem:[%s8747_s14 + $0x44] sm:$0xf] }
  0xb8   : > { %v1358_v45 = vrot.slane %v1357_v49, 4  ;;  %v1353_v5 = vsel %vm8841_vm14, %v1348_v55, %v1352_v34  ;;  %v7873_v7 = vcombine.low %v1813_v50, %v1816_v60  ;;  %v1820_v8 = vsel %vm8805_vm13, %v7858_v57, %v1819_v58 }
  0xb9   : > { %v1821_v11 = vrot.slane %v1819_v58, 4  ;;  %v9172_v15 = vrot.slane %v669_v63, 7  ;;  %v672_v22 = vshll.u32 %v400_v47, 16  ;;  %v914_v17 = vsel %vm8769_vm10, %v9115_v56, %v913_v52  ;;  %v2735_v56 = vld [vmem:[#allocation2 + $0x5c] sm:$0x1]  ;;  %v9192_v52 = vpop.permute.xlu1 %2652 }
  0xba   : > { %v1363_v14 = vsel %vm8841_vm14, %v1358_v45, %v1362_v44  ;;  %1940 = vrot.lane.b32.xlu0 %v7873_v7, %s10950_s16  ;;  %915 = vst [vmem:[#allocation2 + $0x60] sm:$0xf] %v914_v17  ;;  %v2363_v61 = vshrl.u32 %v2188_v48, 16  ;;  %v2366_v26 = vshll.u32 %v2188_v48, 16  ;;  %v2372_v35 = vshll.u32 %v2189_v20, 16 }
  0xbb   : > { %v7842_v25 = vcombine.low %v1353_v5, %v1363_v14  ;;  %v1823_v9 = vsel %vm8805_vm13, %v1821_v11, %v1822_v59  ;;  %v674_v34 = vor.u32 %v672_v22, %v9172_v15  ;;  %v2376_v39 = vshrl.u32 %v2189_v20, 16  ;;  %v9196_v59 = vpop.permute.xlu0 %1606 }
  0xbc   : > { %v7874_v32 = vcombine.low %v1820_v8, %v1823_v9  ;;  %v2365_v36 = vrot.slane %v2363_v61, 4  ;;  %v2368_v37 = vrot.slane %v2366_v26, 5  ;;  %v2382_v42 = vshll.u32 %v2190_v4, 16 }
  0xbd   : > { %1618 = vrot.lane.b32.xlu1 %v7842_v25, %s10943_s24  ;;  %v675_v43 = vsel %vm8761_vm7, %v667_v62, %v674_v34  ;;  %v2374_v44 = vrot.slane %v2372_v35, 5  ;;  %v510_v46 = vsel %vm8754_vm6, 0, %v509_v27  ;;  %v2378_v19 = vrot.slane %v2376_v39, 4 }
  0xbe   : > { %2117 = vrot.lane.b32.xlu0 %v8426_v12, %s8591_s15  ;;  %916 = vst.msk [vmem:[#allocation2 + $0x64] sm:$0xf] %vm417_vm0, %v675_v43  ;;  %v2369_v47 = vor.u32 %v2368_v37, %v2365_v36  ;;  %511 = vst [vmem:[#allocation2 + $0x68] sm:$0x1] %v510_v46  ;;  %v7921_v49 = vrot.slane %v2733_v18, 9  ;;  %v2855_v50 = vrot.slane %v2734_v30, 5 }
  0xbf   : > { %v2384_v48 = vrot.slane %v2382_v42, 5  ;;  %v2858_v55 = vrot.slane %v2735_v56, 5  ;;  %v457_v57 = vsel %vm8723_vm3, 0, %v456_v31  ;;  %v678_v58 = vshrl.u32 %v401_v29, 16  ;;  %v512_v46 = vld [vmem:[#allocation2 + $0x74] sm:$0x1] }
  0xc0   : > { %v2370_v20 = vrot.slane %v2369_v47, 4  ;;  %v2379_v45 = vor.u32 %v2378_v19, %v2374_v44  ;;  %v2857_v60 = vrot.slane %v2855_v50, 4  ;;  %458 = vst [vmem:[#allocation2 + $0x6c] sm:$0x1] %v457_v57  ;;  %v676_v62 = vrot.slane %v9172_v15, 4  ;;  %v9210_v9 = vpop.permute.xlu1 %3696 }
  0xc1   : > { %1942 = vrot.lane.b32.xlu1 %v7874_v32, %s10950_s16  ;;  %v2191_v63 = vld [vmem:[#allocation2 + $0x60] sm:$0xf]  ;;  %v681_v4 = vshll.u32 %v401_v29, 16  ;;  %v2856_v12 = vsel %vm8805_vm13, %v7921_v49, %v2855_v50  ;;  %v680_v14 = vrot.slane %v678_v58, 7  ;;  %v686_v22 = vshrl.u32 %v402_v51, 16 }
  0xc2   : > { %v2375_v5 = vsel %vm8841_vm14, %v2370_v20, %v2374_v44  ;;  %v2380_v7 = vrot.slane %v2379_v45, 4  ;;  %v2387_v8 = vshrl.u32 %v2191_v63, 16  ;;  %v2390_v11 = vshll.u32 %v2191_v63, 16  ;;  %v9208_v25 = vld [vmem:[#allocation2 + $0x60] sm:$0xe]  ;;  %v8433_v45 = vld [vmem:[#allocation2 + $0xc] sm:$0xff]  }
  0xc3   : > { %v2859_v27 = vsel %vm8805_vm13, %v2857_v60, %v2858_v55  ;;  %v683_v36 = vor.u32 %v681_v4, %v680_v14  ;;  %v9218_v43 = vrot.slane %v686_v22, 7  ;;  %v3232_v44 = vld [vmem:[#allocation2 + $0x60] sm:$0xf]  ;;  %v684_v47 = vrot.slane %v680_v14, 4  ;;  %v8434_v60 = vld [vmem:[#allocation2 + $0x18] sm:$0xff]   ;;  %1106 = vst.msk [vmem:[#allocation3 + $0x8] sm:$0xff] %vm10945_vm15, %v8433_v45 }
  0xc4   : > { %v2385_v17 = vsel %vm8841_vm14, %v2380_v7, %v2384_v48  ;;  %v2389_v15 = vrot.slane %v2387_v8, 4  ;;  %v2392_v18 = vrot.slane %v2390_v11, 5  ;;  %v9212_v29 = vpop.permute.xlu0 %2650  ;;  %v7937_v35 = vcombine.low %v2856_v12, %v2859_v27  ;;  %v8430_v48 = vld [vmem:[#allocation2] sm:$0xff]   ;;  %v8443_v8 = vld [vmem:[#allocation2 + $0x30] sm:$0xff]   ;;  %1107 = vst.msk [vmem:[#allocation3 + $0x10] sm:$0xff] %vm10945_vm15, %v8434_v60 }
  0xc5   : > { %v8427_v61 = vld [vmem:[#allocation2 + $0x60] sm:$0xff]   ;;  %v7905_v26 = vcombine.low %v2375_v5, %v2385_v17  ;;  %v917_v30 = vld [vmem:[#allocation2 + $0x68] sm:$0x1]  ;;  %v689_v19 = vshll.u32 %v402_v51, 16  ;;  %v7922_v20 = vrot.slane %v9208_v25, 9  ;;  %v3407_v5 = vshrl.u32 %v3232_v44, 16 }
  0xc6   : > { %v918_v31 = vsel %vm8723_vm3, %v676_v62, %v917_v30  ;;  %v2192_v32 = vld [vmem:[#allocation2 + $0x64] sm:$0xf]  ;;  %v2393_v34 = vor.u32 %v2392_v18, %v2389_v15  ;;  %2119 = vrot.lane.b32.xlu1 %v8427_v61, %s8591_s15  ;;  %v8444_v11 = vld [vmem:[#allocation2 + $0x3c] sm:$0xff]   ;;  %v693_v14 = vrot.slane %v9218_v43, 4  ;;  %v3410_v22 = vshll.u32 %v3232_v44, 16  ;;  %1105 = vst.msk [vmem:[#allocation3] sm:$0xff] %vm10945_vm15, %v8430_v48 }
  0xc7   : > { %v2737_v56 = vld [vmem:[#allocation2 + $0x64] sm:$0xf]  ;;  %2662 = vrot.lane.b32.xlu0 %v7905_v26, %s10955_s30  ;;  %919 = vst [vmem:[#allocation2 + $0x68] sm:$0x1] %v918_v31  ;;  %v2396_v37 = vshll.u32 %v2192_v32, 16  ;;  %v2400_v39 = vshrl.u32 %v2192_v32, 16  ;;  %v691_v63 = vor.u32 %v689_v19, %v9218_v43 }
  0xc8   : > { %v2862_v42 = vrot.slane %v2737_v56, 5  ;;  %v920_v49 = vld [vmem:[#allocation2 + $0x6c] sm:$0xf]  ;;  %v3233_v50 = vld [vmem:[#allocation2 + $0x64] sm:$0xf]  ;;  %v9220_v55 = vrot.slane %v2393_v34, 4  ;;  %v1609_v51 = vpop.permute.xlu1 %1608 }
  0xc9   : > { %v9222_v57 = vrot.slane %v2396_v37, 5  ;;  %v2402_v58 = vrot.slane %v2400_v39, 4  ;;  %v921_v4 = vsel %vm8769_vm10, %v683_v36, %v920_v49  ;;  %v8436_v7 = vld [vmem:[#allocation2 + $0x24] sm:$0xff]   ;;  %v3416_v17 = vshll.u32 %v3233_v50, 16  ;;  %v3777_v15 = vld [vmem:[#allocation2 + $0x60] sm:$0xe] }
  0xca   : > { %v2864_v62 = vrot.slane %v2862_v42, 4  ;;  %v8428_v27 = vld [vmem:[#allocation2 + $0x60] sm:$0xff]   ;;  %922 = vst [vmem:[#allocation2 + $0x6c] sm:$0xf] %v921_v4  ;;  %v692_v25 = vsel %vm8761_vm7, %v684_v47, %v691_v63  ;;  %v3409_v61 = vrot.slane %v3407_v5, 4  ;;  %v3420_v26 = vshrl.u32 %v3233_v50, 16 }
  0xcb   : > { %v2403_v12 = vor.u32 %v2402_v58, %v9222_v57  ;;  %2983 = vrot.lane.b32.xlu0 %v7937_v35, %s8595_s25  ;;  %v513_v30 = vsel %vm8754_vm6, 0, %v512_v46  ;;  %923 = vst.msk [vmem:[#allocation2 + $0x70] sm:$0xf] %vm417_vm0, %v692_v25  ;;  %v3412_v32 = vrot.slane %v3410_v22, 5  ;;  %v3418_v34 = vrot.slane %v3416_v17, 5 }
  0xcc   : > { %v9231_v18 = vpop.permute.xlu0 %3694  ;;  %514 = vst [vmem:[#allocation2 + $0x74] sm:$0x1] %v513_v30  ;;  %v2399_v56 = vsel %vm8841_vm14, %v9220_v55, %v9222_v57  ;;  %v9244_v37 = vsel %vm8805_vm13, %v7922_v20, %v2862_v42  ;;  %1108 = vst.msk [vmem:[#allocation3 + $0x18] sm:$0xff] %vm10945_vm15, %v8436_v7  ;;  %v3422_v42 = vrot.slane %v3420_v26, 4  ;;  %v3778_v19 = vld [vmem:[#allocation2 + $0x64] sm:$0xf] }
  0xcd   : > { %v2404_v31 = vrot.slane %v2403_v12, 4  ;;  %1109 = vst.msk [vmem:[#allocation3 + $0x20] sm:$0xff] %vm10945_vm15, %v8443_v8  ;;  %1110 = vst.msk [vmem:[#allocation3 + $0x28] sm:$0xff] %vm10945_vm15, %v8444_v11  ;;  %v3413_v47 = vor.u32 %v3412_v32, %v3409_v61  ;;  %v7985_v48 = vrot.slane %v3777_v15, 9  ;;  %v3899_v4 = vrot.slane %v3778_v19, 5 }
  0xce   : > { %v2193_v35 = vld [vmem:[#allocation2 + $0x68] sm:$0x1]  ;;  %v3423_v45 = vor.u32 %v3422_v42, %v3418_v34  ;;  %1653 = vst.msk [vmem:[#allocation3] sm:$0xff] %vm1652_vm1, %v9127_v28  ;;  %1654 = vst.msk [vmem:[#allocation3 + $0x8] sm:$0xff] %vm1652_vm1, %v9196_v59  ;;  %v1145_v5 = vld [vmem:[#allocation2 + $0x60] sm:$0xf] }
  0xcf   : > { %v2738_v36 = vld [vmem:[#allocation2 + $0x68] sm:$0x1]  ;;  %v2406_v44 = vshll.u32 %v2193_v35, 16  ;;  %3161 = vrot.lane.b32.xlu0 %v8428_v27, %s8593_s22  ;;  %v3414_v20 = vrot.slane %v3413_v47, 4  ;;  %1655 = vst.msk [vmem:[#allocation3 + $0x10] sm:$0xff] %vm1652_vm1, %v1609_v51  ;;  %v3901_v26 = vrot.slane %v3899_v4, 4 }
  0xd0   : > { %v3234_v39 = vld [vmem:[#allocation2 + $0x68] sm:$0x1]  ;;  %v2865_v46 = vrot.slane %v2738_v36, 5  ;;  %v1933_v49 = vpop.permute.xlu0 %1932  ;;  %v1611_v55 = vpop.permute.xlu1 %1610  ;;  %1977 = vst.msk [vmem:[#allocation3] sm:$0xff] %vm1976_vm8, %v9101_v38  ;;  %1978 = vst.msk [vmem:[#allocation3 + $0x8] sm:$0xff] %vm1976_vm8, %v9149_v33  ;;  %v3900_v33 = vsel %vm8805_vm13, %v7985_v48, %v3899_v4  ;;  %vm4063_vm2 = vcmask 294144  }
  0xd1   : > { %v3426_v50 = vshll.u32 %v3234_v39, 16  ;;  %v2408_v57 = vrot.slane %v2406_v44, 5  ;;  %1656 = vst.msk [vmem:[#allocation3 + $0x18] sm:$0xff] %vm1652_vm1, %v1611_v55  ;;  %v3235_v63 = vld [vmem:[#allocation2 + $0x6c] sm:$0xf]  ;;  %v3419_v59 = vsel %vm8841_vm14, %v3414_v20, %v3418_v34  ;;  %v1368_v39 = vshll.u32 %v1145_v5, 16 }
  0xd2   : > { %v2866_v58 = vsel %vm8805_vm13, %v2864_v62, %v2865_v46  ;;  %1979 = vst.msk [vmem:[#allocation3 + $0x10] sm:$0xff] %vm1976_vm8, %v1933_v49  ;;  %v3424_v62 = vrot.slane %v3423_v45, 4  ;;  %v3431_v51 = vshrl.u32 %v3235_v63, 16  ;;  %v3779_v7 = vld [vmem:[#allocation2 + $0x68] sm:$0x1]  ;;  %v3434_v27 = vshll.u32 %v3235_v63, 16 }
  0xd3   : > { %v3428_v60 = vrot.slane %v3426_v50, 5  ;;  %v2409_v28 = vsel %vm8841_vm14, %v2404_v31, %v2408_v57  ;;  %v1146_v8 = vld [vmem:[#allocation2 + $0x64] sm:$0xf]  ;;  %v7938_v38 = vcombine.low %v9244_v37, %v2866_v58  ;;  %v924_v12 = vld [vmem:[#allocation2 + $0x74] sm:$0x1]  ;;  %v3902_v43 = vrot.slane %v3779_v7, 5 }
  0xd4   : > { %v7906_v11 = vcombine.low %v2399_v56, %v2409_v28  ;;  %v1935_v22 = vpop.permute.xlu1 %1934  ;;  %v925_v15 = vsel %vm8723_vm3, %v693_v14, %v924_v12  ;;  %v3236_v25 = vld [vmem:[#allocation2 + $0x70] sm:$0xf]  ;;  %v3433_v61 = vrot.slane %v3431_v51, 4  ;;  %v9280_v30 = vpop.permute.xlu0 %2109  ;;  %v3436_v32 = vrot.slane %v3434_v27, 5  ;;  %v1147_v56 = vld [vmem:[#allocation2 + $0x68] sm:$0x1] }
  0xd5   : > { %v3429_v17 = vsel %vm8841_vm14, %v3424_v62, %v3428_v60  ;;  %1980 = vst.msk [vmem:[#allocation3 + $0x18] sm:$0xff] %vm1976_vm8, %v1935_v22  ;;  %926 = vst [vmem:[#allocation2 + $0x74] sm:$0x1] %v925_v15  ;;  %v3440_v34 = vshll.u32 %v3236_v25, 16  ;;  %v3444_v35 = vshrl.u32 %v3236_v25, 16  ;;  %v1365_v37 = vshrl.u32 %v1145_v5, 16 }
  0xd6   : > { %2664 = vrot.lane.b32.xlu1 %v7906_v11, %s10955_s30  ;;  %v7969_v31 = vcombine.low %v3419_v59, %v3429_v17  ;;  %v3780_v36 = vld [vmem:[#allocation2 + $0x6c] sm:$0xe]  ;;  %v1374_v14 = vshll.u32 %v1146_v8, 16  ;;  %v3437_v46 = vor.u32 %v3436_v32, %v3433_v61  ;;  %v1378_v19 = vshrl.u32 %v1146_v8, 16  ;;  %v3781_v49 = vld [vmem:[#allocation2 + $0x70] sm:$0xf] }
  0xd7   : > { %v1148_v44 = vld [vmem:[#allocation2 + $0x6c] sm:$0xf]  ;;  %v3442_v47 = vrot.slane %v3440_v34, 5  ;;  %v3446_v42 = vrot.slane %v3444_v35, 4  ;;  %v3903_v50 = vsel %vm8805_vm13, %v3901_v26, %v3902_v43  ;;  %v1367_v48 = vrot.slane %v1365_v37, 4  ;;  %2155 = vst.msk [vmem:[#allocation3 + $0x8] sm:$0xff] %vm10946_vm9, %v9120_v13 }
  0xd8   : > { %3706 = vrot.lane.b32.xlu0 %v7969_v31, %s8598_s12  ;;  %v1370_v55 = vrot.slane %v1368_v39, 5  ;;  %v1376_v57 = vrot.slane %v1374_v14, 5  ;;  %v8429_v58 = vld [vmem:[#allocation2 + $0x6c] sm:$0xff]   ;;  %v3438_v20 = vrot.slane %v3437_v46, 4  ;;  %v8001_v60 = vcombine.low %v3900_v33, %v3903_v50  ;;  %v1693_v31 = vld [vmem:[#allocation2 + $0x60] sm:$0xe] }
  0xd9   : > { %v3447_v45 = vor.u32 %v3446_v42, %v3442_v47  ;;  %v1380_v63 = vrot.slane %v1378_v19, 4  ;;  %v1384_v5 = vshll.u32 %v1147_v56, 16  ;;  %v7986_v28 = vrot.slane %v3780_v36, 9  ;;  %v1149_v8 = vld [vmem:[#allocation2 + $0x70] sm:$0xf]  ;;  %2154 = vst.msk [vmem:[#allocation3] sm:$0xff] %vm10946_vm9, %v9090_v23 }
  0xda   : > { %2985 = vrot.lane.b32.xlu1 %v7938_v38, %s8595_s25  ;;  %v1371_v4 = vor.u32 %v1370_v55, %v1367_v48  ;;  %v3906_v59 = vrot.slane %v3781_v49, 5  ;;  %v1389_v11 = vshrl.u32 %v1148_v44, 16  ;;  %v3443_v38 = vsel %vm8841_vm14, %v3438_v20, %v3442_v47  ;;  %v1694_v46 = vld [vmem:[#allocation2 + $0x64] sm:$0xf]  ;;  %v1695_v47 = vld [vmem:[#allocation2 + $0x68] sm:$0x1] }
  0xdb   : > { %v9287_v62 = vpop.permute.xlu0 %2654  ;;  %v3448_v51 = vrot.slane %v3447_v45, 4  ;;  %v1381_v7 = vor.u32 %v1380_v63, %v1376_v57  ;;  %v1386_v22 = vrot.slane %v1384_v5, 5  ;;  %v1392_v56 = vshll.u32 %v1148_v44, 16  ;;  %v1696_v44 = vld [vmem:[#allocation2 + $0x6c] sm:$0xe]  ;;  %2156 = vst.msk [vmem:[#allocation3 + $0x10] sm:$0xff] %vm10946_vm9, %v9280_v30 }
  0xdc   : > { %4027 = vrot.lane.b32.xlu0 %v8001_v60, %s10979_s29  ;;  %v3237_v12 = vld [vmem:[#allocation2 + $0x74] sm:$0x1]  ;;  %v1372_v27 = vrot.slane %v1371_v4, 4  ;;  %v3907_v17 = vsel %vm8805_vm13, %v7986_v28, %v3906_v59  ;;  %v3908_v61 = vrot.slane %v3906_v59, 4  ;;  %v1391_v35 = vrot.slane %v1389_v11, 4  ;;  %2700 = vst.msk [vmem:[#allocation3 + $0x8] sm:$0xff] %vm2698_vm11, %v9192_v52 }
  0xdd   : > { %v3782_v33 = vld [vmem:[#allocation2 + $0x74] sm:$0x1]  ;;  %v3450_v15 = vshll.u32 %v3237_v12, 16  ;;  %v1382_v25 = vrot.slane %v1381_v7, 4  ;;  %v1398_v36 = vshll.u32 %v1149_v8, 16  ;;  %v1402_v14 = vshrl.u32 %v1149_v8, 16 }
  0xde   : > { %3163 = vrot.lane.b32.xlu1 %v8429_v58, %s8593_s22  ;;  %v3909_v26 = vrot.slane %v3782_v33, 5  ;;  %v1377_v32 = vsel %vm8841_vm14, %v1372_v27, %v1376_v57  ;;  %v1150_v34 = vld [vmem:[#allocation2 + $0x74] sm:$0x1]  ;;  %v1394_v50 = vrot.slane %v1392_v56, 5  ;;  %v1697_v55 = vld [vmem:[#allocation2 + $0x70] sm:$0xf]  ;;  %v2112_v33 = vpop.permute.xlu1 %2111 }
  0xdf   : > { %v3452_v43 = vrot.slane %v3450_v15, 5  ;;  %v1387_v37 = vsel %vm8841_vm14, %v1382_v25, %v1386_v22  ;;  %v9301_v42 = vpop.permute.xlu0 %2975  ;;  %v1400_v48 = vrot.slane %v1398_v36, 5  ;;  %v1404_v58 = vrot.slane %v1402_v14, 4  ;;  %v1698_v60 = vld [vmem:[#allocation2 + $0x74] sm:$0x1]  ;;  %2157 = vst.msk [vmem:[#allocation3 + $0x18] sm:$0xff] %vm10946_vm9, %v2112_v33 }
  0xe0   : > { %v3910_v39 = vsel %vm8805_vm13, %v3908_v61, %v3909_v26  ;;  %v7843_v19 = vcombine.low %v1377_v32, %v1387_v37  ;;  %v1408_v20 = vshll.u32 %v1150_v34, 16  ;;  %v7859_v45 = vrot.slane %v1693_v31, 9  ;;  %v403_v63 = vld [vmem:[%s8747_s14 + $0x48] sm:$0xf]  ;;  %v404_v7 = vld [vmem:[%s8747_s14 + $0x4c] sm:$0xf] }
  0xe1   : > { %v8002_v49 = vcombine.low %v3907_v17, %v3910_v39  ;;  %v3453_v57 = vsel %vm8841_vm14, %v3448_v51, %v3452_v43  ;;  %v1395_v5 = vor.u32 %v1394_v50, %v1391_v35  ;;  %v1826_v28 = vrot.slane %v1694_v46, 5  ;;  %v459_v8 = vld [vmem:[#allocation2 + $0x78] sm:$0x1]  ;;  %v8449_v34 = vld [vmem:[#allocation2 + $0x48] sm:$0xff]   ;;  %v9331_v50 = vld [vmem:[#allocation2 + $0x74] sm:$0x1] }
  0xe2   : > { %v7970_v4 = vcombine.low %v3443_v38, %v3453_v57  ;;  %v1829_v59 = vrot.slane %v1695_v47, 5  ;;  %v1405_v11 = vor.u32 %v1404_v58, %v1400_v48  ;;  %v1410_v12 = vrot.slane %v1408_v20, 5  ;;  %v9323_v37 = vld [vmem:[#allocation2 + $0x6c] sm:$0xf]  ;;  %1111 = vst.msk [vmem:[#allocation3 + $0x30] sm:$0xff] %vm10945_vm15, %v8449_v34 }
  0xe3   : > { %4029 = vrot.lane.b32.xlu0 %v8002_v49, %s10979_s29  ;;  %v7860_v27 = vrot.slane %v1696_v44, 9  ;;  %v1833_v22 = vrot.slane %v1697_v55, 5  ;;  %v1396_v51 = vrot.slane %v1395_v5, 4  ;;  %v1827_v17 = vsel %vm8805_vm13, %v7859_v45, %v1826_v28  ;;  %v9317_v32 = vpop.permute.xlu0 %3153  ;;  %v2195_v49 = vld [vmem:[#allocation2 + $0x70] sm:$0xf]  ;;  %2699 = vst.msk [vmem:[#allocation3] sm:$0xff] %vm2698_vm11, %v9212_v29 }
  0xe4   : > { %3708 = vrot.lane.b32.xlu1 %v7970_v4, %s8598_s12  ;;  %v1828_v15 = vrot.slane %v1826_v28, 4  ;;  %v1836_v38 = vrot.slane %v1698_v60, 5  ;;  %v1406_v25 = vrot.slane %v1405_v11, 4  ;;  %v460_v31 = vsel %vm8723_vm3, 0, %v459_v8  ;;  %v515_v57 = vld [vmem:[#allocation2 + $0x80] sm:$0x1] }
  0xe5   : > { %v9313_v61 = vsel %vm8805_vm13, %v7860_v27, %v1833_v22  ;;  %v1835_v26 = vrot.slane %v1833_v22, 4  ;;  %v1401_v35 = vsel %vm8841_vm14, %v1396_v51, %v1400_v48  ;;  %461 = vst [vmem:[#allocation2 + $0x78] sm:$0x1] %v460_v31  ;;  %v695_v36 = vshrl.u32 %v403_v63, 16  ;;  %v8431_v58 = vld [vmem:[#allocation2 + $0x6c] sm:$0xff]   ;;  %v8450_v60 = vld [vmem:[#allocation2 + $0x54] sm:$0xff]  }
  0xe6   : > { %v1830_v56 = vsel %vm8805_vm13, %v1828_v15, %v1829_v59  ;;  %v698_v43 = vshll.u32 %v403_v63, 16  ;;  %v1411_v39 = vsel %vm8841_vm14, %v1406_v25, %v1410_v12  ;;  %v703_v47 = vshrl.u32 %v404_v7, 16  ;;  %v9344_v5 = vld [vmem:[#allocation2 + $0x6c] sm:$0xe]  ;;  %v9346_v28 = vld [vmem:[#allocation2 + $0x70] sm:$0xf] }
  0xe7   : > { %v7875_v14 = vcombine.low %v1827_v17, %v1830_v56  ;;  %v9329_v46 = vsel %vm8805_vm13, %v1835_v26, %v1836_v38  ;;  %v7844_v48 = vcombine.low %v1401_v35, %v1411_v39  ;;  %v697_v44 = vrot.slane %v695_v36, 7  ;;  %v462_v59 = vld [vmem:[#allocation2 + $0x84] sm:$0x1]  ;;  %v9358_v13 = vld [vmem:[%s8747_s14 + $0x50] sm:$0xf]  ;;  %2701 = vst.msk [vmem:[#allocation3 + $0x10] sm:$0xff] %vm2698_vm11, %v9287_v62 }
  0xe8   : > { %1620 = vrot.lane.b32.xlu1 %v7843_v19, %s10943_s24  ;;  %v706_v55 = vshll.u32 %v404_v7, 16  ;;  %v9336_v20 = vrot.slane %v703_v47, 7  ;;  %v7876_v63 = vcombine.low %v9313_v61, %v9329_v46  ;;  %v2411_v23 = vshrl.u32 %v9323_v37, 16  ;;  %1112 = vst.msk [vmem:[#allocation3 + $0x38] sm:$0xff] %vm10945_vm15, %v8450_v60  ;;  %v9372_v62 = vld [vmem:[%s8747_s14 + $0x54] sm:$0xf] }
  0xe9   : > { %1944 = vrot.lane.b32.xlu0 %v7875_v14, %s10950_s16  ;;  %v700_v4 = vor.u32 %v698_v43, %v697_v44  ;;  %v701_v19 = vrot.slane %v697_v44, 4  ;;  %3021 = vst.msk [vmem:[#allocation3 + $0x8] sm:$0xff] %vm10949_vm12, %v9168_v6  ;;  %v2414_v52 = vshll.u32 %v9323_v37, 16  ;;  %v2420_v8 = vshll.u32 %v2195_v49, 16  ;;  %3020 = vst.msk [vmem:[#allocation3] sm:$0xff] %vm10949_vm12, %v9138_v1 }
  0xea   : > { %v2657_v45 = vpop.permute.xlu1 %2656  ;;  %v708_v7 = vor.u32 %v706_v55, %v9336_v20  ;;  %v2424_v11 = vshrl.u32 %v2195_v49, 16  ;;  %v2430_v29 = vshll.u32 %v9331_v50, 16  ;;  %3022 = vst.msk [vmem:[#allocation3 + $0x10] sm:$0xff] %vm10949_vm12, %v9301_v42  ;;  %v2413_v27 = vrot.slane %v2411_v23, 4  ;;  %v2741_v1 = vld [vmem:[#allocation2 + $0x74] sm:$0x1] }
  0xeb   : > { %2702 = vst.msk [vmem:[#allocation3 + $0x18] sm:$0xff] %vm2698_vm11, %v2657_v45  ;;  %v516_v22 = vsel %vm8754_vm6, 0, %v515_v57  ;;  %v2422_v51 = vrot.slane %v2420_v8, 5  ;;  %v7923_v15 = vrot.slane %v9344_v5, 9  ;;  %v2869_v38 = vrot.slane %v9346_v28, 5 }
  0xec   : > { %1622 = vrot.lane.b32.xlu1 %v7844_v48, %s10943_s24  ;;  %v709_v12 = vsel %vm8761_vm7, %v701_v19, %v708_v7  ;;  %v927_v6 = vld [vmem:[#allocation2 + $0x78] sm:$0xf]  ;;  %3199 = vst.msk [vmem:[#allocation3 + $0x8] sm:$0xff] %vm10947_vm5, %v9135_v54  ;;  %3198 = vst.msk [vmem:[#allocation3] sm:$0xff] %vm10947_vm5, %v9106_v53  ;;  %v2416_v54 = vrot.slane %v2414_v52, 5  ;;  %v2426_v17 = vrot.slane %v2424_v11, 4 }
  0xed   : > { %v3699_v30 = vpop.permute.xlu0 %3698  ;;  %2121 = vrot.lane.b32.xlu0 %v8431_v58, %s8591_s15  ;;  %3200 = vst.msk [vmem:[#allocation3 + $0x10] sm:$0xff] %vm10947_vm5, %v9317_v32  ;;  %v928_v42 = vsel %vm8769_vm10, %v700_v4, %v927_v6  ;;  %517 = vst [vmem:[#allocation2 + $0x80] sm:$0x1] %v516_v22  ;;  %v8440_v53 = vld [vmem:[%s10978_s1 + $0x10] ss:$0 sps:$4 sm:$0x33]   ;;  %v2870_v44 = vsel %vm8805_vm13, %v7923_v15, %v2869_v38 }
  0xee   : > { %v2978_v33 = vpop.permute.xlu1 %2977  ;;  %930 = vst.msk [vmem:[#allocation2 + $0x7c] sm:$0xf] %vm417_vm0, %v709_v12  ;;  %929 = vst [vmem:[#allocation2 + $0x78] sm:$0xf] %v928_v42  ;;  %v518_v25 = vld [vmem:[#allocation2 + $0x8c] sm:$0x1]  ;;  %v2417_v26 = vor.u32 %v2416_v54, %v2413_v27  ;;  %v2427_v31 = vor.u32 %v2426_v17, %v2422_v51 }
  0xef   : > { %3744 = vst.msk [vmem:[#allocation3 + $0x8] sm:$0xff] %vm3742_vm4, %v9210_v9  ;;  %3743 = vst.msk [vmem:[#allocation3] sm:$0xff] %vm3742_vm4, %v9231_v18  ;;  %v2432_v9 = vrot.slane %v2430_v29, 5  ;;  %v463_v18 = vsel %vm8723_vm3, 0, %v462_v59  ;;  %v2872_v32 = vrot.slane %v2741_v1, 5  ;;  %v710_v34 = vrot.slane %v9336_v20, 4 }
  0xf0   : > { %3023 = vst.msk [vmem:[#allocation3 + $0x18] sm:$0xff] %vm10949_vm12, %v2978_v33  ;;  %1946 = vrot.lane.b32.xlu1 %v7876_v63, %s10950_s16  ;;  %464 = vst [vmem:[#allocation2 + $0x84] sm:$0x1] %v463_v18  ;;  %v2871_v35 = vrot.slane %v2869_v38, 4  ;;  %v720_v56 = vshrl.u32 %v9372_v62, 16  ;;  %v2418_v43 = vrot.slane %v2417_v26, 4 }
  0xf1   : > { %3745 = vst.msk [vmem:[#allocation3 + $0x10] sm:$0xff] %vm3742_vm4, %v3699_v30  ;;  %v4020_v61 = vpop.permute.xlu0 %4019  ;;  %v2428_v37 = vrot.slane %v2427_v31, 4  ;;  %v723_v39 = vshll.u32 %v9372_v62, 16  ;;  %vm4170_vm15 = vcmask 1041408   ;;  %v519_v47 = vsel %vm8754_vm6, 0, %v518_v25  ;;  %s10981_s24 = smov 4  }
  0xf2   : > { %4065 = vst.msk [vmem:[#allocation3 + $0x8] sm:$0xff] %vm4063_vm2, %v9177_v24  ;;  %4064 = vst.msk [vmem:[#allocation3] sm:$0xff] %vm4063_vm2, %v9152_v40  ;;  %v712_v24 = vshrl.u32 %v9358_v13, 16  ;;  %v715_v40 = vshll.u32 %v9358_v13, 16  ;;  %v3156_v36 = vpop.permute.xlu1 %3155  ;;  %v9415_v46 = vrot.slane %v720_v56, 7  ;;  %8352 = vmatprep.subr.msk.bf16.mxu0 %vm4170_vm15, %v8440_v53  ;;  %v4172_v49 = vsel %vm4170_vm15, %v8440_v53, 0 }
  0xf3   : > { %4066 = vst.msk [vmem:[#allocation3 + $0x10] sm:$0xff] %vm4063_vm2, %v4020_v61  ;;  %v2423_v50 = vsel %vm8841_vm14, %v2418_v43, %v2422_v51  ;;  %v2433_v48 = vsel %vm8841_vm14, %v2428_v37, %v2432_v9  ;;  %v2873_v55 = vsel %vm8805_vm13, %v2871_v35, %v2872_v32  ;;  %520 = vst [vmem:[#allocation2 + $0x8c] sm:$0x1] %v519_v47  ;;  %8281 = vmatpush3.bf16.msra.mxu0 %v4172_v49  ;;  %vm4121_vm15 = vcmask 293888  }
  0xf4   : > { %3201 = vst.msk [vmem:[#allocation3 + $0x18] sm:$0xff] %vm10947_vm5, %v3156_v36  ;;  %v714_v14 = vrot.slane %v712_v24, 7  ;;  %v7907_v57 = vcombine.low %v2423_v50, %v2433_v48  ;;  %v931_v58 = vld [vmem:[#allocation2 + $0x80] sm:$0x1]  ;;  %v7939_v23 = vcombine.low %v2870_v44, %v2873_v55  ;;  %v725_v11 = vor.u32 %v723_v39, %v9415_v46 }
  0xf5   : > { %v2198_v20 = vld [vmem:[#allocation2 + $0x7c] sm:$0xf]  ;;  %v932_v4 = vsel %vm8723_vm3, %v710_v34, %v931_v58  ;;  %v2197_v19 = vld [vmem:[#allocation2 + $0x78] sm:$0xf]  ;;  %v727_v1 = vrot.slane %v9415_v46, 4 }
  0xf6   : > { %v3701_v45 = vpop.permute.xlu1 %3700  ;;  %v4022_v60 = vpop.permute.xlu0 %4021  ;;  %v8432_v63 = vld [vmem:[#allocation2 + $0x78] sm:$0xff]   ;;  %v2444_v5 = vshll.u32 %v2198_v20, 16  ;;  %2666 = vrot.lane.b32.xlu0 %v7907_v57, %s10955_s30  ;;  %933 = vst [vmem:[#allocation2 + $0x80] sm:$0x1] %v932_v4  ;;  %v2435_v28 = vshrl.u32 %v2197_v19, 16  ;;  %v2438_v59 = vshll.u32 %v2197_v19, 16  ;;  %v717_v8 = vor.u32 %v715_v40, %v714_v14 }
  0xf7   : > { %3746 = vst.msk [vmem:[#allocation3 + $0x18] sm:$0xff] %vm3742_vm4, %v3701_v45  ;;  %v2448_v7 = vshrl.u32 %v2198_v20, 16  ;;  %v9431_v13 = vld [vmem:[#allocation2 + $0x78] sm:$0xe]  ;;  %2123 = vrot.lane.b32.xlu1 %v8432_v63, %s8591_s15  ;;  %v2743_v52 = vld [vmem:[#allocation2 + $0x7c] sm:$0xf] }
  0xf8   : > { %4067 = vst.msk [vmem:[#allocation3 + $0x18] sm:$0xff] %vm4063_vm2, %v4022_v60  ;;  %v9435_v30 = vrot.slane %v2444_v5, 5  ;;  %v2437_v29 = vrot.slane %v2435_v28, 4  ;;  %v2440_v62 = vrot.slane %v2438_v59, 5  ;;  %v2876_v6 = vrot.slane %v2743_v52, 5  ;;  %v8437_v53 = vld [vmem:[#allocation2 + $0x78] sm:$0xff]  }
  0xf9   : > { %v2450_v12 = vrot.slane %v2448_v7, 4  ;;  %v718_v22 = vrot.slane %v714_v14, 4  ;;  %v934_v33 = vld [vmem:[#allocation2 + $0x84] sm:$0xf]  ;;  %v3238_v42 = vld [vmem:[#allocation2 + $0x78] sm:$0xf] }
  0xfa   : > { %v1613_v27 = vpop.permute.xlu1 %1612  ;;  %v2441_v54 = vor.u32 %v2440_v62, %v2437_v29  ;;  %2987 = vrot.lane.b32.xlu0 %v7939_v23, %s8595_s25  ;;  %v7924_v17 = vrot.slane %v9431_v13, 9  ;;  %v3239_v9 = vld [vmem:[#allocation2 + $0x7c] sm:$0xf]  ;;  %v938_v15 = vld [vmem:[#allocation2 + $0x8c] sm:$0x1]  ;;  %v935_v18 = vsel %vm8769_vm10, %v717_v8, %v934_v33  ;;  %v3455_v25 = vshrl.u32 %v3238_v42, 16 }
  0xfb   : > { %1657 = vst.msk [vmem:[#allocation3 + $0x20] sm:$0xff] %vm1652_vm1, %v1613_v27  ;;  %v2451_v51 = vor.u32 %v2450_v12, %v9435_v30  ;;  %v726_v38 = vsel %vm8761_vm7, %v718_v22, %v725_v11  ;;  %v3458_v61 = vshll.u32 %v3238_v42, 16  ;;  %v3783_v26 = vld [vmem:[#allocation2 + $0x78] sm:$0xe]  ;;  %v2878_v24 = vrot.slane %v2876_v6, 4  ;;  %v4082_v12 = vld [vmem:[#allocation3 + $0x10] sm:$0xff] }
  0xfc   : > { %v2442_v32 = vrot.slane %v2441_v54, 4  ;;  %936 = vst [vmem:[#allocation2 + $0x84] sm:$0xf] %v935_v18  ;;  %937 = vst.msk [vmem:[#allocation2 + $0x88] sm:$0xf] %vm417_vm0, %v726_v38  ;;  %v3464_v34 = vshll.u32 %v3239_v9, 16  ;;  %v939_v39 = vsel %vm8723_vm3, %v727_v1, %v938_v15  ;;  %v2877_v19 = vsel %vm8805_vm13, %v7924_v17, %v2876_v6 }
  0xfd   : > { %v1937_v31 = vpop.permute.xlu0 %1936  ;;  %v3468_v35 = vshrl.u32 %v3239_v9, 16  ;;  %v3784_v40 = vld [vmem:[#allocation2 + $0x7c] sm:$0xf]  ;;  %v2199_v36 = vld [vmem:[#allocation2 + $0x80] sm:$0x1]  ;;  %v2452_v14 = vrot.slane %v2451_v51, 4 }
  0xfe   : > { %v1615_v56 = vpop.permute.xlu1 %1614  ;;  %1981 = vst.msk [vmem:[#allocation3 + $0x20] sm:$0xff] %vm1976_vm8, %v1937_v31  ;;  %v2744_v43 = vld [vmem:[#allocation2 + $0x80] sm:$0x1]  ;;  %v2454_v46 = vshll.u32 %v2199_v36, 16  ;;  %3165 = vrot.lane.b32.xlu0 %v8437_v53, %s8593_s22  ;;  %v3457_v49 = vrot.slane %v3455_v25, 4  ;;  %v3460_v50 = vrot.slane %v3458_v61, 5  ;;  %v2447_v20 = vsel %vm8841_vm14, %v2442_v32, %v9435_v30 }
  0xff   : > { %v3240_v37 = vld [vmem:[#allocation2 + $0x80] sm:$0x1]  ;;  %1658 = vst.msk [vmem:[#allocation3 + $0x28] sm:$0xff] %vm1652_vm1, %v1615_v56  ;;  %v2879_v47 = vrot.slane %v2744_v43, 5  ;;  %940 = vst [vmem:[#allocation2 + $0x8c] sm:$0x1] %v939_v39 }
 0x100   : > { %v3466_v48 = vrot.slane %v3464_v34, 5  ;;  %v3470_v44 = vrot.slane %v3468_v35, 4  ;;  %v3474_v55 = vshll.u32 %v3240_v37, 16  ;;  %v3785_v57 = vld [vmem:[#allocation2 + $0x80] sm:$0x1]  ;;  %v2456_v45 = vrot.slane %v2454_v46, 5 }
 0x101   : > { %v2114_v58 = vpop.permute.xlu0 %2113  ;;  %v7987_v60 = vrot.slane %v3783_v26, 9  ;;  %v3913_v63 = vrot.slane %v3784_v40, 5  ;;  %v2880_v5 = vsel %vm8805_vm13, %v2878_v24, %v2879_v47  ;;  %v3461_v28 = vor.u32 %v3460_v50, %v3457_v49  ;;  %v4080_v52 = vld [vmem:[#allocation3] sm:$0xff]  ;;  %v4081_v9 = vld [vmem:[#allocation3 + $0x8] sm:$0xff] }
 0x102   : > { %v1939_v4 = vpop.permute.xlu1 %1938  ;;  %2158 = vst.msk [vmem:[#allocation3 + $0x20] sm:$0xff] %vm10946_vm9, %v2114_v58  ;;  %v3471_v59 = vor.u32 %v3470_v44, %v3466_v48  ;;  %v2457_v7 = vsel %vm8841_vm14, %v2452_v14, %v2456_v45  ;;  %v3476_v23 = vrot.slane %v3474_v55, 5  ;;  %v3916_v30 = vrot.slane %v3785_v57, 5  ;;  %v1151_v62 = vld [vmem:[#allocation2 + $0x78] sm:$0xf]  ;;  %8282 = vmatprep.mubr.msk.bf16.mxu0 %vm4121_vm15, %v4080_v52 }
 0x103   : > { %1982 = vst.msk [vmem:[#allocation3 + $0x28] sm:$0xff] %vm1976_vm8, %v1939_v4  ;;  %v3915_v13 = vrot.slane %v3913_v63, 4  ;;  %v7908_v8 = vcombine.low %v2447_v20, %v2457_v7  ;;  %v3462_v11 = vrot.slane %v3461_v28, 4  ;;  %v9466_v29 = vsel %vm8805_vm13, %v7987_v60, %v3913_v63  ;;  %v3241_v22 = vld [vmem:[#allocation2 + $0x84] sm:$0xf]  ;;  %8283 = vmatmul.mubr.msk.bf16.vlgmr.msra.gmra.mrb[0].mxu0 %vm4121_vm15, %v4081_v9  ;;  %v4083_v28 = vld [vmem:[#allocation3 + $0x18] sm:$0xff] }
 0x104   : > { %v7940_v6 = vcombine.low %v2877_v19, %v2880_v5  ;;  %v3472_v27 = vrot.slane %v3471_v59, 4  ;;  %v3242_v1 = vld [vmem:[#allocation2 + $0x88] sm:$0xf]  ;;  %v3479_v51 = vshrl.u32 %v3241_v22, 16  ;;  %v3482_v17 = vshll.u32 %v3241_v22, 16  ;;  %8286 = vmatprep.mubr.msk.bf16.mxu0 %vm4121_vm15, %v4082_v12 }
 0x105   : > { %v3917_v33 = vsel %vm8805_vm13, %v3915_v13, %v3916_v30  ;;  %2668 = vrot.lane.b32.xlu1 %v7908_v8, %s10955_s30  ;;  %v3467_v42 = vsel %vm8841_vm14, %v3462_v11, %v3466_v48  ;;  %v3488_v53 = vshll.u32 %v3242_v1, 16  ;;  %v3492_v38 = vshrl.u32 %v3242_v1, 16  ;;  %v1152_v61 = vld [vmem:[#allocation2 + $0x7c] sm:$0xf]  ;;  %v1153_v26 = vld [vmem:[#allocation2 + $0x80] sm:$0x1] }
 0x106   : > { %v3243_v54 = vld [vmem:[#allocation2 + $0x8c] sm:$0x1]  ;;  %v3477_v15 = vsel %vm8841_vm14, %v3472_v27, %v3476_v23  ;;  %v8003_v25 = vcombine.low %v9466_v29, %v3917_v33  ;;  %v3481_v24 = vrot.slane %v3479_v51, 4  ;;  %v3484_v34 = vrot.slane %v3482_v17, 5  ;;  %v3786_v40 = vld [vmem:[#allocation2 + $0x84] sm:$0xe] }
 0x107   : > { %v3498_v18 = vshll.u32 %v3243_v54, 16  ;;  %v7971_v32 = vcombine.low %v3467_v42, %v3477_v15  ;;  %v3490_v35 = vrot.slane %v3488_v53, 5  ;;  %v3494_v56 = vrot.slane %v3492_v38, 4  ;;  %v3787_v39 = vld [vmem:[#allocation2 + $0x88] sm:$0xf] }
 0x108   : > { %v2659_v31 = vpop.permute.xlu0 %2658  ;;  %v1413_v43 = vshrl.u32 %v1151_v62, 16  ;;  %v1416_v37 = vshll.u32 %v1151_v62, 16  ;;  %v8439_v14 = vld [vmem:[#allocation2 + $0x84] sm:$0xff]   ;;  %v3485_v46 = vor.u32 %v3484_v34, %v3481_v24  ;;  %v1422_v47 = vshll.u32 %v1152_v61, 16  ;;  %v3788_v48 = vld [vmem:[#allocation2 + $0x8c] sm:$0x1] }
 0x109   : > { %2703 = vst.msk [vmem:[#allocation3 + $0x20] sm:$0xff] %vm2698_vm11, %v2659_v31  ;;  %v3500_v36 = vrot.slane %v3498_v18, 5  ;;  %2989 = vrot.lane.b32.xlu1 %v7940_v6, %s8595_s25  ;;  %3710 = vrot.lane.b32.xlu0 %v7971_v32, %s8598_s12  ;;  %v1426_v49 = vshrl.u32 %v1152_v61, 16  ;;  %v1432_v50 = vshll.u32 %v1153_v26, 16  ;;  %v3495_v55 = vor.u32 %v3494_v56, %v3490_v35  ;;  %v1154_v45 = vld [vmem:[#allocation2 + $0x84] sm:$0xf] }
 0x10a   : > { %v1415_v57 = vrot.slane %v1413_v43, 4  ;;  %v1418_v58 = vrot.slane %v1416_v37, 5  ;;  %v7988_v20 = vrot.slane %v3786_v40, 9  ;;  %v3486_v63 = vrot.slane %v3485_v46, 4  ;;  %v1155_v8 = vld [vmem:[#allocation2 + $0x88] sm:$0xf] }
 0x10b   : > { %v2116_v44 = vpop.permute.xlu1 %2115  ;;  %v1424_v4 = vrot.slane %v1422_v47, 5  ;;  %v1428_v19 = vrot.slane %v1426_v49, 4  ;;  %v1434_v5 = vrot.slane %v1432_v50, 5  ;;  %v3496_v59 = vrot.slane %v3495_v55, 4  ;;  %v1699_v62 = vld [vmem:[#allocation2 + $0x78] sm:$0xe]  ;;  %8287 = vmatmul.mubr.msk.bf16.gmra.mrb[4].mxu0 %vm4121_vm15, %v4083_v28 }
 0x10c   : > { %2159 = vst.msk [vmem:[#allocation3 + $0x28] sm:$0xff] %vm10946_vm9, %v2116_v44  ;;  %v2980_v60 = vpop.permute.xlu0 %2979  ;;  %v1419_v7 = vor.u32 %v1418_v58, %v1415_v57  ;;  %v3920_v23 = vrot.slane %v3787_v39, 5  ;;  %v3923_v13 = vrot.slane %v3788_v48, 5  ;;  %v3491_v30 = vsel %vm8841_vm14, %v3486_v63, %v3490_v35  ;;  %v1156_v1 = vld [vmem:[#allocation2 + $0x8c] sm:$0x1] }
 0x10d   : > { %3024 = vst.msk [vmem:[#allocation3 + $0x20] sm:$0xff] %vm10949_vm12, %v2980_v60  ;;  %3167 = vrot.lane.b32.xlu1 %v8439_v14, %s8593_s22  ;;  %4031 = vrot.lane.b32.xlu0 %v8003_v25, %s10979_s29  ;;  %v1429_v52 = vor.u32 %v1428_v19, %v1424_v4  ;;  %v1437_v11 = vshrl.u32 %v1154_v45, 16  ;;  %v1440_v29 = vshll.u32 %v1154_v45, 16  ;;  %v3501_v12 = vsel %vm8841_vm14, %v3496_v59, %v3500_v36  ;;  %v1700_v53 = vld [vmem:[#allocation2 + $0x7c] sm:$0xf]  ;;  %v8455_v14 = vld [vmem:[#allocation2 + $0x60] sm:$0xff]  }
 0x10e   : > { %v1420_v6 = vrot.slane %v1419_v7, 4  ;;  %v3921_v27 = vsel %vm8805_vm13, %v7988_v20, %v3920_v23  ;;  %v3922_v22 = vrot.slane %v3920_v23, 4  ;;  %v7972_v42 = vcombine.low %v3491_v30, %v3501_v12  ;;  %v1701_v25 = vld [vmem:[#allocation2 + $0x80] sm:$0x1]  ;;  %v1702_v61 = vld [vmem:[#allocation2 + $0x84] sm:$0xe] }
 0x10f   : > { %v1430_v54 = vrot.slane %v1429_v52, 4  ;;  %v1439_v51 = vrot.slane %v1437_v11, 4  ;;  %v1442_v17 = vrot.slane %v1440_v29, 5  ;;  %v1446_v38 = vshll.u32 %v1155_v8, 16  ;;  %v465_v26 = vld [vmem:[#allocation2 + $0x90] sm:$0x1] }
 0x110   : > { %v3158_v33 = vpop.permute.xlu0 %3157  ;;  %v1425_v9 = vsel %vm8841_vm14, %v1420_v6, %v1424_v4  ;;  %v3924_v15 = vsel %vm8805_vm13, %v3922_v22, %v3923_v13  ;;  %v1450_v18 = vshrl.u32 %v1155_v8, 16  ;;  %v1456_v34 = vshll.u32 %v1156_v1, 16  ;;  %v1703_v35 = vld [vmem:[#allocation2 + $0x88] sm:$0xf]  ;;  %v1704_v40 = vld [vmem:[#allocation2 + $0x8c] sm:$0x1] }
 0x111   : > { %3202 = vst.msk [vmem:[#allocation3 + $0x20] sm:$0xff] %vm10947_vm5, %v3158_v33  ;;  %3712 = vrot.lane.b32.xlu1 %v7972_v42, %s8598_s12  ;;  %v1435_v31 = vsel %vm8841_vm14, %v1430_v54, %v1434_v5  ;;  %v8004_v32 = vcombine.low %v3921_v27, %v3924_v15  ;;  %v1443_v24 = vor.u32 %v1442_v17, %v1439_v51  ;;  %v1448_v36 = vrot.slane %v1446_v38, 5  ;;  %v407_v39 = vld [vmem:[%s8747_s14 + $0x58] sm:$0xf]  ;;  %v408_v48 = vld [vmem:[%s8747_s14 + $0x5c] sm:$0xf] }
 0x112   : > { %v7845_v56 = vcombine.low %v1425_v9, %v1435_v31  ;;  %v1452_v43 = vrot.slane %v1450_v18, 4  ;;  %v7861_v37 = vrot.slane %v1699_v62, 9  ;;  %v1458_v47 = vrot.slane %v1456_v34, 5  ;;  %v2200_v20 = vld [vmem:[#allocation2 + $0x84] sm:$0xf]  ;;  %v8456_v23 = vld [vmem:[#allocation2 + $0x6c] sm:$0xff]  }
 0x113   : > { %4033 = vrot.lane.b32.xlu0 %v8004_v32, %s10979_s29  ;;  %v1444_v46 = vrot.slane %v1443_v24, 4  ;;  %v1840_v49 = vrot.slane %v1700_v53, 5  ;;  %v1843_v50 = vrot.slane %v1701_v25, 5  ;;  %v7862_v55 = vrot.slane %v1702_v61, 9  ;;  %v2201_v19 = vld [vmem:[#allocation2 + $0x88] sm:$0xf] }
 0x114   : > { %v1453_v44 = vor.u32 %v1452_v43, %v1448_v36  ;;  %v1847_v57 = vrot.slane %v1703_v35, 5  ;;  %v1850_v58 = vrot.slane %v1704_v40, 5  ;;  %vm10980_vm9 = vcmask 31744   ;;  %v2202_v11 = vld [vmem:[#allocation2 + $0x8c] sm:$0x1]  ;;  %v8441_v51 = vld [vmem:[#allocation2 + $0x84] sm:$0xff]  }
 0x115   : > { %1113 = vst.msk [vmem:[#allocation3 + $0x40] sm:$0xff] %vm10980_vm9, %v8455_v14  ;;  %1624 = vrot.lane.b32.xlu1 %v7845_v56, %s10981_s24  ;;  %v1449_v45 = vsel %vm8841_vm14, %v1444_v46, %v1448_v36  ;;  %v1841_v60 = vsel %vm8805_vm13, %v7861_v37, %v1840_v49  ;;  %v1842_v63 = vrot.slane %v1840_v49, 4  ;;  %v466_v4 = vsel %vm8723_vm3, 0, %v465_v26  ;;  %v521_v29 = vld [vmem:[#allocation2 + $0x98] sm:$0x1]  ;;  %1114 = vst.msk [vmem:[#allocation3 + $0x48] sm:$0xff] %vm10980_vm9, %v8456_v23 }
 0x116   : > { %v1454_v5 = vrot.slane %v1453_v44, 4  ;;  %v1848_v28 = vsel %vm8805_vm13, %v7862_v55, %v1847_v57  ;;  %v1849_v59 = vrot.slane %v1847_v57, 4  ;;  %467 = vst [vmem:[#allocation2 + $0x90] sm:$0x1] %v466_v4  ;;  %v729_v7 = vshrl.u32 %v407_v39, 16 }
 0x117   : > { %v1844_v13 = vsel %vm8805_vm13, %v1842_v63, %v1843_v50  ;;  %v732_v30 = vshll.u32 %v407_v39, 16  ;;  %v737_v52 = vshrl.u32 %v408_v48, 16  ;;  %v740_v8 = vshll.u32 %v408_v48, 16  ;;  %v9520_v1 = vld [vmem:[#allocation2 + $0x84] sm:$0xe] }
 0x118   : > { %v1459_v12 = vsel %vm8841_vm14, %v1454_v5, %v1458_v47  ;;  %v7877_v6 = vcombine.low %v1841_v60, %v1844_v13  ;;  %v1851_v27 = vsel %vm8805_vm13, %v1849_v59, %v1850_v58  ;;  %v731_v22 = vrot.slane %v729_v7, 7  ;;  %v2746_v38 = vld [vmem:[#allocation2 + $0x88] sm:$0xf]  ;;  %v468_v18 = vld [vmem:[#allocation2 + $0x9c] sm:$0x1] }
 0x119   : > { %v2661_v62 = vpop.permute.xlu1 %2660  ;;  %v7846_v33 = vcombine.low %v1449_v45, %v1459_v12  ;;  %v9524_v42 = vrot.slane %v737_v52, 7  ;;  %v2459_v54 = vshrl.u32 %v2200_v20, 16  ;;  %v2462_v9 = vshll.u32 %v2200_v20, 16  ;;  %v2747_v24 = vld [vmem:[#allocation2 + $0x8c] sm:$0x1]  ;;  %v8459_v12 = vld [vmem:[#allocation2 + $0x78] sm:$0xff]  }
 0x11a   : > { %2704 = vst.msk [vmem:[#allocation3 + $0x28] sm:$0xff] %vm2698_vm11, %v2661_v62  ;;  %1948 = vrot.lane.b32.xlu0 %v7877_v6, %s10950_s16  ;;  %v734_v17 = vor.u32 %v732_v30, %v731_v22  ;;  %v735_v53 = vrot.slane %v731_v22, 4  ;;  %v2468_v15 = vshll.u32 %v2201_v19, 16  ;;  %v7878_v61 = vcombine.low %v1848_v28, %v1851_v27  ;;  %v9530_v34 = vld [vmem:[%s8747_s14 + $0x60] sm:$0xf]  ;;  %v8460_v6 = vld [vmem:[#allocation2 + $0x84] sm:$0xff]  }
 0x11b   : > { %1626 = vrot.lane.b32.xlu1 %v7846_v33, %s10981_s24  ;;  %v742_v26 = vor.u32 %v740_v8, %v9524_v42  ;;  %v2461_v31 = vrot.slane %v2459_v54, 4  ;;  %v2472_v32 = vshrl.u32 %v2201_v19, 16  ;;  %v410_v35 = vld [vmem:[%s8747_s14 + $0x64] sm:$0xf]  ;;  %v2464_v56 = vrot.slane %v2462_v9, 5  ;;  %1115 = vst.msk [vmem:[#allocation3 + $0x50] sm:$0xff] %vm10980_vm9, %v8459_v12 }
 0x11c   : > { %v3703_v25 = vpop.permute.xlu0 %3702  ;;  %v2470_v36 = vrot.slane %v2468_v15, 5  ;;  %v2478_v43 = vshll.u32 %v2202_v11, 16  ;;  %v522_v37 = vsel %vm8754_vm6, 0, %v521_v29  ;;  %v524_v39 = vld [vmem:[#allocation2 + $0xa4] sm:$0x1]  ;;  %v7925_v49 = vrot.slane %v9520_v1, 9 }
 0x11d   : > { %v2982_v40 = vpop.permute.xlu1 %2981  ;;  %3747 = vst.msk [vmem:[#allocation3 + $0x20] sm:$0xff] %vm3742_vm4, %v3703_v25  ;;  %v743_v14 = vsel %vm8761_vm7, %v735_v53, %v742_v26  ;;  %v941_v46 = vld [vmem:[#allocation2 + $0x90] sm:$0xf]  ;;  %v2474_v47 = vrot.slane %v2472_v32, 4  ;;  %523 = vst [vmem:[#allocation2 + $0x98] sm:$0x1] %v522_v37  ;;  %v2465_v44 = vor.u32 %v2464_v56, %v2461_v31 }
 0x11e   : > { %3025 = vst.msk [vmem:[#allocation3 + $0x28] sm:$0xff] %vm10949_vm12, %v2982_v40  ;;  %v2883_v50 = vrot.slane %v2746_v38, 5  ;;  %2125 = vrot.lane.b32.xlu0 %v8441_v51, %s8591_s15  ;;  %v942_v48 = vsel %vm8769_vm10, %v734_v17, %v941_v46  ;;  %v2480_v55 = vrot.slane %v2478_v43, 5  ;;  %v2886_v57 = vrot.slane %v2747_v24, 5  ;;  %v9545_v58 = vld [vmem:[%s8747_s14 + $0x68] sm:$0xf] }
 0x11f   : > { %944 = vst.msk [vmem:[#allocation2 + $0x94] sm:$0xf] %vm417_vm0, %v743_v14  ;;  %v471_v20 = vld [vmem:[#allocation2 + $0xa8] sm:$0x1]  ;;  %1950 = vrot.lane.b32.xlu1 %v7878_v61, %s10950_s16  ;;  %943 = vst [vmem:[#allocation2 + $0x90] sm:$0xf] %v942_v48  ;;  %v2475_v60 = vor.u32 %v2474_v47, %v2470_v36 }
 0x120   : > { %v4024_v45 = vpop.permute.xlu0 %4023  ;;  %v2885_v63 = vrot.slane %v2883_v50, 4  ;;  %v469_v4 = vsel %vm8723_vm3, 0, %v468_v18  ;;  %v744_v5 = vrot.slane %v9524_v42, 4  ;;  %v2466_v28 = vrot.slane %v2465_v44, 4 }
 0x121   : > { %v3160_v19 = vpop.permute.xlu1 %3159  ;;  %4068 = vst.msk [vmem:[#allocation3 + $0x20] sm:$0xff] %vm4063_vm2, %v4024_v45  ;;  %470 = vst [vmem:[#allocation2 + $0x9c] sm:$0x1] %v469_v4  ;;  %v746_v59 = vshrl.u32 %v9530_v34, 16  ;;  %v754_v7 = vshrl.u32 %v410_v35, 16  ;;  %v2476_v23 = vrot.slane %v2475_v60, 4  ;;  %v2884_v11 = vsel %vm8805_vm13, %v7925_v49, %v2883_v50 }
 0x122   : > { %3203 = vst.msk [vmem:[#allocation3 + $0x28] sm:$0xff] %vm10947_vm5, %v3160_v19  ;;  %v749_v13 = vshll.u32 %v9530_v34, 16  ;;  %v757_v30 = vshll.u32 %v410_v35, 16  ;;  %v525_v52 = vsel %vm8754_vm6, 0, %v524_v39  ;;  %v2471_v8 = vsel %vm8841_vm14, %v2466_v28, %v2470_v36  ;;  %vm10982_vm5 = vmmov %vm10980_vm9 }
 0x123   : > { %v748_v29 = vrot.slane %v746_v59, 7  ;;  %v9561_v62 = vrot.slane %v754_v7, 7  ;;  %526 = vst [vmem:[#allocation2 + $0xa4] sm:$0x1] %v525_v52  ;;  %v2481_v27 = vsel %vm8841_vm14, %v2476_v23, %v2480_v55  ;;  %v2887_v22 = vsel %vm8805_vm13, %v2885_v63, %v2886_v57  ;;  %1116 = vst.msk [vmem:[#allocation3 + $0x58] sm:$0xff] %vm10982_vm5, %v8460_v6 }
 0x124   : > { %v472_v1 = vsel %vm8723_vm3, 0, %v471_v20  ;;  %v763_v33 = vshrl.u32 %v9545_v58, 16  ;;  %v7909_v54 = vcombine.low %v2471_v8, %v2481_v27  ;;  %v945_v51 = vld [vmem:[#allocation2 + $0x98] sm:$0x1]  ;;  %v766_v9 = vshll.u32 %v9545_v58, 16 }
 0x125   : > { %v3705_v42 = vpop.permute.xlu1 %3704  ;;  %v752_v17 = vrot.slane %v748_v29, 4  ;;  %v759_v53 = vor.u32 %v757_v30, %v9561_v62  ;;  %473 = vst [vmem:[#allocation2 + $0xa8] sm:$0x1] %v472_v1  ;;  %v946_v38 = vsel %vm8723_vm3, %v744_v5, %v945_v51  ;;  %v7941_v32 = vcombine.low %v2884_v11, %v2887_v22 }
 0x126   : > { %3748 = vst.msk [vmem:[#allocation3 + $0x28] sm:$0xff] %vm3742_vm4, %v3705_v42  ;;  %v4026_v15 = vpop.permute.xlu0 %4025  ;;  %v2204_v18 = vld [vmem:[#allocation2 + $0x94] sm:$0xf]  ;;  %2670 = vrot.lane.b32.xlu0 %v7909_v54, %s10955_s30  ;;  %947 = vst [vmem:[#allocation2 + $0x98] sm:$0x1] %v946_v38  ;;  %v751_v24 = vor.u32 %v749_v13, %v748_v29  ;;  %v761_v55 = vrot.slane %v9561_v62, 4 }
 0x127   : > { %v2749_v25 = vld [vmem:[#allocation2 + $0x94] sm:$0xf]  ;;  %4069 = vst.msk [vmem:[#allocation3 + $0x28] sm:$0xff] %vm4063_vm2, %v4026_v15  ;;  %v2203_v26 = vld [vmem:[#allocation2 + $0x90] sm:$0xf]  ;;  %v2492_v31 = vshll.u32 %v2204_v18, 16  ;;  %v760_v34 = vsel %vm8761_vm7, %v752_v17, %v759_v53 }
 0x128   : > { %v8442_v61 = vld [vmem:[#allocation2 + $0x90] sm:$0xff]   ;;  %v2483_v35 = vshrl.u32 %v2203_v26, 16  ;;  %v2486_v40 = vshll.u32 %v2203_v26, 16  ;;  %v2496_v56 = vshrl.u32 %v2204_v18, 16  ;;  %v2890_v43 = vrot.slane %v2749_v25, 5  ;;  %v4084_v44 = vld [vmem:[#allocation3 + $0x20] sm:$0xff] }
 0x129   : > { %v2748_v36 = vld [vmem:[#allocation2 + $0x90] sm:$0xe]  ;;  %951 = vst.msk [vmem:[#allocation2 + $0xa0] sm:$0xf] %vm417_vm0, %v760_v34  ;;  %v1617_v37 = vpop.permute.xlu1 %1616  ;;  %2127 = vrot.lane.b32.xlu1 %v8442_v61, %s8591_s15  ;;  %v9583_v39 = vrot.slane %v2492_v31, 5  ;;  %v9588_v45 = vrot.slane %v763_v33, 7  ;;  %8290 = vmatprep.mubr.msk.bf16.mxu0 %vm4121_vm15, %v4084_v44 }
 0x12a   : > { %v7926_v14 = vrot.slane %v2748_v36, 9  ;;  %1659 = vst.msk [vmem:[#allocation3 + $0x30] sm:$0xff] %vm1652_vm1, %v1617_v37  ;;  %v2485_v46 = vrot.slane %v2483_v35, 4  ;;  %v2488_v47 = vrot.slane %v2486_v40, 5  ;;  %v2498_v49 = vrot.slane %v2496_v56, 4  ;;  %v8445_v48 = vld [vmem:[#allocation2 + $0x90] sm:$0xff]   ;;  %2991 = vrot.lane.b32.xlu0 %v7941_v32, %s8595_s25 }
 0x12b   : > { %v2892_v50 = vrot.slane %v2890_v43, 4  ;;  %v948_v57 = vld [vmem:[#allocation2 + $0x9c] sm:$0xf]  ;;  %v3244_v20 = vld [vmem:[#allocation2 + $0x90] sm:$0xf]  ;;  %vm10983_vm5 = vcmask 130144  }
 0x12c   : > { %v1941_v60 = vpop.permute.xlu0 %1940  ;;  %v2489_v63 = vor.u32 %v2488_v47, %v2485_v46  ;;  %v2499_v4 = vor.u32 %v2498_v49, %v9583_v39  ;;  %v949_v19 = vsel %vm8769_vm10, %v751_v24, %v948_v57  ;;  %v3245_v5 = vld [vmem:[#allocation2 + $0x94] sm:$0xf]  ;;  %v3503_v28 = vshrl.u32 %v3244_v20, 16  ;;  %v952_v59 = vld [vmem:[#allocation2 + $0xa4] sm:$0x1]  ;;  %vm10984_vm9 = vmmov %vm10983_vm5 }
 0x12d   : > { %1983 = vst.msk [vmem:[#allocation3 + $0x30] sm:$0xff] %vm1976_vm8, %v1941_v60  ;;  %950 = vst [vmem:[#allocation2 + $0x9c] sm:$0xf] %v949_v19  ;;  %v3506_v7 = vshll.u32 %v3244_v20, 16  ;;  %v3512_v23 = vshll.u32 %v3245_v5, 16  ;;  %v3516_v13 = vshrl.u32 %v3245_v5, 16  ;;  %v953_v30 = vsel %vm8723_vm3, %v761_v55, %v952_v59 }
 0x12e   : > { %v4085_v8 = vld [vmem:[#allocation3 + $0x28] sm:$0xff]  ;;  %v2205_v11 = vld [vmem:[#allocation2 + $0x98] sm:$0x1]  ;;  %v2490_v29 = vrot.slane %v2489_v63, 4  ;;  %v2500_v62 = vrot.slane %v2499_v4, 4  ;;  %v9601_v27 = vsel %vm8805_vm13, %v7926_v14, %v2890_v43  ;;  %3169 = vrot.lane.b32.xlu0 %v8445_v48, %s8593_s22  ;;  %v3505_v54 = vrot.slane %v3503_v28, 4 }
 0x12f   : > { %v1619_v52 = vpop.permute.xlu1 %1618  ;;  %v2750_v12 = vld [vmem:[#allocation2 + $0x98] sm:$0x1]  ;;  %954 = vst [vmem:[#allocation2 + $0xa4] sm:$0x1] %v953_v30  ;;  %8291 = vmatmul.mubr.msk.bf16.gmra.mrb[8].mxu0 %vm4121_vm15, %v4085_v8  ;;  %v2502_v6 = vshll.u32 %v2205_v11, 16  ;;  %v3508_v51 = vrot.slane %v3506_v7, 5  ;;  %v9616_v43 = vor.u32 %v766_v9, %v9588_v45 }
 0x130   : > { %1660 = vst.msk [vmem:[#allocation3 + $0x38] sm:$0xff] %vm1652_vm1, %v1619_v52  ;;  %v2893_v22 = vrot.slane %v2750_v12, 5  ;;  %v3246_v1 = vld [vmem:[#allocation2 + $0x98] sm:$0x1]  ;;  %v2118_v33 = vpop.permute.xlu0 %2117  ;;  %v2495_v42 = vsel %vm8841_vm14, %v2490_v29, %v9583_v39  ;;  %v3514_v17 = vrot.slane %v3512_v23, 5  ;;  %v3518_v18 = vrot.slane %v3516_v13, 4 }
 0x131   : > { %v3248_v53 = vld [vmem:[#allocation2 + $0xa0] sm:$0xf]  ;;  %2160 = vst.msk [vmem:[#allocation3 + $0x30] sm:$0xff] %vm10983_vm5, %v2118_v33  ;;  %v2504_v15 = vrot.slane %v2502_v6, 5  ;;  %v3522_v25 = vshll.u32 %v3246_v1, 16  ;;  %v3509_v31 = vor.u32 %v3508_v51, %v3505_v54  ;;  %v8461_v7 = vld [vmem:[#allocation2 + $0x90] sm:$0xff]  }
 0x132   : > { %v2894_v38 = vsel %vm8805_vm13, %v2892_v50, %v2893_v22  ;;  %v3789_v61 = vld [vmem:[#allocation2 + $0x90] sm:$0xe]  ;;  %v3536_v32 = vshll.u32 %v3248_v53, 16  ;;  %v3540_v24 = vshrl.u32 %v3248_v53, 16  ;;  %v3519_v35 = vor.u32 %v3518_v18, %v3514_v17  ;;  %v3790_v56 = vld [vmem:[#allocation2 + $0x94] sm:$0xf] }
 0x133   : > { %v1943_v26 = vpop.permute.xlu1 %1942  ;;  %v2505_v34 = vsel %vm8841_vm14, %v2500_v62, %v2504_v15  ;;  %v3524_v40 = vrot.slane %v3522_v25, 5  ;;  %v3791_v36 = vld [vmem:[#allocation2 + $0x98] sm:$0x1]  ;;  %v7942_v39 = vcombine.low %v9601_v27, %v2894_v38  ;;  %v3510_v14 = vrot.slane %v3509_v31, 4  ;;  %v1157_v49 = vld [vmem:[#allocation2 + $0x90] sm:$0xf] }
 0x134   : > { %1984 = vst.msk [vmem:[#allocation3 + $0x38] sm:$0xff] %vm1976_vm8, %v1943_v26  ;;  %v7910_v37 = vcombine.low %v2495_v42, %v2505_v34  ;;  %v3247_v46 = vld [vmem:[#allocation2 + $0x9c] sm:$0xf]  ;;  %v7989_v47 = vrot.slane %v3789_v61, 9  ;;  %v3520_v50 = vrot.slane %v3519_v35, 4  ;;  %v3538_v57 = vrot.slane %v3536_v32, 5 }
 0x135   : > { %v3527_v44 = vshrl.u32 %v3247_v46, 16  ;;  %v3530_v55 = vshll.u32 %v3247_v46, 16  ;;  %v3515_v20 = vsel %vm8841_vm14, %v3510_v14, %v3514_v17  ;;  %v3542_v58 = vrot.slane %v3540_v24, 4  ;;  %v1158_v63 = vld [vmem:[#allocation2 + $0x94] sm:$0xf]  ;;  %v8446_v23 = vld [vmem:[#allocation2 + $0x9c] sm:$0xff]  }
 0x136   : > { %v3249_v48 = vld [vmem:[#allocation2 + $0xa4] sm:$0x1]  ;;  %2672 = vrot.lane.b32.xlu1 %v7910_v37, %s10955_s30  ;;  %v3927_v60 = vrot.slane %v3790_v56, 5  ;;  %v3525_v4 = vsel %vm8841_vm14, %v3520_v50, %v3524_v40  ;;  %v3930_v28 = vrot.slane %v3791_v36, 5  ;;  %v1159_v59 = vld [vmem:[#allocation2 + $0x98] sm:$0x1] }
 0x137   : > { %v3546_v9 = vshll.u32 %v3249_v48, 16  ;;  %v3529_v19 = vrot.slane %v3527_v44, 4  ;;  %v3532_v5 = vrot.slane %v3530_v55, 5  ;;  %v7973_v13 = vcombine.low %v3515_v20, %v3525_v4  ;;  %v3792_v22 = vld [vmem:[#allocation2 + $0x9c] sm:$0xe] }
 0x138   : > { %v3543_v30 = vor.u32 %v3542_v58, %v3538_v57  ;;  %v3928_v8 = vsel %vm8805_vm13, %v7989_v47, %v3927_v60  ;;  %v2120_v11 = vpop.permute.xlu1 %2119  ;;  %v3929_v12 = vrot.slane %v3927_v60, 4  ;;  %v1461_v6 = vshrl.u32 %v1157_v49, 16  ;;  %v8462_v1 = vld [vmem:[#allocation2 + $0x9c] sm:$0xff]   ;;  %v3794_v25 = vld [vmem:[#allocation2 + $0xa4] sm:$0x1] }
 0x139   : > { %v3548_v52 = vrot.slane %v3546_v9, 5  ;;  %v2663_v29 = vpop.permute.xlu0 %2662  ;;  %v3533_v62 = vor.u32 %v3532_v5, %v3529_v19  ;;  %v1464_v27 = vshll.u32 %v1157_v49, 16  ;;  %2161 = vst.msk [vmem:[#allocation3 + $0x38] sm:$0xff] %vm10984_vm9, %v2120_v11  ;;  %vm10985_vm5 = vcmask 31744   ;;  %3714 = vrot.lane.b32.xlu0 %v7973_v13, %s8598_s12  ;;  %v3793_v17 = vld [vmem:[#allocation2 + $0xa0] sm:$0xf] }
 0x13a   : > { %2705 = vst.msk [vmem:[#allocation3 + $0x30] sm:$0xff] %vm2698_vm11, %v2663_v29  ;;  %2993 = vrot.lane.b32.xlu1 %v7942_v39, %s8595_s25  ;;  %v3544_v33 = vrot.slane %v3543_v30, 4  ;;  %v1470_v42 = vshll.u32 %v1158_v63, 16  ;;  %v1474_v54 = vshrl.u32 %v1158_v63, 16  ;;  %v1480_v51 = vshll.u32 %v1159_v59, 16  ;;  %vm10986_vm9 = vmmov %vm10985_vm5 }
 0x13b   : > { %1117 = vst.msk [vmem:[#allocation3 + $0x60] sm:$0xff] %vm10985_vm5, %v8461_v7  ;;  %v3534_v53 = vrot.slane %v3533_v62, 4  ;;  %v3931_v15 = vsel %vm8805_vm13, %v3929_v12, %v3930_v28  ;;  %v1463_v38 = vrot.slane %v1461_v6, 4  ;;  %v1466_v18 = vrot.slane %v1464_v27, 5  ;;  %v1160_v24 = vld [vmem:[#allocation2 + $0x9c] sm:$0xf] }
 0x13c   : > { %1118 = vst.msk [vmem:[#allocation3 + $0x68] sm:$0xff] %vm10986_vm9, %v8462_v1  ;;  %v3549_v61 = vsel %vm8841_vm14, %v3544_v33, %v3548_v52  ;;  %v8005_v26 = vcombine.low %v3928_v8, %v3931_v15  ;;  %v1472_v31 = vrot.slane %v1470_v42, 5  ;;  %v1476_v32 = vrot.slane %v1474_v54, 4  ;;  %v1161_v34 = vld [vmem:[#allocation2 + $0xa0] sm:$0xf] }
 0x13d   : > { %v2984_v35 = vpop.permute.xlu0 %2983  ;;  %v3539_v40 = vsel %vm8841_vm14, %v3534_v53, %v3538_v57  ;;  %v1467_v56 = vor.u32 %v1466_v18, %v1463_v38  ;;  %v1482_v36 = vrot.slane %v1480_v51, 5  ;;  %v7990_v37 = vrot.slane %v3792_v22, 9  ;;  %v1162_v39 = vld [vmem:[#allocation2 + $0xa4] sm:$0x1]  ;;  %v1705_v50 = vld [vmem:[#allocation2 + $0x90] sm:$0xe] }
 0x13e   : > { %3026 = vst.msk [vmem:[#allocation3 + $0x30] sm:$0xff] %vm10949_vm12, %v2984_v35  ;;  %3171 = vrot.lane.b32.xlu1 %v8446_v23, %s8593_s22  ;;  %v7974_v14 = vcombine.low %v3539_v40, %v3549_v61  ;;  %4035 = vrot.lane.b32.xlu0 %v8005_v26, %s10979_s29  ;;  %v1477_v46 = vor.u32 %v1476_v32, %v1472_v31  ;;  %v3934_v47 = vrot.slane %v3793_v17, 5  ;;  %v3937_v49 = vrot.slane %v3794_v25, 5  ;;  %v1706_v57 = vld [vmem:[#allocation2 + $0x94] sm:$0xf] }
 0x13f   : > { %v1468_v48 = vrot.slane %v1467_v56, 4  ;;  %v1485_v44 = vshrl.u32 %v1160_v24, 16  ;;  %v1488_v55 = vshll.u32 %v1160_v24, 16  ;;  %v1494_v20 = vshll.u32 %v1161_v34, 16  ;;  %v1707_v4 = vld [vmem:[#allocation2 + $0x98] sm:$0x1] }
 0x140   : > { %v1478_v58 = vrot.slane %v1477_v46, 4  ;;  %v3935_v9 = vsel %vm8805_vm13, %v7990_v37, %v3934_v47  ;;  %v3936_v60 = vrot.slane %v3934_v47, 4  ;;  %v1498_v63 = vshrl.u32 %v1161_v34, 16  ;;  %v1708_v23 = vld [vmem:[#allocation2 + $0x9c] sm:$0xe] }
 0x141   : > { %v3162_v19 = vpop.permute.xlu0 %3161  ;;  %v1473_v5 = vsel %vm8841_vm14, %v1468_v48, %v1472_v31  ;;  %v1487_v28 = vrot.slane %v1485_v44, 4  ;;  %v1490_v59 = vrot.slane %v1488_v55, 5  ;;  %v1496_v7 = vrot.slane %v1494_v20, 5  ;;  %v1709_v11 = vld [vmem:[#allocation2 + $0xa0] sm:$0xf] }
 0x142   : > { %vm10987_vm5 = vcmask 228544   ;;  %3716 = vrot.lane.b32.xlu1 %v7974_v14, %s8598_s12  ;;  %v1483_v13 = vsel %vm8841_vm14, %v1478_v58, %v1482_v36  ;;  %v3938_v30 = vsel %vm8805_vm13, %v3936_v60, %v3937_v49  ;;  %v1500_v52 = vrot.slane %v1498_v63, 4  ;;  %v1710_v29 = vld [vmem:[#allocation2 + $0xa4] sm:$0x1]  ;;  %v412_v22 = vld [vmem:[%s8747_s14 + $0x6c] sm:$0xf] }
 0x143   : > { %3204 = vst.msk [vmem:[#allocation3 + $0x30] sm:$0xff] %vm10987_vm5, %v3162_v19  ;;  %v1504_v8 = vshll.u32 %v1162_v39, 16  ;;  %v7847_v62 = vcombine.low %v1473_v5, %v1483_v13  ;;  %v8006_v12 = vcombine.low %v3935_v9, %v3938_v30  ;;  %v1491_v6 = vor.u32 %v1490_v59, %v1487_v28  ;;  %v955_v51 = vld [vmem:[#allocation2 + $0xa8] sm:$0xf]  ;;  %v2206_v18 = vld [vmem:[#allocation2 + $0x9c] sm:$0xf]  ;;  %vm10988_vm9 = vmmov %vm10987_vm5 }
 0x144   : > { %v7863_v27 = vrot.slane %v1705_v50, 9  ;;  %v1501_v1 = vor.u32 %v1500_v52, %v1496_v7  ;;  %v1854_v42 = vrot.slane %v1706_v57, 5  ;;  %v1857_v54 = vrot.slane %v1707_v4, 5  ;;  %v2207_v25 = vld [vmem:[#allocation2 + $0xa0] sm:$0xf] }
 0x145   : > { %v1506_v33 = vrot.slane %v1504_v8, 5  ;;  %4037 = vrot.lane.b32.xlu0 %v8006_v12, %s10979_s29  ;;  %v1492_v17 = vrot.slane %v1491_v6, 4  ;;  %v7864_v53 = vrot.slane %v1708_v23, 9  ;;  %v1861_v15 = vrot.slane %v1709_v11, 5  ;;  %v2208_v24 = vld [vmem:[#allocation2 + $0xa4] sm:$0x1] }
 0x146   : > { %v1864_v38 = vrot.slane %v1710_v29, 5  ;;  %1628 = vrot.lane.b32.xlu1 %v7847_v62, %s10981_s24  ;;  %v1502_v61 = vrot.slane %v1501_v1, 4  ;;  %v1855_v26 = vsel %vm8805_vm13, %v7863_v27, %v1854_v42  ;;  %v1856_v31 = vrot.slane %v1854_v42, 4  ;;  %v527_v36 = vld [vmem:[#allocation2 + $0xb0] sm:$0x1]  ;;  %v8447_v5 = vld [vmem:[#allocation2 + $0x9c] sm:$0xff]  }
 0x147   : > { %v769_v32 = vrot.slane %v9588_v45, 4  ;;  %v1497_v34 = vsel %vm8841_vm14, %v1492_v17, %v1496_v7  ;;  %v1862_v35 = vsel %vm8805_vm13, %v7864_v53, %v1861_v15  ;;  %v1863_v40 = vrot.slane %v1861_v15, 4  ;;  %v2751_v47 = vld [vmem:[#allocation2 + $0x9c] sm:$0xe]  ;;  %v2752_v55 = vld [vmem:[#allocation2 + $0xa0] sm:$0xf] }
 0x148   : > { %v771_v56 = vshrl.u32 %v412_v22, 16  ;;  %v2665_v37 = vpop.permute.xlu1 %2664  ;;  %v1507_v39 = vsel %vm8841_vm14, %v1502_v61, %v1506_v33  ;;  %v1858_v14 = vsel %vm8805_vm13, %v1856_v31, %v1857_v54  ;;  %v774_v46 = vshll.u32 %v412_v22, 16  ;;  %v2753_v20 = vld [vmem:[#allocation2 + $0xa4] sm:$0x1]  ;;  %v474_v57 = vld [vmem:[#allocation2 + $0xb4] sm:$0x1] }
 0x149   : > { %v956_v45 = vsel %vm8769_vm10, %v9616_v43, %v955_v51  ;;  %2706 = vst.msk [vmem:[#allocation3 + $0x38] sm:$0xff] %vm2698_vm11, %v2665_v37  ;;  %v7848_v49 = vcombine.low %v1497_v34, %v1507_v39  ;;  %v7879_v50 = vcombine.low %v1855_v26, %v1858_v14  ;;  %v1865_v48 = vsel %vm8805_vm13, %v1863_v40, %v1864_v38  ;;  %v413_v4 = vld [vmem:[%s8747_s14 + $0x70] sm:$0xf]  ;;  %v9675_v19 = vld [vmem:[%s8747_s14 + $0x74] sm:$0xf] }
 0x14a   : > { %v9671_v44 = vrot.slane %v771_v56, 7  ;;  %957 = vst [vmem:[#allocation2 + $0xa8] sm:$0xf] %v956_v45  ;;  %v3707_v58 = vpop.permute.xlu0 %3706  ;;  %v7880_v9 = vcombine.low %v1862_v35, %v1865_v48  ;;  %v2507_v60 = vshrl.u32 %v2206_v18, 16  ;;  %v2510_v43 = vshll.u32 %v2206_v18, 16 }
 0x14b   : > { %v2516_v63 = vshll.u32 %v2207_v25, 16  ;;  %3749 = vst.msk [vmem:[#allocation3 + $0x30] sm:$0xff] %vm3742_vm4, %v3707_v58  ;;  %1630 = vrot.lane.b32.xlu1 %v7848_v49, %s10981_s24  ;;  %1952 = vrot.lane.b32.xlu0 %v7879_v50, %s10950_s16  ;;  %v2520_v7 = vshrl.u32 %v2207_v25, 16  ;;  %v2526_v23 = vshll.u32 %v2208_v24, 16  ;;  %v528_v11 = vsel %vm8754_vm6, 0, %v527_v36 }
 0x14c   : > { %v776_v28 = vor.u32 %v774_v46, %v9671_v44  ;;  %v778_v59 = vrot.slane %v9671_v44, 4  ;;  %v2986_v13 = vpop.permute.xlu1 %2985  ;;  %v2509_v30 = vrot.slane %v2507_v60, 4  ;;  %v2512_v52 = vrot.slane %v2510_v43, 5  ;;  %529 = vst [vmem:[#allocation2 + $0xb0] sm:$0x1] %v528_v11 }
 0x14d   : > { %v2518_v8 = vrot.slane %v2516_v63, 5  ;;  %3027 = vst.msk [vmem:[#allocation3 + $0x38] sm:$0xff] %vm10949_vm12, %v2986_v13  ;;  %v2522_v62 = vrot.slane %v2520_v7, 4  ;;  %v2528_v12 = vrot.slane %v2526_v23, 5  ;;  %v7927_v6 = vrot.slane %v2751_v47, 9 }
 0x14e   : > { %v777_v29 = vsel %vm8761_vm7, %v769_v32, %v776_v28  ;;  %v4028_v27 = vpop.permute.xlu0 %4027  ;;  %v2513_v22 = vor.u32 %v2512_v52, %v2509_v30  ;;  %v2897_v1 = vrot.slane %v2752_v55, 5  ;;  %v2900_v33 = vrot.slane %v2753_v20, 5 }
 0x14f   : > { %958 = vst.msk [vmem:[#allocation2 + $0xac] sm:$0xf] %vm417_vm0, %v777_v29  ;;  %v475_v42 = vsel %vm8723_vm3, 0, %v474_v57  ;;  %1954 = vrot.lane.b32.xlu1 %v7880_v9, %s10950_s16  ;;  %2129 = vrot.lane.b32.xlu0 %v8447_v5, %s8591_s15  ;;  %v2523_v54 = vor.u32 %v2522_v62, %v2518_v8  ;;  %v780_v51 = vshrl.u32 %v413_v4, 16  ;;  %v783_v17 = vshll.u32 %v413_v4, 16 }
 0x150   : > { %4070 = vst.msk [vmem:[#allocation3 + $0x30] sm:$0xff] %vm4063_vm2, %v4028_v27  ;;  %476 = vst [vmem:[#allocation2 + $0xb4] sm:$0x1] %v475_v42  ;;  %v788_v53 = vshrl.u32 %v9675_v19, 16  ;;  %v3164_v15 = vpop.permute.xlu1 %3163  ;;  %v2514_v38 = vrot.slane %v2513_v22, 4  ;;  %v2899_v25 = vrot.slane %v2897_v1, 4  ;;  %v2898_v34 = vsel %vm8805_vm13, %v7927_v6, %v2897_v1 }
 0x151   : > { %v2209_v18 = vld [vmem:[#allocation2 + $0xa8] sm:$0xf]  ;;  %3205 = vst.msk [vmem:[#allocation3 + $0x38] sm:$0xff] %vm10988_vm9, %v3164_v15  ;;  %v2524_v61 = vrot.slane %v2523_v54, 4  ;;  %v782_v32 = vrot.slane %v780_v51, 7  ;;  %v791_v49 = vshll.u32 %v9675_v19, 16 }
 0x152   : > { %v2531_v26 = vshrl.u32 %v2209_v18, 16  ;;  %v2534_v31 = vshll.u32 %v2209_v18, 16  ;;  %v2519_v24 = vsel %vm8841_vm14, %v2514_v38, %v2518_v8  ;;  %v9699_v35 = vld [vmem:[#allocation2 + $0xa8] sm:$0xe]  ;;  %v9701_v40 = vrot.slane %v788_v53, 7 }
 0x153   : > { %v2529_v56 = vsel %vm8841_vm14, %v2524_v61, %v2528_v12  ;;  %v2901_v39 = vsel %vm8805_vm13, %v2899_v25, %v2900_v33  ;;  %v959_v46 = vld [vmem:[#allocation2 + $0xb0] sm:$0x1]  ;;  %v785_v45 = vor.u32 %v783_v17, %v782_v32  ;;  %v786_v47 = vrot.slane %v782_v32, 4  ;;  %v3250_v50 = vld [vmem:[#allocation2 + $0xa8] sm:$0xf] }
 0x154   : > { %v2533_v36 = vrot.slane %v2531_v26, 4  ;;  %v2536_v37 = vrot.slane %v2534_v31, 5  ;;  %v7911_v14 = vcombine.low %v2519_v24, %v2529_v56  ;;  %v960_v44 = vsel %vm8723_vm3, %v778_v59, %v959_v46  ;;  %v530_v19 = vld [vmem:[#allocation2 + $0xbc] sm:$0x1]  ;;  %v9713_v5 = vld [vmem:[#allocation2 + $0xa8] sm:$0xe] }
 0x155   : > { %v7928_v57 = vrot.slane %v9699_v35, 9  ;;  %v4030_v58 = vpop.permute.xlu0 %4029  ;;  %961 = vst [vmem:[#allocation2 + $0xb0] sm:$0x1] %v960_v44  ;;  %v7943_v43 = vcombine.low %v2898_v34, %v2901_v39  ;;  %v793_v4 = vor.u32 %v791_v49, %v9701_v40  ;;  %v3551_v23 = vshrl.u32 %v3250_v50, 16  ;;  %v9716_v13 = vld [vmem:[#allocation2 + $0xa8] sm:$0xf] }
 0x156   : > { %v8448_v48 = vld [vmem:[#allocation2 + $0xa8] sm:$0xff]   ;;  %v2537_v20 = vor.u32 %v2536_v37, %v2533_v36  ;;  %2674 = vrot.lane.b32.xlu0 %v7911_v14, %s10955_s30  ;;  %v3709_v28 = vpop.permute.xlu1 %3708  ;;  %v795_v6 = vrot.slane %v9701_v40, 4  ;;  %v3554_v22 = vshll.u32 %v3250_v50, 16  ;;  %v531_v38 = vsel %vm8754_vm6, 0, %v530_v19 }
 0x157   : > { %v2210_v55 = vld [vmem:[#allocation2 + $0xac] sm:$0xf]  ;;  %2131 = vrot.lane.b32.xlu1 %v8448_v48, %s8591_s15  ;;  %v962_v7 = vld [vmem:[#allocation2 + $0xb4] sm:$0xf]  ;;  %3750 = vst.msk [vmem:[#allocation3 + $0x38] sm:$0xff] %vm3742_vm4, %v3709_v28  ;;  %v794_v8 = vsel %vm8761_vm7, %v786_v47, %v793_v4  ;;  %v3553_v27 = vrot.slane %v3551_v23, 4 }
 0x158   : > { %v2540_v9 = vshll.u32 %v2210_v55, 16  ;;  %v2544_v60 = vshrl.u32 %v2210_v55, 16  ;;  %v2755_v63 = vld [vmem:[#allocation2 + $0xac] sm:$0xf]  ;;  %v963_v11 = vsel %vm8769_vm10, %v785_v45, %v962_v7  ;;  %4071 = vst.msk [vmem:[#allocation3 + $0x38] sm:$0xff] %vm4063_vm2, %v4030_v58  ;;  %v9726_v12 = vrot.slane %v2537_v20, 4 }
 0x159   : > { %v2904_v59 = vrot.slane %v2755_v63, 5  ;;  %v3251_v29 = vld [vmem:[#allocation2 + $0xac] sm:$0xf]  ;;  %964 = vst [vmem:[#allocation2 + $0xb4] sm:$0xf] %v963_v11  ;;  %v3556_v15 = vrot.slane %v3554_v22, 5 }
 0x15a   : > { %v9719_v30 = vrot.slane %v2540_v9, 5  ;;  %v2546_v52 = vrot.slane %v2544_v60, 4  ;;  %v3796_v62 = vld [vmem:[#allocation2 + $0xac] sm:$0xf]  ;;  %965 = vst.msk [vmem:[#allocation2 + $0xb8] sm:$0xf] %vm417_vm0, %v794_v8  ;;  %2995 = vrot.lane.b32.xlu0 %v7943_v43, %s8595_s25  ;;  %v1621_v53 = vpop.permute.xlu1 %1620 }
 0x15b   : > { %v4086_v1 = vld [vmem:[#allocation3 + $0x30] sm:$0xff]  ;;  %v2906_v42 = vrot.slane %v2904_v59, 4  ;;  %v3560_v51 = vshll.u32 %v3251_v29, 16  ;;  %v3564_v17 = vshrl.u32 %v3251_v29, 16  ;;  %v7991_v18 = vrot.slane %v9713_v5, 9  ;;  %1661 = vst.msk [vmem:[#allocation3 + $0x40] sm:$0xff] %vm1652_vm1, %v1621_v53  ;;  %v1945_v61 = vpop.permute.xlu0 %1944 }
 0x15c   : > { %v2547_v33 = vor.u32 %v2546_v52, %v9719_v30  ;;  %v8451_v54 = vld [vmem:[#allocation2 + $0xa8] sm:$0xff]   ;;  %8294 = vmatprep.mubr.msk.bf16.mxu0 %vm4121_vm15, %v4086_v1  ;;  %v3941_v25 = vrot.slane %v3796_v62, 5  ;;  %532 = vst [vmem:[#allocation2 + $0xbc] sm:$0x1] %v531_v38  ;;  %v1509_v24 = vshrl.u32 %v9716_v13, 16  ;;  %1985 = vst.msk [vmem:[#allocation3 + $0x40] sm:$0xff] %vm1976_vm8, %v1945_v61  ;;  %v9741_v56 = vsel %vm8805_vm13, %v7928_v57, %v2904_v59 }
 0x15d   : > { %v3562_v31 = vrot.slane %v3560_v51, 5  ;;  %v3566_v32 = vrot.slane %v3564_v17, 4  ;;  %v2211_v34 = vld [vmem:[#allocation2 + $0xb0] sm:$0x1]  ;;  %v3557_v37 = vor.u32 %v3556_v15, %v3553_v27  ;;  %v2543_v50 = vsel %vm8841_vm14, %v9726_v12, %v9719_v30  ;;  %v1164_v52 = vld [vmem:[#allocation2 + $0xac] sm:$0xf] }
 0x15e   : > { %v2548_v26 = vrot.slane %v2547_v33, 4  ;;  %v2756_v35 = vld [vmem:[#allocation2 + $0xb0] sm:$0x1]  ;;  %v2550_v39 = vshll.u32 %v2211_v34, 16  ;;  %3173 = vrot.lane.b32.xlu0 %v8451_v54, %s8593_s22  ;;  %v1623_v49 = vpop.permute.xlu1 %1622  ;;  %v3943_v44 = vrot.slane %v3941_v25, 4  ;;  %v3942_v9 = vsel %vm8805_vm13, %v7991_v18, %v3941_v25 }
 0x15f   : > { %v3252_v36 = vld [vmem:[#allocation2 + $0xb0] sm:$0x1]  ;;  %v2907_v14 = vrot.slane %v2756_v35, 5  ;;  %v3567_v46 = vor.u32 %v3566_v32, %v3562_v31  ;;  %v3558_v48 = vrot.slane %v3557_v37, 4  ;;  %1662 = vst.msk [vmem:[#allocation3 + $0x48] sm:$0xff] %vm1652_vm1, %v1623_v49  ;;  %v2122_v20 = vpop.permute.xlu0 %2121  ;;  %v9753_v60 = vrot.slane %v1509_v24, 4 }
 0x160   : > { %v3570_v45 = vshll.u32 %v3252_v36, 16  ;;  %v3797_v47 = vld [vmem:[#allocation2 + $0xb0] sm:$0x1]  ;;  %v2552_v57 = vrot.slane %v2550_v39, 5  ;;  %vm10989_vm5 = vcmask 130144   ;;  %v1512_v18 = vshll.u32 %v9716_v13, 16 }
 0x161   : > { %v3944_v55 = vrot.slane %v3797_v47, 5  ;;  %v2908_v58 = vsel %vm8805_vm13, %v2906_v42, %v2907_v14  ;;  %2162 = vst.msk [vmem:[#allocation3 + $0x40] sm:$0xff] %vm10989_vm5, %v2122_v20  ;;  %v3563_v63 = vsel %vm8841_vm14, %v3558_v48, %v3562_v31  ;;  %v3568_v4 = vrot.slane %v3567_v46, 4  ;;  %v3253_v5 = vld [vmem:[#allocation2 + $0xb4] sm:$0xf]  ;;  %v8463_v36 = vld [vmem:[#allocation2 + $0xa8] sm:$0xff]  }
 0x162   : > { %v7944_v43 = vcombine.low %v9741_v56, %v2908_v58  ;;  %v3572_v19 = vrot.slane %v3570_v45, 5  ;;  %v3254_v28 = vld [vmem:[#allocation2 + $0xb8] sm:$0xf]  ;;  %v2553_v59 = vsel %vm8841_vm14, %v2548_v26, %v2552_v57  ;;  %v3575_v7 = vshrl.u32 %v3253_v5, 16  ;;  %v1947_v8 = vpop.permute.xlu1 %1946  ;;  %v1165_v22 = vld [vmem:[#allocation2 + $0xb0] sm:$0x1] }
 0x163   : > { %v3578_v23 = vshll.u32 %v3253_v5, 16  ;;  %v3584_v30 = vshll.u32 %v3254_v28, 16  ;;  %v7912_v11 = vcombine.low %v2543_v50, %v2553_v59  ;;  %v966_v62 = vld [vmem:[#allocation2 + $0xbc] sm:$0x1]  ;;  %v3588_v12 = vshrl.u32 %v3254_v28, 16  ;;  %1986 = vst.msk [vmem:[#allocation3 + $0x48] sm:$0xff] %vm1976_vm8, %v1947_v8 }
 0x164   : > { %v3573_v29 = vsel %vm8841_vm14, %v3568_v4, %v3572_v19  ;;  %v3945_v27 = vsel %vm8805_vm13, %v3943_v44, %v3944_v55  ;;  %v4087_v1 = vld [vmem:[#allocation3 + $0x38] sm:$0xff]  ;;  %v967_v42 = vsel %vm8723_vm3, %v795_v6, %v966_v62  ;;  %v3577_v54 = vrot.slane %v3575_v7, 4  ;;  %v3799_v17 = vld [vmem:[#allocation2 + $0xb8] sm:$0xf]  ;;  %v9776_v32 = vld [vmem:[#allocation2 + $0xa8] sm:$0xe] }
 0x165   : > { %v7975_v33 = vcombine.low %v3563_v63, %v3573_v29  ;;  %v3580_v51 = vrot.slane %v3578_v23, 5  ;;  %8295 = vmatmul.mubr.msk.bf16.gmra.mrb[12].mxu0 %vm4121_vm15, %v4087_v1  ;;  %2676 = vrot.lane.b32.xlu1 %v7912_v11, %s10955_s30  ;;  %968 = vst [vmem:[#allocation2 + $0xbc] sm:$0x1] %v967_v42  ;;  %v9772_v53 = vrot.slane %v3584_v30, 5  ;;  %v3590_v15 = vrot.slane %v3588_v12, 4  ;;  %v8452_v14 = vld [vmem:[#allocation2 + $0xb4] sm:$0xff]  }
 0x166   : > { %v8007_v38 = vcombine.low %v3942_v9, %v3945_v27  ;;  %v3798_v25 = vld [vmem:[#allocation2 + $0xb4] sm:$0xe]  ;;  %v1518_v61 = vshll.u32 %v1164_v52, 16  ;;  %v1522_v6 = vshrl.u32 %v1164_v52, 16  ;;  %v1528_v26 = vshll.u32 %v1165_v22, 16 }
 0x167   : > { %3718 = vrot.lane.b32.xlu0 %v7975_v33, %s8598_s12  ;;  %v3581_v40 = vor.u32 %v3580_v51, %v3577_v54  ;;  %v1166_v31 = vld [vmem:[#allocation2 + $0xb4] sm:$0xf]  ;;  %v3591_v24 = vor.u32 %v3590_v15, %v9772_v53  ;;  %v1514_v34 = vrot.slane %v1512_v18, 5  ;;  %v3948_v35 = vrot.slane %v3799_v17, 5  ;;  %v1167_v56 = vld [vmem:[#allocation2 + $0xb8] sm:$0xf] }
 0x168   : > { %v9779_v37 = vrot.slane %v1518_v61, 5  ;;  %v1524_v39 = vrot.slane %v1522_v6, 4  ;;  %v7992_v13 = vrot.slane %v3798_v25, 9  ;;  %v9783_v49 = vrot.slane %v1528_v26, 5  ;;  %v2667_v50 = vpop.permute.xlu0 %2666  ;;  %v1712_v63 = vld [vmem:[#allocation2 + $0xac] sm:$0xf] }
 0x169   : > { %2997 = vrot.lane.b32.xlu1 %v7944_v43, %s8595_s25  ;;  %v3582_v46 = vrot.slane %v3581_v40, 4  ;;  %v3592_v45 = vrot.slane %v3591_v24, 4  ;;  %v1515_v47 = vor.u32 %v1514_v34, %v9753_v60  ;;  %vm10990_vm9 = vcmask 31744   ;;  %v2124_v57 = vpop.permute.xlu1 %2123  ;;  %2707 = vst.msk [vmem:[#allocation3 + $0x40] sm:$0xff] %vm2698_vm11, %v2667_v50  ;;  %v1713_v7 = vld [vmem:[#allocation2 + $0xb0] sm:$0x1] }
 0x16a   : > { %1119 = vst.msk [vmem:[#allocation3 + $0x70] sm:$0xff] %vm10990_vm9, %v8463_v36  ;;  %v1525_v48 = vor.u32 %v1524_v39, %v9779_v37  ;;  %v3950_v44 = vrot.slane %v3948_v35, 4  ;;  %v1533_v55 = vshrl.u32 %v1166_v31, 16  ;;  %v1536_v20 = vshll.u32 %v1166_v31, 16  ;;  %v8464_v62 = vld [vmem:[#allocation2 + $0xb4] sm:$0xff]  }
 0x16b   : > { %4039 = vrot.lane.b32.xlu0 %v8007_v38, %s10979_s29  ;;  %v1516_v58 = vrot.slane %v1515_v47, 4  ;;  %v1542_v9 = vshll.u32 %v1167_v56, 16  ;;  %v1546_v43 = vshrl.u32 %v1167_v56, 16  ;;  %v7865_v60 = vrot.slane %v9776_v32, 9  ;;  %2163 = vst.msk [vmem:[#allocation3 + $0x48] sm:$0xff] %vm10989_vm5, %v2124_v57 }
 0x16c   : > { %v3255_v4 = vld [vmem:[#allocation2 + $0xbc] sm:$0x1]  ;;  %v1526_v19 = vrot.slane %v1525_v48, 4  ;;  %v3949_v28 = vsel %vm8805_vm13, %v7992_v13, %v3948_v35  ;;  %v1535_v59 = vrot.slane %v1533_v55, 4  ;;  %v3587_v23 = vsel %vm8841_vm14, %v3582_v46, %v9772_v53  ;;  %v2988_v29 = vpop.permute.xlu0 %2987  ;;  %v1714_v33 = vld [vmem:[#allocation2 + $0xb4] sm:$0xe] }
 0x16d   : > { %v3800_v5 = vld [vmem:[#allocation2 + $0xbc] sm:$0x1]  ;;  %3175 = vrot.lane.b32.xlu1 %v8452_v14, %s8593_s22  ;;  %v3594_v30 = vshll.u32 %v3255_v4, 16  ;;  %v1538_v11 = vrot.slane %v1536_v20, 5  ;;  %v1521_v12 = vsel %vm8841_vm14, %v1516_v58, %v9779_v37  ;;  %v9800_v27 = vrot.slane %v1542_v9, 5  ;;  %3028 = vst.msk [vmem:[#allocation3 + $0x40] sm:$0xff] %vm10949_vm12, %v2988_v29 }
 0x16e   : > { %v3951_v52 = vrot.slane %v3800_v5, 5  ;;  %v1168_v8 = vld [vmem:[#allocation2 + $0xbc] sm:$0x1]  ;;  %v1548_v22 = vrot.slane %v1546_v43, 4  ;;  %v477_v42 = vld [vmem:[#allocation2 + $0xc0] sm:$0x1]  ;;  %v1531_v51 = vsel %vm8841_vm14, %v1526_v19, %v9783_v49 }
 0x16f   : > { %v1552_v1 = vshll.u32 %v1168_v8, 16  ;;  %v3596_v54 = vrot.slane %v3594_v30, 5  ;;  %v1539_v53 = vor.u32 %v1538_v11, %v1535_v59  ;;  %v1715_v15 = vld [vmem:[#allocation2 + $0xb8] sm:$0xf]  ;;  %v1716_v38 = vld [vmem:[#allocation2 + $0xbc] sm:$0x1]  ;;  %v7849_v46 = vcombine.low %v1521_v12, %v1531_v51 }
 0x170   : > { %v3952_v17 = vsel %vm8805_vm13, %v3950_v44, %v3951_v52  ;;  %v415_v18 = vld [vmem:[%s8747_s14 + $0x78] sm:$0xf]  ;;  %1120 = vst.msk [vmem:[#allocation3 + $0x78] sm:$0xff] %vm10990_vm9, %v8464_v62  ;;  %v1549_v40 = vor.u32 %v1548_v22, %v9800_v27  ;;  %v1868_v6 = vrot.slane %v1712_v63, 5  ;;  %v1871_v32 = vrot.slane %v1713_v7, 5  ;;  %v3166_v56 = vpop.permute.xlu0 %3165 }
 0x171   : > { %v8008_v25 = vcombine.low %v3949_v28, %v3952_v17  ;;  %v1554_v61 = vrot.slane %v1552_v1, 5  ;;  %v3597_v26 = vsel %vm8841_vm14, %v3592_v45, %v3596_v54  ;;  %v1540_v31 = vrot.slane %v1539_v53, 4  ;;  %v416_v34 = vld [vmem:[%s8747_s14 + $0x7c] sm:$0xf]  ;;  %v2212_v35 = vld [vmem:[#allocation2 + $0xb4] sm:$0xf] }
 0x172   : > { %v7866_v24 = vrot.slane %v1714_v33, 9  ;;  %v7976_v36 = vcombine.low %v3587_v23, %v3597_v26  ;;  %v1550_v37 = vrot.slane %v1549_v40, 4  ;;  %v1869_v39 = vsel %vm8805_vm13, %v7865_v60, %v1868_v6  ;;  %v2213_v14 = vld [vmem:[#allocation2 + $0xb8] sm:$0xf]  ;;  %v2214_v43 = vld [vmem:[#allocation2 + $0xbc] sm:$0x1] }
 0x173   : > { %4041 = vrot.lane.b32.xlu0 %v8008_v25, %s10979_s29  ;;  %v1870_v13 = vrot.slane %v1868_v6, 4  ;;  %vm10991_vm5 = vcmask 228544   ;;  %v1875_v47 = vrot.slane %v1715_v15, 5  ;;  %v1878_v45 = vrot.slane %v1716_v38, 5  ;;  %v533_v63 = vld [vmem:[#allocation2 + $0xc8] sm:$0x1] }
 0x174   : > { %3206 = vst.msk [vmem:[#allocation3 + $0x40] sm:$0xff] %vm10991_vm5, %v3166_v56  ;;  %v478_v49 = vsel %vm8723_vm3, 0, %v477_v42  ;;  %3720 = vrot.lane.b32.xlu1 %v7976_v36, %s8598_s12  ;;  %v1545_v50 = vsel %vm8841_vm14, %v1540_v31, %v9800_v27  ;;  %v797_v44 = vshrl.u32 %v415_v18, 16  ;;  %v800_v55 = vshll.u32 %v415_v18, 16  ;;  %v2757_v28 = vld [vmem:[#allocation2 + $0xb4] sm:$0xe] }
 0x175   : > { %v1872_v48 = vsel %vm8805_vm13, %v1870_v13, %v1871_v32  ;;  %479 = vst [vmem:[#allocation2 + $0xc0] sm:$0x1] %v478_v49  ;;  %v1555_v20 = vsel %vm8841_vm14, %v1550_v37, %v1554_v61  ;;  %v9830_v58 = vsel %vm8805_vm13, %v7866_v24, %v1875_v47  ;;  %v1877_v9 = vrot.slane %v1875_v47, 4  ;;  %v2758_v59 = vld [vmem:[#allocation2 + $0xb8] sm:$0xf]  ;;  %s11017_s14 = smov 64  }
 0x176   : > { %v7881_v57 = vcombine.low %v1869_v39, %v1872_v48  ;;  %v799_v60 = vrot.slane %v797_v44, 7  ;;  %v805_v4 = vshrl.u32 %v416_v34, 16  ;;  %v808_v19 = vshll.u32 %v416_v34, 16  ;;  %v8453_v23 = vld [vmem:[#allocation2 + $0xb4] sm:$0xff]   ;;  %v2759_v11 = vld [vmem:[#allocation2 + $0xbc] sm:$0x1] }
 0x177   : > { %v2555_v5 = vshrl.u32 %v2212_v35, 16  ;;  %v1879_v7 = vsel %vm8805_vm13, %v1877_v9, %v1878_v45  ;;  %v2558_v30 = vshll.u32 %v2212_v35, 16  ;;  %v2564_v52 = vshll.u32 %v2213_v14, 16  ;;  %v2669_v22 = vpop.permute.xlu1 %2668  ;;  %v480_v51 = vld [vmem:[#allocation2 + $0xcc] sm:$0x1] }
 0x178   : > { %1956 = vrot.lane.b32.xlu0 %v7881_v57, %s10950_s16  ;;  %v2568_v8 = vshrl.u32 %v2213_v14, 16  ;;  %1632 = vrot.lane.b32.xlu1 %v7849_v46, %s10981_s24  ;;  %v7850_v29 = vcombine.low %v1545_v50, %v1555_v20  ;;  %v802_v62 = vor.u32 %v800_v55, %v799_v60  ;;  %v803_v12 = vrot.slane %v799_v60, 4  ;;  %v536_v17 = vld [vmem:[#allocation2 + $0xd4] sm:$0x1]  ;;  %2708 = vst.msk [vmem:[#allocation3 + $0x48] sm:$0xff] %vm2698_vm11, %v2669_v22 }
 0x179   : > { %v807_v27 = vrot.slane %v805_v4, 7  ;;  %v2557_v1 = vrot.slane %v2555_v5, 4  ;;  %v2560_v33 = vrot.slane %v2558_v30, 5  ;;  %v2566_v42 = vrot.slane %v2564_v52, 5  ;;  %v3260_v25 = vld [vmem:[#allocation2 + $0xd0] sm:$0xf] }
 0x17a   : > { %v2570_v54 = vrot.slane %v2568_v8, 4  ;;  %v7882_v53 = vcombine.low %v9830_v58, %v1879_v7  ;;  %v2574_v38 = vshll.u32 %v2214_v43, 16  ;;  %v534_v18 = vsel %vm8754_vm6, 0, %v533_v63 }
 0x17b   : > { %v810_v15 = vor.u32 %v808_v19, %v807_v27  ;;  %v2561_v61 = vor.u32 %v2560_v33, %v2557_v1  ;;  %535 = vst [vmem:[#allocation2 + $0xc8] sm:$0x1] %v534_v18  ;;  %v7929_v26 = vrot.slane %v2757_v28, 9  ;;  %v2911_v31 = vrot.slane %v2758_v59, 5  ;;  %v2990_v56 = vpop.permute.xlu1 %2989  ;;  %v3711_v36 = vpop.permute.xlu0 %3710 }
 0x17c   : > { %2133 = vrot.lane.b32.xlu0 %v8453_v23, %s8591_s15  ;;  %v969_v40 = vld [vmem:[#allocation2 + $0xc0] sm:$0xf]  ;;  %v2571_v6 = vor.u32 %v2570_v54, %v2566_v42  ;;  %1634 = vrot.lane.b32.xlu1 %v7850_v29, %s10981_s24  ;;  %v2576_v34 = vrot.slane %v2574_v38, 5  ;;  %v2914_v35 = vrot.slane %v2759_v11, 5  ;;  %v812_v37 = vrot.slane %v807_v27, 4  ;;  %3029 = vst.msk [vmem:[#allocation3 + $0x48] sm:$0xff] %vm10949_vm12, %v2990_v56 }
 0x17d   : > { %v811_v32 = vsel %vm8761_vm7, %v803_v12, %v810_v15  ;;  %v970_v24 = vsel %vm8769_vm10, %v802_v62, %v969_v40  ;;  %v2562_v39 = vrot.slane %v2561_v61, 4  ;;  %v2913_v14 = vrot.slane %v2911_v31, 4  ;;  %3751 = vst.msk [vmem:[#allocation3 + $0x40] sm:$0xff] %vm3742_vm4, %v3711_v36  ;;  %s10953_s24 = smov 56  }
 0x17e   : > { %971 = vst [vmem:[#allocation2 + $0xc0] sm:$0xf] %v970_v24  ;;  %972 = vst.msk [vmem:[#allocation2 + $0xc4] sm:$0xf] %vm417_vm0, %v811_v32  ;;  %v2572_v13 = vrot.slane %v2571_v6, 4  ;;  %v2912_v16 = vsel %vm8805_vm13, %v7929_v26, %v2911_v31  ;;  %v481_v21 = vsel %vm8723_vm3, 0, %v480_v51 }
 0x17f   : > { %v537_v46 = vsel %vm8754_vm6, 0, %v536_v17  ;;  %v3632_v47 = vshll.u32 %v3260_v25, 16  ;;  %v2567_v45 = vsel %vm8841_vm14, %v2562_v39, %v2566_v42  ;;  %v2915_v50 = vsel %vm8805_vm13, %v2913_v14, %v2914_v35  ;;  %482 = vst [vmem:[#allocation2 + $0xcc] sm:$0x1] %v481_v21  ;;  %v3168_v55 = vpop.permute.xlu1 %3167  ;;  %v4032_v20 = vpop.permute.xlu0 %4031  ;;  %vm10992_vm0 = vmmov %vm10991_vm5 }
 0x180   : > { %v2577_v49 = vsel %vm8841_vm14, %v2572_v13, %v2576_v34  ;;  %538 = vst [vmem:[#allocation2 + $0xd4] sm:$0x1] %v537_v46  ;;  %v3636_v48 = vshrl.u32 %v3260_v25, 16  ;;  %1958 = vrot.lane.b32.xlu1 %v7882_v53, %s10950_s16  ;;  %3207 = vst.msk [vmem:[#allocation3 + $0x48] sm:$0xff] %vm10992_vm0, %v3168_v55  ;;  %v7945_v58 = vcombine.low %v2912_v16, %v2915_v50  ;;  %v3962_v4 = vrot.slane %v9862_v10, 5 }
 0x181   : > { %v7913_v44 = vcombine.low %v2567_v45, %v2577_v49  ;;  %4072 = vst.msk [vmem:[#allocation3 + $0x40] sm:$0xff] %vm4063_vm2, %v4032_v20  ;;  %v9869_v43 = vrot.slane %v3632_v47, 5  ;;  %vm10948_vm7 = vcmask 60416   ;;  %vm4658_vm10 = vcmask 57344  }
 0x182   : > { %v973_v57 = vld [vmem:[#allocation2 + $0xc8] sm:$0x1]  ;;  %v9871_v63 = vrot.slane %v3636_v48, 4  ;;  %4657 = vst.msk [vmem:[#allocation6] sm:$0xf] %vm10948_vm7, %v8590_v3 }
 0x183   : > { %2678 = vrot.lane.b32.xlu0 %v7913_v44, %s10955_s30  ;;  %v974_v9 = vsel %vm8723_vm3, %v812_v37, %v973_v57  ;;  %v3713_v19 = vpop.permute.xlu1 %3712  ;;  %vm10993_vm3 = vcmask 130144   ;;  %4659 = vst.msk [vmem:[#allocation6 + $0x4] sm:$0x1] %vm4658_vm10, %v8590_v3  ;;  %vm10995_vm9 = vsmask.f32 256 }
 0x184   : > { %975 = vst [vmem:[#allocation2 + $0xc8] sm:$0x1] %v974_v9  ;;  %3752 = vst.msk [vmem:[#allocation3 + $0x48] sm:$0xff] %vm3742_vm4, %v3713_v19  ;;  %v3639_v6 = vor.u32 %v9871_v63, %v9869_v43  ;;  %vm10998_vm0 = vsmask.f32 7938 }
 0x185   : > { %v8454_v60 = vld [vmem:[#allocation2 + $0xc0] sm:$0xff]   ;;  %v4034_v8 = vpop.permute.xlu0 %4033  ;;  %vm10994_vm6 = vmmov %vm10993_vm3  ;;  %4661 = vst.msk [vmem:[#allocation6 + $0x48] sm:$0xf] %vm10948_vm7, %v8590_v3 }
 0x186   : > { %v2215_v5 = vld [vmem:[#allocation2 + $0xc0] sm:$0xf]  ;;  %v2216_v28 = vld [vmem:[#allocation2 + $0xc4] sm:$0xf]  ;;  %2135 = vrot.lane.b32.xlu1 %v8454_v60, %s8591_s15  ;;  %4073 = vst.msk [vmem:[#allocation3 + $0x48] sm:$0xff] %vm4063_vm2, %v4034_v8  ;;  %vm9930_vm5 = vmand %vm4658_vm10, %vm10995_vm9  ;;  %vm11003_vm9 = vcmask 130144  }
 0x187   : > { %v2760_v59 = vld [vmem:[#allocation2 + $0xc0] sm:$0xe]  ;;  %v2579_v7 = vshrl.u32 %v2215_v5, 16  ;;  %v2582_v23 = vshll.u32 %v2215_v5, 16  ;;  %v2588_v0 = vshll.u32 %v2216_v28, 16  ;;  %v2592_v30 = vshrl.u32 %v2216_v28, 16  ;;  %2999 = vrot.lane.b32.xlu0 %v7945_v58, %s8595_s25  ;;  %v1625_v33 = vpop.permute.xlu1 %1624 }
 0x188   : > { %v2761_v52 = vld [vmem:[#allocation2 + $0xc4] sm:$0xf]  ;;  %v7930_v11 = vrot.slane %v2760_v59, 9  ;;  %v3256_v54 = vld [vmem:[#allocation2 + $0xc0] sm:$0xf]  ;;  %1663 = vst.msk [vmem:[#allocation3 + $0x50] sm:$0xff] %vm1652_vm1, %v1625_v33 }
 0x189   : > { %v2918_v29 = vrot.slane %v2761_v52, 5  ;;  %v2581_v62 = vrot.slane %v2579_v7, 4  ;;  %v2584_v12 = vrot.slane %v2582_v23, 5  ;;  %v2590_v27 = vrot.slane %v2588_v0, 5  ;;  %v8457_v1 = vld [vmem:[#allocation2 + $0xc0] sm:$0xff]   ;;  %v4088_v51 = vld [vmem:[#allocation3 + $0x40] sm:$0xff] }
 0x18a   : > { %v2594_v22 = vrot.slane %v2592_v30, 4  ;;  %v3257_v15 = vld [vmem:[#allocation2 + $0xc4] sm:$0xf]  ;;  %v3599_v38 = vshrl.u32 %v3256_v54, 16  ;;  %v3602_v18 = vshll.u32 %v3256_v54, 16  ;;  %8298 = vmatprep.mubr.msk.bf16.mxu0 %vm4121_vm15, %v4088_v51  ;;  %s10959_s15 = smov 96  }
 0x18b   : > { %v2920_v42 = vrot.slane %v2918_v29, 4  ;;  %v2585_v17 = vor.u32 %v2584_v12, %v2581_v62  ;;  %3177 = vrot.lane.b32.xlu0 %v8457_v1, %s8593_s22  ;;  %v2217_v25 = vld [vmem:[#allocation2 + $0xc8] sm:$0x1]  ;;  %v3608_v56 = vshll.u32 %v3257_v15, 16  ;;  %v3612_v36 = vshrl.u32 %v3257_v15, 16 }
 0x18c   : > { %v2595_v53 = vor.u32 %v2594_v22, %v2590_v27  ;;  %v2762_v40 = vld [vmem:[#allocation2 + $0xc8] sm:$0x1]  ;;  %v2598_v32 = vshll.u32 %v2217_v25, 16  ;;  %v3601_v34 = vrot.slane %v3599_v38, 4  ;;  %v3604_v35 = vrot.slane %v3602_v18, 5  ;;  %v1949_v39 = vpop.permute.xlu0 %1948  ;;  %v8458_v18 = vld [vmem:[#allocation2 + $0xcc] sm:$0xff]  }
 0x18d   : > { %v3258_v61 = vld [vmem:[#allocation2 + $0xc8] sm:$0x1]  ;;  %v2586_v26 = vrot.slane %v2585_v17, 4  ;;  %v2921_v24 = vrot.slane %v2762_v40, 5  ;;  %v3259_v37 = vld [vmem:[#allocation2 + $0xcc] sm:$0xf]  ;;  %v2919_v16 = vsel %vm8805_vm13, %v7930_v11, %v2918_v29  ;;  %v1627_v45 = vpop.permute.xlu1 %1626 }
 0x18e   : > { %v2596_v31 = vrot.slane %v2595_v53, 4  ;;  %v2600_v14 = vrot.slane %v2598_v32, 5  ;;  %v3618_v21 = vshll.u32 %v3258_v61, 16  ;;  %v3261_v46 = vld [vmem:[#allocation2 + $0xd4] sm:$0x1]  ;;  %1987 = vst.msk [vmem:[#allocation3 + $0x50] sm:$0xff] %vm1976_vm8, %v1949_v39  ;;  %v3605_v50 = vor.u32 %v3604_v35, %v3601_v34 }
 0x18f   : > { %v2591_v13 = vsel %vm8841_vm14, %v2586_v26, %v2590_v27  ;;  %v3801_v47 = vld [vmem:[#allocation2 + $0xc0] sm:$0xe]  ;;  %v2922_v49 = vsel %vm8805_vm13, %v2920_v42, %v2921_v24  ;;  %v3610_v48 = vrot.slane %v3608_v56, 5  ;;  %v3614_v44 = vrot.slane %v3612_v36, 4  ;;  %v3802_v55 = vld [vmem:[#allocation2 + $0xc4] sm:$0xf] }
 0x190   : > { %1664 = vst.msk [vmem:[#allocation3 + $0x58] sm:$0xff] %vm1652_vm1, %v1627_v45  ;;  %v4089_v20 = vld [vmem:[#allocation3 + $0x48] sm:$0xff]  ;;  %v2601_v57 = vsel %vm8841_vm14, %v2596_v31, %v2600_v14  ;;  %v3620_v58 = vrot.slane %v3618_v21, 5  ;;  %v3623_v9 = vshrl.u32 %v3259_v37, 16  ;;  %v3626_v63 = vshll.u32 %v3259_v37, 16  ;;  %v2126_v7 = vpop.permute.xlu0 %2125 }
 0x191   : > { %v3803_v60 = vld [vmem:[#allocation2 + $0xc8] sm:$0x1]  ;;  %8299 = vmatmul.mubr.msk.bf16.gmra.mrb[16].mxu0 %vm4121_vm15, %v4089_v20  ;;  %v7914_v19 = vcombine.low %v2591_v13, %v2601_v57  ;;  %v3606_v5 = vrot.slane %v3605_v50, 4  ;;  %v3615_v28 = vor.u32 %v3614_v44, %v3610_v48  ;;  %v3642_v59 = vshll.u32 %v3261_v46, 16  ;;  %v1951_v8 = vpop.permute.xlu1 %1950  ;;  %2164 = vst.msk [vmem:[#allocation3 + $0x50] sm:$0xff] %vm10993_vm3, %v2126_v7  ;;  %vm9940_vm3 = vmand %vm4658_vm10, %vm10998_vm0 }
 0x192   : > { %v3625_v23 = vrot.slane %v3623_v9, 4  ;;  %v3628_v0 = vrot.slane %v3626_v63, 5  ;;  %v7993_v30 = vrot.slane %v3801_v47, 9  ;;  %v3955_v52 = vrot.slane %v3802_v55, 5  ;;  %1988 = vst.msk [vmem:[#allocation3 + $0x58] sm:$0xff] %vm1976_vm8, %v1951_v8  ;;  %vm11004_vm0 = vmmov %vm11003_vm9 }
 0x193   : > { %2680 = vrot.lane.b32.xlu1 %v7914_v19, %s10955_s30  ;;  %v7946_v11 = vcombine.low %v2919_v16, %v2922_v49  ;;  %v3611_v29 = vsel %vm8841_vm14, %v3606_v5, %v3610_v48  ;;  %v3616_v62 = vrot.slane %v3615_v28, 4  ;;  %v3958_v12 = vrot.slane %v3803_v60, 5  ;;  %v3804_v42 = vld [vmem:[#allocation2 + $0xcc] sm:$0xe]  ;;  %v3806_v17 = vld [vmem:[#allocation2 + $0xd4] sm:$0x1] }
 0x194   : > { %v3629_v27 = vor.u32 %v3628_v0, %v3625_v23  ;;  %v3640_v22 = vrot.slane %v3639_v6, 4  ;;  %v3644_v1 = vrot.slane %v3642_v59, 5  ;;  %v3957_v33 = vrot.slane %v3955_v52, 4  ;;  %v4668_v36 = vld [vmem:[#allocation6 + $0x8] sm:$0x1] }
 0x195   : > { %v3621_v54 = vsel %vm8841_vm14, %v3616_v62, %v3620_v58  ;;  %v3956_v51 = vsel %vm8805_vm13, %v7993_v30, %v3955_v52  ;;  %v7994_v25 = vrot.slane %v3804_v42, 9  ;;  %v3964_v40 = vrot.slane %v3962_v4, 4  ;;  %v4699_v37 = vld [vmem:[#allocation6 + $0xc] sm:$0x1]  ;;  %4662 = vst.msk [vmem:[#allocation6 + $0x4c] sm:$0x1] %vm4658_vm10, %v8590_v3 }
 0x196   : > { %v7977_v53 = vcombine.low %v3611_v29, %v3621_v54  ;;  %v3630_v15 = vrot.slane %v3629_v27, 4  ;;  %v3959_v38 = vsel %vm8805_vm13, %v3957_v33, %v3958_v12  ;;  %v3645_v6 = vsel %vm8841_vm14, %v3640_v22, %v3644_v1  ;;  %v4702_v13 = vld [vmem:[#allocation6 + $0x14] sm:$0x1]  ;;  %v4696_v49 = vld [vmem:[#allocation6 + $0x4] sm:$0x1] }
 0x197   : > { %3001 = vrot.lane.b32.xlu1 %v7946_v11, %s8595_s25  ;;  %v8009_v26 = vcombine.low %v3956_v51, %v3959_v38  ;;  %v3965_v31 = vrot.slane %v3806_v17, 5  ;;  %v3963_v35 = vsel %vm8805_vm13, %v7994_v25, %v3962_v4  ;;  %v4671_v4 = vld [vmem:[#allocation6 + $0x10] sm:$0x1]  ;;  %v4669_v14 = vsel %vm9930_vm5, 0, %v4668_v36  ;;  %v4665_v50 = vld [vmem:[#allocation6] sm:$0x1] }
 0x198   : > { %3722 = vrot.lane.b32.xlu0 %v7977_v53, %s8598_s12  ;;  %v3635_v61 = vsel %vm8841_vm14, %v3630_v15, %v9869_v43  ;;  %v2671_v32 = vpop.permute.xlu0 %2670  ;;  %v4672_v21 = vsel %vm9930_vm5, 0, %v4671_v4  ;;  %4670 = vst [vmem:[#allocation6 + $0x8] sm:$0x1] %v4669_v14  ;;  %v4700_v47 = vsel %vm9940_vm3, 0, %v4699_v37  ;;  %v4703_v45 = vsel %vm9940_vm3, 0, %v4702_v13  ;;  %s8599_s25 = smov 40  }
 0x199   : > { %2709 = vst.msk [vmem:[#allocation3 + $0x50] sm:$0xff] %vm2698_vm11, %v2671_v32  ;;  %v7978_v24 = vcombine.low %v3635_v61, %v3645_v6  ;;  %v3966_v43 = vsel %vm8805_vm13, %v3964_v40, %v3965_v31  ;;  %4673 = vst [vmem:[#allocation6 + $0x10] sm:$0x1] %v4672_v21  ;;  %v4697_v48 = vsel %vm9940_vm3, 0, %v4696_v49  ;;  %v4666_v44 = vsel %vm9930_vm5, 0, %v4665_v50 }
 0x19a   : > { %v8010_v39 = vcombine.low %v3963_v35, %v3966_v43  ;;  %4701 = vst [vmem:[#allocation6 + $0xc] sm:$0x1] %v4700_v47  ;;  %4704 = vst [vmem:[#allocation6 + $0x14] sm:$0x1] %v4703_v45  ;;  %v4102_v8 = vlaneseq  ;;  %v4674_v29 = vld [vmem:[#allocation6 + $0x18] sm:$0x1] }
 0x19b   : > { %3179 = vrot.lane.b32.xlu1 %v8458_v18, %s8593_s22  ;;  %v2128_v34 = vpop.permute.xlu1 %2127  ;;  %4698 = vst [vmem:[#allocation6 + $0x4] sm:$0x1] %v4697_v48  ;;  %4667 = vst [vmem:[#allocation6] sm:$0x1] %v4666_v44  ;;  %v4705_v62 = vld [vmem:[#allocation6 + $0x1c] sm:$0x1] }
 0x19c   : > { %4043 = vrot.lane.b32.xlu0 %v8009_v26, %s10979_s29  ;;  %2165 = vst.msk [vmem:[#allocation3 + $0x58] sm:$0xff] %vm10994_vm6, %v2128_v34  ;;  %v2992_v56 = vpop.permute.xlu0 %2991  ;;  %vm11001_vm6 = vcmask 228544   ;;  %v9973_v12 = vshrl.u32 %v4102_v8, 7  ;;  %v4675_v27 = vsel %vm9930_vm5, 0, %v4674_v29  ;;  %v4706_v22 = vsel %vm9940_vm3, 0, %v4705_v62 }
 0x19d   : > { %3030 = vst.msk [vmem:[#allocation3 + $0x50] sm:$0xff] %vm10949_vm12, %v2992_v56  ;;  %vm11002_vm10 = vmmov %vm11001_vm6  ;;  %v4101_v42 = vld [vmem:[%s10928_s2] sm:$0x7] }
 0x19e   : > { %4676 = vst [vmem:[#allocation6 + $0x18] sm:$0x1] %v4675_v27  ;;  %4707 = vst [vmem:[#allocation6 + $0x1c] sm:$0x1] %v4706_v22  ;;  %v9981_v33 = vsub.s32 0, %v9973_v12  ;;  %v9991_v53 = vsub.s32 1, %v9973_v12 }
 0x19f   : > { %3724 = vrot.lane.b32.xlu1 %v7978_v24, %s8598_s12  ;;  %v9995_v38 = vsub.s32 2, %v9973_v12  ;;  %s8600_s12 = smov 48  }
 0x1a0   : > { %v3170_v46 = vpop.permute.xlu0 %3169  ;;  %v9987_v51 = vrot.slane %v4101_v42, %v9981_v33  ;;  %v10000_v6 = vrot.slane %v4101_v42, %v9991_v53 }
 0x1a1   : > { %3208 = vst.msk [vmem:[#allocation3 + $0x50] sm:$0xff] %vm11001_vm6, %v3170_v46  ;;  %v10006_v35 = vrot.slane %v4101_v42, %v9995_v38 }
 0x1a3   : > { %4045 = vrot.lane.b32.xlu1 %v8010_v39, %s10979_s29 }
 0x1a8   : > { %v2673_v55 = vpop.permute.xlu1 %2672 }
 0x1a9   : > { %2710 = vst.msk [vmem:[#allocation3 + $0x58] sm:$0xff] %vm2698_vm11, %v2673_v55 }
 0x1ab   : > { %v3715_v57 = vpop.permute.xlu0 %3714 }
 0x1ac   : > { %v2994_v20 = vpop.permute.xlu1 %2993  ;;  %3753 = vst.msk [vmem:[#allocation3 + $0x50] sm:$0xff] %vm3742_vm4, %v3715_v57 }
 0x1ad   : > { %3031 = vst.msk [vmem:[#allocation3 + $0x58] sm:$0xff] %vm10949_vm12, %v2994_v20 }
 0x1b0   : > { %v3172_v58 = vpop.permute.xlu1 %3171  ;;  %v4036_v9 = vpop.permute.xlu0 %4035 }
 0x1b1   : > { %3209 = vst.msk [vmem:[#allocation3 + $0x58] sm:$0xff] %vm11002_vm10, %v3172_v58 }
 0x1b2   : > { %4074 = vst.msk [vmem:[#allocation3 + $0x50] sm:$0xff] %vm4063_vm2, %v4036_v9 }
 0x1b4   : > { %v3717_v63 = vpop.permute.xlu1 %3716 }
 0x1b5   : > { %3754 = vst.msk [vmem:[#allocation3 + $0x58] sm:$0xff] %vm3742_vm4, %v3717_v63 }
 0x1b7   : > { %v4038_v60 = vpop.permute.xlu0 %4037 }
 0x1b8   : > { %v1629_v19 = vpop.permute.xlu1 %1628  ;;  %4075 = vst.msk [vmem:[#allocation3 + $0x58] sm:$0xff] %vm4063_vm2, %v4038_v60 }
 0x1b9   : > { %v4090_v5 = vld [vmem:[#allocation3 + $0x50] sm:$0xff]  ;;  %1665 = vst.msk [vmem:[#allocation3 + $0x60] sm:$0xff] %vm1652_vm1, %v1629_v19 }
 0x1ba   : > { %8302 = vmatprep.mubr.msk.bf16.mxu0 %vm4121_vm15, %v4090_v5 }
 0x1bd   : > { %v1631_v28 = vpop.permute.xlu1 %1630  ;;  %v1953_v59 = vpop.permute.xlu0 %1952 }
 0x1be   : > { %1666 = vst.msk [vmem:[#allocation3 + $0x68] sm:$0xff] %vm1652_vm1, %v1631_v28 }
 0x1bf   : > { %1989 = vst.msk [vmem:[#allocation3 + $0x60] sm:$0xff] %vm1976_vm8, %v1953_v59  ;;  %v4091_v7 = vld [vmem:[#allocation3 + $0x58] sm:$0xff] }
 0x1c0   : > { %8303 = vmatmul.mubr.msk.bf16.gmra.mrb[20].mxu0 %vm4121_vm15, %v4091_v7 }
 0x1c1   : > { %v1955_v23 = vpop.permute.xlu1 %1954  ;;  %v2130_v0 = vpop.permute.xlu0 %2129 }
 0x1c2   : > { %1990 = vst.msk [vmem:[#allocation3 + $0x68] sm:$0xff] %vm1976_vm8, %v1955_v23 }
 0x1c3   : > { %2166 = vst.msk [vmem:[#allocation3 + $0x60] sm:$0xff] %vm11003_vm9, %v2130_v0 }
 0x1c8   : > { %v2675_v30 = vpop.permute.xlu0 %2674 }
 0x1c9   : > { %v2132_v52 = vpop.permute.xlu1 %2131  ;;  %2711 = vst.msk [vmem:[#allocation3 + $0x60] sm:$0xff] %vm2698_vm11, %v2675_v30 }
 0x1ca   : > { %2167 = vst.msk [vmem:[#allocation3 + $0x68] sm:$0xff] %vm11004_vm0, %v2132_v52 }
 0x1cc   : > { %v2996_v11 = vpop.permute.xlu0 %2995 }
 0x1cd   : > { %3032 = vst.msk [vmem:[#allocation3 + $0x60] sm:$0xff] %vm10949_vm12, %v2996_v11 }
 0x1d0   : > { %v3174_v1 = vpop.permute.xlu0 %3173 }
 0x1d1   : > { %3210 = vst.msk [vmem:[#allocation3 + $0x60] sm:$0xff] %vm11001_vm6, %v3174_v1 }
 0x1d6   : > { %v8284_v15 = vpop.f32.mrb[0].mxu0 }
 0x1d7   : > { %v2677_v54 = vpop.permute.xlu1 %2676  ;;  %v4217_v25 = vadd.f32 %v8284_v15, %v9987_v51  ;;  %v4208_v40 = vpop.f32.mrb[1].mxu0 }
 0x1d8   : > { %2712 = vst.msk [vmem:[#allocation3 + $0x68] sm:$0xff] %vm2698_vm11, %v2677_v54  ;;  %v4209_v26 = vadd.f32 %v4208_v40, %v9987_v51  ;;  %v8285_v31 = vpop.f32.mrb[2].mxu0 }
 0x1d9   : > { %v3719_v17 = vpop.permute.xlu0 %3718  ;;  %vm4337_vm10 = vcmp.ge.f32.partialorder %v4217_v25, 0.0  ;;  %v4369_v32 = vmul.f32 0.01, %v4217_v25  ;;  %v4220_v24 = vadd.f32 %v8285_v31, %v9987_v51  ;;  %v4211_v34 = vpop.f32.mrb[3].mxu0 }
 0x1da   : > { %3755 = vst.msk [vmem:[#allocation3 + $0x60] sm:$0xff] %vm3742_vm4, %v3719_v17  ;;  %vm4335_vm9 = vcmp.ge.f32.partialorder %v4209_v26, 0.0  ;;  %v4367_v43 = vmul.f32 0.01, %v4209_v26  ;;  %v4212_v56 = vadd.f32 %v4211_v34, %v9987_v51 }
 0x1db   : > { %v2998_v18 = vpop.permute.xlu1 %2997  ;;  %v4401_v37 = vsel %vm4337_vm10, %v4217_v25, %v4369_v32  ;;  %vm4338_vm0 = vcmp.ge.f32.partialorder %v4220_v24, 0.0  ;;  %v4370_v39 = vmul.f32 0.01, %v4220_v24 }
 0x1dc   : > { %3033 = vst.msk [vmem:[#allocation3 + $0x68] sm:$0xff] %vm10949_vm12, %v2998_v18  ;;  %v4437_v4 = vmul.f32 %v10000_v6, %v4401_v37  ;;  %v4399_v13 = vsel %vm4335_vm9, %v4209_v26, %v4367_v43  ;;  %vm4336_vm7 = vcmp.ge.f32.partialorder %v4212_v56, 0.0  ;;  %v4368_v14 = vmul.f32 0.01, %v4212_v56 }
 0x1dd   : > { %v4040_v61 = vpop.permute.xlu0 %4039  ;;  %vm4503_vm12 = vcmask 64512   ;;  %v4435_v21 = vmul.f32 %v10000_v6, %v4399_v13  ;;  %v4402_v46 = vsel %vm4338_vm0, %v4220_v24, %v4370_v39 }
 0x1de   : > { %4076 = vst.msk [vmem:[#allocation3 + $0x60] sm:$0xff] %vm4063_vm2, %v4040_v61  ;;  %v4473_v47 = vadd.f32 %v10006_v35, %v4437_v4  ;;  %v4438_v45 = vmul.f32 %v10000_v6, %v4402_v46  ;;  %v4400_v49 = vsel %vm4336_vm7, %v4212_v56, %v4368_v14  ;;  %v8288_v50 = vpop.f32.mrb[4].mxu0 }
 0x1df   : > { %v3176_v36 = vpop.permute.xlu1 %3175  ;;  %v4471_v48 = vadd.f32 %v10006_v35, %v4435_v21  ;;  %v4436_v44 = vmul.f32 %v10000_v6, %v4400_v49  ;;  %v4233_v55 = vadd.f32 %v8288_v50, %v9987_v51  ;;  %v4224_v20 = vpop.f32.mrb[5].mxu0 }
 0x1e0   : > { %3211 = vst.msk [vmem:[#allocation3 + $0x68] sm:$0xff] %vm11001_vm6, %v3176_v36  ;;  %v4474_v9 = vadd.f32 %v10006_v35, %v4438_v45  ;;  %v4225_v63 = vadd.f32 %v4224_v20, %v9987_v51  ;;  %v8289_v60 = vpop.f32.mrb[6].mxu0  ;;  %vm11005_vm6 = vcmask 130144   ;;  %v4708_v20 = vld [vmem:[#allocation6 + $0x24] sm:$0x1] }
 0x1e1   : > { %4506 = vst.msk [vmem:[#allocation4 + $0x10] sm:$0xff] %vm4503_vm12, %v4473_v47  ;;  %4504 = vst.msk [vmem:[#allocation4] sm:$0xff] %vm4503_vm12, %v4471_v48  ;;  %v4472_v19 = vadd.f32 %v10006_v35, %v4436_v44  ;;  %vm4341_vm7 = vcmp.ge.f32.partialorder %v4233_v55, 0.0  ;;  %v4373_v5 = vmul.f32 0.01, %v4233_v55  ;;  %v4236_v28 = vadd.f32 %v8289_v60, %v9987_v51  ;;  %v4227_v59 = vpop.f32.mrb[7].mxu0 }
 0x1e2   : > { %4507 = vst.msk [vmem:[#allocation4 + $0x18] sm:$0xff] %vm4503_vm12, %v4474_v9  ;;  %vm4339_vm10 = vcmp.ge.f32.partialorder %v4225_v63, 0.0  ;;  %v4371_v23 = vmul.f32 0.01, %v4225_v63  ;;  %v4228_v0 = vadd.f32 %v4227_v59, %v9987_v51  ;;  %v4709_v9 = vsel %vm9940_vm3, 0, %v4708_v20 }
 0x1e3   : > { %4505 = vst.msk [vmem:[#allocation4 + $0x8] sm:$0xff] %vm4503_vm12, %v4472_v19  ;;  %v4405_v30 = vsel %vm4341_vm7, %v4233_v55, %v4373_v5  ;;  %vm4342_vm9 = vcmp.ge.f32.partialorder %v4236_v28, 0.0  ;;  %v4374_v52 = vmul.f32 0.01, %v4236_v28  ;;  %vm11007_vm7 = vcmask 195744  }
 0x1e4   : > { %v4441_v8 = vmul.f32 %v10000_v6, %v4405_v30  ;;  %v4403_v11 = vsel %vm4339_vm10, %v4225_v63, %v4371_v23  ;;  %vm4340_vm0 = vcmp.ge.f32.partialorder %v4228_v0, 0.0  ;;  %v4372_v29 = vmul.f32 0.01, %v4228_v0  ;;  %v4677_v55 = vld [vmem:[#allocation6 + $0x20] sm:$0x1] }
 0x1e5   : > { %v4042_v57 = vpop.permute.xlu0 %4041  ;;  %v4092_v58 = vld [vmem:[#allocation3 + $0x60] sm:$0xff]  ;;  %v4439_v27 = vmul.f32 %v10000_v6, %v4403_v11  ;;  %v4406_v22 = vsel %vm4342_vm9, %v4236_v28, %v4374_v52  ;;  %4710 = vst [vmem:[#allocation6 + $0x24] sm:$0x1] %v4709_v9  ;;  %vm11009_vm10 = vsmask.f32 7938  ;;  %vm11010_vm9 = vcmask 60416  }
 0x1e6   : > { %8306 = vmatprep.mubr.msk.bf16.mxu0 %vm4121_vm15, %v4092_v58  ;;  %v3721_v7 = vpop.permute.xlu1 %3720  ;;  %v4477_v42 = vadd.f32 %v10006_v35, %v4441_v8  ;;  %v4442_v54 = vmul.f32 %v10000_v6, %v4406_v22  ;;  %v4404_v17 = vsel %vm4340_vm0, %v4228_v0, %v4372_v29  ;;  %v4678_v58 = vsel %vm9930_vm5, 0, %v4677_v55  ;;  %v10059_v19 = vld [vmem:[#allocation6] sm:$0xe]  ;;  %v10061_v5 = vld [vmem:[#allocation6 + $0x4] sm:$0x1]  ;;  %vm10065_vm0 = vmand %vm11010_vm9, %vm11009_vm10 }
 0x1e7   : > { %3756 = vst.msk [vmem:[#allocation3 + $0x68] sm:$0xff] %vm3742_vm4, %v3721_v7  ;;  %v4475_v15 = vadd.f32 %v10006_v35, %v4439_v27  ;;  %v4440_v18 = vmul.f32 %v10000_v6, %v4404_v17  ;;  %4679 = vst [vmem:[#allocation6 + $0x20] sm:$0x1] %v4678_v58  ;;  %v4925_v0 = vld [vmem:[#allocation6] sm:$0xf]  ;;  %v8046_v22 = vrot.slane %v10059_v19, 9 }
 0x1e8   : > { %4077 = vst.msk [vmem:[#allocation3 + $0x68] sm:$0xff] %vm4063_vm2, %v4042_v57  ;;  %v4478_v25 = vadd.f32 %v10006_v35, %v4442_v54  ;;  %v4841_v30 = vld [vmem:[#allocation6 + $0x8] sm:$0xf]  ;;  %v4844_v52 = vld [vmem:[#allocation6 + $0xc] sm:$0x1]  ;;  %v4942_v17 = vshrl.u32 %v4925_v0, 16 }
 0x1e9   : > { %4510 = vst.msk [vmem:[#allocation4 + $0x30] sm:$0xff] %vm4503_vm12, %v4477_v42  ;;  %v4538_v61 = vld [vmem:[#allocation4 + $0x10] ss:$2 sm:$0xff]  ;;  %v4570_v26 = vld [vmem:[#allocation4 + $0x11] ss:$2 sm:$0xff]  ;;  %4508 = vst.msk [vmem:[#allocation4 + $0x20] sm:$0xff] %vm4503_vm12, %v4475_v15  ;;  %v4476_v31 = vadd.f32 %v10006_v35, %v4440_v18 }
 0x1ea   : > { %v1957_v62 = vpop.permute.xlu0 %1956  ;;  %v1633_v1 = vpop.permute.xlu1 %1632  ;;  %v4600_v24 = vmax.f32 %v4538_v61, %v4570_v26  ;;  %v4536_v34 = vld [vmem:[#allocation4] ss:$2 sm:$0xff]  ;;  %v4568_v43 = vld [vmem:[#allocation4 + $0x1] ss:$2 sm:$0xff]  ;;  %4511 = vst.msk [vmem:[#allocation4 + $0x38] sm:$0xff] %vm4503_vm12, %v4478_v25  ;;  %vm11014_vm10 = vcmask 228544  }
 0x1eb   : > { %1667 = vst.msk [vmem:[#allocation3 + $0x70] sm:$0xff] %vm1652_vm1, %v1633_v1  ;;  %v4599_v36 = vmax.f32 %v4536_v34, %v4568_v43  ;;  %v5116_v1 = vrot.slane %v10061_v5, 5  ;;  %v4847_v20 = vld [vmem:[#allocation6 + $0x10] sm:$0xf]  ;;  %v4926_v5 = vld [vmem:[#allocation6 + $0x4] sm:$0x1] }
 0x1ec   : > { %1991 = vst.msk [vmem:[#allocation3 + $0x70] sm:$0xff] %vm1976_vm8, %v1957_v62 }
 0x1ed   : > { %4509 = vst.msk [vmem:[#allocation4 + $0x28] sm:$0xff] %vm4503_vm12, %v4476_v31  ;;  %4616 = vst.msk [vmem:[#allocation5 + $0x8] sm:$0xff] %vm4503_vm12, %v4600_v24  ;;  %v4945_v24 = vshll.u32 %v4925_v0, 16  ;;  %v5117_v0 = vsel %vm8805_vm13, %v8046_v22, %v5116_v1 }
 0x1ee   : > { %v2134_v40 = vpop.permute.xlu0 %2133  ;;  %v1635_v32 = vpop.permute.xlu1 %1634  ;;  %4615 = vst.msk [vmem:[#allocation5] sm:$0xff] %vm4503_vm12, %v4599_v36 }
 0x1ef   : > { %2168 = vst.msk [vmem:[#allocation3 + $0x70] sm:$0xff] %vm11005_vm6, %v2134_v40  ;;  %v4093_v56 = vld [vmem:[#allocation3 + $0x68] sm:$0xff] }
 0x1f0   : > { %1668 = vst.msk [vmem:[#allocation3 + $0x78] sm:$0xff] %vm1652_vm1, %v1635_v32  ;;  %8307 = vmatmul.mubr.msk.bf16.gmra.mrb[24].mxu0 %vm4121_vm15, %v4093_v56  ;;  %vm11006_vm1 = vmmov %vm11005_vm6 }
 0x1f1   : > { %v4542_v4 = vld [vmem:[#allocation4 + $0x30] ss:$2 sm:$0xff]  ;;  %v4574_v13 = vld [vmem:[#allocation4 + $0x31] ss:$2 sm:$0xff] }
 0x1f2   : > { %v1959_v37 = vpop.permute.xlu1 %1958  ;;  %v4602_v14 = vmax.f32 %v4542_v4, %v4574_v13  ;;  %v4944_v4 = vrot.slane %v4942_v17, 4 }
 0x1f3   : > { %1992 = vst.msk [vmem:[#allocation3 + $0x78] sm:$0xff] %vm1976_vm8, %v1959_v37  ;;  %vm11008_vm8 = vcmask 228544  }
 0x1f4   : > { %v4540_v21 = vld [vmem:[#allocation4 + $0x20] ss:$2 sm:$0xff]  ;;  %v4572_v46 = vld [vmem:[#allocation4 + $0x21] ss:$2 sm:$0xff]  ;;  %4618 = vst.msk [vmem:[#allocation5 + $0x18] sm:$0xff] %vm4503_vm12, %v4602_v14 }
 0x1f5   : > { %v2679_v39 = vpop.permute.xlu0 %2678  ;;  %v4601_v47 = vmax.f32 %v4540_v21, %v4572_v46  ;;  %v4640_v45 = vld [vmem:[#allocation5 + $0x8] sm:$0xff]  ;;  %v4631_v48 = vld [vmem:[#allocation5] sm:$0xff] }
 0x1f6   : > { %2713 = vst.msk [vmem:[#allocation3 + $0x70] sm:$0xff] %vm2698_vm11, %v2679_v39  ;;  %v4648_v44 = vmax.f32 %v4631_v48, %v4640_v45 }
 0x1f7   : > { %4617 = vst.msk [vmem:[#allocation5 + $0x10] sm:$0xff] %vm4503_vm12, %v4601_v47 }
 0x1f8   : > { %v2136_v49 = vpop.permute.xlu1 %2135  ;;  %v8206_v57 = vpack.c.bf16 %v4648_v44, %v4648_v44 }
 0x1f9   : > { %v3000_v50 = vpop.permute.xlu0 %2999  ;;  %2169 = vst.msk [vmem:[#allocation3 + $0x78] sm:$0xff] %vm11006_vm1, %v2136_v49 }
 0x1fa   : > { %3034 = vst.msk [vmem:[#allocation3 + $0x70] sm:$0xff] %vm11007_vm7, %v3000_v50  ;;  %v4759_v60 = vshrl.u32 %v8206_v57, 16  ;;  %v4762_v59 = vshll.u32 %v8206_v57, 16  ;;  %v4947_v57 = vrot.slane %v4945_v24, 5 }
 0x1fb   : > { %v4641_v23 = vld [vmem:[#allocation5 + $0x18] sm:$0xff] }
 0x1fc   : > { %v4761_v28 = vrot.slane %v4759_v60, 7 }
 0x1fd   : > { %v3178_v63 = vpop.permute.xlu0 %3177 }
 0x1fe   : > { %3212 = vst.msk [vmem:[#allocation3 + $0x70] sm:$0xff] %vm11008_vm8, %v3178_v63  ;;  %v4632_v8 = vld [vmem:[#allocation5 + $0x10] sm:$0xff]  ;;  %v4764_v11 = vor.u32 %v4762_v59, %v4761_v28  ;;  %v4765_v29 = vrot.slane %v4761_v28, 4 }
 0x1ff   : > { %v4649_v27 = vmax.f32 %v4632_v8, %v4641_v23  ;;  %v4850_v28 = vld [vmem:[#allocation6 + $0x14] sm:$0x1] }
 0x200   : > { %v4842_v15 = vsel %vm10065_vm0, %v4764_v11, %v4841_v30  ;;  %v4845_v18 = vsel %vm9930_vm5, %v4765_v29, %v4844_v52 }
 0x201   : > { %v8207_v61 = vpack.c.bf16 %v4649_v27, %v4649_v27  ;;  %4843 = vst [vmem:[#allocation6 + $0x8] sm:$0xf] %v4842_v15  ;;  %4846 = vst [vmem:[#allocation6 + $0xc] sm:$0x1] %v4845_v18  ;;  %v4948_v18 = vor.u32 %v4947_v57, %v4944_v4 }
 0x202   : > { %v8292_v62 = vpop.f32.mrb[8].mxu0 }
 0x203   : > { %v4249_v42 = vadd.f32 %v8292_v62, %v9987_v51  ;;  %v4240_v54 = vpop.f32.mrb[9].mxu0  ;;  %v4767_v36 = vshrl.u32 %v8207_v61, 16  ;;  %v4770_v49 = vshll.u32 %v8207_v61, 16 }
 0x204   : > { %v4241_v25 = vadd.f32 %v4240_v54, %v9987_v51  ;;  %v8293_v40 = vpop.f32.mrb[10].mxu0 }
 0x205   : > { %vm4345_vm6 = vcmp.ge.f32.partialorder %v4249_v42, 0.0  ;;  %v4377_v26 = vmul.f32 0.01, %v4249_v42  ;;  %v4252_v31 = vadd.f32 %v8293_v40, %v9987_v51  ;;  %v4243_v32 = vpop.f32.mrb[11].mxu0  ;;  %v2681_v34 = vpop.permute.xlu1 %2680  ;;  %v4769_v45 = vrot.slane %v4767_v36, 7 }
 0x206   : > { %vm4343_vm1 = vcmp.ge.f32.partialorder %v4241_v25, 0.0  ;;  %v4375_v43 = vmul.f32 0.01, %v4241_v25  ;;  %v4244_v56 = vadd.f32 %v4243_v32, %v9987_v51  ;;  %2714 = vst.msk [vmem:[#allocation3 + $0x78] sm:$0xff] %vm2698_vm11, %v2681_v34  ;;  %vm11013_vm11 = vcmask 195744  }
 0x207   : > { %v4409_v37 = vsel %vm4345_vm6, %v4249_v42, %v4377_v26  ;;  %vm4346_vm7 = vcmp.ge.f32.partialorder %v4252_v31, 0.0  ;;  %v4378_v39 = vmul.f32 0.01, %v4252_v31  ;;  %v4772_v60 = vor.u32 %v4770_v49, %v4769_v45 }
 0x208   : > { %v4445_v13 = vmul.f32 %v10000_v6, %v4409_v37  ;;  %v4407_v14 = vsel %vm4343_vm1, %v4241_v25, %v4375_v43  ;;  %vm4344_vm8 = vcmp.ge.f32.partialorder %v4244_v56, 0.0  ;;  %v4376_v21 = vmul.f32 0.01, %v4244_v56  ;;  %v5084_v59 = vld [vmem:[#allocation6 + $0x8] sm:$0xe] }
 0x209   : > { %v4443_v46 = vmul.f32 %v10000_v6, %v4407_v14  ;;  %v4410_v47 = vsel %vm4346_vm7, %v4252_v31, %v4378_v39  ;;  %v3002_v50 = vpop.permute.xlu1 %3001  ;;  %v4773_v19 = vrot.slane %v4769_v45, 4  ;;  %v5085_v23 = vld [vmem:[#allocation6 + $0xc] sm:$0x1]  ;;  %v8047_v52 = vrot.slane %v5084_v59, 9  ;;  %v4927_v62 = vld [vmem:[#allocation6 + $0x8] sm:$0xf] }
 0x20a   : > { %v4481_v48 = vadd.f32 %v10006_v35, %v4445_v13  ;;  %v4446_v44 = vmul.f32 %v10000_v6, %v4410_v47  ;;  %v4408_v55 = vsel %vm4344_vm8, %v4244_v56, %v4376_v21  ;;  %3035 = vst.msk [vmem:[#allocation3 + $0x78] sm:$0xff] %vm11013_vm11, %v3002_v50  ;;  %v3723_v58 = vpop.permute.xlu0 %3722  ;;  %v5120_v8 = vrot.slane %v5085_v23, 5  ;;  %v4928_v27 = vld [vmem:[#allocation6 + $0xc] sm:$0x1]  ;;  %v8469_v34 = vld [vmem:[#allocation6] ss:$8 sps:$4 sm:$0xff]  }
 0x20b   : > { %v4479_v9 = vadd.f32 %v10006_v35, %v4443_v46  ;;  %v4444_v63 = vmul.f32 %v10000_v6, %v4408_v55  ;;  %3757 = vst.msk [vmem:[#allocation3 + $0x70] sm:$0xff] %vm3742_vm4, %v3723_v58  ;;  %v4848_v29 = vsel %vm10065_vm0, %v4772_v60, %v4847_v20  ;;  %v4956_v22 = vshrl.u32 %v4927_v62, 16  ;;  %v5377_v39 = vld [vmem:[#allocation6 + $0x8] sm:$0xe]  ;;  %v5378_v4 = vld [vmem:[#allocation6 + $0xc] sm:$0x1] }
 0x20c   : > { %4514 = vst.msk [vmem:[#allocation4 + $0x50] sm:$0xff] %vm4503_vm12, %v4481_v48  ;;  %v4482_v30 = vadd.f32 %v10006_v35, %v4446_v44  ;;  %4849 = vst [vmem:[#allocation6 + $0x10] sm:$0xf] %v4848_v29  ;;  %v4959_v1 = vshll.u32 %v4927_v62, 16  ;;  %v4851_v54 = vsel %vm9930_vm5, %v4773_v19, %v4850_v28  ;;  %v5121_v15 = vsel %vm8805_vm13, %v8047_v52, %v5120_v8 }
 0x20d   : > { %4512 = vst.msk [vmem:[#allocation4 + $0x40] sm:$0xff] %vm4503_vm12, %v4479_v9  ;;  %v4480_v11 = vadd.f32 %v10006_v35, %v4444_v63  ;;  %v3180_v42 = vpop.permute.xlu1 %3179  ;;  %v4951_v25 = vshll.u32 %v4926_v5, 16  ;;  %4852 = vst [vmem:[#allocation6 + $0x14] sm:$0x1] %v4851_v54  ;;  %v8054_v40 = vcombine.low %v5117_v0, %v5121_v15  ;;  %v4958_v61 = vrot.slane %v4956_v22, 4 }
 0x20e   : > { %4515 = vst.msk [vmem:[#allocation4 + $0x58] sm:$0xff] %vm4503_vm12, %v4482_v30  ;;  %v4044_v17 = vpop.permute.xlu0 %4043  ;;  %v4961_v26 = vrot.slane %v4959_v1, 5  ;;  %v4965_v31 = vshll.u32 %v4928_v27, 16  ;;  %v4949_v43 = vrot.slane %v4948_v18, 4  ;;  %4921 = vst.msk [vmem:[#allocation7] sm:$0xff] %vm4503_vm12, %v8469_v34  ;;  %v8066_v63 = vrot.slane %v5377_v39, 9 }
 0x20f   : > { %3213 = vst.msk [vmem:[#allocation3 + $0x78] sm:$0xff] %vm11014_vm10, %v3180_v42  ;;  %5158 = vrot.lane.b32.xlu0 %v8054_v40, %s10955_s30  ;;  %v4953_v56 = vrot.slane %v4951_v25, 5  ;;  %v5411_v60 = vrot.slane %v5378_v4, 5  ;;  %v4853_v15 = vld [vmem:[#allocation6 + $0x18] sm:$0xf]  ;;  %vm5077_vm11 = vcmask 130112  }
 0x210   : > { %4513 = vst.msk [vmem:[#allocation4 + $0x48] sm:$0xff] %vm4503_vm12, %v4480_v11  ;;  %v4962_v24 = vor.u32 %v4961_v26, %v4958_v61  ;;  %v4967_v37 = vrot.slane %v4965_v31, 5  ;;  %v5220_v11 = vld [vmem:[#allocation6 + $0x8] sm:$0xf]  ;;  %v4856_v18 = vld [vmem:[#allocation6 + $0x1c] sm:$0x1] }
 0x211   : > { %4078 = vst.msk [vmem:[#allocation3 + $0x70] sm:$0xff] %vm4063_vm2, %v4044_v17  ;;  %v3725_v32 = vpop.permute.xlu1 %3724  ;;  %v4954_v44 = vsel %vm8841_vm14, %v4949_v43, %v4953_v56  ;;  %v5412_v28 = vsel %vm8805_vm13, %v8066_v63, %v5411_v60  ;;  %v5237_v22 = vshrl.u32 %v5220_v11, 16  ;;  %v5240_v1 = vshll.u32 %v5220_v11, 16  ;;  %v5221_v31 = vld [vmem:[#allocation6 + $0xc] sm:$0x1] }
 0x212   : > { %3758 = vst.msk [vmem:[#allocation3 + $0x78] sm:$0xff] %vm3742_vm4, %v3725_v32  ;;  %v4963_v36 = vrot.slane %v4962_v24, 4  ;;  %v4711_v39 = vld [vmem:[#allocation6 + $0x2c] sm:$0x1]  ;;  %v5246_v4 = vshll.u32 %v5221_v31, 16  ;;  %vm5170_vm10 = vcmask 195712  }
 0x213   : > { %v8465_v49 = vld [vmem:[#allocation6 + $0x8] ss:$8 sps:$4 sm:$0xff]   ;;  %v5239_v32 = vrot.slane %v5237_v22, 4  ;;  %v5242_v24 = vrot.slane %v5240_v1, 5 }
 0x214   : > { %v4968_v55 = vsel %vm8841_vm14, %v4963_v36, %v4967_v37  ;;  %v5379_v20 = vld [vmem:[#allocation6 + $0x10] sm:$0xe]  ;;  %v5380_v57 = vld [vmem:[#allocation6 + $0x14] sm:$0x1]  ;;  %5203 = vrot.lane.b32.xlu0 %v8465_v49, %s8593_s22  ;;  %v4680_v37 = vld [vmem:[#allocation6 + $0x28] sm:$0x1] }
 0x215   : > { %v4546_v13 = vld [vmem:[#allocation4 + $0x50] ss:$2 sm:$0xff]  ;;  %v4578_v14 = vld [vmem:[#allocation4 + $0x51] ss:$2 sm:$0xff]  ;;  %v4046_v21 = vpop.permute.xlu1 %4045  ;;  %v8067_v58 = vrot.slane %v5379_v20, 9  ;;  %v5415_v9 = vrot.slane %v5380_v57, 5  ;;  %v8042_v19 = vcombine.low %v4954_v44, %v4968_v55 }
 0x216   : > { %v4604_v46 = vmax.f32 %v4546_v13, %v4578_v14  ;;  %4079 = vst.msk [vmem:[#allocation3 + $0x78] sm:$0xff] %vm4063_vm2, %v4046_v21  ;;  %v5222_v8 = vld [vmem:[#allocation6 + $0x10] sm:$0xf]  ;;  %v5223_v34 = vld [vmem:[#allocation6 + $0x14] sm:$0x1]  ;;  %v4681_v14 = vsel %vm9930_vm5, 0, %v4680_v37 }
 0x217   : > { %v4544_v47 = vld [vmem:[#allocation4 + $0x40] ss:$2 sm:$0xff]  ;;  %v4576_v45 = vld [vmem:[#allocation4 + $0x41] ss:$2 sm:$0xff]  ;;  %v5416_v5 = vsel %vm8805_vm13, %v8067_v58, %v5415_v9  ;;  %v5251_v62 = vshrl.u32 %v5222_v8, 16  ;;  %v5254_v27 = vshll.u32 %v5222_v8, 16 }
 0x218   : > { %v4094_v50 = vld [vmem:[#allocation3 + $0x70] sm:$0xff]  ;;  %v4603_v48 = vmax.f32 %v4544_v47, %v4576_v45  ;;  %4620 = vst.msk [vmem:[#allocation5 + $0x28] sm:$0xff] %vm4503_vm12, %v4604_v46  ;;  %5065 = vrot.lane.b32.xlu0 %v8042_v19, %s10950_s16  ;;  %v8074_v23 = vcombine.low %v5412_v28, %v5416_v5  ;;  %v4712_v21 = vsel %vm9940_vm3, 0, %v4711_v39  ;;  %v5243_v45 = vor.u32 %v5242_v24, %v5239_v32 }
 0x219   : > { %8310 = vmatprep.mubr.msk.bf16.mxu0 %vm4121_vm15, %v4094_v50  ;;  %v5253_v25 = vrot.slane %v5251_v62, 4  ;;  %v5256_v40 = vrot.slane %v5254_v27, 5  ;;  %v5516_v36 = vld [vmem:[#allocation6 + $0x10] sm:$0xf]  ;;  %v5087_v47 = vld [vmem:[#allocation6 + $0x14] sm:$0x1] }
 0x21a   : > { %4619 = vst.msk [vmem:[#allocation5 + $0x20] sm:$0xff] %vm4503_vm12, %v4603_v48  ;;  %v5086_v46 = vld [vmem:[#allocation6 + $0x10] sm:$0xe]  ;;  %4682 = vst [vmem:[#allocation6 + $0x28] sm:$0x1] %v4681_v14  ;;  %v5260_v49 = vshll.u32 %v5223_v34, 16 }
 0x21b   : > { %v5257_v13 = vor.u32 %v5256_v40, %v5253_v25  ;;  %4713 = vst [vmem:[#allocation6 + $0x2c] sm:$0x1] %v4712_v21  ;;  %v5673_v50 = vld [vmem:[#allocation6 + $0x10] sm:$0xe]  ;;  %v5533_v48 = vshrl.u32 %v5516_v36, 16  ;;  %v5536_v44 = vshll.u32 %v5516_v36, 16 }
 0x21c   : > { %5453 = vrot.lane.b32.xlu0 %v8074_v23, %s8599_s25  ;;  %v5674_v55 = vld [vmem:[#allocation6 + $0x14] sm:$0x1]  ;;  %v5248_v20 = vrot.slane %v5246_v4, 5  ;;  %v8048_v58 = vrot.slane %v5086_v46, 9  ;;  %v5124_v9 = vrot.slane %v5087_v47, 5  ;;  %v5244_v63 = vrot.slane %v5243_v45, 4 }
 0x21d   : > { %v4095_v59 = vld [vmem:[#allocation3 + $0x78] sm:$0xff]  ;;  %v5258_v57 = vrot.slane %v5257_v13, 4  ;;  %v8086_v60 = vrot.slane %v5673_v50, 9  ;;  %v5517_v19 = vld [vmem:[#allocation6 + $0x14] sm:$0x1]  ;;  %v5262_v5 = vrot.slane %v5260_v49, 5 }
 0x21e   : > { %8311 = vmatmul.mubr.msk.bf16.gmra.mrb[28].mxu0 %vm4121_vm15, %v4095_v59  ;;  %v5707_v28 = vrot.slane %v5674_v55, 5  ;;  %v5535_v59 = vrot.slane %v5533_v48, 4  ;;  %v5538_v23 = vrot.slane %v5536_v44, 5  ;;  %v5542_v62 = vshll.u32 %v5517_v19, 16 }
 0x21f   : > { %v4642_v0 = vld [vmem:[#allocation5 + $0x28] sm:$0xff]  ;;  %v5263_v11 = vsel %vm8841_vm14, %v5258_v57, %v5262_v5 }
 0x220   : > { %v5708_v39 = vsel %vm8805_vm13, %v8086_v60, %v5707_v28  ;;  %v5544_v46 = vrot.slane %v5542_v62, 5 }
 0x221   : > { %v4633_v30 = vld [vmem:[#allocation5 + $0x20] sm:$0xff] }
 0x222   : > { %v4650_v52 = vmax.f32 %v4633_v30, %v4642_v0 }
 0x224   : > { %v8208_v29 = vpack.c.bf16 %v4650_v52, %v4650_v52 }
 0x226   : > { %v4775_v42 = vshrl.u32 %v8208_v29, 16  ;;  %v4778_v17 = vshll.u32 %v8208_v29, 16 }
 0x228   : > { %v4777_v54 = vrot.slane %v4775_v42, 7  ;;  %v5249_v42 = vsel %vm8841_vm14, %v5244_v63, %v5248_v20 }
 0x229   : > { %v8062_v31 = vcombine.low %v5249_v42, %v5263_v11 }
 0x22a   : > { %v4780_v61 = vor.u32 %v4778_v17, %v4777_v54  ;;  %v4781_v26 = vrot.slane %v4777_v54, 4 }
 0x22c   : > { %v4854_v43 = vsel %vm10065_vm0, %v4780_v61, %v4853_v15  ;;  %v4857_v56 = vsel %vm9930_vm5, %v4781_v26, %v4856_v18  ;;  %v5539_v18 = vor.u32 %v5538_v23, %v5535_v59  ;;  %v5125_v61 = vsel %vm8805_vm13, %v8048_v58, %v5124_v9 }
 0x22d   : > { %4855 = vst [vmem:[#allocation6 + $0x18] sm:$0xf] %v4854_v43  ;;  %4858 = vst [vmem:[#allocation6 + $0x1c] sm:$0x1] %v4857_v56 }
 0x22e   : > { %v5540_v21 = vrot.slane %v5539_v18, 4 }
 0x230   : > { %v5545_v59 = vsel %vm8841_vm14, %v5540_v21, %v5544_v46  ;;  %v4859_v46 = vld [vmem:[#allocation6 + $0x20] sm:$0xf] }
 0x234   : > { %v8466_v0 = vld [vmem:[#allocation6 + $0x10] ss:$8 sps:$4 sm:$0xff]   ;;  %v5089_v52 = vld [vmem:[#allocation6 + $0x1c] sm:$0x1] }
 0x235   : > { %v5088_v30 = vld [vmem:[#allocation6 + $0x18] sm:$0xe]  ;;  %5499 = vrot.lane.b32.xlu0 %v8466_v0, %s8600_s12  ;;  %v5128_v27 = vrot.slane %v5089_v52, 5  ;;  %v5676_v22 = vld [vmem:[#allocation6 + $0x1c] sm:$0x1] }
 0x236   : > { %v8049_v8 = vrot.slane %v5088_v30, 9  ;;  %v5675_v29 = vld [vmem:[#allocation6 + $0x18] sm:$0xe]  ;;  %v5711_v17 = vrot.slane %v5676_v22, 5  ;;  %v5519_v15 = vld [vmem:[#allocation6 + $0x1c] sm:$0x1] }
 0x237   : > { %v8087_v1 = vrot.slane %v5675_v29, 9  ;;  %v5518_v54 = vld [vmem:[#allocation6 + $0x18] sm:$0xf]  ;;  %v5556_v4 = vshll.u32 %v5519_v15, 16 }
 0x238   : > { %v5547_v25 = vshrl.u32 %v5518_v54, 16  ;;  %v5550_v40 = vshll.u32 %v5518_v54, 16  ;;  %v5129_v26 = vsel %vm8805_vm13, %v8049_v8, %v5128_v27  ;;  %v8296_v32 = vpop.f32.mrb[12].mxu0  ;;  %v8472_v0 = vld [vmem:[#allocation6 + $0x10] ss:$8 sps:$4 sm:$0xff]  }
 0x239   : > { %v8055_v24 = vcombine.low %v5125_v61, %v5129_v26  ;;  %v5712_v34 = vsel %vm8805_vm13, %v8087_v1, %v5711_v17  ;;  %v4265_v36 = vadd.f32 %v8296_v32, %v9987_v51  ;;  %v4256_v37 = vpop.f32.mrb[13].mxu0  ;;  %5360 = vrot.lane.b32.xlu0 %v8062_v31, %s10979_s29  ;;  %v5558_v9 = vrot.slane %v5556_v4, 5  ;;  %4922 = vst.msk [vmem:[#allocation7 + $0x8] sm:$0xff] %vm4503_vm12, %v8472_v0 }
 0x23a   : > { %v5549_v43 = vrot.slane %v5547_v25, 4  ;;  %v5552_v56 = vrot.slane %v5550_v40, 5  ;;  %v4257_v13 = vadd.f32 %v4256_v37, %v9987_v51  ;;  %v8297_v14 = vpop.f32.mrb[14].mxu0  ;;  %v8094_v48 = vcombine.low %v5708_v39, %v5712_v34  ;;  %v4683_v25 = vld [vmem:[#allocation6 + $0x30] sm:$0x1] }
 0x23b   : > { %5160 = vrot.lane.b32.xlu1 %v8055_v24, %s10955_s30  ;;  %vm4349_vm2 = vcmp.ge.f32.partialorder %v4265_v36, 0.0  ;;  %v4381_v45 = vmul.f32 0.01, %v4265_v36  ;;  %v4268_v49 = vadd.f32 %v8297_v14, %v9987_v51  ;;  %v4259_v50 = vpop.f32.mrb[15].mxu0  ;;  %v4714_v40 = vld [vmem:[#allocation6 + $0x34] sm:$0x1] }
 0x23c   : > { %v5553_v47 = vor.u32 %v5552_v56, %v5549_v43  ;;  %vm4347_vm4 = vcmp.ge.f32.partialorder %v4257_v13, 0.0  ;;  %v4379_v44 = vmul.f32 0.01, %v4257_v13  ;;  %v4260_v55 = vadd.f32 %v4259_v50, %v9987_v51  ;;  %v4929_v34 = vld [vmem:[#allocation6 + $0x10] sm:$0xf] }
 0x23d   : > { %v4413_v57 = vsel %vm4349_vm2, %v4265_v36, %v4381_v45  ;;  %vm4350_vm15 = vcmp.ge.f32.partialorder %v4268_v49, 0.0  ;;  %v4382_v58 = vmul.f32 0.01, %v4268_v49  ;;  %5749 = vrot.lane.b32.xlu0 %v8094_v48, %s10951_s13  ;;  %v4684_v26 = vsel %vm9930_vm5, 0, %v4683_v25  ;;  %v4931_v43 = vld [vmem:[#allocation6 + $0x18] sm:$0xf] }
 0x23e   : > { %v5554_v20 = vrot.slane %v5553_v47, 4  ;;  %v4449_v63 = vmul.f32 %v10000_v6, %v4413_v57  ;;  %v4411_v60 = vsel %vm4347_vm4, %v4257_v13, %v4379_v44  ;;  %vm4348_vm9 = vcmp.ge.f32.partialorder %v4260_v55, 0.0  ;;  %4685 = vst [vmem:[#allocation6 + $0x30] sm:$0x1] %v4684_v26  ;;  %v4930_v44 = vld [vmem:[#allocation6 + $0x14] sm:$0x1] }
 0x23f   : > { %v4380_v19 = vmul.f32 0.01, %v4260_v55  ;;  %v4447_v5 = vmul.f32 %v10000_v6, %v4411_v60  ;;  %v4414_v28 = vsel %vm4350_vm15, %v4268_v49, %v4382_v58  ;;  %v4715_v31 = vsel %vm9940_vm3, 0, %v4714_v40  ;;  %v4862_v49 = vld [vmem:[#allocation6 + $0x24] sm:$0x1] }
 0x240   : > { %v5559_v23 = vsel %vm8841_vm14, %v5554_v20, %v5558_v9  ;;  %v4485_v30 = vadd.f32 %v10006_v35, %v4449_v63  ;;  %v4450_v52 = vmul.f32 %v10000_v6, %v4414_v28  ;;  %4716 = vst [vmem:[#allocation6 + $0x34] sm:$0x1] %v4715_v31  ;;  %v4970_v36 = vshrl.u32 %v4929_v34, 16  ;;  %v4932_v58 = vld [vmem:[#allocation6 + $0x1c] sm:$0x1] }
 0x241   : > { %v4412_v8 = vsel %vm4348_vm9, %v4260_v55, %v4380_v19  ;;  %v8082_v11 = vcombine.low %v5545_v59, %v5559_v23  ;;  %v4483_v29 = vadd.f32 %v10006_v35, %v4447_v5  ;;  %v4973_v37 = vshll.u32 %v4929_v34, 16 }
 0x242   : > { %v4448_v62 = vmul.f32 %v10000_v6, %v4412_v8  ;;  %4518 = vst.msk [vmem:[#allocation4 + $0x70] sm:$0xff] %vm4503_vm12, %v4485_v30  ;;  %v4486_v27 = vadd.f32 %v10006_v35, %v4450_v52  ;;  %v4984_v4 = vshrl.u32 %v4931_v43, 16  ;;  %v4987_v13 = vshll.u32 %v4931_v43, 16 }
 0x243   : > { %5656 = vrot.lane.b32.xlu0 %v8082_v11, %s10953_s24  ;;  %4516 = vst.msk [vmem:[#allocation4 + $0x60] sm:$0xff] %vm4503_vm12, %v4483_v29  ;;  %v4972_v47 = vrot.slane %v4970_v36, 4  ;;  %v4975_v45 = vrot.slane %v4973_v37, 5  ;;  %v4979_v60 = vshll.u32 %v4930_v44, 16  ;;  %v4993_v28 = vshll.u32 %v4932_v58, 16 }
 0x244   : > { %v4484_v42 = vadd.f32 %v10006_v35, %v4448_v62  ;;  %4519 = vst.msk [vmem:[#allocation4 + $0x78] sm:$0xff] %vm4503_vm12, %v4486_v27  ;;  %v4986_v55 = vrot.slane %v4984_v4, 4  ;;  %v4989_v20 = vrot.slane %v4987_v13, 5  ;;  %v5381_v11 = vld [vmem:[#allocation6 + $0x18] sm:$0xe]  ;;  %vm5215_vm2 = vcmask 261312  }
 0x245   : > { %v4976_v63 = vor.u32 %v4975_v45, %v4972_v47  ;;  %v4981_v8 = vrot.slane %v4979_v60, 5  ;;  %v8068_v25 = vrot.slane %v5381_v11, 9  ;;  %v4717_v58 = vld [vmem:[#allocation6 + $0x3c] sm:$0x1] }
 0x246   : > { %4517 = vst.msk [vmem:[#allocation4 + $0x68] sm:$0xff] %vm4503_vm12, %v4484_v42  ;;  %v4990_v19 = vor.u32 %v4989_v20, %v4986_v55  ;;  %v4686_v20 = vld [vmem:[#allocation6 + $0x38] sm:$0x1] }
 0x247   : > { %v4977_v52 = vrot.slane %v4976_v63, 4 }
 0x248   : > { %v4991_v42 = vrot.slane %v4990_v19, 4 }
 0x249   : > { %v4982_v34 = vsel %vm8841_vm14, %v4977_v52, %v4981_v8 }
 0x24b   : > { %v4550_v22 = vld [vmem:[#allocation4 + $0x70] ss:$2 sm:$0xff]  ;;  %v4582_v1 = vld [vmem:[#allocation4 + $0x71] ss:$2 sm:$0xff] }
 0x24c   : > { %v4606_v54 = vmax.f32 %v4550_v22, %v4582_v1 }
 0x24d   : > { %v4548_v17 = vld [vmem:[#allocation4 + $0x60] ss:$2 sm:$0xff]  ;;  %v4580_v15 = vld [vmem:[#allocation4 + $0x61] ss:$2 sm:$0xff] }
 0x24e   : > { %v4605_v18 = vmax.f32 %v4548_v17, %v4580_v15  ;;  %4622 = vst.msk [vmem:[#allocation5 + $0x38] sm:$0xff] %vm4503_vm12, %v4606_v54  ;;  %v4995_v54 = vrot.slane %v4993_v28, 5  ;;  %v5382_v17 = vld [vmem:[#allocation6 + $0x1c] sm:$0x1] }
 0x250   : > { %4621 = vst.msk [vmem:[#allocation5 + $0x30] sm:$0xff] %vm4503_vm12, %v4605_v18  ;;  %v4996_v43 = vsel %vm8841_vm14, %v4991_v42, %v4995_v54 }
 0x255   : > { %v4643_v61 = vld [vmem:[#allocation5 + $0x38] sm:$0xff] }
 0x257   : > { %v4634_v32 = vld [vmem:[#allocation5 + $0x30] sm:$0xff] }
 0x258   : > { %v4651_v24 = vmax.f32 %v4634_v32, %v4643_v61 }
 0x25a   : > { %v8209_v56 = vpack.c.bf16 %v4651_v24, %v4651_v24 }
 0x25c   : > { %v4783_v39 = vshrl.u32 %v8209_v56, 16  ;;  %v4786_v21 = vshll.u32 %v8209_v56, 16 }
 0x25e   : > { %v4785_v14 = vrot.slane %v4783_v39, 7 }
 0x260   : > { %v4788_v50 = vor.u32 %v4786_v21, %v4785_v14  ;;  %v4789_v48 = vrot.slane %v4785_v14, 4 }
 0x262   : > { %v4860_v57 = vsel %vm10065_vm0, %v4788_v50, %v4859_v46  ;;  %v4863_v9 = vsel %vm9930_vm5, %v4789_v48, %v4862_v49  ;;  %v5419_v46 = vrot.slane %v5382_v17, 5  ;;  %v8043_v49 = vcombine.low %v4982_v34, %v4996_v43 }
 0x263   : > { %4861 = vst [vmem:[#allocation6 + $0x20] sm:$0xf] %v4860_v57  ;;  %4864 = vst [vmem:[#allocation6 + $0x24] sm:$0x1] %v4863_v9  ;;  %v4687_v57 = vsel %vm9930_vm5, 0, %v4686_v20  ;;  %v4718_v9 = vsel %vm9940_vm3, 0, %v4717_v58 }
 0x264   : > { %v8300_v5 = vpop.f32.mrb[16].mxu0  ;;  %v5420_v44 = vsel %vm8805_vm13, %v8068_v25, %v5419_v46  ;;  %4688 = vst [vmem:[#allocation6 + $0x38] sm:$0x1] %v4687_v57  ;;  %4719 = vst [vmem:[#allocation6 + $0x3c] sm:$0x1] %v4718_v9 }
 0x265   : > { %v4281_v59 = vadd.f32 %v8300_v5, %v9987_v51  ;;  %v4272_v23 = vpop.f32.mrb[17].mxu0 }
 0x266   : > { %v4273_v0 = vadd.f32 %v4272_v23, %v9987_v51  ;;  %v8301_v30 = vpop.f32.mrb[18].mxu0 }
 0x267   : > { %vm4353_vm6 = vcmp.ge.f32.partialorder %v4281_v59, 0.0  ;;  %v4385_v29 = vmul.f32 0.01, %v4281_v59  ;;  %v4284_v62 = vadd.f32 %v8301_v30, %v9987_v51  ;;  %v4275_v27 = vpop.f32.mrb[19].mxu0  ;;  %v5224_v30 = vld [vmem:[#allocation6 + $0x18] sm:$0xf] }
 0x268   : > { %vm4351_vm1 = vcmp.ge.f32.partialorder %v4273_v0, 0.0  ;;  %v4383_v22 = vmul.f32 0.01, %v4273_v0  ;;  %v4276_v1 = vadd.f32 %v4275_v27, %v9987_v51  ;;  %v5268_v27 = vshll.u32 %v5224_v30, 16 }
 0x269   : > { %v4417_v15 = vsel %vm4353_vm6, %v4281_v59, %v4385_v29  ;;  %vm4354_vm7 = vcmp.ge.f32.partialorder %v4284_v62, 0.0  ;;  %v4386_v18 = vmul.f32 0.01, %v4284_v62 }
 0x26a   : > { %v4453_v40 = vmul.f32 %v10000_v6, %v4417_v15  ;;  %v4415_v61 = vsel %vm4351_vm1, %v4273_v0, %v4383_v22  ;;  %vm4352_vm8 = vcmp.ge.f32.partialorder %v4276_v1, 0.0  ;;  %v4384_v26 = vmul.f32 0.01, %v4276_v1  ;;  %v8467_v31 = vld [vmem:[#allocation6 + $0x18] ss:$8 sps:$4 sm:$0xff]  }
 0x26b   : > { %v4451_v32 = vmul.f32 %v10000_v6, %v4415_v61  ;;  %v4418_v24 = vsel %vm4354_vm7, %v4284_v62, %v4386_v18  ;;  %v5383_v56 = vld [vmem:[#allocation6 + $0x20] sm:$0xe]  ;;  %v5384_v36 = vld [vmem:[#allocation6 + $0x24] sm:$0x1]  ;;  %5205 = vrot.lane.b32.xlu1 %v8467_v31, %s8593_s22  ;;  %v5265_v62 = vshrl.u32 %v5224_v30, 16  ;;  %v5270_v18 = vrot.slane %v5268_v27, 5 }
 0x26c   : > { %v4489_v37 = vadd.f32 %v10006_v35, %v4453_v40  ;;  %v4454_v39 = vmul.f32 %v10000_v6, %v4418_v24  ;;  %v4416_v4 = vsel %vm4352_vm8, %v4276_v1, %v4384_v26  ;;  %v8069_v13 = vrot.slane %v5383_v56, 9  ;;  %v5226_v23 = vld [vmem:[#allocation6 + $0x20] sm:$0xf]  ;;  %v4865_v61 = vld [vmem:[#allocation6 + $0x28] sm:$0xf] }
 0x26d   : > { %v4487_v14 = vadd.f32 %v10006_v35, %v4451_v32  ;;  %v4452_v21 = vmul.f32 %v10000_v6, %v4416_v4  ;;  %v5423_v47 = vrot.slane %v5384_v36, 5  ;;  %v5279_v11 = vshrl.u32 %v5226_v23, 16  ;;  %v4868_v26 = vld [vmem:[#allocation6 + $0x2c] sm:$0x1]  ;;  %v5227_v31 = vld [vmem:[#allocation6 + $0x24] sm:$0x1] }
 0x26e   : > { %4522 = vst.msk [vmem:[#allocation4 + $0x90] sm:$0xff] %vm4503_vm12, %v4489_v37  ;;  %v4490_v45 = vadd.f32 %v10006_v35, %v4454_v39  ;;  %v5282_v29 = vshll.u32 %v5226_v23, 16  ;;  %v5267_v15 = vrot.slane %v5265_v62, 4  ;;  %v5225_v56 = vld [vmem:[#allocation6 + $0x1c] sm:$0x1]  ;;  %v5288_v4 = vshll.u32 %v5227_v31, 16 }
 0x26f   : > { %4520 = vst.msk [vmem:[#allocation4 + $0x80] sm:$0xff] %vm4503_vm12, %v4487_v14  ;;  %v4488_v50 = vadd.f32 %v10006_v35, %v4452_v21  ;;  %v5424_v48 = vsel %vm8805_vm13, %v8069_v13, %v5423_v47  ;;  %5067 = vrot.lane.b32.xlu1 %v8043_v49, %s10950_s16  ;;  %v5281_v54 = vrot.slane %v5279_v11, 4  ;;  %v5520_v13 = vld [vmem:[#allocation6 + $0x20] sm:$0xf]  ;;  %v5678_v21 = vld [vmem:[#allocation6 + $0x24] sm:$0x1] }
 0x270   : > { %4523 = vst.msk [vmem:[#allocation4 + $0x98] sm:$0xff] %vm4503_vm12, %v4490_v45  ;;  %v8075_v55 = vcombine.low %v5420_v44, %v5424_v48  ;;  %v5284_v17 = vrot.slane %v5282_v29, 5  ;;  %v5271_v36 = vor.u32 %v5270_v18, %v5267_v15  ;;  %v5677_v14 = vld [vmem:[#allocation6 + $0x20] sm:$0xe]  ;;  %v5274_v45 = vshll.u32 %v5225_v56, 16 }
 0x271   : > { %4521 = vst.msk [vmem:[#allocation4 + $0x88] sm:$0xff] %vm4503_vm12, %v4488_v50  ;;  %v5090_v46 = vld [vmem:[#allocation6 + $0x20] sm:$0xe]  ;;  %v5091_v50 = vld [vmem:[#allocation6 + $0x24] sm:$0x1]  ;;  %v8088_v20 = vrot.slane %v5677_v14, 9 }
 0x272   : > { %v5285_v43 = vor.u32 %v5284_v17, %v5281_v54  ;;  %v10216_v48 = vld [vmem:[#allocation6 + $0x20] sm:$0xf]  ;;  %v5272_v44 = vrot.slane %v5271_v36, 4  ;;  %v5715_v57 = vrot.slane %v5678_v21, 5  ;;  %v5290_v58 = vrot.slane %v5288_v4, 5 }
 0x273   : > { %5455 = vrot.lane.b32.xlu1 %v8075_v55, %s8599_s25  ;;  %v5561_v55 = vshrl.u32 %v5520_v13, 16  ;;  %v5564_v9 = vshll.u32 %v5520_v13, 16  ;;  %v5276_v23 = vrot.slane %v5274_v45, 5  ;;  %v5001_v11 = vshll.u32 %v10216_v48, 16 }
 0x274   : > { %v5286_v49 = vrot.slane %v5285_v43, 4  ;;  %vm5465_vm1 = vcmask 392512   ;;  %vm5511_vm7 = vcmask 458112   ;;  %vm5668_vm8 = vcmask 523712  }
 0x277   : > { %v4554_v63 = vld [vmem:[#allocation4 + $0x90] ss:$2 sm:$0xff]  ;;  %v4586_v60 = vld [vmem:[#allocation4 + $0x91] ss:$2 sm:$0xff] }
 0x278   : > { %v4608_v19 = vmax.f32 %v4554_v63, %v4586_v60  ;;  %v4552_v5 = vld [vmem:[#allocation4 + $0x80] ss:$2 sm:$0xff]  ;;  %v4584_v28 = vld [vmem:[#allocation4 + $0x81] ss:$2 sm:$0xff]  ;;  %v8050_v60 = vrot.slane %v5090_v46, 9 }
 0x279   : > { %v4607_v59 = vmax.f32 %v4552_v5, %v4584_v28  ;;  %v4689_v63 = vld [vmem:[#allocation6 + $0x40] sm:$0x1]  ;;  %v4998_v5 = vshrl.u32 %v10216_v48, 16 }
 0x27a   : > { %4624 = vst.msk [vmem:[#allocation5 + $0x48] sm:$0xff] %vm4503_vm12, %v4608_v19  ;;  %v5132_v19 = vrot.slane %v5091_v50, 5  ;;  %v4690_v28 = vsel %vm9930_vm5, 0, %v4689_v63 }
 0x27b   : > { %4623 = vst.msk [vmem:[#allocation5 + $0x40] sm:$0xff] %vm4503_vm12, %v4607_v59  ;;  %v4720_v59 = vld [vmem:[#allocation6 + $0x44] sm:$0x1]  ;;  %4691 = vst [vmem:[#allocation6 + $0x40] sm:$0x1] %v4690_v28 }
 0x27c   : > { %v4721_v30 = vsel %vm9940_vm3, 0, %v4720_v59 }
 0x27d   : > { %4722 = vst [vmem:[#allocation6 + $0x44] sm:$0x1] %v4721_v30  ;;  %v4934_v30 = vld [vmem:[#allocation6 + $0x24] sm:$0x1] }
 0x281   : > { %v4644_v0 = vld [vmem:[#allocation5 + $0x48] sm:$0xff]  ;;  %v5159_v22 = vpop.permute.xlu0 %5158 }
 0x282   : > { %v4635_v52 = vld [vmem:[#allocation5 + $0x40] sm:$0xff] }
 0x283   : > { %v4652_v8 = vmax.f32 %v4635_v52, %v4644_v0  ;;  %v5291_v0 = vsel %vm8841_vm14, %v5286_v49, %v5290_v58 }
 0x285   : > { %v8210_v42 = vpack.c.bf16 %v4652_v8, %v4652_v8  ;;  %v10228_v8 = vrot.slane %v5561_v55, 4 }
 0x286   : > { %v5204_v32 = vpop.permute.xlu0 %5203 }
 0x287   : > { %v4791_v1 = vshrl.u32 %v8210_v42, 16  ;;  %v4794_v40 = vshll.u32 %v8210_v42, 16  ;;  %v5716_v42 = vsel %vm8805_vm13, %v8088_v20, %v5715_v57 }
 0x289   : > { %v4793_v25 = vrot.slane %v4791_v1, 7  ;;  %v10236_v1 = vrot.slane %v5564_v9, 5 }
 0x28a   : > { %v5066_v47 = vpop.permute.xlu0 %5065 }
 0x28b   : > { %v4796_v24 = vor.u32 %v4794_v40, %v4793_v25  ;;  %v4797_v34 = vrot.slane %v4793_v25, 4  ;;  %5078 = vst.msk [vmem:[#allocation7] sm:$0xff] %vm5077_vm11, %v5066_v47  ;;  %v5133_v40 = vsel %vm8805_vm13, %v8050_v60, %v5132_v19  ;;  %v5521_v19 = vld [vmem:[#allocation6 + $0x24] sm:$0x1] }
 0x28c   : > { %5171 = vst.msk [vmem:[#allocation7] sm:$0xff] %vm5170_vm10, %v5159_v22  ;;  %v5277_v22 = vsel %vm8841_vm14, %v5272_v44, %v5276_v23  ;;  %v5567_v23 = vor.u32 %v10236_v1, %v10228_v8 }
 0x28d   : > { %v4866_v37 = vsel %vm10065_vm0, %v4796_v24, %v4865_v61  ;;  %v4869_v39 = vsel %vm9930_vm5, %v4797_v34, %v4868_v26  ;;  %5216 = vst.msk [vmem:[#allocation7] sm:$0xff] %vm5215_vm2, %v5204_v32  ;;  %v8063_v25 = vcombine.low %v5277_v22, %v5291_v0  ;;  %v10241_v61 = vrot.slane %v4998_v5, 4 }
 0x28e   : > { %4867 = vst [vmem:[#allocation6 + $0x28] sm:$0xf] %v4866_v37  ;;  %4870 = vst [vmem:[#allocation6 + $0x2c] sm:$0x1] %v4869_v39 }
 0x293   : > { %v8304_v52 = vpop.f32.mrb[20].mxu0 }
 0x294   : > { %v4297_v29 = vadd.f32 %v8304_v52, %v9987_v51  ;;  %v4288_v62 = vpop.f32.mrb[21].mxu0  ;;  %v5003_v52 = vrot.slane %v5001_v11, 5  ;;  %v4723_v11 = vld [vmem:[#allocation6 + $0x4c] sm:$0x1] }
 0x295   : > { %v8468_v27 = vld [vmem:[#allocation6 + $0x20] ss:$8 sps:$4 sm:$0xff]   ;;  %v4289_v54 = vadd.f32 %v4288_v62, %v9987_v51  ;;  %v8305_v17 = vpop.f32.mrb[22].mxu0  ;;  %v5680_v18 = vld [vmem:[#allocation6 + $0x2c] sm:$0x1] }
 0x296   : > { %v5679_v15 = vld [vmem:[#allocation6 + $0x28] sm:$0xe]  ;;  %vm4357_vm4 = vcmp.ge.f32.partialorder %v4297_v29, 0.0  ;;  %v4389_v26 = vmul.f32 0.01, %v4297_v29  ;;  %v4300_v31 = vadd.f32 %v8305_v17, %v9987_v51  ;;  %v4291_v32 = vpop.f32.mrb[23].mxu0  ;;  %5501 = vrot.lane.b32.xlu1 %v8468_v27, %s8600_s12 }
 0x297   : > { %v8089_v24 = vrot.slane %v5679_v15, 9  ;;  %vm4355_vm15 = vcmp.ge.f32.partialorder %v4289_v54, 0.0  ;;  %v4387_v34 = vmul.f32 0.01, %v4289_v54  ;;  %v4292_v43 = vadd.f32 %v4291_v32, %v9987_v51  ;;  %v5092_v36 = vld [vmem:[#allocation6 + $0x28] sm:$0xe] }
 0x298   : > { %v5719_v56 = vrot.slane %v5680_v18, 5  ;;  %v4421_v37 = vsel %vm4357_vm4, %v4297_v29, %v4389_v26  ;;  %vm4358_vm9 = vcmp.ge.f32.partialorder %v4300_v31, 0.0  ;;  %v4390_v39 = vmul.f32 0.01, %v4300_v31  ;;  %v5093_v4 = vld [vmem:[#allocation6 + $0x2c] sm:$0x1] }
 0x299   : > { %v8051_v13 = vrot.slane %v5092_v36, 9  ;;  %v4457_v14 = vmul.f32 %v10000_v6, %v4421_v37  ;;  %v4419_v21 = vsel %vm4355_vm15, %v4289_v54, %v4387_v34  ;;  %vm4356_vm6 = vcmp.ge.f32.partialorder %v4292_v43, 0.0  ;;  %v5522_v47 = vld [vmem:[#allocation6 + $0x28] sm:$0xf]  ;;  %v5523_v5 = vld [vmem:[#allocation6 + $0x2c] sm:$0x1] }
 0x29a   : > { %v4388_v46 = vmul.f32 0.01, %v4292_v43  ;;  %v4455_v45 = vmul.f32 %v10000_v6, %v4419_v21  ;;  %v4422_v49 = vsel %vm4358_vm9, %v4300_v31, %v4390_v39  ;;  %v5720_v50 = vsel %vm8805_vm13, %v8089_v24, %v5719_v56  ;;  %5362 = vrot.lane.b32.xlu1 %v8063_v25, %s10979_s29  ;;  %v4935_v58 = vld [vmem:[#allocation6 + $0x28] sm:$0xf]  ;;  %v4936_v27 = vld [vmem:[#allocation6 + $0x2c] sm:$0x1]  ;;  %v5454_v56 = vpop.permute.xlu0 %5453 }
 0x29b   : > { %v5136_v48 = vrot.slane %v5093_v4, 5  ;;  %v4493_v44 = vadd.f32 %v10006_v35, %v4457_v14  ;;  %v4458_v55 = vmul.f32 %v10000_v6, %v4422_v49  ;;  %v8095_v57 = vcombine.low %v5716_v42, %v5720_v50  ;;  %v4692_v25 = vld [vmem:[#allocation6 + $0x48] sm:$0x1] }
 0x29c   : > { %v4420_v20 = vsel %vm4356_vm6, %v4292_v43, %v4388_v46  ;;  %v4491_v9 = vadd.f32 %v10006_v35, %v4455_v45  ;;  %v5575_v28 = vshrl.u32 %v5522_v47, 16  ;;  %v5578_v0 = vshll.u32 %v5522_v47, 16  ;;  %v8479_v36 = vld [vmem:[#allocation6 + $0x20] ss:$8 sps:$4 sm:$0xff]  }
 0x29d   : > { %v4456_v63 = vmul.f32 %v10000_v6, %v4420_v20  ;;  %v5137_v60 = vsel %vm8805_vm13, %v8051_v13, %v5136_v48  ;;  %4526 = vst.msk [vmem:[#allocation4 + $0xb0] sm:$0xff] %vm4503_vm12, %v4493_v44  ;;  %v4494_v59 = vadd.f32 %v10006_v35, %v4458_v55  ;;  %5751 = vrot.lane.b32.xlu0 %v8095_v57, %s10951_s13  ;;  %v5012_v42 = vshrl.u32 %v4935_v58, 16 }
 0x29e   : > { %4524 = vst.msk [vmem:[#allocation4 + $0xa0] sm:$0xff] %vm4503_vm12, %v4491_v9  ;;  %v5577_v62 = vrot.slane %v5575_v28, 4  ;;  %v5015_v22 = vshll.u32 %v4935_v58, 16  ;;  %v8056_v54 = vcombine.low %v5133_v40, %v5137_v60  ;;  %v5570_v17 = vshll.u32 %v5521_v19, 16  ;;  %4923 = vst.msk [vmem:[#allocation7 + $0x10] sm:$0xff] %vm4503_vm12, %v8479_v36 }
 0x29f   : > { %v4492_v29 = vadd.f32 %v10006_v35, %v4456_v63  ;;  %4527 = vst.msk [vmem:[#allocation4 + $0xb8] sm:$0xff] %vm4503_vm12, %v4494_v59  ;;  %v5580_v15 = vrot.slane %v5578_v0, 5  ;;  %v5584_v18 = vshll.u32 %v5523_v5, 16  ;;  %v5014_v8 = vrot.slane %v5012_v42, 4  ;;  %v4871_v42 = vld [vmem:[#allocation6 + $0x30] sm:$0xf] }
 0x2a0   : > { %v5017_v1 = vrot.slane %v5015_v22, 5  ;;  %v5568_v26 = vrot.slane %v5567_v23, 4  ;;  %v5004_v32 = vor.u32 %v5003_v52, %v10241_v61  ;;  %v5021_v24 = vshll.u32 %v4936_v27, 16  ;;  %v8476_v27 = vld [vmem:[%s10929_s3 + $0x8] sm:$0xff]  }
 0x2a1   : > { %4525 = vst.msk [vmem:[#allocation4 + $0xa8] sm:$0xff] %vm4503_vm12, %v4492_v29  ;;  %5162 = vrot.lane.b32.xlu0 %v8056_v54, %s10955_s30  ;;  %v5581_v31 = vor.u32 %v5580_v15, %v5577_v62  ;;  %v5007_v34 = vshll.u32 %v4934_v30, 16  ;;  %v4693_v40 = vsel %vm9930_vm5, 0, %v4692_v25  ;;  %v5572_v37 = vrot.slane %v5570_v17, 5  ;;  %v8475_v30 = vld [vmem:[%s10929_s3] sm:$0xff]   ;;  %s11015_s30 = smov 16  }
 0x2a2   : > { %v5018_v43 = vor.u32 %v5017_v1, %v5014_v8  ;;  %v5586_v4 = vrot.slane %v5584_v18, 5  ;;  %4694 = vst [vmem:[#allocation6 + $0x48] sm:$0x1] %v4693_v40  ;;  %v4724_v13 = vsel %vm9940_vm3, 0, %v4723_v11  ;;  %v5005_v46 = vrot.slane %v5004_v32, 4  ;;  %8314 = vmatprep.subr.bf16.mxu1 %v8475_v30  ;;  %v8477_v8 = vld [vmem:[%s10929_s3 + $0x10] sm:$0xff]  }
 0x2a3   : > { %v5582_v39 = vrot.slane %v5581_v31, 4  ;;  %4725 = vst [vmem:[#allocation6 + $0x4c] sm:$0x1] %v4724_v13  ;;  %v5573_v61 = vsel %vm8841_vm14, %v5568_v26, %v5572_v37  ;;  %v5023_v47 = vrot.slane %v5021_v24, 5  ;;  %v5009_v20 = vrot.slane %v5007_v34, 5  ;;  %8315 = vmatpush3.bf16.msra.mxu1 %v8475_v30  ;;  %v8478_v1 = vld [vmem:[%s10929_s3 + $0x18] sm:$0xff]  }
 0x2a4   : > { %v5019_v14 = vrot.slane %v5018_v43, 4  ;;  %vm5372_vm3 = vcmask 326912   ;;  %vm10958_vm4 = vcmask 589312   ;;  %v4874_v22 = vld [vmem:[#allocation6 + $0x34] sm:$0x1]  ;;  %vm10957_vm15 = vcmask 588800   ;;  %8316 = vmatprep.subr.bf16.mxu1 %v8476_v27 }
 0x2a5   : > { %v5587_v21 = vsel %vm8841_vm14, %v5582_v39, %v5586_v4  ;;  %v5010_v9 = vsel %vm8841_vm14, %v5005_v46, %v5009_v20  ;;  %v5385_v11 = vld [vmem:[#allocation6 + $0x28] sm:$0xe]  ;;  %v8480_v26 = vld [vmem:[%s10929_s3 + $0x20] ss:$0 sps:$4 sm:$0xff]   ;;  %vm5824_vm9 = vcmask 1043456  }
 0x2a6   : > { %v4558_v45 = vld [vmem:[#allocation4 + $0xb0] ss:$2 sm:$0xff]  ;;  %v4590_v49 = vld [vmem:[#allocation4 + $0xb1] ss:$2 sm:$0xff]  ;;  %v8083_v50 = vcombine.low %v5573_v61, %v5587_v21  ;;  %v5024_v57 = vsel %vm8841_vm14, %v5019_v14, %v5023_v47  ;;  %v5386_v31 = vld [vmem:[#allocation6 + $0x2c] sm:$0x1] }
 0x2a7   : > { %v5500_v48 = vpop.permute.xlu0 %5499  ;;  %v4610_v44 = vmax.f32 %v4558_v45, %v4590_v49  ;;  %v8044_v63 = vcombine.low %v5010_v9, %v5024_v57  ;;  %8317 = vmatpush3.bf16.msra.mxu1 %v8476_v27  ;;  %v8070_v24 = vrot.slane %v5385_v11, 9  ;;  %v5826_v40 = vsel %vm5824_vm9, %v8480_v26, 0 }
 0x2a8   : > { %v4556_v55 = vld [vmem:[#allocation4 + $0xa0] ss:$2 sm:$0xff]  ;;  %v4588_v16 = vld [vmem:[#allocation4 + $0xa1] ss:$2 sm:$0xff]  ;;  %5658 = vrot.lane.b32.xlu1 %v8083_v50, %s10953_s24  ;;  %8318 = vmatprep.subr.bf16.mxu1 %v8477_v8  ;;  %v5427_v13 = vrot.slane %v5386_v31, 5  ;;  %s11016_s24 = smov 56  }
 0x2a9   : > { %v4609_v58 = vmax.f32 %v4556_v55, %v4588_v16  ;;  %4626 = vst.msk [vmem:[#allocation5 + $0x58] sm:$0xff] %vm4503_vm12, %v4610_v44 }
 0x2ab   : > { %4625 = vst.msk [vmem:[#allocation5 + $0x50] sm:$0xff] %vm4503_vm12, %v4609_v58  ;;  %v5361_v60 = vpop.permute.xlu0 %5360  ;;  %8319 = vmatpush3.bf16.msra.mxu1 %v8477_v8  ;;  %v5428_v58 = vsel %vm8805_vm13, %v8070_v24, %v5427_v13  ;;  %v4880_v13 = vld [vmem:[#allocation6 + $0x3c] sm:$0x1] }
 0x2ac   : > { %5373 = vst.msk [vmem:[#allocation7] sm:$0xff] %vm5372_vm3, %v5361_v60  ;;  %5069 = vrot.lane.b32.xlu1 %v8044_v63, %s10950_s16  ;;  %8320 = vmatprep.subr.bf16.mxu1 %v8478_v1  ;;  %s8606_s16 = smov 112  }
 0x2ad   : > { %5466 = vst.msk [vmem:[#allocation7] sm:$0xff] %vm5465_vm1, %v5454_v56 }
 0x2ae   : > { %5512 = vst.msk [vmem:[#allocation7] sm:$0xff] %vm5511_vm7, %v5500_v48 }
 0x2af   : > { %v5750_v19 = vpop.permute.xlu0 %5749  ;;  %8321 = vmatpush3.bf16.msra.mxu1 %v8478_v1 }
 0x2b0   : > { %v4645_v5 = vld [vmem:[#allocation5 + $0x58] sm:$0xff]  ;;  %8353 = vmatprep.subr.msk.bf16.mxu1 %vm5824_vm9, %v8480_v26 }
 0x2b2   : > { %v4636_v28 = vld [vmem:[#allocation5 + $0x50] sm:$0xff] }
 0x2b3   : > { %v4653_v59 = vmax.f32 %v4636_v28, %v4645_v5  ;;  %8323 = vmatpush3.bf16.msra.mxu1 %v5826_v40 }
 0x2b4   : > { %6881 = vmatprep.subr.bf16.mxu1 %v8590_v3 }
 0x2b5   : > { %v5657_v23 = vpop.permute.xlu0 %5656  ;;  %v8211_v0 = vpack.c.bf16 %v4653_v59, %v4653_v59 }
 0x2b6   : > { %5669 = vst.msk [vmem:[#allocation7] sm:$0xff] %vm5668_vm8, %v5657_v23 }
 0x2b7   : > { %5762 = vst.msk [vmem:[#allocation7] sm:$0xff] %vm10958_vm4, %v5750_v19  ;;  %v4799_v52 = vshrl.u32 %v8211_v0, 16  ;;  %v4802_v62 = vshll.u32 %v8211_v0, 16 }
 0x2b9   : > { %v4801_v29 = vrot.slane %v4799_v52, 7 }
 0x2bb   : > { %v4804_v54 = vor.u32 %v4802_v62, %v4801_v29  ;;  %v4805_v17 = vrot.slane %v4801_v29, 4 }
 0x2bd   : > { %v4872_v15 = vsel %vm10065_vm0, %v4804_v54, %v4871_v42  ;;  %v4875_v18 = vsel %vm9930_vm5, %v4805_v17, %v4874_v22  ;;  %v5161_v22 = vpop.permute.xlu1 %5160 }
 0x2be   : > { %v5766_v25 = vld [vmem:[#allocation7] sm:$0xff]  ;;  %4873 = vst [vmem:[#allocation6 + $0x30] sm:$0xf] %v4872_v15  ;;  %4876 = vst [vmem:[#allocation6 + $0x34] sm:$0x1] %v4875_v18 }
 0x2bf   : > { %8324 = vmatprep.mubr.msk.bf16.mxu1 %vm10957_vm15, %v5766_v25  ;;  %v5228_v15 = vld [vmem:[#allocation6 + $0x28] sm:$0xf] }
 0x2c0   : > { %v5293_v11 = vshrl.u32 %v5228_v15, 16  ;;  %v5296_v26 = vshll.u32 %v5228_v15, 16 }
 0x2c3   : > { %v8308_v32 = vpop.f32.mrb[24].mxu0 }
 0x2c4   : > { %v4313_v34 = vadd.f32 %v8308_v32, %v9987_v51  ;;  %v4304_v43 = vpop.f32.mrb[25].mxu0 }
 0x2c5   : > { %v8470_v56 = vld [vmem:[#allocation6 + $0x28] ss:$8 sps:$4 sm:$0xff]   ;;  %v4305_v36 = vadd.f32 %v4304_v43, %v9987_v51  ;;  %v8309_v37 = vpop.f32.mrb[26].mxu0  ;;  %v5388_v4 = vld [vmem:[#allocation6 + $0x34] sm:$0x1]  ;;  %v5295_v43 = vrot.slane %v5293_v11, 4 }
 0x2c6   : > { %v5387_v39 = vld [vmem:[#allocation6 + $0x30] sm:$0xe]  ;;  %vm4361_vm6 = vcmp.ge.f32.partialorder %v4313_v34, 0.0  ;;  %v4393_v14 = vmul.f32 0.01, %v4313_v34  ;;  %v4316_v61 = vadd.f32 %v8309_v37, %v9987_v51  ;;  %v4307_v21 = vpop.f32.mrb[27].mxu0  ;;  %5207 = vrot.lane.b32.xlu0 %v8470_v56, %s8593_s22 }
 0x2c7   : > { %v8071_v46 = vrot.slane %v5387_v39, 9  ;;  %vm4359_vm15 = vcmp.ge.f32.partialorder %v4305_v36, 0.0  ;;  %v4391_v47 = vmul.f32 0.01, %v4305_v36  ;;  %v4308_v45 = vadd.f32 %v4307_v21, %v9987_v51  ;;  %v5230_v18 = vld [vmem:[#allocation6 + $0x30] sm:$0xf] }
 0x2c8   : > { %v5431_v49 = vrot.slane %v5388_v4, 5  ;;  %v4425_v50 = vsel %vm4361_vm6, %v4313_v34, %v4393_v14  ;;  %vm4362_vm9 = vcmp.ge.f32.partialorder %v4316_v61, 0.0  ;;  %v4394_v48 = vmul.f32 0.01, %v4316_v61  ;;  %v4877_v4 = vld [vmem:[#allocation6 + $0x38] sm:$0xf] }
 0x2c9   : > { %v4461_v44 = vmul.f32 %v10000_v6, %v4425_v50  ;;  %v4423_v55 = vsel %vm4359_vm15, %v4305_v36, %v4391_v47  ;;  %vm4360_vm4 = vcmp.ge.f32.partialorder %v4308_v45, 0.0  ;;  %v4392_v16 = vmul.f32 0.01, %v4308_v45  ;;  %v5229_v14 = vld [vmem:[#allocation6 + $0x2c] sm:$0x1] }
 0x2ca   : > { %v4459_v20 = vmul.f32 %v10000_v6, %v4423_v55  ;;  %v4426_v57 = vsel %vm4362_vm9, %v4316_v61, %v4394_v48  ;;  %v5432_v9 = vsel %vm8805_vm13, %v8071_v46, %v5431_v49  ;;  %v5307_v31 = vshrl.u32 %v5230_v18, 16  ;;  %v5231_v46 = vld [vmem:[#allocation6 + $0x34] sm:$0x1]  ;;  %v5524_v47 = vld [vmem:[#allocation6 + $0x30] sm:$0xf] }
 0x2cb   : > { %v4497_v63 = vadd.f32 %v10006_v35, %v4461_v44  ;;  %v4462_v60 = vmul.f32 %v10000_v6, %v4426_v57  ;;  %v4424_v19 = vsel %vm4360_vm4, %v4308_v45, %v4392_v16  ;;  %v8076_v5 = vcombine.low %v5428_v58, %v5432_v9  ;;  %v5094_v44 = vld [vmem:[#allocation6 + $0x30] sm:$0xe]  ;;  %v5095_v55 = vld [vmem:[#allocation6 + $0x34] sm:$0x1] }
 0x2cc   : > { %v4495_v28 = vadd.f32 %v10006_v35, %v4459_v20  ;;  %v4460_v59 = vmul.f32 %v10000_v6, %v4424_v19  ;;  %v5310_v32 = vshll.u32 %v5230_v18, 16  ;;  %v5298_v56 = vrot.slane %v5296_v26, 5 }
 0x2cd   : > { %4530 = vst.msk [vmem:[#allocation4 + $0xd0] sm:$0xff] %vm4503_vm12, %v4497_v63  ;;  %v4498_v23 = vadd.f32 %v10006_v35, %v4462_v60  ;;  %5457 = vrot.lane.b32.xlu0 %v8076_v5, %s8599_s25  ;;  %v5309_v40 = vrot.slane %v5307_v31, 4  ;;  %v5302_v16 = vshll.u32 %v5229_v14, 16  ;;  %v5316_v20 = vshll.u32 %v5231_v46, 16 }
 0x2ce   : > { %4528 = vst.msk [vmem:[#allocation4 + $0xc0] sm:$0xff] %vm4503_vm12, %v4495_v28  ;;  %v4496_v0 = vadd.f32 %v10006_v35, %v4460_v59  ;;  %v5312_v36 = vrot.slane %v5310_v32, 5  ;;  %v5299_v45 = vor.u32 %v5298_v56, %v5295_v43  ;;  %v5589_v57 = vshrl.u32 %v5524_v47, 16 }
 0x2cf   : > { %4531 = vst.msk [vmem:[#allocation4 + $0xd8] sm:$0xff] %vm4503_vm12, %v4498_v23  ;;  %v5592_v58 = vshll.u32 %v5524_v47, 16  ;;  %v8052_v60 = vrot.slane %v5094_v44, 9  ;;  %v5140_v19 = vrot.slane %v5095_v55, 5  ;;  %v5304_v28 = vrot.slane %v5302_v16, 5 }
 0x2d0   : > { %4529 = vst.msk [vmem:[#allocation4 + $0xc8] sm:$0xff] %vm4503_vm12, %v4496_v0  ;;  %v5313_v49 = vor.u32 %v5312_v36, %v5309_v40  ;;  %v5300_v9 = vrot.slane %v5299_v45, 4  ;;  %v5318_v59 = vrot.slane %v5316_v20, 5  ;;  %v5591_v23 = vrot.slane %v5589_v57, 4 }
 0x2d1   : > { %v5594_v0 = vrot.slane %v5592_v58, 5  ;;  %v5141_v15 = vsel %vm8805_vm13, %v8052_v60, %v5140_v19  ;;  %v5681_v19 = vld [vmem:[#allocation6 + $0x30] sm:$0xe] }
 0x2d2   : > { %v5314_v63 = vrot.slane %v5313_v49, 4 }
 0x2d6   : > { %v4562_v30 = vld [vmem:[#allocation4 + $0xd0] ss:$2 sm:$0xff]  ;;  %v4594_v52 = vld [vmem:[#allocation4 + $0xd1] ss:$2 sm:$0xff] }
 0x2d7   : > { %v4612_v29 = vmax.f32 %v4562_v30, %v4594_v52  ;;  %v4560_v62 = vld [vmem:[#allocation4 + $0xc0] ss:$2 sm:$0xff]  ;;  %v4592_v27 = vld [vmem:[#allocation4 + $0xc1] ss:$2 sm:$0xff] }
 0x2d8   : > { %v4611_v42 = vmax.f32 %v4560_v62, %v4592_v27  ;;  %v5305_v27 = vsel %vm8841_vm14, %v5300_v9, %v5304_v28  ;;  %v5682_v28 = vld [vmem:[#allocation6 + $0x34] sm:$0x1] }
 0x2d9   : > { %4628 = vst.msk [vmem:[#allocation5 + $0x68] sm:$0xff] %vm4503_vm12, %v4612_v29 }
 0x2da   : > { %4627 = vst.msk [vmem:[#allocation5 + $0x60] sm:$0xff] %vm4503_vm12, %v4611_v42  ;;  %v5319_v42 = vsel %vm8841_vm14, %v5314_v63, %v5318_v59 }
 0x2db   : > { %v8064_v32 = vcombine.low %v5305_v27, %v5319_v42  ;;  %v5723_v27 = vrot.slane %v5682_v28, 5 }
 0x2dd   : > { %v5206_v54 = vpop.permute.xlu1 %5205 }
 0x2e0   : > { %v4646_v17 = vld [vmem:[#allocation5 + $0x68] sm:$0xff] }
 0x2e1   : > { %v4637_v25 = vld [vmem:[#allocation5 + $0x60] sm:$0xff]  ;;  %v5068_v8 = vpop.permute.xlu1 %5067 }
 0x2e2   : > { %v4654_v1 = vmax.f32 %v4637_v25, %v4646_v17  ;;  %5079 = vst.msk [vmem:[#allocation7 + $0x8] sm:$0xff] %vm5077_vm11, %v5068_v8 }
 0x2e3   : > { %5172 = vst.msk [vmem:[#allocation7 + $0x8] sm:$0xff] %vm5170_vm10, %v5161_v22 }
 0x2e4   : > { %v8212_v24 = vpack.c.bf16 %v4654_v1, %v4654_v1  ;;  %5217 = vst.msk [vmem:[#allocation7 + $0x8] sm:$0xff] %vm5215_vm2, %v5206_v54  ;;  %v5595_v1 = vor.u32 %v5594_v0, %v5591_v23 }
 0x2e6   : > { %v4807_v34 = vshrl.u32 %v8212_v24, 16  ;;  %v4810_v39 = vshll.u32 %v8212_v24, 16  ;;  %v5596_v63 = vrot.slane %v5595_v1, 4 }
 0x2e8   : > { %v4809_v37 = vrot.slane %v4807_v34, 7 }
 0x2ea   : > { %v4812_v61 = vor.u32 %v4810_v39, %v4809_v37  ;;  %v4813_v21 = vrot.slane %v4809_v37, 4  ;;  %v5525_v39 = vld [vmem:[#allocation6 + $0x34] sm:$0x1] }
 0x2eb   : > { %v5598_v55 = vshll.u32 %v5525_v39, 16 }
 0x2ec   : > { %v4878_v50 = vsel %vm10065_vm0, %v4812_v61, %v4877_v4  ;;  %v4881_v48 = vsel %vm9930_vm5, %v4813_v21, %v4880_v13 }
 0x2ed   : > { %4879 = vst [vmem:[#allocation6 + $0x38] sm:$0xf] %v4878_v50  ;;  %4882 = vst [vmem:[#allocation6 + $0x3c] sm:$0x1] %v4881_v48 }
 0x2f1   : > { %v8312_v5 = vpop.f32.mrb[28].mxu0 }
 0x2f2   : > { %v4329_v30 = vadd.f32 %v8312_v5, %v9987_v51  ;;  %v4320_v52 = vpop.f32.mrb[29].mxu0  ;;  %v5600_v5 = vrot.slane %v5598_v55, 5 }
 0x2f3   : > { %v4321_v29 = vadd.f32 %v4320_v52, %v9987_v51  ;;  %v8313_v62 = vpop.f32.mrb[30].mxu0 }
 0x2f4   : > { %vm4365_vm4 = vcmp.ge.f32.partialorder %v4329_v30, 0.0  ;;  %v4397_v22 = vmul.f32 0.01, %v4329_v30  ;;  %v4332_v54 = vadd.f32 %v8313_v62, %v9987_v51  ;;  %v4323_v17 = vpop.f32.mrb[31].mxu0  ;;  %v8471_v8 = vld [vmem:[#allocation6 + $0x30] ss:$8 sps:$4 sm:$0xff]   ;;  %v5601_v52 = vsel %vm8841_vm14, %v5596_v63, %v5600_v5 }
 0x2f5   : > { %vm4363_vm15 = vcmp.ge.f32.partialorder %v4321_v29, 0.0  ;;  %v4395_v18 = vmul.f32 0.01, %v4321_v29  ;;  %v4324_v25 = vadd.f32 %v4323_v17, %v9987_v51  ;;  %v5096_v31 = vld [vmem:[#allocation6 + $0x38] sm:$0xe]  ;;  %5503 = vrot.lane.b32.xlu0 %v8471_v8, %s8600_s12  ;;  %v8090_v62 = vrot.slane %v5681_v19, 9 }
 0x2f6   : > { %v4429_v11 = vsel %vm4365_vm4, %v4329_v30, %v4397_v22  ;;  %vm4366_vm6 = vcmp.ge.f32.partialorder %v4332_v54, 0.0  ;;  %v4398_v26 = vmul.f32 0.01, %v4332_v54  ;;  %v5097_v56 = vld [vmem:[#allocation6 + $0x3c] sm:$0x1]  ;;  %v8053_v37 = vrot.slane %v5096_v31, 9 }
 0x2f7   : > { %v4465_v24 = vmul.f32 %v10000_v6, %v4429_v11  ;;  %v4427_v34 = vsel %vm4363_vm15, %v4321_v29, %v4395_v18  ;;  %vm4364_vm9 = vcmp.ge.f32.partialorder %v4324_v25, 0.0  ;;  %v4396_v43 = vmul.f32 0.01, %v4324_v25  ;;  %v5526_v4 = vld [vmem:[#allocation6 + $0x38] sm:$0xf] }
 0x2f8   : > { %v4463_v40 = vmul.f32 %v10000_v6, %v4427_v34  ;;  %v4430_v36 = vsel %vm4366_vm6, %v4332_v54, %v4398_v26  ;;  %v5144_v51 = vrot.slane %v5097_v56, 5  ;;  %v5527_v21 = vld [vmem:[#allocation6 + $0x3c] sm:$0x1]  ;;  %v5603_v46 = vshrl.u32 %v5526_v4, 16  ;;  %v8481_v59 = vld [vmem:[#allocation6 + $0x30] ss:$8 sps:$4 sm:$0xff]  }
 0x2f9   : > { %v4501_v13 = vadd.f32 %v10006_v35, %v4465_v24  ;;  %v4466_v14 = vmul.f32 %v10000_v6, %v4430_v36  ;;  %v4428_v61 = vsel %vm4364_vm9, %v4324_v25, %v4396_v43  ;;  %v5606_v50 = vshll.u32 %v5526_v4, 16  ;;  %5364 = vrot.lane.b32.xlu0 %v8064_v32, %s10979_s29  ;;  %v5684_v9 = vld [vmem:[#allocation6 + $0x3c] sm:$0x1]  ;;  %4924 = vst.msk [vmem:[#allocation7 + $0x18] sm:$0xff] %vm4503_vm12, %v8481_v59  ;;  %v5232_v63 = vld [vmem:[#allocation6 + $0x38] sm:$0xf] }
 0x2fa   : > { %v4499_v47 = vadd.f32 %v10006_v35, %v4463_v40  ;;  %v4464_v45 = vmul.f32 %v10000_v6, %v4428_v61  ;;  %v5145_v49 = vsel %vm8805_vm13, %v8053_v37, %v5144_v51  ;;  %v5605_v16 = vrot.slane %v5603_v46, 4  ;;  %v5683_v6 = vld [vmem:[#allocation6 + $0x38] sm:$0xe]  ;;  %v4937_v37 = vld [vmem:[#allocation6 + $0x30] sm:$0xf] }
 0x2fb   : > { %4534 = vst.msk [vmem:[#allocation4 + $0xf0] sm:$0xff] %vm4503_vm12, %v4501_v13  ;;  %v4502_v48 = vadd.f32 %v10006_v35, %v4466_v14  ;;  %v8057_v44 = vcombine.low %v5141_v15, %v5145_v49  ;;  %v5608_v57 = vrot.slane %v5606_v50, 5  ;;  %v5612_v58 = vshll.u32 %v5527_v21, 16  ;;  %v5456_v15 = vpop.permute.xlu1 %5455  ;;  %v4939_v40 = vld [vmem:[#allocation6 + $0x38] sm:$0xf] }
 0x2fc   : > { %4532 = vst.msk [vmem:[#allocation4 + $0xe0] sm:$0xff] %vm4503_vm12, %v4499_v47  ;;  %v4500_v20 = vadd.f32 %v10006_v35, %v4464_v45  ;;  %v8091_v30 = vrot.slane %v5683_v6, 9  ;;  %v5727_v35 = vrot.slane %v5684_v9, 5  ;;  %v5724_v11 = vsel %vm8805_vm13, %v8090_v62, %v5723_v27  ;;  %v4883_v14 = vld [vmem:[#allocation6 + $0x40] sm:$0xf] }
 0x2fd   : > { %4535 = vst.msk [vmem:[#allocation4 + $0xf8] sm:$0xff] %vm4503_vm12, %v4502_v48  ;;  %5164 = vrot.lane.b32.xlu1 %v8057_v44, %s11015_s30  ;;  %v5609_v60 = vor.u32 %v5608_v57, %v5605_v16  ;;  %v5614_v0 = vrot.slane %v5612_v58, 5  ;;  %v5040_v51 = vshrl.u32 %v4939_v40, 16  ;;  %v5043_v39 = vshll.u32 %v4939_v40, 16  ;;  %v4886_v46 = vld [vmem:[#allocation6 + $0x44] sm:$0x1] }
 0x2fe   : > { %4533 = vst.msk [vmem:[#allocation4 + $0xe8] sm:$0xff] %vm4503_vm12, %v4500_v20  ;;  %v5728_v17 = vsel %vm8805_vm13, %v8091_v30, %v5727_v35  ;;  %v5026_v61 = vshrl.u32 %v4937_v37, 16  ;;  %v5029_v21 = vshll.u32 %v4937_v37, 16  ;;  %v5530_v16 = vld [vmem:[#allocation6 + $0x48] sm:$0xf]  ;;  %v5324_v35 = vshll.u32 %v5232_v63, 16 }
 0x2ff   : > { %v5610_v23 = vrot.slane %v5609_v60, 4  ;;  %v8096_v26 = vcombine.low %v5724_v11, %v5728_v17  ;;  %v5042_v49 = vrot.slane %v5040_v51, 4  ;;  %v5045_v50 = vrot.slane %v5043_v39, 5  ;;  %v4938_v6 = vld [vmem:[#allocation6 + $0x34] sm:$0x1] }
 0x300   : > { %v5028_v57 = vrot.slane %v5026_v61, 4  ;;  %v5031_v58 = vrot.slane %v5029_v21, 5  ;;  %v4940_v9 = vld [vmem:[#allocation6 + $0x3c] sm:$0x1]  ;;  %v5631_v19 = vshrl.u32 %v5530_v16, 16  ;;  %v5634_v7 = vshll.u32 %v5530_v16, 16 }
 0x301   : > { %v5615_v29 = vsel %vm8841_vm14, %v5610_v23, %v5614_v0  ;;  %v5046_v60 = vor.u32 %v5045_v50, %v5042_v49  ;;  %v5035_v10 = vshll.u32 %v4938_v6, 16  ;;  %v5049_v59 = vshll.u32 %v4940_v9, 16  ;;  %v5233_v61 = vld [vmem:[#allocation6 + $0x3c] sm:$0x1] }
 0x302   : > { %v8084_v42 = vcombine.low %v5601_v52, %v5615_v29  ;;  %v5032_v28 = vor.u32 %v5031_v58, %v5028_v57  ;;  %v5321_v23 = vshrl.u32 %v5232_v63, 16  ;;  %v5633_v52 = vrot.slane %v5631_v19, 4 }
 0x303   : > { %v5047_v30 = vrot.slane %v5046_v60, 4  ;;  %v5636_v29 = vrot.slane %v5634_v7, 5  ;;  %v5330_v57 = vshll.u32 %v5233_v61, 16  ;;  %vm6027_vm4 = vcmask 124930   ;;  %v6015_v61 = vld [vmem:[#allocation10 + $0x8] sm:$0x1] }
 0x304   : > { %v4566_v22 = vld [vmem:[#allocation4 + $0xf0] ss:$2 sm:$0xff]  ;;  %v4598_v54 = vld [vmem:[#allocation4 + $0xf1] ss:$2 sm:$0xff]  ;;  %5660 = vrot.lane.b32.xlu0 %v8084_v42, %s11016_s24  ;;  %v5033_v27 = vrot.slane %v5032_v28, 4  ;;  %v5037_v42 = vrot.slane %v5035_v10, 5 }
 0x305   : > { %v4614_v18 = vmax.f32 %v4566_v22, %v4598_v54  ;;  %v4564_v25 = vld [vmem:[#allocation4 + $0xe0] ss:$2 sm:$0xff]  ;;  %v4596_v8 = vld [vmem:[#allocation4 + $0xe1] ss:$2 sm:$0xff]  ;;  %v5051_v22 = vrot.slane %v5049_v59, 5  ;;  %v5323_v17 = vrot.slane %v5321_v23, 4 }
 0x306   : > { %v4613_v1 = vmax.f32 %v4564_v25, %v4596_v8  ;;  %v5389_v54 = vld [vmem:[#allocation6 + $0x38] sm:$0xe]  ;;  %v5687_v28 = vld [vmem:[#allocation6 + $0x48] sm:$0xe]  ;;  %v5332_v10 = vrot.slane %v5330_v57, 5 }
 0x307   : > { %4630 = vst.msk [vmem:[#allocation5 + $0x78] sm:$0xff] %vm4503_vm12, %v4614_v18  ;;  %vm11025_vm15 = vsmask.f32 256 }
 0x308   : > { %4629 = vst.msk [vmem:[#allocation5 + $0x70] sm:$0xff] %vm4503_vm12, %v4613_v1  ;;  %v5502_v31 = vpop.permute.xlu1 %5501  ;;  %5753 = vrot.lane.b32.xlu0 %v8096_v26, %s11017_s14  ;;  %vm11018_vm12 = vcmask 589312   ;;  %v5326_v1 = vrot.slane %v5324_v35, 5 }
 0x30c   : > { %v5363_v32 = vpop.permute.xlu1 %5362 }
 0x30d   : > { %5374 = vst.msk [vmem:[#allocation7 + $0x8] sm:$0xff] %vm5372_vm3, %v5363_v32 }
 0x30e   : > { %v4647_v24 = vld [vmem:[#allocation5 + $0x78] sm:$0xff]  ;;  %5467 = vst.msk [vmem:[#allocation7 + $0x8] sm:$0xff] %vm5465_vm1, %v5456_v15 }
 0x30f   : > { %v4638_v34 = vld [vmem:[#allocation5 + $0x70] sm:$0xff]  ;;  %5513 = vst.msk [vmem:[#allocation7 + $0x8] sm:$0xff] %vm5511_vm7, %v5502_v31  ;;  %v5752_v48 = vpop.permute.xlu0 %5751  ;;  %v5390_v15 = vld [vmem:[#allocation6 + $0x3c] sm:$0x1] }
 0x310   : > { %v4655_v43 = vmax.f32 %v4638_v34, %v4647_v24  ;;  %v5052_v34 = vsel %vm8841_vm14, %v5047_v30, %v5051_v22  ;;  %v5688_v30 = vld [vmem:[#allocation6 + $0x4c] sm:$0x1] }
 0x311   : > { %v5735_v22 = vrot.slane %v5688_v30, 5 }
 0x312   : > { %v8213_v56 = vpack.c.bf16 %v4655_v43, %v4655_v43 }
 0x313   : > { %v5163_v0 = vpop.permute.xlu0 %5162 }
 0x314   : > { %v4815_v36 = vshrl.u32 %v8213_v56, 16  ;;  %v4818_v13 = vshll.u32 %v8213_v56, 16 }
 0x316   : > { %v4817_v4 = vrot.slane %v4815_v36, 7 }
 0x318   : > { %v4820_v47 = vor.u32 %v4818_v13, %v4817_v4  ;;  %v4821_v45 = vrot.slane %v4817_v4, 4  ;;  %v5531_v4 = vld [vmem:[#allocation6 + $0x4c] sm:$0x1]  ;;  %v5038_v13 = vsel %vm8841_vm14, %v5033_v27, %v5037_v42  ;;  %v8093_v42 = vrot.slane %v5687_v28, 9 }
 0x319   : > { %v5640_v16 = vshll.u32 %v5531_v4, 16 }
 0x31a   : > { %v4884_v44 = vsel %vm10065_vm0, %v4820_v47, %v4883_v14  ;;  %v4887_v55 = vsel %vm9930_vm5, %v4821_v45, %v4886_v46  ;;  %v5659_v20 = vpop.permute.xlu1 %5658  ;;  %vm11019_vm5 = vcmask 588800   ;;  %v8072_v14 = vrot.slane %v5389_v54, 9  ;;  %vm11023_vm0 = vmmov %vm11018_vm12 }
 0x31b   : > { %4885 = vst [vmem:[#allocation6 + $0x40] sm:$0xf] %v4884_v44  ;;  %4888 = vst [vmem:[#allocation6 + $0x44] sm:$0x1] %v4887_v55  ;;  %v5435_v47 = vrot.slane %v5390_v15, 5  ;;  %v5327_v45 = vor.u32 %v5326_v1, %v5323_v17  ;;  %v5637_v55 = vor.u32 %v5636_v29, %v5633_v52  ;;  %v5736_v1 = vsel %vm8805_vm13, %v8093_v42, %v5735_v22 }
 0x31c   : > { %5670 = vst.msk [vmem:[#allocation7 + $0x8] sm:$0xff] %vm5668_vm8, %v5659_v20 }
 0x31d   : > { %5763 = vst.msk [vmem:[#allocation7 + $0x8] sm:$0xff] %vm11018_vm12, %v5752_v48  ;;  %v8045_v48 = vcombine.low %v5038_v13, %v5052_v34  ;;  %v5436_v9 = vsel %vm8805_vm13, %v8072_v14, %v5435_v47  ;;  %v5328_v63 = vrot.slane %v5327_v45, 4  ;;  %v8488_v45 = vld [vmem:[%s10931_s5 + $0x10] sm:$0xff]  }
 0x31e   : > { %v5070_v5 = vpop.permute.xlu1 %5069 }
 0x31f   : > { %5080 = vst.msk [vmem:[#allocation7 + $0x10] sm:$0xff] %vm5077_vm11, %v5070_v5  ;;  %v5642_v5 = vrot.slane %v5640_v16, 5  ;;  %v5333_v29 = vsel %vm8841_vm14, %v5328_v63, %v5332_v10 }
 0x320   : > { %5173 = vst.msk [vmem:[#allocation7 + $0x10] sm:$0xff] %vm5170_vm10, %v5163_v0  ;;  %v5638_v0 = vrot.slane %v5637_v55, 4 }
 0x322   : > { %v8473_v62 = vld [vmem:[#allocation6 + $0x38] ss:$8 sps:$4 sm:$0xff]   ;;  %v5392_v25 = vld [vmem:[#allocation6 + $0x44] sm:$0x1]  ;;  %v5643_v17 = vsel %vm8841_vm14, %v5638_v0, %v5642_v5 }
 0x323   : > { %5209 = vrot.lane.b32.xlu1 %v8473_v62, %s8593_s22  ;;  %v5391_v18 = vld [vmem:[#allocation6 + $0x40] sm:$0xe]  ;;  %v5235_v43 = vld [vmem:[#allocation6 + $0x44] sm:$0x1]  ;;  %v5439_v37 = vrot.slane %v5392_v25, 5  ;;  %s11020_s22 = smov 8  }
 0x324   : > { %v5234_v8 = vld [vmem:[#allocation6 + $0x40] sm:$0xf]  ;;  %v5767_v32 = vld [vmem:[#allocation7 + $0x8] sm:$0xff]  ;;  %v8073_v36 = vrot.slane %v5391_v18, 9  ;;  %v5344_v50 = vshll.u32 %v5235_v43, 16 }
 0x325   : > { %v5335_v11 = vshrl.u32 %v5234_v8, 16  ;;  %v5338_v26 = vshll.u32 %v5234_v8, 16  ;;  %v5528_v31 = vld [vmem:[#allocation6 + $0x40] sm:$0xf]  ;;  %8325 = vmatmul.mubr.msk.bf16.vlgmr.msra.gmra.mrb[0].mxu1 %vm11019_vm5, %v5767_v32  ;;  %v5529_v44 = vld [vmem:[#allocation6 + $0x44] sm:$0x1] }
 0x326   : > { %v8474_v24 = vld [vmem:[#allocation6 + $0x40] ss:$8 sps:$4 sm:$0xff]   ;;  %v5617_v56 = vshrl.u32 %v5528_v31, 16  ;;  %v5620_v40 = vshll.u32 %v5528_v31, 16  ;;  %v5440_v20 = vsel %vm8805_vm13, %v8073_v36, %v5439_v37  ;;  %v5346_v60 = vrot.slane %v5344_v50, 5 }
 0x327   : > { %v5337_v51 = vrot.slane %v5335_v11, 4  ;;  %v5340_v39 = vrot.slane %v5338_v26, 5  ;;  %5505 = vrot.lane.b32.xlu1 %v8474_v24, %s8600_s12  ;;  %v5626_v19 = vshll.u32 %v5529_v44, 16  ;;  %v8077_v7 = vcombine.low %v5436_v9, %v5440_v20  ;;  %v5685_v35 = vld [vmem:[#allocation6 + $0x40] sm:$0xe] }
 0x328   : > { %v5619_v21 = vrot.slane %v5617_v56, 4  ;;  %v5622_v46 = vrot.slane %v5620_v40, 5  ;;  %v5686_v52 = vld [vmem:[#allocation6 + $0x44] sm:$0x1]  ;;  %v8092_v15 = vrot.slane %v5685_v35, 9 }
 0x329   : > { %v5341_v49 = vor.u32 %v5340_v39, %v5337_v51  ;;  %v5628_v62 = vrot.slane %v5626_v19, 5  ;;  %v5731_v18 = vrot.slane %v5686_v52, 5 }
 0x32a   : > { %v5623_v6 = vor.u32 %v5622_v46, %v5619_v21  ;;  %v6036_v21 = vld [vmem:[#allocation10 + $0x8] sm:$0x4]  ;;  %v6012_v46 = vld [vmem:[#allocation10 + $0x4] sm:$0x1] }
 0x32b   : > { %v5342_v58 = vrot.slane %v5341_v49, 4  ;;  %5071 = vrot.lane.b32.xlu1 %v8045_v48, %s11020_s22  ;;  %v5732_v8 = vsel %vm8805_vm13, %v8092_v15, %v5731_v18  ;;  %vm11021_vm13 = vmmov %vm11018_vm12  ;;  %v6033_v49 = vld [vmem:[#allocation10 + $0x4] sm:$0x4] }
 0x32c   : > { %v5624_v23 = vrot.slane %v5623_v6, 4  ;;  %v8097_v26 = vcombine.low %v5732_v8, %v5736_v1 }
 0x32d   : > { %v5347_v59 = vsel %vm8841_vm14, %v5342_v58, %v5346_v60  ;;  %v5779_v58 = vld [vmem:[%s10930_s4] sm:$0x7] }
 0x32e   : > { %v8065_v27 = vcombine.low %v5333_v29, %v5347_v59  ;;  %v5629_v54 = vsel %vm8841_vm14, %v5624_v23, %v5628_v62  ;;  %vm11022_vm14 = vmmov %vm11019_vm5  ;;  %v10466_v6 = vrot.slane %v5779_v58, %v9981_v33  ;;  %v10470_v19 = vrot.slane %v5779_v58, %v9991_v53 }
 0x32f   : > { %5459 = vrot.lane.b32.xlu1 %v8077_v7, %s8599_s25  ;;  %v8085_v25 = vcombine.low %v5629_v54, %v5643_v17  ;;  %v10475_v23 = vrot.slane %v5779_v58, %v9995_v38  ;;  %v6018_v58 = vld [vmem:[#allocation10 + $0xc] sm:$0x1] }
 0x333   : > { %5366 = vrot.lane.b32.xlu1 %v8065_v27, %s10979_s29 }
 0x337   : > { %5662 = vrot.lane.b32.xlu1 %v8085_v25, %s11016_s24 }
 0x338   : > { %v5208_v11 = vpop.permute.xlu0 %5207 }
 0x339   : > { %5218 = vst.msk [vmem:[#allocation7 + $0x10] sm:$0xff] %vm5215_vm2, %v5208_v11 }
 0x33b   : > { %5755 = vrot.lane.b32.xlu1 %v8097_v26, %s11017_s14 }
 0x33f   : > { %v5458_v41 = vpop.permute.xlu0 %5457 }
 0x367   : > { %v5504_v31 = vpop.permute.xlu0 %5503 }
 0x36b   : > { %v5365_v32 = vpop.permute.xlu0 %5364 }
 0x36c   : > { %5375 = vst.msk [vmem:[#allocation7 + $0x10] sm:$0xff] %vm5372_vm3, %v5365_v32 }
 0x36d   : > { %5468 = vst.msk [vmem:[#allocation7 + $0x10] sm:$0xff] %vm5465_vm1, %v5458_v41 }
 0x36e   : > { %5514 = vst.msk [vmem:[#allocation7 + $0x10] sm:$0xff] %vm5511_vm7, %v5504_v31 }
 0x36f   : > { %v5165_v43 = vpop.permute.xlu1 %5164 }
 0x376   : > { %v5661_v24 = vpop.permute.xlu0 %5660 }
 0x377   : > { %5671 = vst.msk [vmem:[#allocation7 + $0x10] sm:$0xff] %vm5668_vm8, %v5661_v24 }
 0x37a   : > { %v5754_v2 = vpop.permute.xlu0 %5753 }
 0x37b   : > { %5764 = vst.msk [vmem:[#allocation7 + $0x10] sm:$0xff] %vm11021_vm13, %v5754_v2  ;;  %vm5981_vm13 = vcmask 125952  }
 0x382   : > { %v5768_v34 = vld [vmem:[#allocation7 + $0x10] sm:$0xff] }
 0x383   : > { %8328 = vmatprep.mubr.msk.bf16.mxu1 %vm11022_vm14, %v5768_v34  ;;  %vm6098_vm14 = vsmask.f32 2306 }
 0x395   : > { %v5210_v56 = vpop.permute.xlu1 %5209 }
 0x399   : > { %v5506_v40 = vpop.permute.xlu1 %5505 }
 0x39d   : > { %v5072_v36 = vpop.permute.xlu1 %5071 }
 0x39e   : > { %5081 = vst.msk [vmem:[#allocation7 + $0x18] sm:$0xff] %vm5077_vm11, %v5072_v36  ;;  %vm11024_vm11 = vmmov %vm11019_vm5  ;;  %vm5941_vm5 = vcmask 130048  }
 0x39f   : > { %5174 = vst.msk [vmem:[#allocation7 + $0x18] sm:$0xff] %vm5170_vm10, %v5165_v43  ;;  %vm6007_vm10 = vcmask 122880  }
 0x3a0   : > { %5219 = vst.msk [vmem:[#allocation7 + $0x18] sm:$0xff] %vm5215_vm2, %v5210_v56  ;;  %vm6028_vm2 = vsmask.f32 7946  ;;  %vm10438_vm6 = vmand %vm6007_vm10, %vm11025_vm15  ;;  %vm6304_vm15 = vcmask 1040384  }
 0x3a1   : > { %v5460_v37 = vpop.permute.xlu1 %5459  ;;  %v6016_v47 = vsel %vm10438_vm6, 0, %v6015_v61  ;;  %v6013_v50 = vsel %vm10438_vm6, 0, %v6012_v46 }
 0x3a2   : > { %6017 = vst [vmem:[#allocation10 + $0x8] sm:$0x1] %v6016_v47  ;;  %6014 = vst [vmem:[#allocation10 + $0x4] sm:$0x1] %v6013_v50 }
 0x3a5   : > { %v5367_v51 = vpop.permute.xlu1 %5366 }
 0x3a6   : > { %5376 = vst.msk [vmem:[#allocation7 + $0x18] sm:$0xff] %vm5372_vm3, %v5367_v51  ;;  %vm10444_vm3 = vmand %vm6027_vm4, %vm6028_vm2 }
 0x3a7   : > { %5469 = vst.msk [vmem:[#allocation7 + $0x18] sm:$0xff] %vm5465_vm1, %v5460_v37  ;;  %vm6003_vm1 = vcmask 124928   ;;  %v6034_v48 = vsel %vm10444_vm3, 0, %v6033_v49  ;;  %v6037_v44 = vsel %vm10444_vm3, 0, %v6036_v21 }
 0x3a8   : > { %5515 = vst.msk [vmem:[#allocation7 + $0x18] sm:$0xff] %vm5511_vm7, %v5506_v40  ;;  %6035 = vst [vmem:[#allocation10 + $0x4] sm:$0x4] %v6034_v48 }
 0x3a9   : > { %v5663_v39 = vpop.permute.xlu1 %5662  ;;  %6006 = vst.msk [vmem:[#allocation10 + $0x14] sm:$0x7] %vm6003_vm1, %v8590_v3  ;;  %6038 = vst [vmem:[#allocation10 + $0x8] sm:$0x4] %v6037_v44 }
 0x3aa   : > { %5672 = vst.msk [vmem:[#allocation7 + $0x18] sm:$0xff] %vm5668_vm8, %v5663_v39 }
 0x3ab   : > { %6004 = vst.msk [vmem:[#allocation10] sm:$0x7] %vm6003_vm1, %v8590_v3 }
 0x3ad   : > { %v5756_v4 = vpop.permute.xlu1 %5755 }
 0x3ae   : > { %5765 = vst.msk [vmem:[#allocation7 + $0x18] sm:$0xff] %vm11023_vm0, %v5756_v4  ;;  %vm10495_vm0 = vmand %vm6003_vm1, %vm6098_vm14  ;;  %vm6309_vm1 = vcmask 1046534  }
 0x3b0   : > { %v6103_v48 = vld [vmem:[#allocation10 + $0x8] sm:$0x7] }
 0x3b2   : > { %v6030_v55 = vld [vmem:[#allocation10] sm:$0x4]  ;;  %v6009_v20 = vld [vmem:[#allocation10] sm:$0x1] }
 0x3b3   : > { %v6031_v16 = vsel %vm10444_vm3, 0, %v6030_v55  ;;  %v6010_v57 = vsel %vm10438_vm6, 0, %v6009_v20  ;;  %v6100_v55 = vld [vmem:[#allocation10 + $0x4] sm:$0x7] }
 0x3b4   : > { %6032 = vst [vmem:[#allocation10] sm:$0x4] %v6031_v16  ;;  %6011 = vst [vmem:[#allocation10] sm:$0x1] %v6010_v57 }
 0x3b5   : > { %v5769_v13 = vld [vmem:[#allocation7 + $0x18] sm:$0xff] }
 0x3b6   : > { %8329 = vmatmul.mubr.msk.bf16.gmra.mrb[4].mxu1 %vm11024_vm11, %v5769_v13 }
 0x3f8   : > { %v8326_v9 = vpop.f32.mrb[0].mxu1 }
 0x3f9   : > { %v5871_v63 = vadd.f32 %v8326_v9, %v10466_v6  ;;  %v5862_v60 = vpop.f32.mrb[1].mxu1  ;;  %v6021_v9 = vld [vmem:[#allocation10 + $0x10] sm:$0x1] }
 0x3fa   : > { %v5863_v7 = vadd.f32 %v5862_v60, %v10466_v6  ;;  %v8327_v5 = vpop.f32.mrb[2].mxu1  ;;  %v6019_v60 = vsel %vm10438_vm6, 0, %v6018_v58 }
 0x3fb   : > { %vm5895_vm7 = vcmp.ge.f32.partialorder %v5871_v63, 0.0  ;;  %v5903_v28 = vmul.f32 0.01, %v5871_v63  ;;  %v5874_v10 = vadd.f32 %v8327_v5, %v10466_v6  ;;  %v5865_v59 = vpop.f32.mrb[3].mxu1  ;;  %6020 = vst [vmem:[#allocation10 + $0xc] sm:$0x1] %v6019_v60 }
 0x3fc   : > { %vm5893_vm8 = vcmp.ge.f32.partialorder %v5863_v7, 0.0  ;;  %v5901_v0 = vmul.f32 0.01, %v5863_v7  ;;  %v5866_v30 = vadd.f32 %v5865_v59, %v10466_v6  ;;  %v6045_v59 = vld [vmem:[#allocation10 + $0x14] sm:$0x4] }
 0x3fd   : > { %v5911_v35 = vsel %vm5895_vm7, %v5871_v63, %v5903_v28  ;;  %vm5896_vm9 = vcmp.ge.f32.partialorder %v5874_v10, 0.0  ;;  %v5904_v52 = vmul.f32 0.01, %v5874_v10  ;;  %v6039_v63 = vld [vmem:[#allocation10 + $0xc] sm:$0x4] }
 0x3fe   : > { %v5923_v29 = vmul.f32 %v10470_v19, %v5911_v35  ;;  %v5909_v62 = vsel %vm5893_vm8, %v5863_v7, %v5901_v0  ;;  %vm5894_vm12 = vcmp.ge.f32.partialorder %v5866_v30, 0.0  ;;  %v5902_v27 = vmul.f32 0.01, %v5866_v30  ;;  %v6042_v28 = vld [vmem:[#allocation10 + $0x10] sm:$0x4] }
 0x3ff   : > { %v5921_v42 = vmul.f32 %v10470_v19, %v5909_v62  ;;  %v5912_v22 = vsel %vm5896_vm9, %v5874_v10, %v5904_v52  ;;  %v6022_v7 = vsel %vm10438_vm6, 0, %v6021_v9  ;;  %v6040_v5 = vsel %vm10444_vm3, 0, %v6039_v63  ;;  %v8486_v52 = vld [vmem:[%s10931_s5] sm:$0xff]  }
 0x400   : > { %v5935_v54 = vadd.f32 %v10475_v23, %v5923_v29  ;;  %v5924_v17 = vmul.f32 %v10470_v19, %v5912_v22  ;;  %v5910_v15 = vsel %vm5894_vm12, %v5866_v30, %v5902_v27  ;;  %6023 = vst [vmem:[#allocation10 + $0x10] sm:$0x1] %v6022_v7  ;;  %6041 = vst [vmem:[#allocation10 + $0xc] sm:$0x4] %v6040_v5  ;;  %v6043_v10 = vsel %vm10444_vm3, 0, %v6042_v28  ;;  %v8487_v29 = vld [vmem:[%s10931_s5 + $0x8] sm:$0xff]  }
 0x401   : > { %v5933_v18 = vadd.f32 %v10475_v23, %v5921_v42  ;;  %v5922_v25 = vmul.f32 %v10470_v19, %v5910_v15  ;;  %6044 = vst [vmem:[#allocation10 + $0x10] sm:$0x4] %v6043_v10  ;;  %v6046_v0 = vsel %vm10444_vm3, 0, %v6045_v59  ;;  %v6024_v30 = vld [vmem:[#allocation10 + $0x14] sm:$0x1]  ;;  %6882 = vmatpush1.bf16.msra.mxu1 %v8486_v52  ;;  %vm6307_vm3 = vcmask 1044484  }
 0x402   : > { %5944 = vst.msk [vmem:[#allocation8 + $0x10] sm:$0xff] %vm5941_vm5, %v5935_v54  ;;  %v5936_v8 = vadd.f32 %v10475_v23, %v5924_v17  ;;  %6047 = vst [vmem:[#allocation10 + $0x14] sm:$0x4] %v6046_v0  ;;  %v6025_v35 = vsel %vm10438_vm6, 0, %v6024_v30  ;;  %6883 = vmatprep.subr.bf16.mxu1 %v8590_v3  ;;  %vm6305_vm6 = vcmask 1042434  }
 0x403   : > { %5942 = vst.msk [vmem:[#allocation8] sm:$0xff] %vm5941_vm5, %v5933_v18  ;;  %v5934_v1 = vadd.f32 %v10475_v23, %v5922_v25  ;;  %6026 = vst [vmem:[#allocation10 + $0x14] sm:$0x1] %v6025_v35  ;;  %v8603_v28 = vmov 1983009808  }
 0x404   : > { %5945 = vst.msk [vmem:[#allocation8 + $0x18] sm:$0xff] %vm5941_vm5, %v5936_v8  ;;  %vm10553_vm7 = vmor %vm6304_vm15, %vm6305_vm6  ;;  %v6123_v10 = vunpack.c.l.s4 %v8603_v28  ;;  %vm6179_vm8 = vsmask.f32 1280  ;;  %vm6180_vm9 = vsmask.f32 3336  ;;  %vm6347_vm15 = vcmask 392448  }
 0x405   : > { %5943 = vst.msk [vmem:[#allocation8 + $0x8] sm:$0xff] %vm5941_vm5, %v5934_v1  ;;  %6884 = vmatpush1.bf16.msra.mxu1 %v8487_v29  ;;  %vm10563_vm12 = vmor %vm10553_vm7, %vm6307_vm3  ;;  %vm6377_vm6 = vcmask 523648   ;;  %vm6495_vm3 = vcmask 654848   ;;  %vm6604_vm7 = vcmask 917248  }
 0x406   : > { %6885 = vmatprep.subr.bf16.mxu1 %v8590_v3  ;;  %vm10573_vm14 = vmor %vm10563_vm12, %vm6309_vm1  ;;  %vm6573_vm1 = vcmask 786048   ;;  %vm6998_vm12 = vcmask 254977  }
 0x409   : > { %6886 = vmatpush1.bf16.msra.mxu1 %v8488_v45 }
 0x40a   : > { %6887 = vmatprep.subr.bf16.mxu1 %v8590_v3 }
 0x40b   : > { %v5952_v11 = vld [vmem:[#allocation8 + $0x10] ss:$2 sm:$0xff]  ;;  %v5960_v26 = vld [vmem:[#allocation8 + $0x11] ss:$2 sm:$0xff] }
 0x40c   : > { %v5966_v41 = vmax.f32 %v5952_v11, %v5960_v26  ;;  %v5950_v31 = vld [vmem:[#allocation8] ss:$2 sm:$0xff]  ;;  %v5958_v32 = vld [vmem:[#allocation8 + $0x1] ss:$2 sm:$0xff] }
 0x40d   : > { %v5965_v24 = vmax.f32 %v5950_v31, %v5958_v32 }
 0x40e   : > { %v5974_v2 = vcombine.high %v5966_v41, %v5966_v41  ;;  %5984 = vst.msk [vmem:[#allocation9 + $0x8] sm:$0xf] %vm5981_vm13, %v5966_v41 }
 0x40f   : > { %v5973_v34 = vcombine.high %v5965_v24, %v5965_v24  ;;  %5982 = vst.msk [vmem:[#allocation9] sm:$0xf] %vm5981_vm13, %v5965_v24 }
 0x410   : > { %5985 = vst.msk [vmem:[#allocation9 + $0xc] sm:$0xf] %vm5981_vm13, %v5974_v2 }
 0x411   : > { %5983 = vst.msk [vmem:[#allocation9 + $0x4] sm:$0xf] %vm5981_vm13, %v5973_v34 }
 0x415   : > { %v5991_v43 = vld [vmem:[#allocation9 + $0x8] sm:$0xf] }
 0x416   : > { %v5990_v40 = vld [vmem:[#allocation9] sm:$0xf] }
 0x417   : > { %v5996_v56 = vld [vmem:[#allocation9 + $0xc] sm:$0xf] }
 0x418   : > { %v5995_v36 = vld [vmem:[#allocation9 + $0x4] sm:$0xf]  ;;  %v6000_v37 = vmax.f32 %v5991_v43, %v5996_v56 }
 0x419   : > { %v5999_v51 = vmax.f32 %v5990_v40, %v5995_v36 }
 0x41a   : > { %v8215_v39 = vpack.c.bf16 %v6000_v37, %v6000_v37 }
 0x41b   : > { %v8214_v4 = vpack.c.bf16 %v5999_v51, %v5999_v51 }
 0x41c   : > { %v6072_v13 = vshrl.u32 %v8215_v39, 16  ;;  %v6075_v46 = vshll.u32 %v8215_v39, 16 }
 0x41d   : > { %v6065_v61 = vshrl.u32 %v8214_v4, 16  ;;  %v6068_v49 = vshll.u32 %v8214_v4, 16 }
 0x41e   : > { %v6074_v21 = vrot.slane %v6072_v13, 7 }
 0x41f   : > { %v6067_v47 = vrot.slane %v6065_v61, 7 }
 0x420   : > { %v6077_v44 = vor.u32 %v6075_v46, %v6074_v21  ;;  %v8111_v21 = vld.sshfl [vmem:[#allocation10] sm:$0x13 pattern:$0x76325410] }
 0x421   : > { %v6070_v16 = vor.u32 %v6068_v49, %v6067_v47  ;;  %v6154_v0 = vcombine.high %v8111_v21, %v8111_v21 }
 0x422   : > { %v6104_v20 = vsel %vm10495_vm0, %v6077_v44, %v6103_v48  ;;  %v6187_v44 = vshrl.u32 %v8111_v21, 16 }
 0x423   : > { %v6101_v57 = vsel %vm10495_vm0, %v6070_v16, %v6100_v55  ;;  %6105 = vst [vmem:[#allocation10 + $0x8] sm:$0x7] %v6104_v20 }
 0x424   : > { %6102 = vst [vmem:[#allocation10 + $0x4] sm:$0x7] %v6101_v57  ;;  %v6190_v57 = vshll.u32 %v8111_v21, 16  ;;  %v6189_v52 = vrot.slane %v6187_v44, 6 }
 0x42a   : > { %v8124_v59 = vld.sshfl [vmem:[#allocation10 + $0x8] sm:$0x13 pattern:$0x76325410] }
 0x42b   : > { %v10551_v47 = vld.sshfl [vmem:[#allocation10 + $0x4] sm:$0x12 pattern:$0x76325410] }
 0x42c   : > { %v8123_v7 = vld.sshfl [vmem:[#allocation10 + $0x4] sm:$0x13 pattern:$0x76325410]  ;;  %v6287_v35 = vcombine.high %v10551_v47, %v10551_v47 }
 0x489   : > { %v8330_v14 = vpop.f32.mrb[4].mxu1 }
 0x48a   : > { %v5887_v62 = vadd.f32 %v8330_v14, %v10466_v6  ;;  %v5878_v27 = vpop.f32.mrb[5].mxu1  ;;  %v6420_v14 = vshrl.u32 %v8123_v7, 16 }
 0x48b   : > { %v5879_v42 = vadd.f32 %v5878_v27, %v10466_v6  ;;  %v8331_v22 = vpop.f32.mrb[6].mxu1  ;;  %v6192_v27 = vrot.slane %v6190_v57, 7 }
 0x48c   : > { %vm5899_vm11 = vcmp.ge.f32.partialorder %v5887_v62, 0.0  ;;  %v5907_v54 = vmul.f32 0.01, %v5887_v62  ;;  %v5890_v17 = vadd.f32 %v8331_v22, %v10466_v6  ;;  %v5881_v15 = vpop.f32.mrb[7].mxu1  ;;  %v6434_v22 = vshrl.u32 %v8124_v59, 16 }
 0x48d   : > { %vm5897_vm10 = vcmp.ge.f32.partialorder %v5879_v42, 0.0  ;;  %v5905_v18 = vmul.f32 0.01, %v5879_v42  ;;  %v5882_v25 = vadd.f32 %v5881_v15, %v10466_v6 }
 0x48e   : > { %v5915_v8 = vsel %vm5899_vm11, %v5887_v62, %v5907_v54  ;;  %vm5900_vm4 = vcmp.ge.f32.partialorder %v5890_v17, 0.0  ;;  %v5908_v1 = vmul.f32 0.01, %v5890_v17  ;;  %v6423_v62 = vshll.u32 %v8123_v7, 16  ;;  %vm10579_vm11 = vmor %vm6179_vm8, %vm6180_vm9 }
 0x48f   : > { %v5927_v11 = vmul.f32 %v10470_v19, %v5915_v8  ;;  %v5913_v26 = vsel %vm5897_vm10, %v5879_v42, %v5905_v18  ;;  %vm5898_vm2 = vcmp.ge.f32.partialorder %v5882_v25, 0.0  ;;  %v5906_v41 = vmul.f32 0.01, %v5882_v25 }
 0x490   : > { %v5925_v31 = vmul.f32 %v10470_v19, %v5913_v26  ;;  %v5916_v32 = vsel %vm5900_vm4, %v5890_v17, %v5908_v1  ;;  %v6437_v54 = vshll.u32 %v8124_v59, 16  ;;  %v10567_v18 = vld.sshfl [vmem:[#allocation10 + $0x8] sm:$0x12 pattern:$0x76325410]  ;;  %v6196_v8 = vshll.u32 %v6154_v0, 16 }
 0x491   : > { %v5939_v24 = vadd.f32 %v10475_v23, %v5927_v11  ;;  %v5928_v2 = vmul.f32 %v10470_v19, %v5916_v32  ;;  %v5914_v34 = vsel %vm5898_vm2, %v5882_v25, %v5906_v41  ;;  %v8120_v25 = vrot.slane %v10551_v47, 9  ;;  %v6109_v26 = vld [vmem:[#allocation10 + $0x10] sm:$0x7] }
 0x492   : > { %v5937_v43 = vadd.f32 %v10475_v23, %v5925_v31  ;;  %v5926_v6 = vmul.f32 %v10470_v19, %v5914_v34  ;;  %v6317_v31 = vrot.slane %v6287_v35, 7  ;;  %v6394_v32 = vcombine.high %v8123_v7, %v8123_v7  ;;  %v8520_v7 = vld.sshfl [vmem:[#allocation10 + $0x4] sm:$0xf pattern:$0x76325410] }
 0x493   : > { %5948 = vst.msk [vmem:[#allocation8 + $0x30] sm:$0xff] %vm5941_vm5, %v5939_v24  ;;  %v5940_v56 = vadd.f32 %v10475_v23, %v5928_v2  ;;  %v6106_v2 = vld [vmem:[#allocation10 + $0xc] sm:$0x7]  ;;  %v6402_v34 = vcombine.high %v8124_v59, %v8124_v59  ;;  %vm6184_vm10 = vsmask.f32 7448  ;;  %v6295_v21 = vcombine.high %v10567_v18, %v10567_v18 }
 0x494   : > { %5946 = vst.msk [vmem:[#allocation8 + $0x20] sm:$0xff] %vm5941_vm5, %v5937_v43  ;;  %v5938_v40 = vadd.f32 %v10475_v23, %v5926_v6  ;;  %v10547_v23 = vld.sshfl [vmem:[#allocation10] sm:$0x12 pattern:$0x76325410]  ;;  %v6422_v43 = vrot.slane %v6420_v14, 6 }
 0x495   : > { %5949 = vst.msk [vmem:[#allocation8 + $0x38] sm:$0xff] %vm5941_vm5, %v5940_v56  ;;  %v6279_v46 = vcombine.high %v10547_v23, %v10547_v23  ;;  %v8119_v63 = vrot.slane %v10547_v23, 9  ;;  %v6425_v6 = vrot.slane %v6423_v62, 7  ;;  %v6429_v47 = vshll.u32 %v6394_v32, 16 }
 0x496   : > { %5947 = vst.msk [vmem:[#allocation8 + $0x28] sm:$0xff] %vm5941_vm5, %v5938_v40  ;;  %v6124_v40 = vunpack.c.0.s8 %v6123_v10  ;;  %v6443_v44 = vshll.u32 %v6402_v34, 16  ;;  %v6321_v28 = vrot.slane %v6295_v21, 7  ;;  %vm6262_vm2 = vcmask 261248  }
 0x497   : > { %v6313_v60 = vrot.slane %v6279_v46, 7  ;;  %v10595_v46 = vsel %vm10573_vm14, %v8120_v25, %v6317_v31  ;;  %v6431_v0 = vrot.slane %v6429_v47, 7  ;;  %vm6969_vm8 = vcmask 254976  }
 0x498   : > { %v10610_v9 = vsub.s32 %v6124_v40, %v9973_v12  ;;  %v6445_v35 = vrot.slane %v6443_v44, 7  ;;  %v8490_v40 = vld [vmem:[%s10931_s5 + $0x20] sm:$0xff]   ;;  %6981 = vst.msk [vmem:[#allocation14] sm:$0x3] %vm6969_vm8, %v8590_v3  ;;  %6983 = vst.msk [vmem:[#allocation14 + $0x6] sm:$0x3] %vm6969_vm8, %v8590_v3 }
 0x499   : > { %vm6984_vm9 = vcmask 253952  }
 0x49c   : > { %v5956_v36 = vld [vmem:[#allocation8 + $0x30] ss:$2 sm:$0xff]  ;;  %v5964_v37 = vld [vmem:[#allocation8 + $0x31] ss:$2 sm:$0xff] }
 0x49d   : > { %v5968_v51 = vmax.f32 %v5956_v36, %v5964_v37  ;;  %v5954_v39 = vld [vmem:[#allocation8 + $0x20] ss:$2 sm:$0xff]  ;;  %v5962_v4 = vld [vmem:[#allocation8 + $0x21] ss:$2 sm:$0xff]  ;;  %v6436_v37 = vrot.slane %v6434_v22, 6 }
 0x49e   : > { %v5967_v13 = vmax.f32 %v5954_v39, %v5962_v4  ;;  %v8138_v39 = vld.sshfl [vmem:[#allocation10 + $0x14] sm:$0x13 pattern:$0x76325410] }
 0x49f   : > { %v5976_v61 = vcombine.high %v5968_v51, %v5968_v51  ;;  %5988 = vst.msk [vmem:[#allocation9 + $0x18] sm:$0xf] %vm5981_vm13, %v5968_v51  ;;  %v6439_v51 = vrot.slane %v6437_v54, 7 }
 0x4a0   : > { %v5975_v19 = vcombine.high %v5967_v13, %v5967_v13  ;;  %5986 = vst.msk [vmem:[#allocation9 + $0x10] sm:$0xf] %vm5981_vm13, %v5967_v13  ;;  %v6314_v13 = vsel %vm10573_vm14, %v8119_v63, %v6313_v60  ;;  %v6198_v60 = vrot.slane %v6196_v8, 7 }
 0x4a1   : > { %5989 = vst.msk [vmem:[#allocation9 + $0x1c] sm:$0xf] %vm5981_vm13, %v5976_v61  ;;  %v6193_v61 = vor.u32 %v6192_v27, %v6189_v52  ;;  %v6327_v10 = vcombine.low %v6314_v13, %v10595_v46 }
 0x4a2   : > { %5987 = vst.msk [vmem:[#allocation9 + $0x14] sm:$0xf] %vm5981_vm13, %v5975_v19  ;;  %vm6182_vm13 = vsmask.f32 5392 }
 0x4a3   : > { %v10587_v19 = vld.sshfl [vmem:[#allocation10 + $0x14] sm:$0x12 pattern:$0x76325410]  ;;  %vm10603_vm4 = vmor %vm10579_vm11, %vm6182_vm13  ;;  %v6194_v63 = vrot.slane %v6193_v61, 2 }
 0x4a4   : > { %v6763_v57 = vcombine.high %v10587_v19, %v10587_v19  ;;  %v8146_v14 = vrot.slane %v10587_v19, 9  ;;  %vm6999_vm13 = vsmask.f32 7942 }
 0x4a6   : > { %v5993_v49 = vld [vmem:[#allocation9 + $0x18] sm:$0xf]  ;;  %v6778_v62 = vrot.slane %v6763_v57, 7 }
 0x4a7   : > { %v5992_v55 = vld [vmem:[#allocation9 + $0x10] sm:$0xf] }
 0x4a8   : > { %v5998_v48 = vld [vmem:[#allocation9 + $0x1c] sm:$0xf] }
 0x4a9   : > { %v5997_v16 = vld [vmem:[#allocation9 + $0x14] sm:$0xf]  ;;  %v6002_v20 = vmax.f32 %v5993_v49, %v5998_v48  ;;  %v6426_v48 = vor.u32 %v6425_v6, %v6422_v43 }
 0x4aa   : > { %v6001_v58 = vmax.f32 %v5992_v55, %v5997_v16  ;;  %v8489_v49 = vld [vmem:[%s10931_s5 + $0x18] sm:$0xff]   ;;  %v6689_v55 = vshrl.u32 %v8138_v39, 16  ;;  %v6692_v16 = vshll.u32 %v8138_v39, 16 }
 0x4ab   : > { %v8217_v5 = vpack.c.bf16 %v6002_v20, %v6002_v20  ;;  %v6440_v20 = vor.u32 %v6439_v51, %v6436_v37  ;;  %6888 = vmatpush1.bf16.msra.mxu1 %v8489_v49  ;;  %v6779_v49 = vsel %vm10573_vm14, %v8146_v14, %v6778_v62 }
 0x4ac   : > { %v8216_v30 = vpack.c.bf16 %v6001_v58, %v6001_v58  ;;  %v6645_v58 = vcombine.high %v8138_v39, %v8138_v39  ;;  %6889 = vmatprep.subr.bf16.mxu1 %v8590_v3  ;;  %v6691_v52 = vrot.slane %v6689_v55, 6 }
 0x4ad   : > { %v6086_v29 = vshrl.u32 %v8217_v5, 16  ;;  %v6089_v15 = vshll.u32 %v8217_v5, 16  ;;  %v8121_v5 = vrot.slane %v10567_v18, 9  ;;  %v6441_v45 = vrot.slane %v6440_v20, 2 }
 0x4ae   : > { %v6079_v42 = vshrl.u32 %v8216_v30, 16  ;;  %v6082_v11 = vshll.u32 %v8216_v30, 16  ;;  %v6427_v30 = vrot.slane %v6426_v48, 2  ;;  %v10623_v27 = vshll.u32 %v6645_v58, 16  ;;  %v8493_v58 = vld [vmem:[%s10931_s5 + $0x28] sm:$0xff]  }
 0x4af   : > { %v6088_v17 = vrot.slane %v6086_v29, 7  ;;  %v6694_v29 = vrot.slane %v6692_v16, 7  ;;  %v10631_v8 = vsel %vm10573_vm14, %v8121_v5, %v6321_v28  ;;  %6890 = vmatpush1.bf16.msra.mxu1 %v8490_v40  ;;  %v8523_v48 = vld.sshfl [vmem:[#allocation10] sm:$0xf pattern:$0x76325410] }
 0x4b0   : > { %v6081_v1 = vrot.slane %v6079_v42, 7  ;;  %6891 = vmatprep.subr.bf16.mxu1 %v8590_v3  ;;  %v6700_v5 = vrot.slane %v10623_v27, 7 }
 0x4b1   : > { %v6091_v24 = vor.u32 %v6089_v15, %v6088_v17 }
 0x4b2   : > { %v6084_v56 = vor.u32 %v6082_v11, %v6081_v1  ;;  %v6335_v1 = vrot.slane %v6327_v10, %v10610_v9 }
 0x4b3   : > { %v6110_v4 = vsel %vm10495_vm0, %v6091_v24, %v6109_v26  ;;  %v6695_v26 = vor.u32 %v6694_v29, %v6691_v52  ;;  %6892 = vmatpush1.bf16.msra.mxu1 %v8493_v58  ;;  %v7007_v58 = vld [vmem:[#allocation14 + $0x4] sm:$0x2] }
 0x4b4   : > { %v6107_v23 = vsel %vm10495_vm0, %v6084_v56, %v6106_v2  ;;  %6111 = vst [vmem:[#allocation10 + $0x10] sm:$0x7] %v6110_v4  ;;  %vm10618_vm0 = vmor %vm10603_vm4, %vm6184_vm10  ;;  %6893 = vmatprep.subr.bf16.mxu1 %v8590_v3 }
 0x4b5   : > { %6108 = vst [vmem:[#allocation10 + $0xc] sm:$0x7] %v6107_v23  ;;  %v10627_v22 = vsel %vm10618_vm0, %v6194_v63, %v6198_v60  ;;  %v10636_v11 = vsel %vm10618_vm0, %v6427_v30, %v6431_v0  ;;  %v6446_v51 = vsel %vm10618_vm0, %v6441_v45, %v6445_v35  ;;  %v6696_v50 = vrot.slane %v6695_v26, 2  ;;  %v8494_v30 = vld [vmem:[%s10931_s5 + $0x30] sm:$0xff]   ;;  %vm10706_vm10 = vmand %vm6998_vm12, %vm6999_vm13 }
 0x4b6   : > { %v6475_v35 = vcombine.low %v10636_v11, %v6446_v51  ;;  %v6242_v52 = vcombine.low %v10627_v22, %v10636_v11  ;;  %v6553_v22 = vcombine.low %v10595_v46, %v10631_v8 }
 0x4b7   : > { %6894 = vmatpush1.bf16.msra.mxu1 %v8494_v30  ;;  %v8497_v30 = vld [vmem:[%s10933_s7 + $0x40] sm:$0xff]  }
 0x4b8   : > { %v6483_v11 = vrot.slane %v6475_v35, %v10610_v9  ;;  %v6250_v59 = vrot.slane %v6242_v52, %v10610_v9  ;;  %6895 = vmatprep.subr.bf16.mxu1 %v8590_v3  ;;  %v8498_v35 = vld [vmem:[%s10933_s7] sm:$0xff]   ;;  %v8499_v52 = vld [vmem:[%s10933_s7 + $0x48] sm:$0xff]   ;;  %8246 = vmatprep.subr.bf16.mxu0 %v8497_v30 }
 0x4b9   : > { %8247 = vmatpush3.bf16.msra.mxu0 %v8498_v35 }
 0x4ba   : > { %8248 = vmatprep.subr.bf16.mxu0 %v8499_v52 }
 0x4bb   : > { %v8126_v42 = vld.sshfl [vmem:[#allocation10 + $0x10] sm:$0x13 pattern:$0x76325410] }
 0x4bc   : > { %v8521_v54 = vld.sshfl [vmem:[#allocation10 + $0xc] sm:$0xf pattern:$0x76325410]  ;;  %v6418_v17 = vcombine.high %v8126_v42, %v8126_v42  ;;  %v6462_v15 = vshrl.u32 %v8126_v42, 16  ;;  %v6465_v18 = vshll.u32 %v8126_v42, 16 }
 0x4bd   : > { %v8118_v25 = vld.sshfl [vmem:[#allocation10 + $0xc] sm:$0x12 pattern:$0x76325410]  ;;  %v6373_v36 = vcombine.low %v8520_v7, %v8521_v54 }
 0x4be   : > { %v6303_v31 = vcombine.high %v8118_v25, %v8118_v25  ;;  %v8122_v32 = vrot.slane %v8118_v25, 9  ;;  %v8125_v24 = vld.sshfl [vmem:[#allocation10 + $0xc] sm:$0x13 pattern:$0x76325410]  ;;  %v6464_v2 = vrot.slane %v6462_v15, 6 }
 0x4bf   : > { %v6410_v34 = vcombine.high %v8125_v24, %v8125_v24  ;;  %v6448_v43 = vshrl.u32 %v8125_v24, 16  ;;  %v6451_v6 = vshll.u32 %v8125_v24, 16  ;;  %v6467_v56 = vrot.slane %v6465_v18, 7  ;;  %6374 = vrot.lane.b32.xlu0 %v6373_v36, %s8600_s12  ;;  %s8605_s12 = smov 80  }
 0x4c0   : > { %v6325_v37 = vrot.slane %v6303_v31, 7  ;;  %v6471_v39 = vshll.u32 %v6418_v17, 16  ;;  %v8141_v4 = vld.sshfl [vmem:[#allocation10 + $0x10] sm:$0x12 pattern:$0x76325410]  ;;  %v6701_v18 = vsel %vm10618_vm0, %v6696_v50, %v6700_v5 }
 0x4c1   : > { %v6450_v13 = vrot.slane %v6448_v43, 6  ;;  %v6453_v61 = vrot.slane %v6451_v6, 7  ;;  %v6457_v19 = vshll.u32 %v6410_v34, 16  ;;  %v6468_v23 = vor.u32 %v6467_v56, %v6464_v2  ;;  %v8496_v34 = vld [vmem:[%s10931_s5 + $0x40] sm:$0xff]   ;;  %v7001_v50 = vld [vmem:[#allocation14] sm:$0x2] }
 0x4c2   : > { %v6326_v21 = vsel %vm10573_vm14, %v8122_v32, %v6325_v37  ;;  %v6755_v47 = vcombine.high %v8141_v4, %v8141_v4  ;;  %v6473_v20 = vrot.slane %v6471_v39, 7  ;;  %v8522_v57 = vld.sshfl [vmem:[#allocation10 + $0x8] sm:$0xf pattern:$0x76325410]  ;;  %v8145_v60 = vrot.slane %v8141_v4, 9 }
 0x4c3   : > { %v6328_v44 = vcombine.low %v10631_v8, %v6326_v21  ;;  %v6454_v55 = vor.u32 %v6453_v61, %v6450_v13  ;;  %v6469_v16 = vrot.slane %v6468_v23, 2  ;;  %v6459_v63 = vrot.slane %v6457_v19, 7  ;;  %v8524_v27 = vld.sshfl [vmem:[#allocation10 + $0x8] sm:$0xf pattern:$0x76325410] }
 0x4c4   : > { %v6774_v7 = vrot.slane %v6755_v47, 7  ;;  %v8525_v42 = vld.sshfl [vmem:[#allocation10 + $0x10] sm:$0xf pattern:$0x76325410]  ;;  %v6136_v25 = vcombine.low %v8523_v48, %v8522_v57  ;;  %v6561_v43 = vrot.slane %v6553_v22, %v10610_v9 }
 0x4c5   : > { %v6342_v28 = vrot.slane %v6328_v44, %v10610_v9  ;;  %v6455_v10 = vrot.slane %v6454_v55, 2  ;;  %v6474_v0 = vsel %vm10618_vm0, %v6469_v16, %v6473_v20  ;;  %v6600_v6 = vcombine.low %v8524_v27, %v8525_v42  ;;  %v6989_v47 = vld [vmem:[#allocation14 + $0x2] sm:$0x1]  ;;  %v7004_v48 = vld [vmem:[#allocation14 + $0x2] sm:$0x2]  ;;  %v8504_v27 = vld [vmem:[%s10933_s7 + $0x18] sm:$0xff]  }
 0x4c6   : > { %v6775_v29 = vsel %vm10573_vm14, %v8145_v60, %v6774_v7  ;;  %v6703_v24 = vcombine.low %v6474_v0, %v6701_v18  ;;  %6138 = vst.msk [vmem:[#allocation11] sm:$0xff] %vm5941_vm5, %v6136_v25  ;;  %vm11044_vm14 = vsmask.f32 256  ;;  %v7005_v16 = vsel %vm10706_vm10, 0, %v7004_v48  ;;  %v6992_v20 = vld [vmem:[#allocation14 + $0x4] sm:$0x1] }
 0x4c7   : > { %v6343_v45 = vcombine.low %v6335_v1, %v6342_v28  ;;  %v6460_v14 = vsel %vm10618_vm0, %v6455_v10, %v6459_v63  ;;  %v6781_v62 = vcombine.low %v6775_v29, %v6779_v49  ;;  %v6554_v15 = vcombine.low %v6326_v21, %v6775_v29  ;;  %v8495_v1 = vld [vmem:[%s10931_s5 + $0x38] sm:$0xff]   ;;  %vm10700_vm11 = vmand %vm6984_vm9, %vm11044_vm14  ;;  %7006 = vst [vmem:[#allocation14 + $0x2] sm:$0x2] %v7005_v16  ;;  %v6986_v60 = vld [vmem:[#allocation14] sm:$0x1] }
 0x4c8   : > { %v6476_v54 = vcombine.low %v6460_v14, %v6474_v0  ;;  %v6243_v17 = vcombine.low %v6446_v51, %v6460_v14  ;;  %6896 = vmatpush1.bf16.msra.mxu1 %v8495_v1  ;;  %v6717_v40 = vrot.slane %v6703_v24, %v10610_v9  ;;  %v6990_v44 = vsel %vm10700_vm11, 0, %v6989_v47  ;;  %v6995_v5 = vld [vmem:[#allocation14 + $0x6] sm:$0x1]  ;;  %v8502_v14 = vld [vmem:[%s10933_s7 + $0x10] sm:$0xff]   ;;  %v8505_v42 = vld [vmem:[%s10933_s7 + $0x60] sm:$0xff]  }
 0x4c9   : > { %6344 = vrot.lane.b32.xlu1 %v6343_v45, %s10979_s29  ;;  %v6795_v41 = vrot.slane %v6781_v62, %v10610_v9  ;;  %v6568_v2 = vrot.slane %v6554_v15, %v10610_v9  ;;  %6897 = vmatprep.subr.bf16.mxu1 %v8590_v3  ;;  %6991 = vst [vmem:[#allocation14 + $0x2] sm:$0x1] %v6990_v44  ;;  %v7002_v3 = vsel %vm10706_vm10, 0, %v7001_v50  ;;  %v6993_v57 = vsel %vm10700_vm11, 0, %v6992_v20  ;;  %v8500_v29 = vld [vmem:[%s10933_s7 + $0x8] sm:$0xff]   ;;  %v8501_v45 = vld [vmem:[%s10933_s7 + $0x50] sm:$0xff]  }
 0x4ca   : > { %v6490_v26 = vrot.slane %v6476_v54, %v10610_v9  ;;  %v6257_v31 = vrot.slane %v6243_v17, %v10610_v9  ;;  %7003 = vst [vmem:[#allocation14] sm:$0x2] %v7002_v3  ;;  %6994 = vst [vmem:[#allocation14 + $0x4] sm:$0x1] %v6993_v57  ;;  %v7008_v63 = vsel %vm10706_vm10, 0, %v7007_v58  ;;  %v6987_v7 = vsel %vm10700_vm11, 0, %v6986_v60  ;;  %8249 = vmatpush3.bf16.msra.mxu0 %v8500_v29 }
 0x4cb   : > { %v6796_v32 = vcombine.low %v6342_v28, %v6795_v41  ;;  %v6569_v56 = vcombine.low %v6561_v43, %v6568_v2  ;;  %7009 = vst [vmem:[#allocation14 + $0x4] sm:$0x2] %v7008_v63  ;;  %6988 = vst [vmem:[#allocation14] sm:$0x1] %v6987_v7  ;;  %v7010_v28 = vld [vmem:[#allocation14 + $0x6] sm:$0x2]  ;;  %8250 = vmatprep.subr.bf16.mxu0 %v8501_v45 }
 0x4cc   : > { %v6491_v46 = vcombine.low %v6483_v11, %v6490_v26  ;;  %v6258_v8 = vcombine.low %v6250_v59, %v6257_v31  ;;  %6898 = vmatpush1.bf16.msra.mxu1 %v8496_v34  ;;  %v6718_v37 = vcombine.low %v6257_v31, %v6717_v40  ;;  %v6996_v10 = vsel %vm10700_vm11, 0, %v6995_v5  ;;  %v8503_v62 = vld [vmem:[%s10933_s7 + $0x58] sm:$0xff]   ;;  %v8506_v54 = vld [vmem:[%s10933_s7 + $0x20] sm:$0xff]   ;;  %v8507_v17 = vld [vmem:[%s10933_s7 + $0x68] sm:$0xff]  }
 0x4cd   : > { %6798 = vst.msk [vmem:[#allocation11 + $0x8] sm:$0xff] %vm5941_vm5, %v6796_v32  ;;  %v7011_v0 = vsel %vm10706_vm10, 0, %v7010_v28  ;;  %6997 = vst [vmem:[#allocation14 + $0x6] sm:$0x1] %v6996_v10  ;;  %v8508_v15 = vld [vmem:[%s10933_s7 + $0x28] sm:$0xff]  }
 0x4ce   : > { %6492 = vrot.lane.b32.xlu1 %v6491_v46, %s11017_s14  ;;  %6259 = vrot.lane.b32.xlu0 %v6258_v8, %s11015_s30  ;;  %7012 = vst [vmem:[#allocation14 + $0x6] sm:$0x2] %v7011_v0  ;;  %v6819_v18 = vld [vmem:[%s10932_s6] sm:$0x7]  ;;  %vm7095_vm9 = vsmask.f32 3340 }
 0x4cf   : > { %8251 = vmatpush3.bf16.msra.mxu0 %v8502_v14  ;;  %v6823_v41 = vrot.slane %v6819_v18, %v9981_v33  ;;  %v6931_v11 = vrot.slane %v6819_v18, %v9991_v53  ;;  %v6937_v24 = vrot.slane %v6819_v18, %v9995_v38  ;;  %v8607_v10 = vmov 1935823168  }
 0x4d0   : > { %8252 = vmatprep.subr.bf16.mxu0 %v8503_v62  ;;  %v7051_v60 = vld [vmem:[#allocation14 + $0x2] sm:$0x3]  ;;  %v7063_v0 = vunpack.c.l.s4 %v8607_v10  ;;  %vm7098_vm10 = vsmask.f32 5396 }
 0x4d2   : > { %6601 = vrot.lane.b32.xlu1 %v6600_v6, %s10959_s15  ;;  %6570 = vrot.lane.b32.xlu0 %v6569_v56, %s8605_s12  ;;  %v7054_v30 = vld [vmem:[#allocation14 + $0x4] sm:$0x3]  ;;  %v8157_v35 = vld.sshfl [vmem:[#allocation14] sm:$0x11 pattern:$0x75316420] }
 0x4d3   : > { %8253 = vmatpush3.bf16.msra.mxu0 %v8504_v27  ;;  %v7082_v62 = vcombine.high %v8157_v35, %v8157_v35  ;;  %v7064_v27 = vunpack.c.0.s8 %v7063_v0  ;;  %s8611_s12 = smov [#allocation18]  }
 0x4d4   : > { %v6800_v36 = vld [vmem:[#allocation11 + $0x8] sm:$0xff]  ;;  %8254 = vmatprep.subr.bf16.mxu0 %v8505_v42  ;;  %s8530_s15 = sshll.u32 %s8611_s12, 4  ;;  %s8531_s15 = int_to_ptr.vmem [resolvable:$false] %s8530_s15 }
 0x4d5   : > { %8156 = vmatprep.mubr.msk.bf16.mxu1 %vm5941_vm5, %v6800_v36  ;;  %vm6722_vm5 = vcmask 1048448   ;;  %v8172_v45 = vld.sshfl [vmem:[#allocation14 + $0x6] sm:$0x11 pattern:$0x75316420]  ;;  %v7110_v18 = vshll.u32 %v7082_v62, 16 }
 0x4d6   : > { %6719 = vrot.lane.b32.xlu0 %v6718_v37, %s8606_s16  ;;  %v7301_v42 = vcombine.high %v8172_v45, %v8172_v45  ;;  %s377_s16 = sand.u32 1, %s8580_s18  }
 0x4d7   : > { %8255 = vmatpush3.bf16.msra.mxu0 %v8506_v54  ;;  %v8161_v54 = vld.sshfl [vmem:[#allocation14] sm:$0x10 pattern:$0x75316420]  ;;  %s378_s1 = scalar_lea.vmem [#allocation18], %s377_s16 }
 0x4d8   : > { %8256 = vmatprep.subr.bf16.mxu0 %v8507_v17  ;;  %s7758_s30 = sshll.u32 %s378_s1, 4  ;;  %s10886_s30 = int_to_ptr.vmem [resolvable:$true] %s7758_s30 }
 0x4d9   : > { %s8526_s25 = scalar_lea.vmem %s10886_s30, 16  ;;  %p8533_p0 = scmp.lt.s32.totalorder %s10886_s30, %s8531_s15 }
 0x4da   : > { %p8527_p11 = scmp.ne.s32.totalorder %s10886_s30, %s8526_s25 }
 0x4db   : > { %8257 = vmatpush3.bf16.msra.mxu0 %v8508_v15  ;;  %v7105_v15 = vshrl.u32 %v8157_v35, 16 }
 0x4dc   : > { %p8528_p12 = pnand %p8527_p11, %p8710_p5 }
 0x4de   : > { %p8529_p13 = pneg %p8528_p12 }
 0x531   : > { %v6375_v39 = vpop.permute.xlu0 %6374 }
 0x53b   : > { %v6345_v51 = vpop.permute.xlu1 %6344 }
 0x540   : > { %v6493_v4 = vpop.permute.xlu1 %6492  ;;  %v6260_v13 = vpop.permute.xlu0 %6259 }
 0x541   : > { %6263 = vst.msk [vmem:[#allocation11] sm:$0xff] %vm6262_vm2, %v6260_v13  ;;  %vm6940_vm2 = vcmask 261120  }
 0x542   : > { %6348 = vst.msk [vmem:[#allocation11] sm:$0xff] %vm6347_vm15, %v6345_v51  ;;  %vm7091_vm15 = vsmask.f32 1284 }
 0x543   : > { %6378 = vst.msk [vmem:[#allocation11] sm:$0xff] %vm6377_vm6, %v6375_v39  ;;  %vm11049_vm6 = vmmov %vm11044_vm14  ;;  %vm11052_vm14 = vsmask.f32 4368 }
 0x544   : > { %v6602_v61 = vpop.permute.xlu1 %6601  ;;  %v6571_v19 = vpop.permute.xlu0 %6570  ;;  %6496 = vst.msk [vmem:[#allocation11] sm:$0xff] %vm6495_vm3, %v6493_v4  ;;  %vm7092_vm3 = vmor %vm11049_vm6, %vm7091_vm15  ;;  %vm7102_vm6 = vsmask.f32 7452 }
 0x545   : > { %6574 = vst.msk [vmem:[#allocation11] sm:$0xff] %vm6573_vm1, %v6571_v19  ;;  %vm7093_vm1 = vsmask.f32 2312 }
 0x546   : > { %6605 = vst.msk [vmem:[#allocation11] sm:$0xff] %vm6604_vm7, %v6602_v61  ;;  %vm7049_vm7 = vsmask.f32 1282 }
 0x547   : > { %vm10778_vm12 = vmand %vm6969_vm8, %vm7049_vm7  ;;  %vm7133_vm7 = vcmask 517376  }
 0x548   : > { %v6720_v23 = vpop.permute.xlu0 %6719 }
 0x549   : > { %6723 = vst.msk [vmem:[#allocation11] sm:$0xff] %vm6722_vm5, %v6720_v23  ;;  %vm7094_vm5 = vmor %vm7092_vm3, %vm7093_vm1  ;;  %vm8609_vm1 = vmmov 0  }
 0x54a   : > { %vm7096_vm13 = vmor %vm7094_vm5, %vm7095_vm9  ;;  %vm7166_vm5 = vcmask 779776   ;;  %vm7183_vm9 = vcmask 1042176  }
 0x54b   : > { %vm7097_vm11 = vmor %vm7096_vm13, %vm11052_vm14  ;;  %vm7699_vm13 = vcmask 523264   ;;  %vm7743_vm14 = vcmask 8192  }
 0x550   : > { %v6799_v21 = vld [vmem:[#allocation11] sm:$0xff] }
 0x551   : > { %6914 = vmatmul.mubr.bf16.vlgmr.msra.gmra.mrb[8].mxu1 %v6799_v21 }
 0x624   : > { %v6915_v22 = vpop.f32.mrb[8].mxu1 }
 0x625   : > { %v6916_v25 = vadd.f32 %v6915_v22, %v6823_v41  ;;  %v6917_v1 = vpop.f32.mrb[9].mxu1  ;;  %v10792_v22 = vsub.s32 %v7064_v27, %v9973_v12 }
 0x626   : > { %v6918_v26 = vpop.f32.mrb[10].mxu1  ;;  %v8510_v1 = vld [vmem:[%s10933_s7 + $0x30] sm:$0xff]  }
 0x627   : > { %vm6922_vm4 = vcmp.ge.f32.partialorder %v6916_v25, 0.0  ;;  %v6924_v59 = vmul.f32 0.01, %v6916_v25  ;;  %v6919_v31 = vadd.f32 %v6918_v26, %v6823_v41  ;;  %v6920_v32 = vpop.f32.mrb[11].mxu1  ;;  %v7057_v41 = vld [vmem:[#allocation14] sm:$0x1] }
 0x628   : > { %v7317_v32 = vshll.u32 %v7301_v42, 16 }
 0x629   : > { %v6926_v46 = vsel %vm6922_vm4, %v6916_v25, %v6924_v59  ;;  %vm6923_vm0 = vcmp.ge.f32.partialorder %v6919_v31, 0.0  ;;  %v6925_v8 = vmul.f32 0.01, %v6919_v31  ;;  %vm7099_vm4 = vmor %vm7097_vm11, %vm7098_vm10  ;;  %v8509_v25 = vld [vmem:[%s10933_s7 + $0x70] sm:$0xff]   ;;  %v7267_v59 = vld [vmem:[#allocation14 + $0x6] sm:$0x1] }
 0x62a   : > { %v6932_v2 = vmul.f32 %v6931_v11, %v6926_v46  ;;  %8258 = vmatprep.subr.bf16.mxu0 %v8509_v25  ;;  %v8516_v25 = vld [vmem:[%s10935_s9] sm:$0xff]  }
 0x62b   : > { %v6927_v34 = vsel %vm6923_vm0, %v6919_v31, %v6925_v8  ;;  %vm7100_vm0 = vsmask.f32 6424  ;;  %v7312_v31 = vshrl.u32 %v8172_v45, 16  ;;  %8259 = vmatpush3.bf16.msra.mxu0 %v8510_v1  ;;  %v8517_v1 = vld [vmem:[%s10935_s9 + $0x8] sm:$0xff]  }
 0x62c   : > { %v6938_v43 = vadd.f32 %v6937_v24, %v6932_v2  ;;  %v6933_v6 = vmul.f32 %v6931_v11, %v6927_v34  ;;  %vm10787_vm15 = vmor %vm7099_vm4, %vm7100_vm0  ;;  %v8176_v11 = vld.sshfl [vmem:[#allocation14 + $0x6] sm:$0x10 pattern:$0x75316420] }
 0x62d   : > { %vm10802_vm3 = vmor %vm10787_vm15, %vm7102_vm6 }
 0x62e   : > { %6941 = vst.msk [vmem:[#allocation12] sm:$0xff] %vm6940_vm2, %v6938_v43  ;;  %v6939_v56 = vadd.f32 %v6937_v24, %v6933_v6 }
 0x630   : > { %6942 = vst.msk [vmem:[#allocation12 + $0x8] sm:$0xff] %vm6940_vm2, %v6939_v56 }
 0x637   : > { %v6943_v40 = vld [vmem:[#allocation12] ss:$2 sm:$0xff]  ;;  %v6945_v36 = vld [vmem:[#allocation12 + $0x1] ss:$2 sm:$0xff] }
 0x638   : > { %v6946_v37 = vmax.f32 %v6943_v40, %v6945_v36  ;;  %v8511_v40 = vld [vmem:[%s10933_s7 + $0x78] sm:$0xff]  }
 0x639   : > { %8260 = vmatprep.subr.bf16.mxu0 %v8511_v40 }
 0x63a   : > { %v6948_v51 = vcombine.high %v6946_v37, %v6946_v37  ;;  %v6955_v39 = vrot.slane %v6946_v37, %v10610_v9 }
 0x63c   : > { %v6962_v4 = vrot.slane %v6948_v51, %v10610_v9  ;;  %v6963_v13 = vcombine.high %v6955_v39, %v6955_v39  ;;  %6970 = vst.msk [vmem:[#allocation13] sm:$0x3] %vm6969_vm8, %v6955_v39  ;;  %v8512_v39 = vld [vmem:[%s10933_s7 + $0x38] sm:$0xff]  }
 0x63d   : > { %8261 = vmatpush3.bf16.msra.mxu0 %v8512_v39 }
 0x63e   : > { %v6964_v61 = vcombine.high %v6962_v4, %v6962_v4  ;;  %6971 = vst.msk [vmem:[#allocation13 + $0x2] sm:$0x3] %vm6969_vm8, %v6963_v13  ;;  %6972 = vst.msk [vmem:[#allocation13 + $0x4] sm:$0x3] %vm6969_vm8, %v6962_v4  ;;  %v7112_v13 = vsel %vm10802_vm3, %v7105_v15, %v7110_v18 }
 0x640   : > { %6973 = vst.msk [vmem:[#allocation13 + $0x6] sm:$0x3] %vm6969_vm8, %v6964_v61 }
 0x643   : > { %v6974_v19 = vld [vmem:[#allocation13] sm:$0x3] }
 0x645   : > { %v6977_v23 = vld [vmem:[#allocation13 + $0x2] sm:$0x3]  ;;  %v6975_v47 = vld [vmem:[#allocation13 + $0x4] sm:$0x3] }
 0x646   : > { %v6979_v21 = vmax.f32 %v6974_v19, %v6977_v23 }
 0x647   : > { %v6978_v49 = vld [vmem:[#allocation13 + $0x6] sm:$0x3] }
 0x648   : > { %v7013_v50 = vpack.c.bf16 %v6979_v21, %v6979_v21  ;;  %v6980_v48 = vmax.f32 %v6975_v47, %v6978_v49  ;;  %v8608_v21 = vmov 0.0   ;;  %v8513_v47 = vld [vmem:[%s10933_s7 + $0x80] sm:$0xff]  }
 0x649   : > { %8332 = vmatprep.subr.bf16.mxu1 %v8608_v21  ;;  %8336 = vmatprep.mubr.msk.bf16.mxu1 %vm8609_vm1, %v8608_v21 }
 0x64a   : > { %v7023_v44 = vrot.slane %v7013_v50, %v10610_v9  ;;  %v7014_v55 = vpack.c.bf16 %v6980_v48, %v6980_v48  ;;  %8333 = vmatpush3.bf16.msra.mxu1 %v8513_v47 }
 0x64b   : > { %8334 = vmatprep.subr.bf16.mxu1 %v8608_v21 }
 0x64c   : > { %v7032_v3 = vshrl.u32 %v7023_v44, 16  ;;  %v7030_v16 = vrot.slane %v7014_v55, %v10610_v9  ;;  %v7035_v57 = vshll.u32 %v7023_v44, 16 }
 0x64e   : > { %v7034_v20 = vrot.slane %v7032_v3, 7  ;;  %v7039_v63 = vshrl.u32 %v7030_v16, 16  ;;  %v7042_v28 = vshll.u32 %v7030_v16, 16  ;;  %v7319_v3 = vsel %vm10802_vm3, %v7312_v31, %v7317_v32  ;;  %v8514_v16 = vld [vmem:[%s10933_s7 + $0x88] sm:$0xff]  }
 0x64f   : > { %8335 = vmatpush3.bf16.msra.mxu1 %v8514_v16 }
 0x650   : > { %v7037_v7 = vor.u32 %v7035_v57, %v7034_v20  ;;  %v7041_v5 = vrot.slane %v7039_v63, 7  ;;  %8340 = vmatprep.subr.bf16.mxu1 %v8608_v21 }
 0x652   : > { %v7052_v52 = vsel %vm10778_vm12, %v7037_v7, %v7051_v60  ;;  %v7044_v29 = vor.u32 %v7042_v28, %v7041_v5 }
 0x653   : > { %7053 = vst [vmem:[#allocation14 + $0x2] sm:$0x3] %v7052_v52 }
 0x654   : > { %v7055_v14 = vsel %vm10778_vm12, %v7044_v29, %v7054_v30  ;;  %vm7658_vm12 = vcmask 516096  }
 0x655   : > { %7056 = vst [vmem:[#allocation14 + $0x4] sm:$0x3] %v7055_v14 }
 0x65a   : > { %v8162_v26 = vld.sshfl [vmem:[#allocation14 + $0x2] sm:$0x10 pattern:$0x75316420]  ;;  %v7058_v2 = vld [vmem:[#allocation14 + $0x2] sm:$0x1] }
 0x65b   : > { %v8163_v24 = vcombine.high %v8161_v54, %v8162_v26  ;;  %v8158_v46 = vld.sshfl [vmem:[#allocation14 + $0x2] sm:$0x11 pattern:$0x75316420]  ;;  %v7061_v56 = vcombine.low %v7057_v41, %v7058_v2 }
 0x65c   : > { %v8169_v34 = vld.sshfl [vmem:[#allocation14 + $0x4] sm:$0x10 pattern:$0x75316420]  ;;  %v7090_v43 = vcombine.high %v8158_v46, %v8158_v46  ;;  %v7114_v6 = vshrl.u32 %v8158_v46, 16 }
 0x65d   : > { %v7162_v36 = vrot.slane %v8163_v24, %v10792_v22  ;;  %v8170_v37 = vcombine.high %v8162_v26, %v8169_v34  ;;  %v7266_v51 = vld [vmem:[#allocation14 + $0x4] sm:$0x1]  ;;  %v8177_v4 = vcombine.high %v8169_v34, %v8176_v11  ;;  %v7068_v23 = vrot.slane %v7061_v56, %v10792_v22  ;;  %v7168_v60 = vld [vmem:[#allocation14 + $0x2] sm:$0x1]  ;;  %v8519_v11 = vld [vmem:[%s10935_s9 + $0x18] sm:$0xff]  }
 0x65e   : > { %v7119_v61 = vshll.u32 %v7090_v43, 16  ;;  %v8171_v19 = vld.sshfl [vmem:[#allocation14 + $0x4] sm:$0x11 pattern:$0x75316420]  ;;  %v7270_v50 = vcombine.low %v7266_v51, %v7267_v59 }
 0x65f   : > { %7163 = vrot.lane.b32.xlu1 %v7162_v36, %s11017_s14  ;;  %v7260_v49 = vrot.slane %v8170_v37, %v10792_v22  ;;  %v7293_v48 = vcombine.high %v8171_v19, %v8171_v19  ;;  %v7169_v55 = vld [vmem:[#allocation14 + $0x4] sm:$0x1]  ;;  %7070 = vst.msk [vmem:[#allocation15] sm:$0x3] %vm6969_vm8, %v7068_v23  ;;  %v7303_v57 = vshrl.u32 %v8171_v19, 16  ;;  %v7359_v63 = vrot.slane %v8177_v4, %v10792_v22 }
 0x660   : > { %v7121_v44 = vsel %vm10802_vm3, %v7114_v6, %v7119_v61  ;;  %v7277_v5 = vrot.slane %v7270_v50, %v10792_v22  ;;  %v7172_v28 = vcombine.low %v7168_v60, %v7169_v55  ;;  %v7399_v26 = vld [vmem:[%s10934_s8] sm:$0x7]  ;;  %v8610_v61 = vmov 1966171168  }
 0x661   : > { %7261 = vrot.lane.b32.xlu0 %v7260_v49, %s10979_s29  ;;  %v7122_v20 = vcombine.low %v7112_v13, %v7121_v44  ;;  %v7308_v58 = vshll.u32 %v7293_v48, 16  ;;  %7361 = vst.msk [vmem:[#allocation15 + $0x4] sm:$0x3] %vm6969_vm8, %v7359_v63  ;;  %v7403_v24 = vrot.slane %v7399_v26, %v9981_v33  ;;  %v7620_v36 = vrot.slane %v7399_v26, %v9991_v53 }
 0x662   : > { %v7179_v52 = vrot.slane %v7172_v28, %v10792_v22  ;;  %v7625_v51 = vrot.slane %v7399_v26, %v9995_v38  ;;  %v7635_v33 = vunpack.c.l.s4 %v8610_v61 }
 0x663   : > { %v7129_v7 = vrot.slane %v7122_v20, %v10792_v22  ;;  %v7310_v10 = vsel %vm10802_vm3, %v7303_v57, %v7308_v58 }
 0x664   : > { %v7320_v0 = vcombine.low %v7310_v10, %v7319_v3  ;;  %v7223_v30 = vcombine.low %v7121_v44, %v7310_v10  ;;  %v7636_v19 = vunpack.c.0.s8 %v7635_v33 }
 0x665   : > { %7130 = vrot.lane.b32.xlu1 %v7129_v7, %s10979_s29  ;;  %7278 = vrot.lane.b32.xlu0 %v7277_v5, %s11017_s14  ;;  %s8202_s14 = sshll.u32 %s8693_s21, 4  ;;  %s7746_s21 = scalar_lea.sflag [#allocation19], %s377_s16 }
 0x666   : > { %v7230_v35 = vrot.slane %v7223_v30, %v10792_v22  ;;  %v7327_v29 = vrot.slane %v7320_v0, %v10792_v22  ;;  %v7639_v23 = vsub.s32 %v7636_v19, %v9973_v12  ;;  %v7674_v12 = vld [vmem:[%s10936_s10] sm:$0x1]  ;;  %s10884_s22 = scalar_lea.hbm %s10937_s11, %s8202_s14 }
 0x668   : > { %7232 = vst.msk [vmem:[#allocation15 + $0x2] sm:$0x3] %vm6969_vm8, %v7230_v35 }
 0x669   : > { %7180 = vrot.lane.b32.xlu1 %v7179_v52, %s11057_s0  ;;  %7328 = vrot.lane.b32.xlu0 %v7327_v29, %s11057_s0  ;;  %s8532_s0 = scalar_lea.vmem %s8531_s15, 32 }
 0x66a   : > { %p8534_p1 = scmp.lt.s32.totalorder %s8532_s0, %s8526_s25 }
 0x66c   : > { %p8535_p2 = por %p8534_p1, %p8533_p0 }
 0x66e   : > { %p8536_p3 = pnand %p8535_p2, %p8529_p13 }
 0x6d1   : > { %v7164_v45 = vpop.permute.xlu1 %7163 }
 0x6d3   : > { %v7262_v14 = vpop.permute.xlu0 %7261 }
 0x6d4   : > { %7264 = vst.msk [vmem:[#allocation15 + $0x2] sm:$0x3] %vm7133_vm7, %v7262_v14 }
 0x6d7   : > { %v7131_v62 = vpop.permute.xlu1 %7130  ;;  %v7279_v27 = vpop.permute.xlu0 %7278 }
 0x6d8   : > { %7134 = vst.msk [vmem:[#allocation15] sm:$0x3] %vm7133_vm7, %v7131_v62 }
 0x6d9   : > { %7281 = vst.msk [vmem:[#allocation15 + $0x2] sm:$0x3] %vm7166_vm5, %v7279_v27  ;;  %7167 = vst.msk [vmem:[#allocation15] sm:$0x3] %vm7166_vm5, %v7164_v45 }
 0x6db   : > { %v7181_v42 = vpop.permute.xlu1 %7180  ;;  %v7329_v54 = vpop.permute.xlu0 %7328 }
 0x6dc   : > { %7184 = vst.msk [vmem:[#allocation15] sm:$0x3] %vm7183_vm9, %v7181_v42  ;;  %7331 = vst.msk [vmem:[#allocation15 + $0x2] sm:$0x3] %vm7183_vm9, %v7329_v54 }
 0x6e3   : > { %v7362_v17 = vld [vmem:[#allocation15] sm:$0x3f] }
 0x6e4   : > { %v7405_v15 = vcombine.high %v7362_v17, %v7362_v17  ;;  %v7412_v18 = vrot.slane %v7362_v17, %v10610_v9 }
 0x6e6   : > { %v7419_v41 = vrot.slane %v7405_v15, %v10610_v9  ;;  %v7420_v22 = vcombine.high %v7412_v18, %v7412_v18  ;;  %v8518_v9 = vld [vmem:[%s10935_s9 + $0x10] sm:$0xff]  }
 0x6e8   : > { %7566 = vmatprep.mubr.bf16.mxu0 %v7420_v22  ;;  %8337 = vmatmul.mubr.msk.bf16.vlgmr.msra.gmra.mrb[12].mxu1 %vm6940_vm2, %v7419_v41  ;;  %vm7627_vm2 = vcmask 519168  }
 0x6e9   : > { %7567 = vmatmul.mubr.bf16.vlgmr.msra.gmra.mrb[32].mxu0 %v7412_v18  ;;  %8348 = vmatprep.mubr.msk.bf16.mxu1 %vm8609_vm1, %v8608_v21 }
 0x6ea   : > { %8341 = vmatpush3.bf16.msra.mxu1 %v8516_v25 }
 0x6eb   : > { %8342 = vmatprep.subr.bf16.mxu1 %v8608_v21 }
 0x6ee   : > { %8343 = vmatpush3.bf16.msra.mxu1 %v8517_v1 }
 0x6ef   : > { %8344 = vmatprep.subr.bf16.mxu1 %v8608_v21 }
 0x6f2   : > { %8345 = vmatpush3.bf16.msra.mxu1 %v8518_v9 }
 0x6f3   : > { %8346 = vmatprep.subr.bf16.mxu1 %v8608_v21 }
 0x6f6   : > { %8347 = vmatpush3.bf16.msra.mxu1 %v8519_v11 }
 0x7bb   : > { %v7608_v59 = vpop.f32.mrb[12].mxu1 }
 0x7bc   : > { %v8262_v31 = vpop.f32.mrb[32].mxu0  ;;  %v8338_v32 = vpop.f32.mrb[13].mxu1 }
 0x7bd   : > { %v8263_v46 = vpop.f32.mrb[33].mxu0  ;;  %v7611_v8 = vpop.f32.mrb[14].mxu1 }
 0x7be   : > { %v8264_v2 = vadd.f32 %v8263_v46, %v8262_v31  ;;  %v8265_v34 = vpop.f32.mrb[34].mxu0  ;;  %v8339_v43 = vpop.f32.mrb[15].mxu1 }
 0x7bf   : > { %v8266_v6 = vpop.f32.mrb[35].mxu0 }
 0x7c0   : > { %v7569_v56 = vadd.f32 %v8264_v2, %v7403_v24 }
 0x7c2   : > { %v7609_v40 = vadd.f32 %v7608_v59, %v7569_v56 }
 0x7c4   : > { %vm7614_vm8 = vcmp.ge.f32.partialorder %v7609_v40, 0.0  ;;  %v7615_v37 = vmul.f32 0.01, %v7609_v40 }
 0x7c6   : > { %v7616_v39 = vsel %vm7614_vm8, %v7609_v40, %v7615_v37 }
 0x7c7   : > { %v7621_v4 = vmul.f32 %v7620_v36, %v7616_v39 }
 0x7c9   : > { %v7626_v13 = vadd.f32 %v7625_v51, %v7621_v4 }
 0x7cb   : > { %7628 = vst.msk [vmem:[#allocation16] sm:$0xf] %vm7627_vm2, %v7626_v13 }
 0x7d2   : > { %v7629_v21 = vld [vmem:[#allocation16] ss:$2 sm:$0x3]  ;;  %v7631_v47 = vld [vmem:[#allocation16 + $0x1] ss:$2 sm:$0x3] }
 0x7d3   : > { %v7632_v49 = vmax.f32 %v7629_v21, %v7631_v47 }
 0x7d5   : > { %v7640_v53 = vrot.slane %v7632_v49, %v7639_v23 }
 0x7d7   : > { %v7641_v50 = vcombine.high %v7640_v53, %v7640_v53  ;;  %v7648_v48 = vrot.slane %v7640_v53, %v7639_v23 }
 0x7d9   : > { %v7655_v38 = vrot.slane %v7641_v50, %v7639_v23  ;;  %7659 = vst.msk [vmem:[#allocation17] sm:$0x1] %vm7658_vm12, %v7648_v48 }
 0x7db   : > { %7660 = vst.msk [vmem:[#allocation17 + $0x1] sm:$0x1] %vm7658_vm12, %v7655_v38 }
 0x7e0   : > { %v7661_v44 = vld [vmem:[#allocation17] sm:$0x1] }
 0x7e2   : > { %v7663_v55 = vld [vmem:[#allocation17 + $0x1] sm:$0x1] }
 0x7e3   : > { %v7664_v3 = vmax.f32 %v7661_v44, %v7663_v55 }
 0x7e5   : > { %v7665_v16 = vpack.c.bf16 %v7664_v3, %v7664_v3 }
 0x7e7   : > { %8349 = vmatmul.mubr.msk.bf16.vlgmr.msra.gmra.mrb[16].mxu1 %vm7699_vm13, %v7665_v16 }
 0x8ba   : > { %v7737_v20 = vpop.f32.mrb[16].mxu1 }
 0x8bb   : > { %v7738_v57 = vadd.f32 %v7737_v20, %v7674_v12  ;;  %v8350_v58 = vpop.f32.mrb[17].mxu1 }
 0x8bc   : > { %v7740_v63 = vpop.f32.mrb[18].mxu1 }
 0x8bd   : > { %v8351_v60 = vpop.f32.mrb[19].mxu1  ;;  %7744 = vst.msk [vmem:[%s378_s1] sm:$0x1] %vm7743_vm14, %v7738_v57 }
 0x8be   : > { %8539 = shalt.err (!%p8536_p3)
}
 0x8bf   : > { %s8540_s16 = scalar_lea.hbm %s10884_s22, 16  ;;  %s8544_s1 = scalar_lea.hbm %s10937_s11, 32 }
 0x8c0   : > { %p8541_p4 = scmp.ne.s32.totalorder %s10884_s22, %s8540_s16  ;;  %p8545_p9 = scmp.lt.u32.totalorder %s10884_s22, %s10937_s11 }
 0x8c1   : > { %p8546_p10 = scmp.lt.u32.totalorder %s8544_s1, %s8540_s16  ;;  %p8548_p12 = scmp.lt.u32.totalorder %s8540_s16, %s10884_s22 }
 0x8c2   : > { %p8542_p7 = pnand %p8541_p4, %p8710_p5 }
 0x8c3   : > { %p8547_p11 = por %p8546_p10, %p8545_p9 }
 0x8c4   : > { %p8543_p8 = pneg %p8542_p7 }
 0x8c5   : > { %p8549_p13 = por %p8548_p12, %p8547_p11 }
 0x8c7   : > { %p8550_p0 = pnand %p8549_p13, %p8543_p8 }
 0x8c9   : > { %8553 = shalt.err (!%p8550_p0)
}
 0x8ca   : > { %8354 = dma.vmem_to_hbm [thread:$0]  (%p8710_p5), %s10886_s30, 16, %s10884_s22, %s7746_s21  }
 0x8cb PF: > { %p8360_p1 = scmp.ge.s32.totalorder %s8588_s20, 2  ;;  %s7770_s25 = sand.u32 1, %s8576_s17  }
 0x8cc   : > { %s7771_s12 = scalar_lea.sflag [#allocation19], %s7770_s25 }
 0x8cd   : > { %p8357_p2 = pnand %p8360_p1, %p8714_p6 }
 0x8cf   : > { %8571 = dma.done.wait (!%p8357_p2), %s7771_s12, 16  }
 0x8d0   : > { %8573 = vsyncadd (!%p8357_p2), %s7771_s12, 4294967280  ;;  %p21_p3 = scmp.ge.s32.totalorder %s8697_s23, 4   ;;  %s11058_s17 = smov %s8580_s18 }
 0x8d1   : > { %s11059_s18 = smov %s8584_s19  ;;  %s11060_s19 = smov %s8708_s26 }
 0x8d2   : > { %s11061_s20 = smov %s8697_s23  ;;  %23 = sbr.rel (!%p21_p3) target bundleno = 6 (0x6), region = 155 }
 0x8d9   :  { %7775 = vsyncpa [#allocation19], 1 }
 0x8da   :  { %7777 = vsyncpa [#allocation19 + $0x1], 1 }

</bundles_post_ra>
